<compile_context>
chip_gen: v5e
topology: v5e:2x2
jax: 0.10.0
libtpu: 0.0.40
codegen_flags: <defaults>
</compile_context>

<pallas_src>
import jax
import jax.numpy as jnp
from jax.experimental import pallas as pl
from jax.experimental.pallas import tpu as pltpu

VOCAB = 65           # vocab_size = len(chars)
VOCAB_PAD = 128      # lane-dense LM-head output (sliced back to VOCAB outside)
N_EMBD = 128         # n_embd
N_HEAD = 4           # n_head
HEAD = N_EMBD // N_HEAD
N_LAYER = 2          # n_layer
BLOCK = 16           # block_size (sequence length for the demo)
B_BLK = 8            # batch elements folded into one grid step (M = 8*16 = 128)
LN_EPS = 1e-5        # torch.nn.LayerNorm default


# ---------------- fused forward kernel ----------------
# grid = (batch_blocks, N_LAYER); one transformer layer per inner grid step.

def _gpt_forward_kernel(x_ref, wqkv_ref, wo_ref, bo_ref,
                        ln1g_ref, ln1b_ref, ln2g_ref, ln2b_ref,
                        w1_ref, w2_ref, lnfg_ref, lnfb_ref,
                        lmw_ref, lmb_ref, o_ref, xres_ref, att_ref):
    f32, bf16 = jnp.float32, jnp.bfloat16
    l = pl.program_id(1)                         # layer index (inner grid axis)
    T, C = BLOCK, N_EMBD
    scale = HEAD ** -0.5

    def layer_norm(v, g, b):
        # two independent cross-lane reductions; var = E[x^2] - mu^2
        mu = jnp.mean(v, axis=-1, keepdims=True)
        mu2 = jnp.mean(v * v, axis=-1, keepdims=True)
        var = mu2 - mu * mu
        return (v - mu) * jax.lax.rsqrt(var + LN_EPS) * g + b

    @pl.when(l == 0)
    def _():                                     # residual stream <- embeddings
        xres_ref[...] = x_ref[...]

    x = xres_ref[...]                            # (M, C) f32 residual stream

    # ---- multi-head self-attention (pre-LN) ----
    h = layer_norm(x, ln1g_ref[...], ln1b_ref[...])
    qkv = jnp.dot(h.astype(bf16), wqkv_ref[...],
                  preferred_element_type=f32)    # (M, 3C), one fused matmul

    row = jax.lax.broadcasted_iota(jnp.int32, (T, T), 0)
    col = jax.lax.broadcasted_iota(jnp.int32, (T, T), 1)
    causal = col <= row                          # tril mask, built once

    dn = (((1,), (1,)), ((), ()))                # q @ k^T without materializing k.T
    for b in range(B_BLK):                       # per-batch attention inside slab
        r0 = b * T
        for hh in range(N_HEAD):                 # heads split by lane slice
            lo = hh * HEAD
            q = qkv[r0:r0 + T, lo:lo + HEAD].astype(bf16)
            k = qkv[r0:r0 + T, C + lo:C + lo + HEAD].astype(bf16)
            v = qkv[r0:r0 + T, 2 * C + lo:2 * C + lo + HEAD].astype(bf16)
            s = jax.lax.dot_general(q, k, dn, preferred_element_type=f32) * scale
            s = jnp.where(causal, s, -1e30)      # causal mask
            m = jnp.max(s, axis=-1, keepdims=True)
            p = jnp.exp(s - m)
            p = p * pl.reciprocal(jnp.sum(p, axis=-1, keepdims=True),
                                  approx=True)   # softmax (EUP recip)
            # write-through to scratch: bounds per-head live ranges, no concat
            att_ref[r0:r0 + T, lo:lo + HEAD] = jnp.dot(
                p.astype(bf16), v, preferred_element_type=f32)

    proj = jnp.dot(att_ref[...].astype(bf16), wo_ref[...],
                   preferred_element_type=f32) + bo_ref[...]
    x = x + proj                                 # residual (stays in VMEM/regs)

    # ---- feed-forward (pre-LN); Dropout = identity ----
    h = layer_norm(x, ln2g_ref[...], ln2b_ref[...])
    h = jnp.dot(h.astype(bf16), w1_ref[...], preferred_element_type=f32)
    h = jnp.maximum(h, 0.0)                      # ReLU in f32
    h = jnp.dot(h.astype(bf16), w2_ref[...], preferred_element_type=f32)
    x = x + h                                    # residual

    xres_ref[...] = x                            # carry to the next layer step

    @pl.when(l == N_LAYER - 1)
    def _():                                     # final LN + LM head, last layer only
        xf = layer_norm(x, lnfg_ref[...], lnfb_ref[...])
        o_ref[...] = (jnp.dot(xf.astype(bf16), lmw_ref[...],
                              preferred_element_type=f32)
                      + lmb_ref[...])            # lane-dense (M, 128) store


# ---------------- wrapper ----------------

def gpt_forward(params, idx):
    B, T = idx.shape
    assert T == BLOCK and B % B_BLK == 0, "demo wrapper expects T=BLOCK, B % B_BLK == 0"
    C = N_EMBD
    M = B_BLK * T
    n_bb = B // B_BLK

    # embedding gather + positional add stay in plain JAX (tiny glue);
    # batch folded into the matmul row dimension here (layout plumbing only)
    tok = jnp.take(params['tok_emb'], idx, axis=0)            # (B, T, C)
    pos = params['pos_emb'][:T]
    x = (tok + pos[None]).astype(jnp.float32).reshape(n_bb, M, C)

    def per_layer(shape):
        # one layer's weight slice per inner grid step (double-buffered DMA
        # overlaps next layer's weights with current-layer compute)
        return pl.BlockSpec((None,) + shape[1:],
                            lambda i, l, _n=len(shape) - 1: (l,) + (0,) * _n)

    def resident(shape):
        # grid-invariant block (final LN / LM head), fetched once
        return pl.BlockSpec(shape, lambda i, l, _n=len(shape): (0,) * _n)

    logits_pad = pl.pallas_call(
        _gpt_forward_kernel,
        out_shape=jax.ShapeDtypeStruct((n_bb, M, VOCAB_PAD), jnp.float32),
        grid=(n_bb, N_LAYER),
        in_specs=[
            pl.BlockSpec((None, M, C), lambda i, l: (i, 0, 0)),  # x slab (layer-invariant)
            per_layer((N_LAYER, C, 3 * C)),                      # wqkv (bf16)
            per_layer((N_LAYER, C, C)),                          # wo   (bf16)
            per_layer((N_LAYER, 1, C)),                          # bo
            per_layer((N_LAYER, 1, C)),                          # ln1_g
            per_layer((N_LAYER, 1, C)),                          # ln1_b
            per_layer((N_LAYER, 1, C)),                          # ln2_g
            per_layer((N_LAYER, 1, C)),                          # ln2_b
            per_layer((N_LAYER, C, 4 * C)),                      # w1   (bf16)
            per_layer((N_LAYER, 4 * C, C)),                      # w2   (bf16)
            resident((1, C)),                                    # lnf_g
            resident((1, C)),                                    # lnf_b
            resident((C, VOCAB_PAD)),                            # lm_w (bf16, padded)
            resident((1, VOCAB_PAD)),                            # lm_b (padded)
        ],
        out_specs=pl.BlockSpec((None, M, VOCAB_PAD), lambda i, l: (i, 0, 0)),
        scratch_shapes=[pltpu.VMEM((M, C), jnp.float32),         # residual stream
                        pltpu.VMEM((M, C), jnp.float32)],        # per-head attention out
        compiler_params=pltpu.CompilerParams(
            dimension_semantics=("parallel", "arbitrary")),      # batch blocks across TCs
    )(x, params['wqkv'], params['wo'], params['bo'],
      params['ln1_g'], params['ln1_b'], params['ln2_g'], params['ln2_b'],
      params['w1'], params['w2'], params['lnf_g'], params['lnf_b'],
      params['lm_w'], params['lm_b'])

    return logits_pad.reshape(B, T, VOCAB_PAD)[..., :VOCAB]
    # TODO(synk): loss branch (cosine_embedding_loss + cross_entropy mix) and
    # generate() multinomial sampling are host-side / not part of the kernel path.


# ---------------- deterministic parameter init ----------------

def init_params(key):
    def nrm(k, shape, dtype=jnp.float32):
        return (0.02 * jax.random.normal(k, shape, jnp.float32)).astype(dtype)

    ks = jax.random.split(key, 7)
    L, C = N_LAYER, N_EMBD
    lm_w = jnp.pad(nrm(ks[5], (C, VOCAB)), ((0, 0), (0, VOCAB_PAD - VOCAB)))
    return {
        'tok_emb': nrm(ks[0], (VOCAB, C)),
        'pos_emb': nrm(ks[1], (BLOCK, C)),
        # fused per-layer weights, stacked over layers; matmul weights in bf16
        'wqkv': nrm(ks[2], (L, C, 3 * C), jnp.bfloat16),
        'wo':   nrm(ks[3], (L, C, C), jnp.bfloat16),
        'bo':   jnp.zeros((L, 1, C), jnp.float32),
        'ln1_g': jnp.ones((L, 1, C), jnp.float32),
        'ln1_b': jnp.zeros((L, 1, C), jnp.float32),
        'ln2_g': jnp.ones((L, 1, C), jnp.float32),
        'ln2_b': jnp.zeros((L, 1, C), jnp.float32),
        'w1': nrm(ks[4], (L, C, 4 * C), jnp.bfloat16),
        'w2': nrm(ks[6], (L, 4 * C, C), jnp.bfloat16),
        'lnf_g': jnp.ones((1, C), jnp.float32),
        'lnf_b': jnp.zeros((1, C), jnp.float32),
        'lm_w': lm_w.astype(jnp.bfloat16),
        'lm_b': jnp.zeros((1, VOCAB_PAD), jnp.float32),
    }


if __name__ == "__main__":
    key = jax.random.PRNGKey(0)
    pkey, ikey = jax.random.split(key)
    params = init_params(pkey)
    B, T = 2 * B_BLK, BLOCK                 # 16 sequences -> 2 "parallel" grid steps
    idx = jax.random.randint(ikey, (B, T), 0, VOCAB, dtype=jnp.int32)
    logits = gpt_forward(params, idx)
    jax.block_until_ready(logits)
    assert logits.shape == (B, T, VOCAB) and logits.dtype == jnp.float32
    assert bool(jnp.all(jnp.isfinite(logits)))
    print("KERNEL_OK")
</pallas_src>

<mosaic_0001>
module attributes {stable_mosaic.version = 11 : i64} {
  func.func @_gpt_forward_kernel(%arg0: i32, %arg1: i32, %arg2: memref<1x128x128xf32, #tpu.memory_space<vmem>>, %arg3: memref<1x128x384xbf16, #tpu.memory_space<vmem>>, %arg4: memref<1x128x128xbf16, #tpu.memory_space<vmem>>, %arg5: memref<1x1x128xf32, #tpu.memory_space<vmem>>, %arg6: memref<1x1x128xf32, #tpu.memory_space<vmem>>, %arg7: memref<1x1x128xf32, #tpu.memory_space<vmem>>, %arg8: memref<1x1x128xf32, #tpu.memory_space<vmem>>, %arg9: memref<1x1x128xf32, #tpu.memory_space<vmem>>, %arg10: memref<1x128x512xbf16, #tpu.memory_space<vmem>>, %arg11: memref<1x512x128xbf16, #tpu.memory_space<vmem>>, %arg12: memref<1x128xf32, #tpu.memory_space<vmem>>, %arg13: memref<1x128xf32, #tpu.memory_space<vmem>>, %arg14: memref<128x128xbf16, #tpu.memory_space<vmem>>, %arg15: memref<1x128xf32, #tpu.memory_space<vmem>>, %arg16: memref<1x128x128xf32, #tpu.memory_space<vmem>>, %arg17: memref<128x128xf32, #tpu.memory_space<vmem>>, %arg18: memref<128x128xf32, #tpu.memory_space<vmem>>) attributes {dimension_semantics = [#tpu.dimension_semantics<parallel>, #tpu.dimension_semantics<arbitrary>], iteration_bounds = array<i64: 2, 2>, scalar_prefetch = 0 : i64, scratch_operands = 2 : i64, tpu.core_type = #tpu.core_type<tc>, window_params = [{transform_indices = @transform_0, window_bounds = array<i64: 1, 128, 128>}, {transform_indices = @transform_1, window_bounds = array<i64: 1, 128, 384>}, {transform_indices = @transform_2, window_bounds = array<i64: 1, 128, 128>}, {transform_indices = @transform_3, window_bounds = array<i64: 1, 1, 128>}, {transform_indices = @transform_4, window_bounds = array<i64: 1, 1, 128>}, {transform_indices = @transform_5, window_bounds = array<i64: 1, 1, 128>}, {transform_indices = @transform_6, window_bounds = array<i64: 1, 1, 128>}, {transform_indices = @transform_7, window_bounds = array<i64: 1, 1, 128>}, {transform_indices = @transform_8, window_bounds = array<i64: 1, 128, 512>}, {transform_indices = @transform_9, window_bounds = array<i64: 1, 512, 128>}, {pipeline_mode = #tpu.pipeline_mode<synchronous>, transform_indices = @transform_10, window_bounds = array<i64: 1, 128>}, {pipeline_mode = #tpu.pipeline_mode<synchronous>, transform_indices = @transform_11, window_bounds = array<i64: 1, 128>}, {pipeline_mode = #tpu.pipeline_mode<synchronous>, transform_indices = @transform_12, window_bounds = array<i64: 128, 128>}, {pipeline_mode = #tpu.pipeline_mode<synchronous>, transform_indices = @transform_13, window_bounds = array<i64: 1, 128>}, {transform_indices = @transform_14, window_bounds = array<i64: 1, 128, 128>}]} {
    %c0_i32 = arith.constant 0 : i32
    %0 = arith.cmpi eq, %arg1, %c0_i32 : i32
    %1 = arith.extui %0 : i1 to i32
    %c0_i32_0 = arith.constant 0 : i32
    %2 = arith.cmpi ne, %1, %c0_i32_0 : i32
    scf.if %2 {
      %c0_297 = arith.constant 0 : index
      %c0_298 = arith.constant 0 : index
      %c0_299 = arith.constant 0 : index
      %856 = vector.load %arg2[%c0_297, %c0_298, %c0_299] : memref<1x128x128xf32, #tpu.memory_space<vmem>>, vector<1x128x128xf32>
      %857 = vector.shape_cast %856 : vector<1x128x128xf32> to vector<128x128xf32>
      %c0_300 = arith.constant 0 : index
      %c0_301 = arith.constant 0 : index
      %858 = vector.load %arg17[%c0_300, %c0_301] : memref<128x128xf32, #tpu.memory_space<vmem>>, vector<128x128xf32>
      tpu.vector_store %arg17[%c0_300, %c0_301], %857 {strides = array<i32>} : memref<128x128xf32, #tpu.memory_space<vmem>>, vector<128x128xf32>,
    } else {
    }
    %c0 = arith.constant 0 : index
    %c0_1 = arith.constant 0 : index
    %3 = vector.load %arg17[%c0, %c0_1] : memref<128x128xf32, #tpu.memory_space<vmem>>, vector<128x128xf32>
    %c0_2 = arith.constant 0 : index
    %c0_3 = arith.constant 0 : index
    %c0_4 = arith.constant 0 : index
    %4 = vector.load %arg6[%c0_2, %c0_3, %c0_4] : memref<1x1x128xf32, #tpu.memory_space<vmem>>, vector<1x1x128xf32>
    %5 = vector.shape_cast %4 : vector<1x1x128xf32> to vector<1x128xf32>
    %c0_5 = arith.constant 0 : index
    %c0_6 = arith.constant 0 : index
    %c0_7 = arith.constant 0 : index
    %6 = vector.load %arg7[%c0_5, %c0_6, %c0_7] : memref<1x1x128xf32, #tpu.memory_space<vmem>>, vector<1x1x128xf32>
    %7 = vector.shape_cast %6 : vector<1x1x128xf32> to vector<1x128xf32>
    %cst = arith.constant dense<0.000000e+00> : vector<128xf32>
    %8 = vector.multi_reduction <add>, %3, %cst [1] : vector<128x128xf32> to vector<128xf32>
    %9 = vector.shape_cast %8 : vector<128xf32> to vector<128x1xf32>
    %cst_8 = arith.constant 1.280000e+02 : f32
    %10 = vector.broadcast %cst_8 : f32 to vector<128x1xf32>
    %11 = arith.divf %9, %10 : vector<128x1xf32>
    %12 = arith.mulf %3, %3 : vector<128x128xf32>
    %cst_9 = arith.constant dense<0.000000e+00> : vector<128xf32>
    %13 = vector.multi_reduction <add>, %12, %cst_9 [1] : vector<128x128xf32> to vector<128xf32>
    %14 = vector.shape_cast %13 : vector<128xf32> to vector<128x1xf32>
    %cst_10 = arith.constant 1.280000e+02 : f32
    %15 = vector.broadcast %cst_10 : f32 to vector<128x1xf32>
    %16 = arith.divf %14, %15 : vector<128x1xf32>
    %17 = arith.mulf %11, %11 : vector<128x1xf32>
    %18 = arith.subf %16, %17 : vector<128x1xf32>
    %19 = vector.broadcast %11 : vector<128x1xf32> to vector<128x128xf32>
    %20 = arith.subf %3, %19 : vector<128x128xf32>
    %cst_11 = arith.constant 9.99999974E-6 : f32
    %21 = vector.broadcast %cst_11 : f32 to vector<128x1xf32>
    %22 = arith.addf %18, %21 : vector<128x1xf32>
    %23 = math.rsqrt %22 : vector<128x1xf32>
    %24 = vector.broadcast %23 : vector<128x1xf32> to vector<128x128xf32>
    %25 = arith.mulf %20, %24 : vector<128x128xf32>
    %26 = vector.broadcast %5 : vector<1x128xf32> to vector<128x128xf32>
    %27 = arith.mulf %25, %26 : vector<128x128xf32>
    %28 = vector.broadcast %7 : vector<1x128xf32> to vector<128x128xf32>
    %29 = arith.addf %27, %28 : vector<128x128xf32>
    %30 = arith.truncf %29 : vector<128x128xf32> to vector<128x128xbf16>
    %c0_12 = arith.constant 0 : index
    %c0_13 = arith.constant 0 : index
    %c0_14 = arith.constant 0 : index
    %31 = vector.load %arg3[%c0_12, %c0_13, %c0_14] : memref<1x128x384xbf16, #tpu.memory_space<vmem>>, vector<1x128x384xbf16>
    %32 = vector.shape_cast %31 : vector<1x128x384xbf16> to vector<128x384xbf16>
    %cst_15 = arith.constant dense<0.000000e+00> : vector<128x384xf32>
    %33 = tpu.matmul %30, %32, %cst_15 {dimension_numbers = #tpu.dot_dimension_numbers<[1], [0], [0], [1], [0, 0, 1, 1], [], []>} : vector<128x128xbf16>, vector<128x384xbf16>, vector<128x384xf32> -> vector<128x384xf32>
    %34 = tpu.iota {dimensions = array<i32: 0>} : vector<16x16xi32>
    %35 = tpu.iota {dimensions = array<i32: 1>} : vector<16x16xi32>
    %36 = arith.cmpi sle, %35, %34 : vector<16x16xi32>
    %37 = vector.extract_strided_slice %33 {offsets = [0, 0], sizes = [16, 32], strides = [1, 1]} : vector<128x384xf32> to vector<16x32xf32>
    %38 = arith.truncf %37 : vector<16x32xf32> to vector<16x32xbf16>
    %39 = vector.extract_strided_slice %33 {offsets = [0, 128], sizes = [16, 32], strides = [1, 1]} : vector<128x384xf32> to vector<16x32xf32>
    %40 = arith.truncf %39 : vector<16x32xf32> to vector<16x32xbf16>
    %41 = vector.extract_strided_slice %33 {offsets = [0, 256], sizes = [16, 32], strides = [1, 1]} : vector<128x384xf32> to vector<16x32xf32>
    %42 = arith.truncf %41 : vector<16x32xf32> to vector<16x32xbf16>
    %cst_16 = arith.constant dense<0.000000e+00> : vector<16x16xf32>
    %43 = tpu.matmul %38, %40, %cst_16 {dimension_numbers = #tpu.dot_dimension_numbers<[1], [1], [0], [0], [0, 0, 1, 0], [], []>} : vector<16x32xbf16>, vector<16x32xbf16>, vector<16x16xf32> -> vector<16x16xf32>
    %cst_17 = arith.constant 0.176776692 : f32
    %44 = vector.broadcast %cst_17 : f32 to vector<16x16xf32>
    %45 = arith.mulf %43, %44 : vector<16x16xf32>
    %cst_18 = arith.constant -1.000000e+30 : f32
    %46 = vector.broadcast %cst_18 : f32 to vector<16x16xf32>
    %47 = arith.select %36, %45, %46 : vector<16x16xi1>, vector<16x16xf32>
    %cst_19 = arith.constant dense<0xFF800000> : vector<16xf32>
    %48 = vector.multi_reduction <maximumf>, %47, %cst_19 [1] : vector<16x16xf32> to vector<16xf32>
    %49 = vector.shape_cast %48 : vector<16xf32> to vector<16x1xf32>
    %50 = vector.broadcast %49 : vector<16x1xf32> to vector<16x16xf32>
    %51 = arith.subf %47, %50 : vector<16x16xf32>
    %52 = math.exp %51 : vector<16x16xf32>
    %cst_20 = arith.constant dense<0.000000e+00> : vector<16xf32>
    %53 = vector.multi_reduction <add>, %52, %cst_20 [1] : vector<16x16xf32> to vector<16xf32>
    %54 = vector.shape_cast %53 : vector<16xf32> to vector<16x1xf32>
    %55 = tpu.reciprocal %54 {approx = true} : vector<16x1xf32> -> vector<16x1xf32>
    %56 = vector.broadcast %55 : vector<16x1xf32> to vector<16x16xf32>
    %57 = arith.mulf %52, %56 : vector<16x16xf32>
    %58 = arith.truncf %57 : vector<16x16xf32> to vector<16x16xbf16>
    %cst_21 = arith.constant dense<0.000000e+00> : vector<16x32xf32>
    %59 = tpu.matmul %58, %42, %cst_21 {dimension_numbers = #tpu.dot_dimension_numbers<[1], [0], [0], [1], [0, 0, 1, 1], [], []>} : vector<16x16xbf16>, vector<16x32xbf16>, vector<16x32xf32> -> vector<16x32xf32>
    %c0_22 = arith.constant 0 : index
    %c0_23 = arith.constant 0 : index
    %60 = vector.load %arg18[%c0_22, %c0_23] : memref<128x128xf32, #tpu.memory_space<vmem>>, vector<16x32xf32>
    tpu.vector_store %arg18[%c0_22, %c0_23], %59 {strides = array<i32>} : memref<128x128xf32, #tpu.memory_space<vmem>>, vector<16x32xf32>,
    %61 = vector.extract_strided_slice %33 {offsets = [0, 32], sizes = [16, 32], strides = [1, 1]} : vector<128x384xf32> to vector<16x32xf32>
    %62 = arith.truncf %61 : vector<16x32xf32> to vector<16x32xbf16>
    %63 = vector.extract_strided_slice %33 {offsets = [0, 160], sizes = [16, 32], strides = [1, 1]} : vector<128x384xf32> to vector<16x32xf32>
    %64 = arith.truncf %63 : vector<16x32xf32> to vector<16x32xbf16>
    %65 = vector.extract_strided_slice %33 {offsets = [0, 288], sizes = [16, 32], strides = [1, 1]} : vector<128x384xf32> to vector<16x32xf32>
    %66 = arith.truncf %65 : vector<16x32xf32> to vector<16x32xbf16>
    %cst_24 = arith.constant dense<0.000000e+00> : vector<16x16xf32>
    %67 = tpu.matmul %62, %64, %cst_24 {dimension_numbers = #tpu.dot_dimension_numbers<[1], [1], [0], [0], [0, 0, 1, 0], [], []>} : vector<16x32xbf16>, vector<16x32xbf16>, vector<16x16xf32> -> vector<16x16xf32>
    %cst_25 = arith.constant 0.176776692 : f32
    %68 = vector.broadcast %cst_25 : f32 to vector<16x16xf32>
    %69 = arith.mulf %67, %68 : vector<16x16xf32>
    %cst_26 = arith.constant -1.000000e+30 : f32
    %70 = vector.broadcast %cst_26 : f32 to vector<16x16xf32>
    %71 = arith.select %36, %69, %70 : vector<16x16xi1>, vector<16x16xf32>
    %cst_27 = arith.constant dense<0xFF800000> : vector<16xf32>
    %72 = vector.multi_reduction <maximumf>, %71, %cst_27 [1] : vector<16x16xf32> to vector<16xf32>
    %73 = vector.shape_cast %72 : vector<16xf32> to vector<16x1xf32>
    %74 = vector.broadcast %73 : vector<16x1xf32> to vector<16x16xf32>
    %75 = arith.subf %71, %74 : vector<16x16xf32>
    %76 = math.exp %75 : vector<16x16xf32>
    %cst_28 = arith.constant dense<0.000000e+00> : vector<16xf32>
    %77 = vector.multi_reduction <add>, %76, %cst_28 [1] : vector<16x16xf32> to vector<16xf32>
    %78 = vector.shape_cast %77 : vector<16xf32> to vector<16x1xf32>
    %79 = tpu.reciprocal %78 {approx = true} : vector<16x1xf32> -> vector<16x1xf32>
    %80 = vector.broadcast %79 : vector<16x1xf32> to vector<16x16xf32>
    %81 = arith.mulf %76, %80 : vector<16x16xf32>
    %82 = arith.truncf %81 : vector<16x16xf32> to vector<16x16xbf16>
    %cst_29 = arith.constant dense<0.000000e+00> : vector<16x32xf32>
    %83 = tpu.matmul %82, %66, %cst_29 {dimension_numbers = #tpu.dot_dimension_numbers<[1], [0], [0], [1], [0, 0, 1, 1], [], []>} : vector<16x16xbf16>, vector<16x32xbf16>, vector<16x32xf32> -> vector<16x32xf32>
    %c0_30 = arith.constant 0 : index
    %c32 = arith.constant 32 : index
    %84 = vector.load %arg18[%c0_30, %c32] : memref<128x128xf32, #tpu.memory_space<vmem>>, vector<16x32xf32>
    tpu.vector_store %arg18[%c0_30, %c32], %83 {strides = array<i32>} : memref<128x128xf32, #tpu.memory_space<vmem>>, vector<16x32xf32>,
    %85 = vector.extract_strided_slice %33 {offsets = [0, 64], sizes = [16, 32], strides = [1, 1]} : vector<128x384xf32> to vector<16x32xf32>
    %86 = arith.truncf %85 : vector<16x32xf32> to vector<16x32xbf16>
    %87 = vector.extract_strided_slice %33 {offsets = [0, 192], sizes = [16, 32], strides = [1, 1]} : vector<128x384xf32> to vector<16x32xf32>
    %88 = arith.truncf %87 : vector<16x32xf32> to vector<16x32xbf16>
    %89 = vector.extract_strided_slice %33 {offsets = [0, 320], sizes = [16, 32], strides = [1, 1]} : vector<128x384xf32> to vector<16x32xf32>
    %90 = arith.truncf %89 : vector<16x32xf32> to vector<16x32xbf16>
    %cst_31 = arith.constant dense<0.000000e+00> : vector<16x16xf32>
    %91 = tpu.matmul %86, %88, %cst_31 {dimension_numbers = #tpu.dot_dimension_numbers<[1], [1], [0], [0], [0, 0, 1, 0], [], []>} : vector<16x32xbf16>, vector<16x32xbf16>, vector<16x16xf32> -> vector<16x16xf32>
    %cst_32 = arith.constant 0.176776692 : f32
    %92 = vector.broadcast %cst_32 : f32 to vector<16x16xf32>
    %93 = arith.mulf %91, %92 : vector<16x16xf32>
    %cst_33 = arith.constant -1.000000e+30 : f32
    %94 = vector.broadcast %cst_33 : f32 to vector<16x16xf32>
    %95 = arith.select %36, %93, %94 : vector<16x16xi1>, vector<16x16xf32>
    %cst_34 = arith.constant dense<0xFF800000> : vector<16xf32>
    %96 = vector.multi_reduction <maximumf>, %95, %cst_34 [1] : vector<16x16xf32> to vector<16xf32>
    %97 = vector.shape_cast %96 : vector<16xf32> to vector<16x1xf32>
    %98 = vector.broadcast %97 : vector<16x1xf32> to vector<16x16xf32>
    %99 = arith.subf %95, %98 : vector<16x16xf32>
    %100 = math.exp %99 : vector<16x16xf32>
    %cst_35 = arith.constant dense<0.000000e+00> : vector<16xf32>
    %101 = vector.multi_reduction <add>, %100, %cst_35 [1] : vector<16x16xf32> to vector<16xf32>
    %102 = vector.shape_cast %101 : vector<16xf32> to vector<16x1xf32>
    %103 = tpu.reciprocal %102 {approx = true} : vector<16x1xf32> -> vector<16x1xf32>
    %104 = vector.broadcast %103 : vector<16x1xf32> to vector<16x16xf32>
    %105 = arith.mulf %100, %104 : vector<16x16xf32>
    %106 = arith.truncf %105 : vector<16x16xf32> to vector<16x16xbf16>
    %cst_36 = arith.constant dense<0.000000e+00> : vector<16x32xf32>
    %107 = tpu.matmul %106, %90, %cst_36 {dimension_numbers = #tpu.dot_dimension_numbers<[1], [0], [0], [1], [0, 0, 1, 1], [], []>} : vector<16x16xbf16>, vector<16x32xbf16>, vector<16x32xf32> -> vector<16x32xf32>
    %c0_37 = arith.constant 0 : index
    %c64 = arith.constant 64 : index
    %108 = vector.load %arg18[%c0_37, %c64] : memref<128x128xf32, #tpu.memory_space<vmem>>, vector<16x32xf32>
    tpu.vector_store %arg18[%c0_37, %c64], %107 {strides = array<i32>} : memref<128x128xf32, #tpu.memory_space<vmem>>, vector<16x32xf32>,
    %109 = vector.extract_strided_slice %33 {offsets = [0, 96], sizes = [16, 32], strides = [1, 1]} : vector<128x384xf32> to vector<16x32xf32>
    %110 = arith.truncf %109 : vector<16x32xf32> to vector<16x32xbf16>
    %111 = vector.extract_strided_slice %33 {offsets = [0, 224], sizes = [16, 32], strides = [1, 1]} : vector<128x384xf32> to vector<16x32xf32>
    %112 = arith.truncf %111 : vector<16x32xf32> to vector<16x32xbf16>
    %113 = vector.extract_strided_slice %33 {offsets = [0, 352], sizes = [16, 32], strides = [1, 1]} : vector<128x384xf32> to vector<16x32xf32>
    %114 = arith.truncf %113 : vector<16x32xf32> to vector<16x32xbf16>
    %cst_38 = arith.constant dense<0.000000e+00> : vector<16x16xf32>
    %115 = tpu.matmul %110, %112, %cst_38 {dimension_numbers = #tpu.dot_dimension_numbers<[1], [1], [0], [0], [0, 0, 1, 0], [], []>} : vector<16x32xbf16>, vector<16x32xbf16>, vector<16x16xf32> -> vector<16x16xf32>
    %cst_39 = arith.constant 0.176776692 : f32
    %116 = vector.broadcast %cst_39 : f32 to vector<16x16xf32>
    %117 = arith.mulf %115, %116 : vector<16x16xf32>
    %cst_40 = arith.constant -1.000000e+30 : f32
    %118 = vector.broadcast %cst_40 : f32 to vector<16x16xf32>
    %119 = arith.select %36, %117, %118 : vector<16x16xi1>, vector<16x16xf32>
    %cst_41 = arith.constant dense<0xFF800000> : vector<16xf32>
    %120 = vector.multi_reduction <maximumf>, %119, %cst_41 [1] : vector<16x16xf32> to vector<16xf32>
    %121 = vector.shape_cast %120 : vector<16xf32> to vector<16x1xf32>
    %122 = vector.broadcast %121 : vector<16x1xf32> to vector<16x16xf32>
    %123 = arith.subf %119, %122 : vector<16x16xf32>
    %124 = math.exp %123 : vector<16x16xf32>
    %cst_42 = arith.constant dense<0.000000e+00> : vector<16xf32>
    %125 = vector.multi_reduction <add>, %124, %cst_42 [1] : vector<16x16xf32> to vector<16xf32>
    %126 = vector.shape_cast %125 : vector<16xf32> to vector<16x1xf32>
    %127 = tpu.reciprocal %126 {approx = true} : vector<16x1xf32> -> vector<16x1xf32>
    %128 = vector.broadcast %127 : vector<16x1xf32> to vector<16x16xf32>
    %129 = arith.mulf %124, %128 : vector<16x16xf32>
    %130 = arith.truncf %129 : vector<16x16xf32> to vector<16x16xbf16>
    %cst_43 = arith.constant dense<0.000000e+00> : vector<16x32xf32>
    %131 = tpu.matmul %130, %114, %cst_43 {dimension_numbers = #tpu.dot_dimension_numbers<[1], [0], [0], [1], [0, 0, 1, 1], [], []>} : vector<16x16xbf16>, vector<16x32xbf16>, vector<16x32xf32> -> vector<16x32xf32>
    %c0_44 = arith.constant 0 : index
    %c96 = arith.constant 96 : index
    %132 = vector.load %arg18[%c0_44, %c96] : memref<128x128xf32, #tpu.memory_space<vmem>>, vector<16x32xf32>
    tpu.vector_store %arg18[%c0_44, %c96], %131 {strides = array<i32>} : memref<128x128xf32, #tpu.memory_space<vmem>>, vector<16x32xf32>,
    %133 = vector.extract_strided_slice %33 {offsets = [16, 0], sizes = [16, 32], strides = [1, 1]} : vector<128x384xf32> to vector<16x32xf32>
    %134 = arith.truncf %133 : vector<16x32xf32> to vector<16x32xbf16>
    %135 = vector.extract_strided_slice %33 {offsets = [16, 128], sizes = [16, 32], strides = [1, 1]} : vector<128x384xf32> to vector<16x32xf32>
    %136 = arith.truncf %135 : vector<16x32xf32> to vector<16x32xbf16>
    %137 = vector.extract_strided_slice %33 {offsets = [16, 256], sizes = [16, 32], strides = [1, 1]} : vector<128x384xf32> to vector<16x32xf32>
    %138 = arith.truncf %137 : vector<16x32xf32> to vector<16x32xbf16>
    %cst_45 = arith.constant dense<0.000000e+00> : vector<16x16xf32>
    %139 = tpu.matmul %134, %136, %cst_45 {dimension_numbers = #tpu.dot_dimension_numbers<[1], [1], [0], [0], [0, 0, 1, 0], [], []>} : vector<16x32xbf16>, vector<16x32xbf16>, vector<16x16xf32> -> vector<16x16xf32>
    %cst_46 = arith.constant 0.176776692 : f32
    %140 = vector.broadcast %cst_46 : f32 to vector<16x16xf32>
    %141 = arith.mulf %139, %140 : vector<16x16xf32>
    %cst_47 = arith.constant -1.000000e+30 : f32
    %142 = vector.broadcast %cst_47 : f32 to vector<16x16xf32>
    %143 = arith.select %36, %141, %142 : vector<16x16xi1>, vector<16x16xf32>
    %cst_48 = arith.constant dense<0xFF800000> : vector<16xf32>
    %144 = vector.multi_reduction <maximumf>, %143, %cst_48 [1] : vector<16x16xf32> to vector<16xf32>
    %145 = vector.shape_cast %144 : vector<16xf32> to vector<16x1xf32>
    %146 = vector.broadcast %145 : vector<16x1xf32> to vector<16x16xf32>
    %147 = arith.subf %143, %146 : vector<16x16xf32>
    %148 = math.exp %147 : vector<16x16xf32>
    %cst_49 = arith.constant dense<0.000000e+00> : vector<16xf32>
    %149 = vector.multi_reduction <add>, %148, %cst_49 [1] : vector<16x16xf32> to vector<16xf32>
    %150 = vector.shape_cast %149 : vector<16xf32> to vector<16x1xf32>
    %151 = tpu.reciprocal %150 {approx = true} : vector<16x1xf32> -> vector<16x1xf32>
    %152 = vector.broadcast %151 : vector<16x1xf32> to vector<16x16xf32>
    %153 = arith.mulf %148, %152 : vector<16x16xf32>
    %154 = arith.truncf %153 : vector<16x16xf32> to vector<16x16xbf16>
    %cst_50 = arith.constant dense<0.000000e+00> : vector<16x32xf32>
    %155 = tpu.matmul %154, %138, %cst_50 {dimension_numbers = #tpu.dot_dimension_numbers<[1], [0], [0], [1], [0, 0, 1, 1], [], []>} : vector<16x16xbf16>, vector<16x32xbf16>, vector<16x32xf32> -> vector<16x32xf32>
    %c16 = arith.constant 16 : index
    %c0_51 = arith.constant 0 : index
    %156 = vector.load %arg18[%c16, %c0_51] : memref<128x128xf32, #tpu.memory_space<vmem>>, vector<16x32xf32>
    tpu.vector_store %arg18[%c16, %c0_51], %155 {strides = array<i32>} : memref<128x128xf32, #tpu.memory_space<vmem>>, vector<16x32xf32>,
    %157 = vector.extract_strided_slice %33 {offsets = [16, 32], sizes = [16, 32], strides = [1, 1]} : vector<128x384xf32> to vector<16x32xf32>
    %158 = arith.truncf %157 : vector<16x32xf32> to vector<16x32xbf16>
    %159 = vector.extract_strided_slice %33 {offsets = [16, 160], sizes = [16, 32], strides = [1, 1]} : vector<128x384xf32> to vector<16x32xf32>
    %160 = arith.truncf %159 : vector<16x32xf32> to vector<16x32xbf16>
    %161 = vector.extract_strided_slice %33 {offsets = [16, 288], sizes = [16, 32], strides = [1, 1]} : vector<128x384xf32> to vector<16x32xf32>
    %162 = arith.truncf %161 : vector<16x32xf32> to vector<16x32xbf16>
    %cst_52 = arith.constant dense<0.000000e+00> : vector<16x16xf32>
    %163 = tpu.matmul %158, %160, %cst_52 {dimension_numbers = #tpu.dot_dimension_numbers<[1], [1], [0], [0], [0, 0, 1, 0], [], []>} : vector<16x32xbf16>, vector<16x32xbf16>, vector<16x16xf32> -> vector<16x16xf32>
    %cst_53 = arith.constant 0.176776692 : f32
    %164 = vector.broadcast %cst_53 : f32 to vector<16x16xf32>
    %165 = arith.mulf %163, %164 : vector<16x16xf32>
    %cst_54 = arith.constant -1.000000e+30 : f32
    %166 = vector.broadcast %cst_54 : f32 to vector<16x16xf32>
    %167 = arith.select %36, %165, %166 : vector<16x16xi1>, vector<16x16xf32>
    %cst_55 = arith.constant dense<0xFF800000> : vector<16xf32>
    %168 = vector.multi_reduction <maximumf>, %167, %cst_55 [1] : vector<16x16xf32> to vector<16xf32>
    %169 = vector.shape_cast %168 : vector<16xf32> to vector<16x1xf32>
    %170 = vector.broadcast %169 : vector<16x1xf32> to vector<16x16xf32>
    %171 = arith.subf %167, %170 : vector<16x16xf32>
    %172 = math.exp %171 : vector<16x16xf32>
    %cst_56 = arith.constant dense<0.000000e+00> : vector<16xf32>
    %173 = vector.multi_reduction <add>, %172, %cst_56 [1] : vector<16x16xf32> to vector<16xf32>
    %174 = vector.shape_cast %173 : vector<16xf32> to vector<16x1xf32>
    %175 = tpu.reciprocal %174 {approx = true} : vector<16x1xf32> -> vector<16x1xf32>
    %176 = vector.broadcast %175 : vector<16x1xf32> to vector<16x16xf32>
    %177 = arith.mulf %172, %176 : vector<16x16xf32>
    %178 = arith.truncf %177 : vector<16x16xf32> to vector<16x16xbf16>
    %cst_57 = arith.constant dense<0.000000e+00> : vector<16x32xf32>
    %179 = tpu.matmul %178, %162, %cst_57 {dimension_numbers = #tpu.dot_dimension_numbers<[1], [0], [0], [1], [0, 0, 1, 1], [], []>} : vector<16x16xbf16>, vector<16x32xbf16>, vector<16x32xf32> -> vector<16x32xf32>
    %c16_58 = arith.constant 16 : index
    %c32_59 = arith.constant 32 : index
    %180 = vector.load %arg18[%c16_58, %c32_59] : memref<128x128xf32, #tpu.memory_space<vmem>>, vector<16x32xf32>
    tpu.vector_store %arg18[%c16_58, %c32_59], %179 {strides = array<i32>} : memref<128x128xf32, #tpu.memory_space<vmem>>, vector<16x32xf32>,
    %181 = vector.extract_strided_slice %33 {offsets = [16, 64], sizes = [16, 32], strides = [1, 1]} : vector<128x384xf32> to vector<16x32xf32>
    %182 = arith.truncf %181 : vector<16x32xf32> to vector<16x32xbf16>
    %183 = vector.extract_strided_slice %33 {offsets = [16, 192], sizes = [16, 32], strides = [1, 1]} : vector<128x384xf32> to vector<16x32xf32>
    %184 = arith.truncf %183 : vector<16x32xf32> to vector<16x32xbf16>
    %185 = vector.extract_strided_slice %33 {offsets = [16, 320], sizes = [16, 32], strides = [1, 1]} : vector<128x384xf32> to vector<16x32xf32>
    %186 = arith.truncf %185 : vector<16x32xf32> to vector<16x32xbf16>
    %cst_60 = arith.constant dense<0.000000e+00> : vector<16x16xf32>
    %187 = tpu.matmul %182, %184, %cst_60 {dimension_numbers = #tpu.dot_dimension_numbers<[1], [1], [0], [0], [0, 0, 1, 0], [], []>} : vector<16x32xbf16>, vector<16x32xbf16>, vector<16x16xf32> -> vector<16x16xf32>
    %cst_61 = arith.constant 0.176776692 : f32
    %188 = vector.broadcast %cst_61 : f32 to vector<16x16xf32>
    %189 = arith.mulf %187, %188 : vector<16x16xf32>
    %cst_62 = arith.constant -1.000000e+30 : f32
    %190 = vector.broadcast %cst_62 : f32 to vector<16x16xf32>
    %191 = arith.select %36, %189, %190 : vector<16x16xi1>, vector<16x16xf32>
    %cst_63 = arith.constant dense<0xFF800000> : vector<16xf32>
    %192 = vector.multi_reduction <maximumf>, %191, %cst_63 [1] : vector<16x16xf32> to vector<16xf32>
    %193 = vector.shape_cast %192 : vector<16xf32> to vector<16x1xf32>
    %194 = vector.broadcast %193 : vector<16x1xf32> to vector<16x16xf32>
    %195 = arith.subf %191, %194 : vector<16x16xf32>
    %196 = math.exp %195 : vector<16x16xf32>
    %cst_64 = arith.constant dense<0.000000e+00> : vector<16xf32>
    %197 = vector.multi_reduction <add>, %196, %cst_64 [1] : vector<16x16xf32> to vector<16xf32>
    %198 = vector.shape_cast %197 : vector<16xf32> to vector<16x1xf32>
    %199 = tpu.reciprocal %198 {approx = true} : vector<16x1xf32> -> vector<16x1xf32>
    %200 = vector.broadcast %199 : vector<16x1xf32> to vector<16x16xf32>
    %201 = arith.mulf %196, %200 : vector<16x16xf32>
    %202 = arith.truncf %201 : vector<16x16xf32> to vector<16x16xbf16>
    %cst_65 = arith.constant dense<0.000000e+00> : vector<16x32xf32>
    %203 = tpu.matmul %202, %186, %cst_65 {dimension_numbers = #tpu.dot_dimension_numbers<[1], [0], [0], [1], [0, 0, 1, 1], [], []>} : vector<16x16xbf16>, vector<16x32xbf16>, vector<16x32xf32> -> vector<16x32xf32>
    %c16_66 = arith.constant 16 : index
    %c64_67 = arith.constant 64 : index
    %204 = vector.load %arg18[%c16_66, %c64_67] : memref<128x128xf32, #tpu.memory_space<vmem>>, vector<16x32xf32>
    tpu.vector_store %arg18[%c16_66, %c64_67], %203 {strides = array<i32>} : memref<128x128xf32, #tpu.memory_space<vmem>>, vector<16x32xf32>,
    %205 = vector.extract_strided_slice %33 {offsets = [16, 96], sizes = [16, 32], strides = [1, 1]} : vector<128x384xf32> to vector<16x32xf32>
    %206 = arith.truncf %205 : vector<16x32xf32> to vector<16x32xbf16>
    %207 = vector.extract_strided_slice %33 {offsets = [16, 224], sizes = [16, 32], strides = [1, 1]} : vector<128x384xf32> to vector<16x32xf32>
    %208 = arith.truncf %207 : vector<16x32xf32> to vector<16x32xbf16>
    %209 = vector.extract_strided_slice %33 {offsets = [16, 352], sizes = [16, 32], strides = [1, 1]} : vector<128x384xf32> to vector<16x32xf32>
    %210 = arith.truncf %209 : vector<16x32xf32> to vector<16x32xbf16>
    %cst_68 = arith.constant dense<0.000000e+00> : vector<16x16xf32>
    %211 = tpu.matmul %206, %208, %cst_68 {dimension_numbers = #tpu.dot_dimension_numbers<[1], [1], [0], [0], [0, 0, 1, 0], [], []>} : vector<16x32xbf16>, vector<16x32xbf16>, vector<16x16xf32> -> vector<16x16xf32>
    %cst_69 = arith.constant 0.176776692 : f32
    %212 = vector.broadcast %cst_69 : f32 to vector<16x16xf32>
    %213 = arith.mulf %211, %212 : vector<16x16xf32>
    %cst_70 = arith.constant -1.000000e+30 : f32
    %214 = vector.broadcast %cst_70 : f32 to vector<16x16xf32>
    %215 = arith.select %36, %213, %214 : vector<16x16xi1>, vector<16x16xf32>
    %cst_71 = arith.constant dense<0xFF800000> : vector<16xf32>
    %216 = vector.multi_reduction <maximumf>, %215, %cst_71 [1] : vector<16x16xf32> to vector<16xf32>
    %217 = vector.shape_cast %216 : vector<16xf32> to vector<16x1xf32>
    %218 = vector.broadcast %217 : vector<16x1xf32> to vector<16x16xf32>
    %219 = arith.subf %215, %218 : vector<16x16xf32>
    %220 = math.exp %219 : vector<16x16xf32>
    %cst_72 = arith.constant dense<0.000000e+00> : vector<16xf32>
    %221 = vector.multi_reduction <add>, %220, %cst_72 [1] : vector<16x16xf32> to vector<16xf32>
    %222 = vector.shape_cast %221 : vector<16xf32> to vector<16x1xf32>
    %223 = tpu.reciprocal %222 {approx = true} : vector<16x1xf32> -> vector<16x1xf32>
    %224 = vector.broadcast %223 : vector<16x1xf32> to vector<16x16xf32>
    %225 = arith.mulf %220, %224 : vector<16x16xf32>
    %226 = arith.truncf %225 : vector<16x16xf32> to vector<16x16xbf16>
    %cst_73 = arith.constant dense<0.000000e+00> : vector<16x32xf32>
    %227 = tpu.matmul %226, %210, %cst_73 {dimension_numbers = #tpu.dot_dimension_numbers<[1], [0], [0], [1], [0, 0, 1, 1], [], []>} : vector<16x16xbf16>, vector<16x32xbf16>, vector<16x32xf32> -> vector<16x32xf32>
    %c16_74 = arith.constant 16 : index
    %c96_75 = arith.constant 96 : index
    %228 = vector.load %arg18[%c16_74, %c96_75] : memref<128x128xf32, #tpu.memory_space<vmem>>, vector<16x32xf32>
    tpu.vector_store %arg18[%c16_74, %c96_75], %227 {strides = array<i32>} : memref<128x128xf32, #tpu.memory_space<vmem>>, vector<16x32xf32>,
    %229 = vector.extract_strided_slice %33 {offsets = [32, 0], sizes = [16, 32], strides = [1, 1]} : vector<128x384xf32> to vector<16x32xf32>
    %230 = arith.truncf %229 : vector<16x32xf32> to vector<16x32xbf16>
    %231 = vector.extract_strided_slice %33 {offsets = [32, 128], sizes = [16, 32], strides = [1, 1]} : vector<128x384xf32> to vector<16x32xf32>
    %232 = arith.truncf %231 : vector<16x32xf32> to vector<16x32xbf16>
    %233 = vector.extract_strided_slice %33 {offsets = [32, 256], sizes = [16, 32], strides = [1, 1]} : vector<128x384xf32> to vector<16x32xf32>
    %234 = arith.truncf %233 : vector<16x32xf32> to vector<16x32xbf16>
    %cst_76 = arith.constant dense<0.000000e+00> : vector<16x16xf32>
    %235 = tpu.matmul %230, %232, %cst_76 {dimension_numbers = #tpu.dot_dimension_numbers<[1], [1], [0], [0], [0, 0, 1, 0], [], []>} : vector<16x32xbf16>, vector<16x32xbf16>, vector<16x16xf32> -> vector<16x16xf32>
    %cst_77 = arith.constant 0.176776692 : f32
    %236 = vector.broadcast %cst_77 : f32 to vector<16x16xf32>
    %237 = arith.mulf %235, %236 : vector<16x16xf32>
    %cst_78 = arith.constant -1.000000e+30 : f32
    %238 = vector.broadcast %cst_78 : f32 to vector<16x16xf32>
    %239 = arith.select %36, %237, %238 : vector<16x16xi1>, vector<16x16xf32>
    %cst_79 = arith.constant dense<0xFF800000> : vector<16xf32>
    %240 = vector.multi_reduction <maximumf>, %239, %cst_79 [1] : vector<16x16xf32> to vector<16xf32>
    %241 = vector.shape_cast %240 : vector<16xf32> to vector<16x1xf32>
    %242 = vector.broadcast %241 : vector<16x1xf32> to vector<16x16xf32>
    %243 = arith.subf %239, %242 : vector<16x16xf32>
    %244 = math.exp %243 : vector<16x16xf32>
    %cst_80 = arith.constant dense<0.000000e+00> : vector<16xf32>
    %245 = vector.multi_reduction <add>, %244, %cst_80 [1] : vector<16x16xf32> to vector<16xf32>
    %246 = vector.shape_cast %245 : vector<16xf32> to vector<16x1xf32>
    %247 = tpu.reciprocal %246 {approx = true} : vector<16x1xf32> -> vector<16x1xf32>
    %248 = vector.broadcast %247 : vector<16x1xf32> to vector<16x16xf32>
    %249 = arith.mulf %244, %248 : vector<16x16xf32>
    %250 = arith.truncf %249 : vector<16x16xf32> to vector<16x16xbf16>
    %cst_81 = arith.constant dense<0.000000e+00> : vector<16x32xf32>
    %251 = tpu.matmul %250, %234, %cst_81 {dimension_numbers = #tpu.dot_dimension_numbers<[1], [0], [0], [1], [0, 0, 1, 1], [], []>} : vector<16x16xbf16>, vector<16x32xbf16>, vector<16x32xf32> -> vector<16x32xf32>
    %c32_82 = arith.constant 32 : index
    %c0_83 = arith.constant 0 : index
    %252 = vector.load %arg18[%c32_82, %c0_83] : memref<128x128xf32, #tpu.memory_space<vmem>>, vector<16x32xf32>
    tpu.vector_store %arg18[%c32_82, %c0_83], %251 {strides = array<i32>} : memref<128x128xf32, #tpu.memory_space<vmem>>, vector<16x32xf32>,
    %253 = vector.extract_strided_slice %33 {offsets = [32, 32], sizes = [16, 32], strides = [1, 1]} : vector<128x384xf32> to vector<16x32xf32>
    %254 = arith.truncf %253 : vector<16x32xf32> to vector<16x32xbf16>
    %255 = vector.extract_strided_slice %33 {offsets = [32, 160], sizes = [16, 32], strides = [1, 1]} : vector<128x384xf32> to vector<16x32xf32>
    %256 = arith.truncf %255 : vector<16x32xf32> to vector<16x32xbf16>
    %257 = vector.extract_strided_slice %33 {offsets = [32, 288], sizes = [16, 32], strides = [1, 1]} : vector<128x384xf32> to vector<16x32xf32>
    %258 = arith.truncf %257 : vector<16x32xf32> to vector<16x32xbf16>
    %cst_84 = arith.constant dense<0.000000e+00> : vector<16x16xf32>
    %259 = tpu.matmul %254, %256, %cst_84 {dimension_numbers = #tpu.dot_dimension_numbers<[1], [1], [0], [0], [0, 0, 1, 0], [], []>} : vector<16x32xbf16>, vector<16x32xbf16>, vector<16x16xf32> -> vector<16x16xf32>
    %cst_85 = arith.constant 0.176776692 : f32
    %260 = vector.broadcast %cst_85 : f32 to vector<16x16xf32>
    %261 = arith.mulf %259, %260 : vector<16x16xf32>
    %cst_86 = arith.constant -1.000000e+30 : f32
    %262 = vector.broadcast %cst_86 : f32 to vector<16x16xf32>
    %263 = arith.select %36, %261, %262 : vector<16x16xi1>, vector<16x16xf32>
    %cst_87 = arith.constant dense<0xFF800000> : vector<16xf32>
    %264 = vector.multi_reduction <maximumf>, %263, %cst_87 [1] : vector<16x16xf32> to vector<16xf32>
    %265 = vector.shape_cast %264 : vector<16xf32> to vector<16x1xf32>
    %266 = vector.broadcast %265 : vector<16x1xf32> to vector<16x16xf32>
    %267 = arith.subf %263, %266 : vector<16x16xf32>
    %268 = math.exp %267 : vector<16x16xf32>
    %cst_88 = arith.constant dense<0.000000e+00> : vector<16xf32>
    %269 = vector.multi_reduction <add>, %268, %cst_88 [1] : vector<16x16xf32> to vector<16xf32>
    %270 = vector.shape_cast %269 : vector<16xf32> to vector<16x1xf32>
    %271 = tpu.reciprocal %270 {approx = true} : vector<16x1xf32> -> vector<16x1xf32>
    %272 = vector.broadcast %271 : vector<16x1xf32> to vector<16x16xf32>
    %273 = arith.mulf %268, %272 : vector<16x16xf32>
    %274 = arith.truncf %273 : vector<16x16xf32> to vector<16x16xbf16>
    %cst_89 = arith.constant dense<0.000000e+00> : vector<16x32xf32>
    %275 = tpu.matmul %274, %258, %cst_89 {dimension_numbers = #tpu.dot_dimension_numbers<[1], [0], [0], [1], [0, 0, 1, 1], [], []>} : vector<16x16xbf16>, vector<16x32xbf16>, vector<16x32xf32> -> vector<16x32xf32>
    %c32_90 = arith.constant 32 : index
    %c32_91 = arith.constant 32 : index
    %276 = vector.load %arg18[%c32_90, %c32_91] : memref<128x128xf32, #tpu.memory_space<vmem>>, vector<16x32xf32>
    tpu.vector_store %arg18[%c32_90, %c32_91], %275 {strides = array<i32>} : memref<128x128xf32, #tpu.memory_space<vmem>>, vector<16x32xf32>,
    %277 = vector.extract_strided_slice %33 {offsets = [32, 64], sizes = [16, 32], strides = [1, 1]} : vector<128x384xf32> to vector<16x32xf32>
    %278 = arith.truncf %277 : vector<16x32xf32> to vector<16x32xbf16>
    %279 = vector.extract_strided_slice %33 {offsets = [32, 192], sizes = [16, 32], strides = [1, 1]} : vector<128x384xf32> to vector<16x32xf32>
    %280 = arith.truncf %279 : vector<16x32xf32> to vector<16x32xbf16>
    %281 = vector.extract_strided_slice %33 {offsets = [32, 320], sizes = [16, 32], strides = [1, 1]} : vector<128x384xf32> to vector<16x32xf32>
    %282 = arith.truncf %281 : vector<16x32xf32> to vector<16x32xbf16>
    %cst_92 = arith.constant dense<0.000000e+00> : vector<16x16xf32>
    %283 = tpu.matmul %278, %280, %cst_92 {dimension_numbers = #tpu.dot_dimension_numbers<[1], [1], [0], [0], [0, 0, 1, 0], [], []>} : vector<16x32xbf16>, vector<16x32xbf16>, vector<16x16xf32> -> vector<16x16xf32>
    %cst_93 = arith.constant 0.176776692 : f32
    %284 = vector.broadcast %cst_93 : f32 to vector<16x16xf32>
    %285 = arith.mulf %283, %284 : vector<16x16xf32>
    %cst_94 = arith.constant -1.000000e+30 : f32
    %286 = vector.broadcast %cst_94 : f32 to vector<16x16xf32>
    %287 = arith.select %36, %285, %286 : vector<16x16xi1>, vector<16x16xf32>
    %cst_95 = arith.constant dense<0xFF800000> : vector<16xf32>
    %288 = vector.multi_reduction <maximumf>, %287, %cst_95 [1] : vector<16x16xf32> to vector<16xf32>
    %289 = vector.shape_cast %288 : vector<16xf32> to vector<16x1xf32>
    %290 = vector.broadcast %289 : vector<16x1xf32> to vector<16x16xf32>
    %291 = arith.subf %287, %290 : vector<16x16xf32>
    %292 = math.exp %291 : vector<16x16xf32>
    %cst_96 = arith.constant dense<0.000000e+00> : vector<16xf32>
    %293 = vector.multi_reduction <add>, %292, %cst_96 [1] : vector<16x16xf32> to vector<16xf32>
    %294 = vector.shape_cast %293 : vector<16xf32> to vector<16x1xf32>
    %295 = tpu.reciprocal %294 {approx = true} : vector<16x1xf32> -> vector<16x1xf32>
    %296 = vector.broadcast %295 : vector<16x1xf32> to vector<16x16xf32>
    %297 = arith.mulf %292, %296 : vector<16x16xf32>
    %298 = arith.truncf %297 : vector<16x16xf32> to vector<16x16xbf16>
    %cst_97 = arith.constant dense<0.000000e+00> : vector<16x32xf32>
    %299 = tpu.matmul %298, %282, %cst_97 {dimension_numbers = #tpu.dot_dimension_numbers<[1], [0], [0], [1], [0, 0, 1, 1], [], []>} : vector<16x16xbf16>, vector<16x32xbf16>, vector<16x32xf32> -> vector<16x32xf32>
    %c32_98 = arith.constant 32 : index
    %c64_99 = arith.constant 64 : index
    %300 = vector.load %arg18[%c32_98, %c64_99] : memref<128x128xf32, #tpu.memory_space<vmem>>, vector<16x32xf32>
    tpu.vector_store %arg18[%c32_98, %c64_99], %299 {strides = array<i32>} : memref<128x128xf32, #tpu.memory_space<vmem>>, vector<16x32xf32>,
    %301 = vector.extract_strided_slice %33 {offsets = [32, 96], sizes = [16, 32], strides = [1, 1]} : vector<128x384xf32> to vector<16x32xf32>
    %302 = arith.truncf %301 : vector<16x32xf32> to vector<16x32xbf16>
    %303 = vector.extract_strided_slice %33 {offsets = [32, 224], sizes = [16, 32], strides = [1, 1]} : vector<128x384xf32> to vector<16x32xf32>
    %304 = arith.truncf %303 : vector<16x32xf32> to vector<16x32xbf16>
    %305 = vector.extract_strided_slice %33 {offsets = [32, 352], sizes = [16, 32], strides = [1, 1]} : vector<128x384xf32> to vector<16x32xf32>
    %306 = arith.truncf %305 : vector<16x32xf32> to vector<16x32xbf16>
    %cst_100 = arith.constant dense<0.000000e+00> : vector<16x16xf32>
    %307 = tpu.matmul %302, %304, %cst_100 {dimension_numbers = #tpu.dot_dimension_numbers<[1], [1], [0], [0], [0, 0, 1, 0], [], []>} : vector<16x32xbf16>, vector<16x32xbf16>, vector<16x16xf32> -> vector<16x16xf32>
    %cst_101 = arith.constant 0.176776692 : f32
    %308 = vector.broadcast %cst_101 : f32 to vector<16x16xf32>
    %309 = arith.mulf %307, %308 : vector<16x16xf32>
    %cst_102 = arith.constant -1.000000e+30 : f32
    %310 = vector.broadcast %cst_102 : f32 to vector<16x16xf32>
    %311 = arith.select %36, %309, %310 : vector<16x16xi1>, vector<16x16xf32>
    %cst_103 = arith.constant dense<0xFF800000> : vector<16xf32>
    %312 = vector.multi_reduction <maximumf>, %311, %cst_103 [1] : vector<16x16xf32> to vector<16xf32>
    %313 = vector.shape_cast %312 : vector<16xf32> to vector<16x1xf32>
    %314 = vector.broadcast %313 : vector<16x1xf32> to vector<16x16xf32>
    %315 = arith.subf %311, %314 : vector<16x16xf32>
    %316 = math.exp %315 : vector<16x16xf32>
    %cst_104 = arith.constant dense<0.000000e+00> : vector<16xf32>
    %317 = vector.multi_reduction <add>, %316, %cst_104 [1] : vector<16x16xf32> to vector<16xf32>
    %318 = vector.shape_cast %317 : vector<16xf32> to vector<16x1xf32>
    %319 = tpu.reciprocal %318 {approx = true} : vector<16x1xf32> -> vector<16x1xf32>
    %320 = vector.broadcast %319 : vector<16x1xf32> to vector<16x16xf32>
    %321 = arith.mulf %316, %320 : vector<16x16xf32>
    %322 = arith.truncf %321 : vector<16x16xf32> to vector<16x16xbf16>
    %cst_105 = arith.constant dense<0.000000e+00> : vector<16x32xf32>
    %323 = tpu.matmul %322, %306, %cst_105 {dimension_numbers = #tpu.dot_dimension_numbers<[1], [0], [0], [1], [0, 0, 1, 1], [], []>} : vector<16x16xbf16>, vector<16x32xbf16>, vector<16x32xf32> -> vector<16x32xf32>
    %c32_106 = arith.constant 32 : index
    %c96_107 = arith.constant 96 : index
    %324 = vector.load %arg18[%c32_106, %c96_107] : memref<128x128xf32, #tpu.memory_space<vmem>>, vector<16x32xf32>
    tpu.vector_store %arg18[%c32_106, %c96_107], %323 {strides = array<i32>} : memref<128x128xf32, #tpu.memory_space<vmem>>, vector<16x32xf32>,
    %325 = vector.extract_strided_slice %33 {offsets = [48, 0], sizes = [16, 32], strides = [1, 1]} : vector<128x384xf32> to vector<16x32xf32>
    %326 = arith.truncf %325 : vector<16x32xf32> to vector<16x32xbf16>
    %327 = vector.extract_strided_slice %33 {offsets = [48, 128], sizes = [16, 32], strides = [1, 1]} : vector<128x384xf32> to vector<16x32xf32>
    %328 = arith.truncf %327 : vector<16x32xf32> to vector<16x32xbf16>
    %329 = vector.extract_strided_slice %33 {offsets = [48, 256], sizes = [16, 32], strides = [1, 1]} : vector<128x384xf32> to vector<16x32xf32>
    %330 = arith.truncf %329 : vector<16x32xf32> to vector<16x32xbf16>
    %cst_108 = arith.constant dense<0.000000e+00> : vector<16x16xf32>
    %331 = tpu.matmul %326, %328, %cst_108 {dimension_numbers = #tpu.dot_dimension_numbers<[1], [1], [0], [0], [0, 0, 1, 0], [], []>} : vector<16x32xbf16>, vector<16x32xbf16>, vector<16x16xf32> -> vector<16x16xf32>
    %cst_109 = arith.constant 0.176776692 : f32
    %332 = vector.broadcast %cst_109 : f32 to vector<16x16xf32>
    %333 = arith.mulf %331, %332 : vector<16x16xf32>
    %cst_110 = arith.constant -1.000000e+30 : f32
    %334 = vector.broadcast %cst_110 : f32 to vector<16x16xf32>
    %335 = arith.select %36, %333, %334 : vector<16x16xi1>, vector<16x16xf32>
    %cst_111 = arith.constant dense<0xFF800000> : vector<16xf32>
    %336 = vector.multi_reduction <maximumf>, %335, %cst_111 [1] : vector<16x16xf32> to vector<16xf32>
    %337 = vector.shape_cast %336 : vector<16xf32> to vector<16x1xf32>
    %338 = vector.broadcast %337 : vector<16x1xf32> to vector<16x16xf32>
    %339 = arith.subf %335, %338 : vector<16x16xf32>
    %340 = math.exp %339 : vector<16x16xf32>
    %cst_112 = arith.constant dense<0.000000e+00> : vector<16xf32>
    %341 = vector.multi_reduction <add>, %340, %cst_112 [1] : vector<16x16xf32> to vector<16xf32>
    %342 = vector.shape_cast %341 : vector<16xf32> to vector<16x1xf32>
    %343 = tpu.reciprocal %342 {approx = true} : vector<16x1xf32> -> vector<16x1xf32>
    %344 = vector.broadcast %343 : vector<16x1xf32> to vector<16x16xf32>
    %345 = arith.mulf %340, %344 : vector<16x16xf32>
    %346 = arith.truncf %345 : vector<16x16xf32> to vector<16x16xbf16>
    %cst_113 = arith.constant dense<0.000000e+00> : vector<16x32xf32>
    %347 = tpu.matmul %346, %330, %cst_113 {dimension_numbers = #tpu.dot_dimension_numbers<[1], [0], [0], [1], [0, 0, 1, 1], [], []>} : vector<16x16xbf16>, vector<16x32xbf16>, vector<16x32xf32> -> vector<16x32xf32>
    %c48 = arith.constant 48 : index
    %c0_114 = arith.constant 0 : index
    %348 = vector.load %arg18[%c48, %c0_114] : memref<128x128xf32, #tpu.memory_space<vmem>>, vector<16x32xf32>
    tpu.vector_store %arg18[%c48, %c0_114], %347 {strides = array<i32>} : memref<128x128xf32, #tpu.memory_space<vmem>>, vector<16x32xf32>,
    %349 = vector.extract_strided_slice %33 {offsets = [48, 32], sizes = [16, 32], strides = [1, 1]} : vector<128x384xf32> to vector<16x32xf32>
    %350 = arith.truncf %349 : vector<16x32xf32> to vector<16x32xbf16>
    %351 = vector.extract_strided_slice %33 {offsets = [48, 160], sizes = [16, 32], strides = [1, 1]} : vector<128x384xf32> to vector<16x32xf32>
    %352 = arith.truncf %351 : vector<16x32xf32> to vector<16x32xbf16>
    %353 = vector.extract_strided_slice %33 {offsets = [48, 288], sizes = [16, 32], strides = [1, 1]} : vector<128x384xf32> to vector<16x32xf32>
    %354 = arith.truncf %353 : vector<16x32xf32> to vector<16x32xbf16>
    %cst_115 = arith.constant dense<0.000000e+00> : vector<16x16xf32>
    %355 = tpu.matmul %350, %352, %cst_115 {dimension_numbers = #tpu.dot_dimension_numbers<[1], [1], [0], [0], [0, 0, 1, 0], [], []>} : vector<16x32xbf16>, vector<16x32xbf16>, vector<16x16xf32> -> vector<16x16xf32>
    %cst_116 = arith.constant 0.176776692 : f32
    %356 = vector.broadcast %cst_116 : f32 to vector<16x16xf32>
    %357 = arith.mulf %355, %356 : vector<16x16xf32>
    %cst_117 = arith.constant -1.000000e+30 : f32
    %358 = vector.broadcast %cst_117 : f32 to vector<16x16xf32>
    %359 = arith.select %36, %357, %358 : vector<16x16xi1>, vector<16x16xf32>
    %cst_118 = arith.constant dense<0xFF800000> : vector<16xf32>
    %360 = vector.multi_reduction <maximumf>, %359, %cst_118 [1] : vector<16x16xf32> to vector<16xf32>
    %361 = vector.shape_cast %360 : vector<16xf32> to vector<16x1xf32>
    %362 = vector.broadcast %361 : vector<16x1xf32> to vector<16x16xf32>
    %363 = arith.subf %359, %362 : vector<16x16xf32>
    %364 = math.exp %363 : vector<16x16xf32>
    %cst_119 = arith.constant dense<0.000000e+00> : vector<16xf32>
    %365 = vector.multi_reduction <add>, %364, %cst_119 [1] : vector<16x16xf32> to vector<16xf32>
    %366 = vector.shape_cast %365 : vector<16xf32> to vector<16x1xf32>
    %367 = tpu.reciprocal %366 {approx = true} : vector<16x1xf32> -> vector<16x1xf32>
    %368 = vector.broadcast %367 : vector<16x1xf32> to vector<16x16xf32>
    %369 = arith.mulf %364, %368 : vector<16x16xf32>
    %370 = arith.truncf %369 : vector<16x16xf32> to vector<16x16xbf16>
    %cst_120 = arith.constant dense<0.000000e+00> : vector<16x32xf32>
    %371 = tpu.matmul %370, %354, %cst_120 {dimension_numbers = #tpu.dot_dimension_numbers<[1], [0], [0], [1], [0, 0, 1, 1], [], []>} : vector<16x16xbf16>, vector<16x32xbf16>, vector<16x32xf32> -> vector<16x32xf32>
    %c48_121 = arith.constant 48 : index
    %c32_122 = arith.constant 32 : index
    %372 = vector.load %arg18[%c48_121, %c32_122] : memref<128x128xf32, #tpu.memory_space<vmem>>, vector<16x32xf32>
    tpu.vector_store %arg18[%c48_121, %c32_122], %371 {strides = array<i32>} : memref<128x128xf32, #tpu.memory_space<vmem>>, vector<16x32xf32>,
    %373 = vector.extract_strided_slice %33 {offsets = [48, 64], sizes = [16, 32], strides = [1, 1]} : vector<128x384xf32> to vector<16x32xf32>
    %374 = arith.truncf %373 : vector<16x32xf32> to vector<16x32xbf16>
    %375 = vector.extract_strided_slice %33 {offsets = [48, 192], sizes = [16, 32], strides = [1, 1]} : vector<128x384xf32> to vector<16x32xf32>
    %376 = arith.truncf %375 : vector<16x32xf32> to vector<16x32xbf16>
    %377 = vector.extract_strided_slice %33 {offsets = [48, 320], sizes = [16, 32], strides = [1, 1]} : vector<128x384xf32> to vector<16x32xf32>
    %378 = arith.truncf %377 : vector<16x32xf32> to vector<16x32xbf16>
    %cst_123 = arith.constant dense<0.000000e+00> : vector<16x16xf32>
    %379 = tpu.matmul %374, %376, %cst_123 {dimension_numbers = #tpu.dot_dimension_numbers<[1], [1], [0], [0], [0, 0, 1, 0], [], []>} : vector<16x32xbf16>, vector<16x32xbf16>, vector<16x16xf32> -> vector<16x16xf32>
    %cst_124 = arith.constant 0.176776692 : f32
    %380 = vector.broadcast %cst_124 : f32 to vector<16x16xf32>
    %381 = arith.mulf %379, %380 : vector<16x16xf32>
    %cst_125 = arith.constant -1.000000e+30 : f32
    %382 = vector.broadcast %cst_125 : f32 to vector<16x16xf32>
    %383 = arith.select %36, %381, %382 : vector<16x16xi1>, vector<16x16xf32>
    %cst_126 = arith.constant dense<0xFF800000> : vector<16xf32>
    %384 = vector.multi_reduction <maximumf>, %383, %cst_126 [1] : vector<16x16xf32> to vector<16xf32>
    %385 = vector.shape_cast %384 : vector<16xf32> to vector<16x1xf32>
    %386 = vector.broadcast %385 : vector<16x1xf32> to vector<16x16xf32>
    %387 = arith.subf %383, %386 : vector<16x16xf32>
    %388 = math.exp %387 : vector<16x16xf32>
    %cst_127 = arith.constant dense<0.000000e+00> : vector<16xf32>
    %389 = vector.multi_reduction <add>, %388, %cst_127 [1] : vector<16x16xf32> to vector<16xf32>
    %390 = vector.shape_cast %389 : vector<16xf32> to vector<16x1xf32>
    %391 = tpu.reciprocal %390 {approx = true} : vector<16x1xf32> -> vector<16x1xf32>
    %392 = vector.broadcast %391 : vector<16x1xf32> to vector<16x16xf32>
    %393 = arith.mulf %388, %392 : vector<16x16xf32>
    %394 = arith.truncf %393 : vector<16x16xf32> to vector<16x16xbf16>
    %cst_128 = arith.constant dense<0.000000e+00> : vector<16x32xf32>
    %395 = tpu.matmul %394, %378, %cst_128 {dimension_numbers = #tpu.dot_dimension_numbers<[1], [0], [0], [1], [0, 0, 1, 1], [], []>} : vector<16x16xbf16>, vector<16x32xbf16>, vector<16x32xf32> -> vector<16x32xf32>
    %c48_129 = arith.constant 48 : index
    %c64_130 = arith.constant 64 : index
    %396 = vector.load %arg18[%c48_129, %c64_130] : memref<128x128xf32, #tpu.memory_space<vmem>>, vector<16x32xf32>
    tpu.vector_store %arg18[%c48_129, %c64_130], %395 {strides = array<i32>} : memref<128x128xf32, #tpu.memory_space<vmem>>, vector<16x32xf32>,
    %397 = vector.extract_strided_slice %33 {offsets = [48, 96], sizes = [16, 32], strides = [1, 1]} : vector<128x384xf32> to vector<16x32xf32>
    %398 = arith.truncf %397 : vector<16x32xf32> to vector<16x32xbf16>
    %399 = vector.extract_strided_slice %33 {offsets = [48, 224], sizes = [16, 32], strides = [1, 1]} : vector<128x384xf32> to vector<16x32xf32>
    %400 = arith.truncf %399 : vector<16x32xf32> to vector<16x32xbf16>
    %401 = vector.extract_strided_slice %33 {offsets = [48, 352], sizes = [16, 32], strides = [1, 1]} : vector<128x384xf32> to vector<16x32xf32>
    %402 = arith.truncf %401 : vector<16x32xf32> to vector<16x32xbf16>
    %cst_131 = arith.constant dense<0.000000e+00> : vector<16x16xf32>
    %403 = tpu.matmul %398, %400, %cst_131 {dimension_numbers = #tpu.dot_dimension_numbers<[1], [1], [0], [0], [0, 0, 1, 0], [], []>} : vector<16x32xbf16>, vector<16x32xbf16>, vector<16x16xf32> -> vector<16x16xf32>
    %cst_132 = arith.constant 0.176776692 : f32
    %404 = vector.broadcast %cst_132 : f32 to vector<16x16xf32>
    %405 = arith.mulf %403, %404 : vector<16x16xf32>
    %cst_133 = arith.constant -1.000000e+30 : f32
    %406 = vector.broadcast %cst_133 : f32 to vector<16x16xf32>
    %407 = arith.select %36, %405, %406 : vector<16x16xi1>, vector<16x16xf32>
    %cst_134 = arith.constant dense<0xFF800000> : vector<16xf32>
    %408 = vector.multi_reduction <maximumf>, %407, %cst_134 [1] : vector<16x16xf32> to vector<16xf32>
    %409 = vector.shape_cast %408 : vector<16xf32> to vector<16x1xf32>
    %410 = vector.broadcast %409 : vector<16x1xf32> to vector<16x16xf32>
    %411 = arith.subf %407, %410 : vector<16x16xf32>
    %412 = math.exp %411 : vector<16x16xf32>
    %cst_135 = arith.constant dense<0.000000e+00> : vector<16xf32>
    %413 = vector.multi_reduction <add>, %412, %cst_135 [1] : vector<16x16xf32> to vector<16xf32>
    %414 = vector.shape_cast %413 : vector<16xf32> to vector<16x1xf32>
    %415 = tpu.reciprocal %414 {approx = true} : vector<16x1xf32> -> vector<16x1xf32>
    %416 = vector.broadcast %415 : vector<16x1xf32> to vector<16x16xf32>
    %417 = arith.mulf %412, %416 : vector<16x16xf32>
    %418 = arith.truncf %417 : vector<16x16xf32> to vector<16x16xbf16>
    %cst_136 = arith.constant dense<0.000000e+00> : vector<16x32xf32>
    %419 = tpu.matmul %418, %402, %cst_136 {dimension_numbers = #tpu.dot_dimension_numbers<[1], [0], [0], [1], [0, 0, 1, 1], [], []>} : vector<16x16xbf16>, vector<16x32xbf16>, vector<16x32xf32> -> vector<16x32xf32>
    %c48_137 = arith.constant 48 : index
    %c96_138 = arith.constant 96 : index
    %420 = vector.load %arg18[%c48_137, %c96_138] : memref<128x128xf32, #tpu.memory_space<vmem>>, vector<16x32xf32>
    tpu.vector_store %arg18[%c48_137, %c96_138], %419 {strides = array<i32>} : memref<128x128xf32, #tpu.memory_space<vmem>>, vector<16x32xf32>,
    %421 = vector.extract_strided_slice %33 {offsets = [64, 0], sizes = [16, 32], strides = [1, 1]} : vector<128x384xf32> to vector<16x32xf32>
    %422 = arith.truncf %421 : vector<16x32xf32> to vector<16x32xbf16>
    %423 = vector.extract_strided_slice %33 {offsets = [64, 128], sizes = [16, 32], strides = [1, 1]} : vector<128x384xf32> to vector<16x32xf32>
    %424 = arith.truncf %423 : vector<16x32xf32> to vector<16x32xbf16>
    %425 = vector.extract_strided_slice %33 {offsets = [64, 256], sizes = [16, 32], strides = [1, 1]} : vector<128x384xf32> to vector<16x32xf32>
    %426 = arith.truncf %425 : vector<16x32xf32> to vector<16x32xbf16>
    %cst_139 = arith.constant dense<0.000000e+00> : vector<16x16xf32>
    %427 = tpu.matmul %422, %424, %cst_139 {dimension_numbers = #tpu.dot_dimension_numbers<[1], [1], [0], [0], [0, 0, 1, 0], [], []>} : vector<16x32xbf16>, vector<16x32xbf16>, vector<16x16xf32> -> vector<16x16xf32>
    %cst_140 = arith.constant 0.176776692 : f32
    %428 = vector.broadcast %cst_140 : f32 to vector<16x16xf32>
    %429 = arith.mulf %427, %428 : vector<16x16xf32>
    %cst_141 = arith.constant -1.000000e+30 : f32
    %430 = vector.broadcast %cst_141 : f32 to vector<16x16xf32>
    %431 = arith.select %36, %429, %430 : vector<16x16xi1>, vector<16x16xf32>
    %cst_142 = arith.constant dense<0xFF800000> : vector<16xf32>
    %432 = vector.multi_reduction <maximumf>, %431, %cst_142 [1] : vector<16x16xf32> to vector<16xf32>
    %433 = vector.shape_cast %432 : vector<16xf32> to vector<16x1xf32>
    %434 = vector.broadcast %433 : vector<16x1xf32> to vector<16x16xf32>
    %435 = arith.subf %431, %434 : vector<16x16xf32>
    %436 = math.exp %435 : vector<16x16xf32>
    %cst_143 = arith.constant dense<0.000000e+00> : vector<16xf32>
    %437 = vector.multi_reduction <add>, %436, %cst_143 [1] : vector<16x16xf32> to vector<16xf32>
    %438 = vector.shape_cast %437 : vector<16xf32> to vector<16x1xf32>
    %439 = tpu.reciprocal %438 {approx = true} : vector<16x1xf32> -> vector<16x1xf32>
    %440 = vector.broadcast %439 : vector<16x1xf32> to vector<16x16xf32>
    %441 = arith.mulf %436, %440 : vector<16x16xf32>
    %442 = arith.truncf %441 : vector<16x16xf32> to vector<16x16xbf16>
    %cst_144 = arith.constant dense<0.000000e+00> : vector<16x32xf32>
    %443 = tpu.matmul %442, %426, %cst_144 {dimension_numbers = #tpu.dot_dimension_numbers<[1], [0], [0], [1], [0, 0, 1, 1], [], []>} : vector<16x16xbf16>, vector<16x32xbf16>, vector<16x32xf32> -> vector<16x32xf32>
    %c64_145 = arith.constant 64 : index
    %c0_146 = arith.constant 0 : index
    %444 = vector.load %arg18[%c64_145, %c0_146] : memref<128x128xf32, #tpu.memory_space<vmem>>, vector<16x32xf32>
    tpu.vector_store %arg18[%c64_145, %c0_146], %443 {strides = array<i32>} : memref<128x128xf32, #tpu.memory_space<vmem>>, vector<16x32xf32>,
    %445 = vector.extract_strided_slice %33 {offsets = [64, 32], sizes = [16, 32], strides = [1, 1]} : vector<128x384xf32> to vector<16x32xf32>
    %446 = arith.truncf %445 : vector<16x32xf32> to vector<16x32xbf16>
    %447 = vector.extract_strided_slice %33 {offsets = [64, 160], sizes = [16, 32], strides = [1, 1]} : vector<128x384xf32> to vector<16x32xf32>
    %448 = arith.truncf %447 : vector<16x32xf32> to vector<16x32xbf16>
    %449 = vector.extract_strided_slice %33 {offsets = [64, 288], sizes = [16, 32], strides = [1, 1]} : vector<128x384xf32> to vector<16x32xf32>
    %450 = arith.truncf %449 : vector<16x32xf32> to vector<16x32xbf16>
    %cst_147 = arith.constant dense<0.000000e+00> : vector<16x16xf32>
    %451 = tpu.matmul %446, %448, %cst_147 {dimension_numbers = #tpu.dot_dimension_numbers<[1], [1], [0], [0], [0, 0, 1, 0], [], []>} : vector<16x32xbf16>, vector<16x32xbf16>, vector<16x16xf32> -> vector<16x16xf32>
    %cst_148 = arith.constant 0.176776692 : f32
    %452 = vector.broadcast %cst_148 : f32 to vector<16x16xf32>
    %453 = arith.mulf %451, %452 : vector<16x16xf32>
    %cst_149 = arith.constant -1.000000e+30 : f32
    %454 = vector.broadcast %cst_149 : f32 to vector<16x16xf32>
    %455 = arith.select %36, %453, %454 : vector<16x16xi1>, vector<16x16xf32>
    %cst_150 = arith.constant dense<0xFF800000> : vector<16xf32>
    %456 = vector.multi_reduction <maximumf>, %455, %cst_150 [1] : vector<16x16xf32> to vector<16xf32>
    %457 = vector.shape_cast %456 : vector<16xf32> to vector<16x1xf32>
    %458 = vector.broadcast %457 : vector<16x1xf32> to vector<16x16xf32>
    %459 = arith.subf %455, %458 : vector<16x16xf32>
    %460 = math.exp %459 : vector<16x16xf32>
    %cst_151 = arith.constant dense<0.000000e+00> : vector<16xf32>
    %461 = vector.multi_reduction <add>, %460, %cst_151 [1] : vector<16x16xf32> to vector<16xf32>
    %462 = vector.shape_cast %461 : vector<16xf32> to vector<16x1xf32>
    %463 = tpu.reciprocal %462 {approx = true} : vector<16x1xf32> -> vector<16x1xf32>
    %464 = vector.broadcast %463 : vector<16x1xf32> to vector<16x16xf32>
    %465 = arith.mulf %460, %464 : vector<16x16xf32>
    %466 = arith.truncf %465 : vector<16x16xf32> to vector<16x16xbf16>
    %cst_152 = arith.constant dense<0.000000e+00> : vector<16x32xf32>
    %467 = tpu.matmul %466, %450, %cst_152 {dimension_numbers = #tpu.dot_dimension_numbers<[1], [0], [0], [1], [0, 0, 1, 1], [], []>} : vector<16x16xbf16>, vector<16x32xbf16>, vector<16x32xf32> -> vector<16x32xf32>
    %c64_153 = arith.constant 64 : index
    %c32_154 = arith.constant 32 : index
    %468 = vector.load %arg18[%c64_153, %c32_154] : memref<128x128xf32, #tpu.memory_space<vmem>>, vector<16x32xf32>
    tpu.vector_store %arg18[%c64_153, %c32_154], %467 {strides = array<i32>} : memref<128x128xf32, #tpu.memory_space<vmem>>, vector<16x32xf32>,
    %469 = vector.extract_strided_slice %33 {offsets = [64, 64], sizes = [16, 32], strides = [1, 1]} : vector<128x384xf32> to vector<16x32xf32>
    %470 = arith.truncf %469 : vector<16x32xf32> to vector<16x32xbf16>
    %471 = vector.extract_strided_slice %33 {offsets = [64, 192], sizes = [16, 32], strides = [1, 1]} : vector<128x384xf32> to vector<16x32xf32>
    %472 = arith.truncf %471 : vector<16x32xf32> to vector<16x32xbf16>
    %473 = vector.extract_strided_slice %33 {offsets = [64, 320], sizes = [16, 32], strides = [1, 1]} : vector<128x384xf32> to vector<16x32xf32>
    %474 = arith.truncf %473 : vector<16x32xf32> to vector<16x32xbf16>
    %cst_155 = arith.constant dense<0.000000e+00> : vector<16x16xf32>
    %475 = tpu.matmul %470, %472, %cst_155 {dimension_numbers = #tpu.dot_dimension_numbers<[1], [1], [0], [0], [0, 0, 1, 0], [], []>} : vector<16x32xbf16>, vector<16x32xbf16>, vector<16x16xf32> -> vector<16x16xf32>
    %cst_156 = arith.constant 0.176776692 : f32
    %476 = vector.broadcast %cst_156 : f32 to vector<16x16xf32>
    %477 = arith.mulf %475, %476 : vector<16x16xf32>
    %cst_157 = arith.constant -1.000000e+30 : f32
    %478 = vector.broadcast %cst_157 : f32 to vector<16x16xf32>
    %479 = arith.select %36, %477, %478 : vector<16x16xi1>, vector<16x16xf32>
    %cst_158 = arith.constant dense<0xFF800000> : vector<16xf32>
    %480 = vector.multi_reduction <maximumf>, %479, %cst_158 [1] : vector<16x16xf32> to vector<16xf32>
    %481 = vector.shape_cast %480 : vector<16xf32> to vector<16x1xf32>
    %482 = vector.broadcast %481 : vector<16x1xf32> to vector<16x16xf32>
    %483 = arith.subf %479, %482 : vector<16x16xf32>
    %484 = math.exp %483 : vector<16x16xf32>
    %cst_159 = arith.constant dense<0.000000e+00> : vector<16xf32>
    %485 = vector.multi_reduction <add>, %484, %cst_159 [1] : vector<16x16xf32> to vector<16xf32>
    %486 = vector.shape_cast %485 : vector<16xf32> to vector<16x1xf32>
    %487 = tpu.reciprocal %486 {approx = true} : vector<16x1xf32> -> vector<16x1xf32>
    %488 = vector.broadcast %487 : vector<16x1xf32> to vector<16x16xf32>
    %489 = arith.mulf %484, %488 : vector<16x16xf32>
    %490 = arith.truncf %489 : vector<16x16xf32> to vector<16x16xbf16>
    %cst_160 = arith.constant dense<0.000000e+00> : vector<16x32xf32>
    %491 = tpu.matmul %490, %474, %cst_160 {dimension_numbers = #tpu.dot_dimension_numbers<[1], [0], [0], [1], [0, 0, 1, 1], [], []>} : vector<16x16xbf16>, vector<16x32xbf16>, vector<16x32xf32> -> vector<16x32xf32>
    %c64_161 = arith.constant 64 : index
    %c64_162 = arith.constant 64 : index
    %492 = vector.load %arg18[%c64_161, %c64_162] : memref<128x128xf32, #tpu.memory_space<vmem>>, vector<16x32xf32>
    tpu.vector_store %arg18[%c64_161, %c64_162], %491 {strides = array<i32>} : memref<128x128xf32, #tpu.memory_space<vmem>>, vector<16x32xf32>,
    %493 = vector.extract_strided_slice %33 {offsets = [64, 96], sizes = [16, 32], strides = [1, 1]} : vector<128x384xf32> to vector<16x32xf32>
    %494 = arith.truncf %493 : vector<16x32xf32> to vector<16x32xbf16>
    %495 = vector.extract_strided_slice %33 {offsets = [64, 224], sizes = [16, 32], strides = [1, 1]} : vector<128x384xf32> to vector<16x32xf32>
    %496 = arith.truncf %495 : vector<16x32xf32> to vector<16x32xbf16>
    %497 = vector.extract_strided_slice %33 {offsets = [64, 352], sizes = [16, 32], strides = [1, 1]} : vector<128x384xf32> to vector<16x32xf32>
    %498 = arith.truncf %497 : vector<16x32xf32> to vector<16x32xbf16>
    %cst_163 = arith.constant dense<0.000000e+00> : vector<16x16xf32>
    %499 = tpu.matmul %494, %496, %cst_163 {dimension_numbers = #tpu.dot_dimension_numbers<[1], [1], [0], [0], [0, 0, 1, 0], [], []>} : vector<16x32xbf16>, vector<16x32xbf16>, vector<16x16xf32> -> vector<16x16xf32>
    %cst_164 = arith.constant 0.176776692 : f32
    %500 = vector.broadcast %cst_164 : f32 to vector<16x16xf32>
    %501 = arith.mulf %499, %500 : vector<16x16xf32>
    %cst_165 = arith.constant -1.000000e+30 : f32
    %502 = vector.broadcast %cst_165 : f32 to vector<16x16xf32>
    %503 = arith.select %36, %501, %502 : vector<16x16xi1>, vector<16x16xf32>
    %cst_166 = arith.constant dense<0xFF800000> : vector<16xf32>
    %504 = vector.multi_reduction <maximumf>, %503, %cst_166 [1] : vector<16x16xf32> to vector<16xf32>
    %505 = vector.shape_cast %504 : vector<16xf32> to vector<16x1xf32>
    %506 = vector.broadcast %505 : vector<16x1xf32> to vector<16x16xf32>
    %507 = arith.subf %503, %506 : vector<16x16xf32>
    %508 = math.exp %507 : vector<16x16xf32>
    %cst_167 = arith.constant dense<0.000000e+00> : vector<16xf32>
    %509 = vector.multi_reduction <add>, %508, %cst_167 [1] : vector<16x16xf32> to vector<16xf32>
    %510 = vector.shape_cast %509 : vector<16xf32> to vector<16x1xf32>
    %511 = tpu.reciprocal %510 {approx = true} : vector<16x1xf32> -> vector<16x1xf32>
    %512 = vector.broadcast %511 : vector<16x1xf32> to vector<16x16xf32>
    %513 = arith.mulf %508, %512 : vector<16x16xf32>
    %514 = arith.truncf %513 : vector<16x16xf32> to vector<16x16xbf16>
    %cst_168 = arith.constant dense<0.000000e+00> : vector<16x32xf32>
    %515 = tpu.matmul %514, %498, %cst_168 {dimension_numbers = #tpu.dot_dimension_numbers<[1], [0], [0], [1], [0, 0, 1, 1], [], []>} : vector<16x16xbf16>, vector<16x32xbf16>, vector<16x32xf32> -> vector<16x32xf32>
    %c64_169 = arith.constant 64 : index
    %c96_170 = arith.constant 96 : index
    %516 = vector.load %arg18[%c64_169, %c96_170] : memref<128x128xf32, #tpu.memory_space<vmem>>, vector<16x32xf32>
    tpu.vector_store %arg18[%c64_169, %c96_170], %515 {strides = array<i32>} : memref<128x128xf32, #tpu.memory_space<vmem>>, vector<16x32xf32>,
    %517 = vector.extract_strided_slice %33 {offsets = [80, 0], sizes = [16, 32], strides = [1, 1]} : vector<128x384xf32> to vector<16x32xf32>
    %518 = arith.truncf %517 : vector<16x32xf32> to vector<16x32xbf16>
    %519 = vector.extract_strided_slice %33 {offsets = [80, 128], sizes = [16, 32], strides = [1, 1]} : vector<128x384xf32> to vector<16x32xf32>
    %520 = arith.truncf %519 : vector<16x32xf32> to vector<16x32xbf16>
    %521 = vector.extract_strided_slice %33 {offsets = [80, 256], sizes = [16, 32], strides = [1, 1]} : vector<128x384xf32> to vector<16x32xf32>
    %522 = arith.truncf %521 : vector<16x32xf32> to vector<16x32xbf16>
    %cst_171 = arith.constant dense<0.000000e+00> : vector<16x16xf32>
    %523 = tpu.matmul %518, %520, %cst_171 {dimension_numbers = #tpu.dot_dimension_numbers<[1], [1], [0], [0], [0, 0, 1, 0], [], []>} : vector<16x32xbf16>, vector<16x32xbf16>, vector<16x16xf32> -> vector<16x16xf32>
    %cst_172 = arith.constant 0.176776692 : f32
    %524 = vector.broadcast %cst_172 : f32 to vector<16x16xf32>
    %525 = arith.mulf %523, %524 : vector<16x16xf32>
    %cst_173 = arith.constant -1.000000e+30 : f32
    %526 = vector.broadcast %cst_173 : f32 to vector<16x16xf32>
    %527 = arith.select %36, %525, %526 : vector<16x16xi1>, vector<16x16xf32>
    %cst_174 = arith.constant dense<0xFF800000> : vector<16xf32>
    %528 = vector.multi_reduction <maximumf>, %527, %cst_174 [1] : vector<16x16xf32> to vector<16xf32>
    %529 = vector.shape_cast %528 : vector<16xf32> to vector<16x1xf32>
    %530 = vector.broadcast %529 : vector<16x1xf32> to vector<16x16xf32>
    %531 = arith.subf %527, %530 : vector<16x16xf32>
    %532 = math.exp %531 : vector<16x16xf32>
    %cst_175 = arith.constant dense<0.000000e+00> : vector<16xf32>
    %533 = vector.multi_reduction <add>, %532, %cst_175 [1] : vector<16x16xf32> to vector<16xf32>
    %534 = vector.shape_cast %533 : vector<16xf32> to vector<16x1xf32>
    %535 = tpu.reciprocal %534 {approx = true} : vector<16x1xf32> -> vector<16x1xf32>
    %536 = vector.broadcast %535 : vector<16x1xf32> to vector<16x16xf32>
    %537 = arith.mulf %532, %536 : vector<16x16xf32>
    %538 = arith.truncf %537 : vector<16x16xf32> to vector<16x16xbf16>
    %cst_176 = arith.constant dense<0.000000e+00> : vector<16x32xf32>
    %539 = tpu.matmul %538, %522, %cst_176 {dimension_numbers = #tpu.dot_dimension_numbers<[1], [0], [0], [1], [0, 0, 1, 1], [], []>} : vector<16x16xbf16>, vector<16x32xbf16>, vector<16x32xf32> -> vector<16x32xf32>
    %c80 = arith.constant 80 : index
    %c0_177 = arith.constant 0 : index
    %540 = vector.load %arg18[%c80, %c0_177] : memref<128x128xf32, #tpu.memory_space<vmem>>, vector<16x32xf32>
    tpu.vector_store %arg18[%c80, %c0_177], %539 {strides = array<i32>} : memref<128x128xf32, #tpu.memory_space<vmem>>, vector<16x32xf32>,
    %541 = vector.extract_strided_slice %33 {offsets = [80, 32], sizes = [16, 32], strides = [1, 1]} : vector<128x384xf32> to vector<16x32xf32>
    %542 = arith.truncf %541 : vector<16x32xf32> to vector<16x32xbf16>
    %543 = vector.extract_strided_slice %33 {offsets = [80, 160], sizes = [16, 32], strides = [1, 1]} : vector<128x384xf32> to vector<16x32xf32>
    %544 = arith.truncf %543 : vector<16x32xf32> to vector<16x32xbf16>
    %545 = vector.extract_strided_slice %33 {offsets = [80, 288], sizes = [16, 32], strides = [1, 1]} : vector<128x384xf32> to vector<16x32xf32>
    %546 = arith.truncf %545 : vector<16x32xf32> to vector<16x32xbf16>
    %cst_178 = arith.constant dense<0.000000e+00> : vector<16x16xf32>
    %547 = tpu.matmul %542, %544, %cst_178 {dimension_numbers = #tpu.dot_dimension_numbers<[1], [1], [0], [0], [0, 0, 1, 0], [], []>} : vector<16x32xbf16>, vector<16x32xbf16>, vector<16x16xf32> -> vector<16x16xf32>
    %cst_179 = arith.constant 0.176776692 : f32
    %548 = vector.broadcast %cst_179 : f32 to vector<16x16xf32>
    %549 = arith.mulf %547, %548 : vector<16x16xf32>
    %cst_180 = arith.constant -1.000000e+30 : f32
    %550 = vector.broadcast %cst_180 : f32 to vector<16x16xf32>
    %551 = arith.select %36, %549, %550 : vector<16x16xi1>, vector<16x16xf32>
    %cst_181 = arith.constant dense<0xFF800000> : vector<16xf32>
    %552 = vector.multi_reduction <maximumf>, %551, %cst_181 [1] : vector<16x16xf32> to vector<16xf32>
    %553 = vector.shape_cast %552 : vector<16xf32> to vector<16x1xf32>
    %554 = vector.broadcast %553 : vector<16x1xf32> to vector<16x16xf32>
    %555 = arith.subf %551, %554 : vector<16x16xf32>
    %556 = math.exp %555 : vector<16x16xf32>
    %cst_182 = arith.constant dense<0.000000e+00> : vector<16xf32>
    %557 = vector.multi_reduction <add>, %556, %cst_182 [1] : vector<16x16xf32> to vector<16xf32>
    %558 = vector.shape_cast %557 : vector<16xf32> to vector<16x1xf32>
    %559 = tpu.reciprocal %558 {approx = true} : vector<16x1xf32> -> vector<16x1xf32>
    %560 = vector.broadcast %559 : vector<16x1xf32> to vector<16x16xf32>
    %561 = arith.mulf %556, %560 : vector<16x16xf32>
    %562 = arith.truncf %561 : vector<16x16xf32> to vector<16x16xbf16>
    %cst_183 = arith.constant dense<0.000000e+00> : vector<16x32xf32>
    %563 = tpu.matmul %562, %546, %cst_183 {dimension_numbers = #tpu.dot_dimension_numbers<[1], [0], [0], [1], [0, 0, 1, 1], [], []>} : vector<16x16xbf16>, vector<16x32xbf16>, vector<16x32xf32> -> vector<16x32xf32>
    %c80_184 = arith.constant 80 : index
    %c32_185 = arith.constant 32 : index
    %564 = vector.load %arg18[%c80_184, %c32_185] : memref<128x128xf32, #tpu.memory_space<vmem>>, vector<16x32xf32>
    tpu.vector_store %arg18[%c80_184, %c32_185], %563 {strides = array<i32>} : memref<128x128xf32, #tpu.memory_space<vmem>>, vector<16x32xf32>,
    %565 = vector.extract_strided_slice %33 {offsets = [80, 64], sizes = [16, 32], strides = [1, 1]} : vector<128x384xf32> to vector<16x32xf32>
    %566 = arith.truncf %565 : vector<16x32xf32> to vector<16x32xbf16>
    %567 = vector.extract_strided_slice %33 {offsets = [80, 192], sizes = [16, 32], strides = [1, 1]} : vector<128x384xf32> to vector<16x32xf32>
    %568 = arith.truncf %567 : vector<16x32xf32> to vector<16x32xbf16>
    %569 = vector.extract_strided_slice %33 {offsets = [80, 320], sizes = [16, 32], strides = [1, 1]} : vector<128x384xf32> to vector<16x32xf32>
    %570 = arith.truncf %569 : vector<16x32xf32> to vector<16x32xbf16>
    %cst_186 = arith.constant dense<0.000000e+00> : vector<16x16xf32>
    %571 = tpu.matmul %566, %568, %cst_186 {dimension_numbers = #tpu.dot_dimension_numbers<[1], [1], [0], [0], [0, 0, 1, 0], [], []>} : vector<16x32xbf16>, vector<16x32xbf16>, vector<16x16xf32> -> vector<16x16xf32>
    %cst_187 = arith.constant 0.176776692 : f32
    %572 = vector.broadcast %cst_187 : f32 to vector<16x16xf32>
    %573 = arith.mulf %571, %572 : vector<16x16xf32>
    %cst_188 = arith.constant -1.000000e+30 : f32
    %574 = vector.broadcast %cst_188 : f32 to vector<16x16xf32>
    %575 = arith.select %36, %573, %574 : vector<16x16xi1>, vector<16x16xf32>
    %cst_189 = arith.constant dense<0xFF800000> : vector<16xf32>
    %576 = vector.multi_reduction <maximumf>, %575, %cst_189 [1] : vector<16x16xf32> to vector<16xf32>
    %577 = vector.shape_cast %576 : vector<16xf32> to vector<16x1xf32>
    %578 = vector.broadcast %577 : vector<16x1xf32> to vector<16x16xf32>
    %579 = arith.subf %575, %578 : vector<16x16xf32>
    %580 = math.exp %579 : vector<16x16xf32>
    %cst_190 = arith.constant dense<0.000000e+00> : vector<16xf32>
    %581 = vector.multi_reduction <add>, %580, %cst_190 [1] : vector<16x16xf32> to vector<16xf32>
    %582 = vector.shape_cast %581 : vector<16xf32> to vector<16x1xf32>
    %583 = tpu.reciprocal %582 {approx = true} : vector<16x1xf32> -> vector<16x1xf32>
    %584 = vector.broadcast %583 : vector<16x1xf32> to vector<16x16xf32>
    %585 = arith.mulf %580, %584 : vector<16x16xf32>
    %586 = arith.truncf %585 : vector<16x16xf32> to vector<16x16xbf16>
    %cst_191 = arith.constant dense<0.000000e+00> : vector<16x32xf32>
    %587 = tpu.matmul %586, %570, %cst_191 {dimension_numbers = #tpu.dot_dimension_numbers<[1], [0], [0], [1], [0, 0, 1, 1], [], []>} : vector<16x16xbf16>, vector<16x32xbf16>, vector<16x32xf32> -> vector<16x32xf32>
    %c80_192 = arith.constant 80 : index
    %c64_193 = arith.constant 64 : index
    %588 = vector.load %arg18[%c80_192, %c64_193] : memref<128x128xf32, #tpu.memory_space<vmem>>, vector<16x32xf32>
    tpu.vector_store %arg18[%c80_192, %c64_193], %587 {strides = array<i32>} : memref<128x128xf32, #tpu.memory_space<vmem>>, vector<16x32xf32>,
    %589 = vector.extract_strided_slice %33 {offsets = [80, 96], sizes = [16, 32], strides = [1, 1]} : vector<128x384xf32> to vector<16x32xf32>
    %590 = arith.truncf %589 : vector<16x32xf32> to vector<16x32xbf16>
    %591 = vector.extract_strided_slice %33 {offsets = [80, 224], sizes = [16, 32], strides = [1, 1]} : vector<128x384xf32> to vector<16x32xf32>
    %592 = arith.truncf %591 : vector<16x32xf32> to vector<16x32xbf16>
    %593 = vector.extract_strided_slice %33 {offsets = [80, 352], sizes = [16, 32], strides = [1, 1]} : vector<128x384xf32> to vector<16x32xf32>
    %594 = arith.truncf %593 : vector<16x32xf32> to vector<16x32xbf16>
    %cst_194 = arith.constant dense<0.000000e+00> : vector<16x16xf32>
    %595 = tpu.matmul %590, %592, %cst_194 {dimension_numbers = #tpu.dot_dimension_numbers<[1], [1], [0], [0], [0, 0, 1, 0], [], []>} : vector<16x32xbf16>, vector<16x32xbf16>, vector<16x16xf32> -> vector<16x16xf32>
    %cst_195 = arith.constant 0.176776692 : f32
    %596 = vector.broadcast %cst_195 : f32 to vector<16x16xf32>
    %597 = arith.mulf %595, %596 : vector<16x16xf32>
    %cst_196 = arith.constant -1.000000e+30 : f32
    %598 = vector.broadcast %cst_196 : f32 to vector<16x16xf32>
    %599 = arith.select %36, %597, %598 : vector<16x16xi1>, vector<16x16xf32>
    %cst_197 = arith.constant dense<0xFF800000> : vector<16xf32>
    %600 = vector.multi_reduction <maximumf>, %599, %cst_197 [1] : vector<16x16xf32> to vector<16xf32>
    %601 = vector.shape_cast %600 : vector<16xf32> to vector<16x1xf32>
    %602 = vector.broadcast %601 : vector<16x1xf32> to vector<16x16xf32>
    %603 = arith.subf %599, %602 : vector<16x16xf32>
    %604 = math.exp %603 : vector<16x16xf32>
    %cst_198 = arith.constant dense<0.000000e+00> : vector<16xf32>
    %605 = vector.multi_reduction <add>, %604, %cst_198 [1] : vector<16x16xf32> to vector<16xf32>
    %606 = vector.shape_cast %605 : vector<16xf32> to vector<16x1xf32>
    %607 = tpu.reciprocal %606 {approx = true} : vector<16x1xf32> -> vector<16x1xf32>
    %608 = vector.broadcast %607 : vector<16x1xf32> to vector<16x16xf32>
    %609 = arith.mulf %604, %608 : vector<16x16xf32>
    %610 = arith.truncf %609 : vector<16x16xf32> to vector<16x16xbf16>
    %cst_199 = arith.constant dense<0.000000e+00> : vector<16x32xf32>
    %611 = tpu.matmul %610, %594, %cst_199 {dimension_numbers = #tpu.dot_dimension_numbers<[1], [0], [0], [1], [0, 0, 1, 1], [], []>} : vector<16x16xbf16>, vector<16x32xbf16>, vector<16x32xf32> -> vector<16x32xf32>
    %c80_200 = arith.constant 80 : index
    %c96_201 = arith.constant 96 : index
    %612 = vector.load %arg18[%c80_200, %c96_201] : memref<128x128xf32, #tpu.memory_space<vmem>>, vector<16x32xf32>
    tpu.vector_store %arg18[%c80_200, %c96_201], %611 {strides = array<i32>} : memref<128x128xf32, #tpu.memory_space<vmem>>, vector<16x32xf32>,
    %613 = vector.extract_strided_slice %33 {offsets = [96, 0], sizes = [16, 32], strides = [1, 1]} : vector<128x384xf32> to vector<16x32xf32>
    %614 = arith.truncf %613 : vector<16x32xf32> to vector<16x32xbf16>
    %615 = vector.extract_strided_slice %33 {offsets = [96, 128], sizes = [16, 32], strides = [1, 1]} : vector<128x384xf32> to vector<16x32xf32>
    %616 = arith.truncf %615 : vector<16x32xf32> to vector<16x32xbf16>
    %617 = vector.extract_strided_slice %33 {offsets = [96, 256], sizes = [16, 32], strides = [1, 1]} : vector<128x384xf32> to vector<16x32xf32>
    %618 = arith.truncf %617 : vector<16x32xf32> to vector<16x32xbf16>
    %cst_202 = arith.constant dense<0.000000e+00> : vector<16x16xf32>
    %619 = tpu.matmul %614, %616, %cst_202 {dimension_numbers = #tpu.dot_dimension_numbers<[1], [1], [0], [0], [0, 0, 1, 0], [], []>} : vector<16x32xbf16>, vector<16x32xbf16>, vector<16x16xf32> -> vector<16x16xf32>
    %cst_203 = arith.constant 0.176776692 : f32
    %620 = vector.broadcast %cst_203 : f32 to vector<16x16xf32>
    %621 = arith.mulf %619, %620 : vector<16x16xf32>
    %cst_204 = arith.constant -1.000000e+30 : f32
    %622 = vector.broadcast %cst_204 : f32 to vector<16x16xf32>
    %623 = arith.select %36, %621, %622 : vector<16x16xi1>, vector<16x16xf32>
    %cst_205 = arith.constant dense<0xFF800000> : vector<16xf32>
    %624 = vector.multi_reduction <maximumf>, %623, %cst_205 [1] : vector<16x16xf32> to vector<16xf32>
    %625 = vector.shape_cast %624 : vector<16xf32> to vector<16x1xf32>
    %626 = vector.broadcast %625 : vector<16x1xf32> to vector<16x16xf32>
    %627 = arith.subf %623, %626 : vector<16x16xf32>
    %628 = math.exp %627 : vector<16x16xf32>
    %cst_206 = arith.constant dense<0.000000e+00> : vector<16xf32>
    %629 = vector.multi_reduction <add>, %628, %cst_206 [1] : vector<16x16xf32> to vector<16xf32>
    %630 = vector.shape_cast %629 : vector<16xf32> to vector<16x1xf32>
    %631 = tpu.reciprocal %630 {approx = true} : vector<16x1xf32> -> vector<16x1xf32>
    %632 = vector.broadcast %631 : vector<16x1xf32> to vector<16x16xf32>
    %633 = arith.mulf %628, %632 : vector<16x16xf32>
    %634 = arith.truncf %633 : vector<16x16xf32> to vector<16x16xbf16>
    %cst_207 = arith.constant dense<0.000000e+00> : vector<16x32xf32>
    %635 = tpu.matmul %634, %618, %cst_207 {dimension_numbers = #tpu.dot_dimension_numbers<[1], [0], [0], [1], [0, 0, 1, 1], [], []>} : vector<16x16xbf16>, vector<16x32xbf16>, vector<16x32xf32> -> vector<16x32xf32>
    %c96_208 = arith.constant 96 : index
    %c0_209 = arith.constant 0 : index
    %636 = vector.load %arg18[%c96_208, %c0_209] : memref<128x128xf32, #tpu.memory_space<vmem>>, vector<16x32xf32>
    tpu.vector_store %arg18[%c96_208, %c0_209], %635 {strides = array<i32>} : memref<128x128xf32, #tpu.memory_space<vmem>>, vector<16x32xf32>,
    %637 = vector.extract_strided_slice %33 {offsets = [96, 32], sizes = [16, 32], strides = [1, 1]} : vector<128x384xf32> to vector<16x32xf32>
    %638 = arith.truncf %637 : vector<16x32xf32> to vector<16x32xbf16>
    %639 = vector.extract_strided_slice %33 {offsets = [96, 160], sizes = [16, 32], strides = [1, 1]} : vector<128x384xf32> to vector<16x32xf32>
    %640 = arith.truncf %639 : vector<16x32xf32> to vector<16x32xbf16>
    %641 = vector.extract_strided_slice %33 {offsets = [96, 288], sizes = [16, 32], strides = [1, 1]} : vector<128x384xf32> to vector<16x32xf32>
    %642 = arith.truncf %641 : vector<16x32xf32> to vector<16x32xbf16>
    %cst_210 = arith.constant dense<0.000000e+00> : vector<16x16xf32>
    %643 = tpu.matmul %638, %640, %cst_210 {dimension_numbers = #tpu.dot_dimension_numbers<[1], [1], [0], [0], [0, 0, 1, 0], [], []>} : vector<16x32xbf16>, vector<16x32xbf16>, vector<16x16xf32> -> vector<16x16xf32>
    %cst_211 = arith.constant 0.176776692 : f32
    %644 = vector.broadcast %cst_211 : f32 to vector<16x16xf32>
    %645 = arith.mulf %643, %644 : vector<16x16xf32>
    %cst_212 = arith.constant -1.000000e+30 : f32
    %646 = vector.broadcast %cst_212 : f32 to vector<16x16xf32>
    %647 = arith.select %36, %645, %646 : vector<16x16xi1>, vector<16x16xf32>
    %cst_213 = arith.constant dense<0xFF800000> : vector<16xf32>
    %648 = vector.multi_reduction <maximumf>, %647, %cst_213 [1] : vector<16x16xf32> to vector<16xf32>
    %649 = vector.shape_cast %648 : vector<16xf32> to vector<16x1xf32>
    %650 = vector.broadcast %649 : vector<16x1xf32> to vector<16x16xf32>
    %651 = arith.subf %647, %650 : vector<16x16xf32>
    %652 = math.exp %651 : vector<16x16xf32>
    %cst_214 = arith.constant dense<0.000000e+00> : vector<16xf32>
    %653 = vector.multi_reduction <add>, %652, %cst_214 [1] : vector<16x16xf32> to vector<16xf32>
    %654 = vector.shape_cast %653 : vector<16xf32> to vector<16x1xf32>
    %655 = tpu.reciprocal %654 {approx = true} : vector<16x1xf32> -> vector<16x1xf32>
    %656 = vector.broadcast %655 : vector<16x1xf32> to vector<16x16xf32>
    %657 = arith.mulf %652, %656 : vector<16x16xf32>
    %658 = arith.truncf %657 : vector<16x16xf32> to vector<16x16xbf16>
    %cst_215 = arith.constant dense<0.000000e+00> : vector<16x32xf32>
    %659 = tpu.matmul %658, %642, %cst_215 {dimension_numbers = #tpu.dot_dimension_numbers<[1], [0], [0], [1], [0, 0, 1, 1], [], []>} : vector<16x16xbf16>, vector<16x32xbf16>, vector<16x32xf32> -> vector<16x32xf32>
    %c96_216 = arith.constant 96 : index
    %c32_217 = arith.constant 32 : index
    %660 = vector.load %arg18[%c96_216, %c32_217] : memref<128x128xf32, #tpu.memory_space<vmem>>, vector<16x32xf32>
    tpu.vector_store %arg18[%c96_216, %c32_217], %659 {strides = array<i32>} : memref<128x128xf32, #tpu.memory_space<vmem>>, vector<16x32xf32>,
    %661 = vector.extract_strided_slice %33 {offsets = [96, 64], sizes = [16, 32], strides = [1, 1]} : vector<128x384xf32> to vector<16x32xf32>
    %662 = arith.truncf %661 : vector<16x32xf32> to vector<16x32xbf16>
    %663 = vector.extract_strided_slice %33 {offsets = [96, 192], sizes = [16, 32], strides = [1, 1]} : vector<128x384xf32> to vector<16x32xf32>
    %664 = arith.truncf %663 : vector<16x32xf32> to vector<16x32xbf16>
    %665 = vector.extract_strided_slice %33 {offsets = [96, 320], sizes = [16, 32], strides = [1, 1]} : vector<128x384xf32> to vector<16x32xf32>
    %666 = arith.truncf %665 : vector<16x32xf32> to vector<16x32xbf16>
    %cst_218 = arith.constant dense<0.000000e+00> : vector<16x16xf32>
    %667 = tpu.matmul %662, %664, %cst_218 {dimension_numbers = #tpu.dot_dimension_numbers<[1], [1], [0], [0], [0, 0, 1, 0], [], []>} : vector<16x32xbf16>, vector<16x32xbf16>, vector<16x16xf32> -> vector<16x16xf32>
    %cst_219 = arith.constant 0.176776692 : f32
    %668 = vector.broadcast %cst_219 : f32 to vector<16x16xf32>
    %669 = arith.mulf %667, %668 : vector<16x16xf32>
    %cst_220 = arith.constant -1.000000e+30 : f32
    %670 = vector.broadcast %cst_220 : f32 to vector<16x16xf32>
    %671 = arith.select %36, %669, %670 : vector<16x16xi1>, vector<16x16xf32>
    %cst_221 = arith.constant dense<0xFF800000> : vector<16xf32>
    %672 = vector.multi_reduction <maximumf>, %671, %cst_221 [1] : vector<16x16xf32> to vector<16xf32>
    %673 = vector.shape_cast %672 : vector<16xf32> to vector<16x1xf32>
    %674 = vector.broadcast %673 : vector<16x1xf32> to vector<16x16xf32>
    %675 = arith.subf %671, %674 : vector<16x16xf32>
    %676 = math.exp %675 : vector<16x16xf32>
    %cst_222 = arith.constant dense<0.000000e+00> : vector<16xf32>
    %677 = vector.multi_reduction <add>, %676, %cst_222 [1] : vector<16x16xf32> to vector<16xf32>
    %678 = vector.shape_cast %677 : vector<16xf32> to vector<16x1xf32>
    %679 = tpu.reciprocal %678 {approx = true} : vector<16x1xf32> -> vector<16x1xf32>
    %680 = vector.broadcast %679 : vector<16x1xf32> to vector<16x16xf32>
    %681 = arith.mulf %676, %680 : vector<16x16xf32>
    %682 = arith.truncf %681 : vector<16x16xf32> to vector<16x16xbf16>
    %cst_223 = arith.constant dense<0.000000e+00> : vector<16x32xf32>
    %683 = tpu.matmul %682, %666, %cst_223 {dimension_numbers = #tpu.dot_dimension_numbers<[1], [0], [0], [1], [0, 0, 1, 1], [], []>} : vector<16x16xbf16>, vector<16x32xbf16>, vector<16x32xf32> -> vector<16x32xf32>
    %c96_224 = arith.constant 96 : index
    %c64_225 = arith.constant 64 : index
    %684 = vector.load %arg18[%c96_224, %c64_225] : memref<128x128xf32, #tpu.memory_space<vmem>>, vector<16x32xf32>
    tpu.vector_store %arg18[%c96_224, %c64_225], %683 {strides = array<i32>} : memref<128x128xf32, #tpu.memory_space<vmem>>, vector<16x32xf32>,
    %685 = vector.extract_strided_slice %33 {offsets = [96, 96], sizes = [16, 32], strides = [1, 1]} : vector<128x384xf32> to vector<16x32xf32>
    %686 = arith.truncf %685 : vector<16x32xf32> to vector<16x32xbf16>
    %687 = vector.extract_strided_slice %33 {offsets = [96, 224], sizes = [16, 32], strides = [1, 1]} : vector<128x384xf32> to vector<16x32xf32>
    %688 = arith.truncf %687 : vector<16x32xf32> to vector<16x32xbf16>
    %689 = vector.extract_strided_slice %33 {offsets = [96, 352], sizes = [16, 32], strides = [1, 1]} : vector<128x384xf32> to vector<16x32xf32>
    %690 = arith.truncf %689 : vector<16x32xf32> to vector<16x32xbf16>
    %cst_226 = arith.constant dense<0.000000e+00> : vector<16x16xf32>
    %691 = tpu.matmul %686, %688, %cst_226 {dimension_numbers = #tpu.dot_dimension_numbers<[1], [1], [0], [0], [0, 0, 1, 0], [], []>} : vector<16x32xbf16>, vector<16x32xbf16>, vector<16x16xf32> -> vector<16x16xf32>
    %cst_227 = arith.constant 0.176776692 : f32
    %692 = vector.broadcast %cst_227 : f32 to vector<16x16xf32>
    %693 = arith.mulf %691, %692 : vector<16x16xf32>
    %cst_228 = arith.constant -1.000000e+30 : f32
    %694 = vector.broadcast %cst_228 : f32 to vector<16x16xf32>
    %695 = arith.select %36, %693, %694 : vector<16x16xi1>, vector<16x16xf32>
    %cst_229 = arith.constant dense<0xFF800000> : vector<16xf32>
    %696 = vector.multi_reduction <maximumf>, %695, %cst_229 [1] : vector<16x16xf32> to vector<16xf32>
    %697 = vector.shape_cast %696 : vector<16xf32> to vector<16x1xf32>
    %698 = vector.broadcast %697 : vector<16x1xf32> to vector<16x16xf32>
    %699 = arith.subf %695, %698 : vector<16x16xf32>
    %700 = math.exp %699 : vector<16x16xf32>
    %cst_230 = arith.constant dense<0.000000e+00> : vector<16xf32>
    %701 = vector.multi_reduction <add>, %700, %cst_230 [1] : vector<16x16xf32> to vector<16xf32>
    %702 = vector.shape_cast %701 : vector<16xf32> to vector<16x1xf32>
    %703 = tpu.reciprocal %702 {approx = true} : vector<16x1xf32> -> vector<16x1xf32>
    %704 = vector.broadcast %703 : vector<16x1xf32> to vector<16x16xf32>
    %705 = arith.mulf %700, %704 : vector<16x16xf32>
    %706 = arith.truncf %705 : vector<16x16xf32> to vector<16x16xbf16>
    %cst_231 = arith.constant dense<0.000000e+00> : vector<16x32xf32>
    %707 = tpu.matmul %706, %690, %cst_231 {dimension_numbers = #tpu.dot_dimension_numbers<[1], [0], [0], [1], [0, 0, 1, 1], [], []>} : vector<16x16xbf16>, vector<16x32xbf16>, vector<16x32xf32> -> vector<16x32xf32>
    %c96_232 = arith.constant 96 : index
    %c96_233 = arith.constant 96 : index
    %708 = vector.load %arg18[%c96_232, %c96_233] : memref<128x128xf32, #tpu.memory_space<vmem>>, vector<16x32xf32>
    tpu.vector_store %arg18[%c96_232, %c96_233], %707 {strides = array<i32>} : memref<128x128xf32, #tpu.memory_space<vmem>>, vector<16x32xf32>,
    %709 = vector.extract_strided_slice %33 {offsets = [112, 0], sizes = [16, 32], strides = [1, 1]} : vector<128x384xf32> to vector<16x32xf32>
    %710 = arith.truncf %709 : vector<16x32xf32> to vector<16x32xbf16>
    %711 = vector.extract_strided_slice %33 {offsets = [112, 128], sizes = [16, 32], strides = [1, 1]} : vector<128x384xf32> to vector<16x32xf32>
    %712 = arith.truncf %711 : vector<16x32xf32> to vector<16x32xbf16>
    %713 = vector.extract_strided_slice %33 {offsets = [112, 256], sizes = [16, 32], strides = [1, 1]} : vector<128x384xf32> to vector<16x32xf32>
    %714 = arith.truncf %713 : vector<16x32xf32> to vector<16x32xbf16>
    %cst_234 = arith.constant dense<0.000000e+00> : vector<16x16xf32>
    %715 = tpu.matmul %710, %712, %cst_234 {dimension_numbers = #tpu.dot_dimension_numbers<[1], [1], [0], [0], [0, 0, 1, 0], [], []>} : vector<16x32xbf16>, vector<16x32xbf16>, vector<16x16xf32> -> vector<16x16xf32>
    %cst_235 = arith.constant 0.176776692 : f32
    %716 = vector.broadcast %cst_235 : f32 to vector<16x16xf32>
    %717 = arith.mulf %715, %716 : vector<16x16xf32>
    %cst_236 = arith.constant -1.000000e+30 : f32
    %718 = vector.broadcast %cst_236 : f32 to vector<16x16xf32>
    %719 = arith.select %36, %717, %718 : vector<16x16xi1>, vector<16x16xf32>
    %cst_237 = arith.constant dense<0xFF800000> : vector<16xf32>
    %720 = vector.multi_reduction <maximumf>, %719, %cst_237 [1] : vector<16x16xf32> to vector<16xf32>
    %721 = vector.shape_cast %720 : vector<16xf32> to vector<16x1xf32>
    %722 = vector.broadcast %721 : vector<16x1xf32> to vector<16x16xf32>
    %723 = arith.subf %719, %722 : vector<16x16xf32>
    %724 = math.exp %723 : vector<16x16xf32>
    %cst_238 = arith.constant dense<0.000000e+00> : vector<16xf32>
    %725 = vector.multi_reduction <add>, %724, %cst_238 [1] : vector<16x16xf32> to vector<16xf32>
    %726 = vector.shape_cast %725 : vector<16xf32> to vector<16x1xf32>
    %727 = tpu.reciprocal %726 {approx = true} : vector<16x1xf32> -> vector<16x1xf32>
    %728 = vector.broadcast %727 : vector<16x1xf32> to vector<16x16xf32>
    %729 = arith.mulf %724, %728 : vector<16x16xf32>
    %730 = arith.truncf %729 : vector<16x16xf32> to vector<16x16xbf16>
    %cst_239 = arith.constant dense<0.000000e+00> : vector<16x32xf32>
    %731 = tpu.matmul %730, %714, %cst_239 {dimension_numbers = #tpu.dot_dimension_numbers<[1], [0], [0], [1], [0, 0, 1, 1], [], []>} : vector<16x16xbf16>, vector<16x32xbf16>, vector<16x32xf32> -> vector<16x32xf32>
    %c112 = arith.constant 112 : index
    %c0_240 = arith.constant 0 : index
    %732 = vector.load %arg18[%c112, %c0_240] : memref<128x128xf32, #tpu.memory_space<vmem>>, vector<16x32xf32>
    tpu.vector_store %arg18[%c112, %c0_240], %731 {strides = array<i32>} : memref<128x128xf32, #tpu.memory_space<vmem>>, vector<16x32xf32>,
    %733 = vector.extract_strided_slice %33 {offsets = [112, 32], sizes = [16, 32], strides = [1, 1]} : vector<128x384xf32> to vector<16x32xf32>
    %734 = arith.truncf %733 : vector<16x32xf32> to vector<16x32xbf16>
    %735 = vector.extract_strided_slice %33 {offsets = [112, 160], sizes = [16, 32], strides = [1, 1]} : vector<128x384xf32> to vector<16x32xf32>
    %736 = arith.truncf %735 : vector<16x32xf32> to vector<16x32xbf16>
    %737 = vector.extract_strided_slice %33 {offsets = [112, 288], sizes = [16, 32], strides = [1, 1]} : vector<128x384xf32> to vector<16x32xf32>
    %738 = arith.truncf %737 : vector<16x32xf32> to vector<16x32xbf16>
    %cst_241 = arith.constant dense<0.000000e+00> : vector<16x16xf32>
    %739 = tpu.matmul %734, %736, %cst_241 {dimension_numbers = #tpu.dot_dimension_numbers<[1], [1], [0], [0], [0, 0, 1, 0], [], []>} : vector<16x32xbf16>, vector<16x32xbf16>, vector<16x16xf32> -> vector<16x16xf32>
    %cst_242 = arith.constant 0.176776692 : f32
    %740 = vector.broadcast %cst_242 : f32 to vector<16x16xf32>
    %741 = arith.mulf %739, %740 : vector<16x16xf32>
    %cst_243 = arith.constant -1.000000e+30 : f32
    %742 = vector.broadcast %cst_243 : f32 to vector<16x16xf32>
    %743 = arith.select %36, %741, %742 : vector<16x16xi1>, vector<16x16xf32>
    %cst_244 = arith.constant dense<0xFF800000> : vector<16xf32>
    %744 = vector.multi_reduction <maximumf>, %743, %cst_244 [1] : vector<16x16xf32> to vector<16xf32>
    %745 = vector.shape_cast %744 : vector<16xf32> to vector<16x1xf32>
    %746 = vector.broadcast %745 : vector<16x1xf32> to vector<16x16xf32>
    %747 = arith.subf %743, %746 : vector<16x16xf32>
    %748 = math.exp %747 : vector<16x16xf32>
    %cst_245 = arith.constant dense<0.000000e+00> : vector<16xf32>
    %749 = vector.multi_reduction <add>, %748, %cst_245 [1] : vector<16x16xf32> to vector<16xf32>
    %750 = vector.shape_cast %749 : vector<16xf32> to vector<16x1xf32>
    %751 = tpu.reciprocal %750 {approx = true} : vector<16x1xf32> -> vector<16x1xf32>
    %752 = vector.broadcast %751 : vector<16x1xf32> to vector<16x16xf32>
    %753 = arith.mulf %748, %752 : vector<16x16xf32>
    %754 = arith.truncf %753 : vector<16x16xf32> to vector<16x16xbf16>
    %cst_246 = arith.constant dense<0.000000e+00> : vector<16x32xf32>
    %755 = tpu.matmul %754, %738, %cst_246 {dimension_numbers = #tpu.dot_dimension_numbers<[1], [0], [0], [1], [0, 0, 1, 1], [], []>} : vector<16x16xbf16>, vector<16x32xbf16>, vector<16x32xf32> -> vector<16x32xf32>
    %c112_247 = arith.constant 112 : index
    %c32_248 = arith.constant 32 : index
    %756 = vector.load %arg18[%c112_247, %c32_248] : memref<128x128xf32, #tpu.memory_space<vmem>>, vector<16x32xf32>
    tpu.vector_store %arg18[%c112_247, %c32_248], %755 {strides = array<i32>} : memref<128x128xf32, #tpu.memory_space<vmem>>, vector<16x32xf32>,
    %757 = vector.extract_strided_slice %33 {offsets = [112, 64], sizes = [16, 32], strides = [1, 1]} : vector<128x384xf32> to vector<16x32xf32>
    %758 = arith.truncf %757 : vector<16x32xf32> to vector<16x32xbf16>
    %759 = vector.extract_strided_slice %33 {offsets = [112, 192], sizes = [16, 32], strides = [1, 1]} : vector<128x384xf32> to vector<16x32xf32>
    %760 = arith.truncf %759 : vector<16x32xf32> to vector<16x32xbf16>
    %761 = vector.extract_strided_slice %33 {offsets = [112, 320], sizes = [16, 32], strides = [1, 1]} : vector<128x384xf32> to vector<16x32xf32>
    %762 = arith.truncf %761 : vector<16x32xf32> to vector<16x32xbf16>
    %cst_249 = arith.constant dense<0.000000e+00> : vector<16x16xf32>
    %763 = tpu.matmul %758, %760, %cst_249 {dimension_numbers = #tpu.dot_dimension_numbers<[1], [1], [0], [0], [0, 0, 1, 0], [], []>} : vector<16x32xbf16>, vector<16x32xbf16>, vector<16x16xf32> -> vector<16x16xf32>
    %cst_250 = arith.constant 0.176776692 : f32
    %764 = vector.broadcast %cst_250 : f32 to vector<16x16xf32>
    %765 = arith.mulf %763, %764 : vector<16x16xf32>
    %cst_251 = arith.constant -1.000000e+30 : f32
    %766 = vector.broadcast %cst_251 : f32 to vector<16x16xf32>
    %767 = arith.select %36, %765, %766 : vector<16x16xi1>, vector<16x16xf32>
    %cst_252 = arith.constant dense<0xFF800000> : vector<16xf32>
    %768 = vector.multi_reduction <maximumf>, %767, %cst_252 [1] : vector<16x16xf32> to vector<16xf32>
    %769 = vector.shape_cast %768 : vector<16xf32> to vector<16x1xf32>
    %770 = vector.broadcast %769 : vector<16x1xf32> to vector<16x16xf32>
    %771 = arith.subf %767, %770 : vector<16x16xf32>
    %772 = math.exp %771 : vector<16x16xf32>
    %cst_253 = arith.constant dense<0.000000e+00> : vector<16xf32>
    %773 = vector.multi_reduction <add>, %772, %cst_253 [1] : vector<16x16xf32> to vector<16xf32>
    %774 = vector.shape_cast %773 : vector<16xf32> to vector<16x1xf32>
    %775 = tpu.reciprocal %774 {approx = true} : vector<16x1xf32> -> vector<16x1xf32>
    %776 = vector.broadcast %775 : vector<16x1xf32> to vector<16x16xf32>
    %777 = arith.mulf %772, %776 : vector<16x16xf32>
    %778 = arith.truncf %777 : vector<16x16xf32> to vector<16x16xbf16>
    %cst_254 = arith.constant dense<0.000000e+00> : vector<16x32xf32>
    %779 = tpu.matmul %778, %762, %cst_254 {dimension_numbers = #tpu.dot_dimension_numbers<[1], [0], [0], [1], [0, 0, 1, 1], [], []>} : vector<16x16xbf16>, vector<16x32xbf16>, vector<16x32xf32> -> vector<16x32xf32>
    %c112_255 = arith.constant 112 : index
    %c64_256 = arith.constant 64 : index
    %780 = vector.load %arg18[%c112_255, %c64_256] : memref<128x128xf32, #tpu.memory_space<vmem>>, vector<16x32xf32>
    tpu.vector_store %arg18[%c112_255, %c64_256], %779 {strides = array<i32>} : memref<128x128xf32, #tpu.memory_space<vmem>>, vector<16x32xf32>,
    %781 = vector.extract_strided_slice %33 {offsets = [112, 96], sizes = [16, 32], strides = [1, 1]} : vector<128x384xf32> to vector<16x32xf32>
    %782 = arith.truncf %781 : vector<16x32xf32> to vector<16x32xbf16>
    %783 = vector.extract_strided_slice %33 {offsets = [112, 224], sizes = [16, 32], strides = [1, 1]} : vector<128x384xf32> to vector<16x32xf32>
    %784 = arith.truncf %783 : vector<16x32xf32> to vector<16x32xbf16>
    %785 = vector.extract_strided_slice %33 {offsets = [112, 352], sizes = [16, 32], strides = [1, 1]} : vector<128x384xf32> to vector<16x32xf32>
    %786 = arith.truncf %785 : vector<16x32xf32> to vector<16x32xbf16>
    %cst_257 = arith.constant dense<0.000000e+00> : vector<16x16xf32>
    %787 = tpu.matmul %782, %784, %cst_257 {dimension_numbers = #tpu.dot_dimension_numbers<[1], [1], [0], [0], [0, 0, 1, 0], [], []>} : vector<16x32xbf16>, vector<16x32xbf16>, vector<16x16xf32> -> vector<16x16xf32>
    %cst_258 = arith.constant 0.176776692 : f32
    %788 = vector.broadcast %cst_258 : f32 to vector<16x16xf32>
    %789 = arith.mulf %787, %788 : vector<16x16xf32>
    %cst_259 = arith.constant -1.000000e+30 : f32
    %790 = vector.broadcast %cst_259 : f32 to vector<16x16xf32>
    %791 = arith.select %36, %789, %790 : vector<16x16xi1>, vector<16x16xf32>
    %cst_260 = arith.constant dense<0xFF800000> : vector<16xf32>
    %792 = vector.multi_reduction <maximumf>, %791, %cst_260 [1] : vector<16x16xf32> to vector<16xf32>
    %793 = vector.shape_cast %792 : vector<16xf32> to vector<16x1xf32>
    %794 = vector.broadcast %793 : vector<16x1xf32> to vector<16x16xf32>
    %795 = arith.subf %791, %794 : vector<16x16xf32>
    %796 = math.exp %795 : vector<16x16xf32>
    %cst_261 = arith.constant dense<0.000000e+00> : vector<16xf32>
    %797 = vector.multi_reduction <add>, %796, %cst_261 [1] : vector<16x16xf32> to vector<16xf32>
    %798 = vector.shape_cast %797 : vector<16xf32> to vector<16x1xf32>
    %799 = tpu.reciprocal %798 {approx = true} : vector<16x1xf32> -> vector<16x1xf32>
    %800 = vector.broadcast %799 : vector<16x1xf32> to vector<16x16xf32>
    %801 = arith.mulf %796, %800 : vector<16x16xf32>
    %802 = arith.truncf %801 : vector<16x16xf32> to vector<16x16xbf16>
    %cst_262 = arith.constant dense<0.000000e+00> : vector<16x32xf32>
    %803 = tpu.matmul %802, %786, %cst_262 {dimension_numbers = #tpu.dot_dimension_numbers<[1], [0], [0], [1], [0, 0, 1, 1], [], []>} : vector<16x16xbf16>, vector<16x32xbf16>, vector<16x32xf32> -> vector<16x32xf32>
    %c112_263 = arith.constant 112 : index
    %c96_264 = arith.constant 96 : index
    %804 = vector.load %arg18[%c112_263, %c96_264] : memref<128x128xf32, #tpu.memory_space<vmem>>, vector<16x32xf32>
    tpu.vector_store %arg18[%c112_263, %c96_264], %803 {strides = array<i32>} : memref<128x128xf32, #tpu.memory_space<vmem>>, vector<16x32xf32>,
    %c0_265 = arith.constant 0 : index
    %c0_266 = arith.constant 0 : index
    %805 = vector.load %arg18[%c0_265, %c0_266] : memref<128x128xf32, #tpu.memory_space<vmem>>, vector<128x128xf32>
    %806 = arith.truncf %805 : vector<128x128xf32> to vector<128x128xbf16>
    %c0_267 = arith.constant 0 : index
    %c0_268 = arith.constant 0 : index
    %c0_269 = arith.constant 0 : index
    %807 = vector.load %arg4[%c0_267, %c0_268, %c0_269] : memref<1x128x128xbf16, #tpu.memory_space<vmem>>, vector<1x128x128xbf16>
    %808 = vector.shape_cast %807 : vector<1x128x128xbf16> to vector<128x128xbf16>
    %cst_270 = arith.constant dense<0.000000e+00> : vector<128x128xf32>
    %809 = tpu.matmul %806, %808, %cst_270 {dimension_numbers = #tpu.dot_dimension_numbers<[1], [0], [0], [1], [0, 0, 1, 1], [], []>} : vector<128x128xbf16>, vector<128x128xbf16>, vector<128x128xf32> -> vector<128x128xf32>
    %c0_271 = arith.constant 0 : index
    %c0_272 = arith.constant 0 : index
    %c0_273 = arith.constant 0 : index
    %810 = vector.load %arg5[%c0_271, %c0_272, %c0_273] : memref<1x1x128xf32, #tpu.memory_space<vmem>>, vector<1x1x128xf32>
    %811 = vector.shape_cast %810 : vector<1x1x128xf32> to vector<1x128xf32>
    %812 = vector.broadcast %811 : vector<1x128xf32> to vector<128x128xf32>
    %813 = arith.addf %809, %812 : vector<128x128xf32>
    %814 = arith.addf %3, %813 : vector<128x128xf32>
    %c0_274 = arith.constant 0 : index
    %c0_275 = arith.constant 0 : index
    %c0_276 = arith.constant 0 : index
    %815 = vector.load %arg8[%c0_274, %c0_275, %c0_276] : memref<1x1x128xf32, #tpu.memory_space<vmem>>, vector<1x1x128xf32>
    %816 = vector.shape_cast %815 : vector<1x1x128xf32> to vector<1x128xf32>
    %c0_277 = arith.constant 0 : index
    %c0_278 = arith.constant 0 : index
    %c0_279 = arith.constant 0 : index
    %817 = vector.load %arg9[%c0_277, %c0_278, %c0_279] : memref<1x1x128xf32, #tpu.memory_space<vmem>>, vector<1x1x128xf32>
    %818 = vector.shape_cast %817 : vector<1x1x128xf32> to vector<1x128xf32>
    %cst_280 = arith.constant dense<0.000000e+00> : vector<128xf32>
    %819 = vector.multi_reduction <add>, %814, %cst_280 [1] : vector<128x128xf32> to vector<128xf32>
    %820 = vector.shape_cast %819 : vector<128xf32> to vector<128x1xf32>
    %cst_281 = arith.constant 1.280000e+02 : f32
    %821 = vector.broadcast %cst_281 : f32 to vector<128x1xf32>
    %822 = arith.divf %820, %821 : vector<128x1xf32>
    %823 = arith.mulf %814, %814 : vector<128x128xf32>
    %cst_282 = arith.constant dense<0.000000e+00> : vector<128xf32>
    %824 = vector.multi_reduction <add>, %823, %cst_282 [1] : vector<128x128xf32> to vector<128xf32>
    %825 = vector.shape_cast %824 : vector<128xf32> to vector<128x1xf32>
    %cst_283 = arith.constant 1.280000e+02 : f32
    %826 = vector.broadcast %cst_283 : f32 to vector<128x1xf32>
    %827 = arith.divf %825, %826 : vector<128x1xf32>
    %828 = arith.mulf %822, %822 : vector<128x1xf32>
    %829 = arith.subf %827, %828 : vector<128x1xf32>
    %830 = vector.broadcast %822 : vector<128x1xf32> to vector<128x128xf32>
    %831 = arith.subf %814, %830 : vector<128x128xf32>
    %cst_284 = arith.constant 9.99999974E-6 : f32
    %832 = vector.broadcast %cst_284 : f32 to vector<128x1xf32>
    %833 = arith.addf %829, %832 : vector<128x1xf32>
    %834 = math.rsqrt %833 : vector<128x1xf32>
    %835 = vector.broadcast %834 : vector<128x1xf32> to vector<128x128xf32>
    %836 = arith.mulf %831, %835 : vector<128x128xf32>
    %837 = vector.broadcast %816 : vector<1x128xf32> to vector<128x128xf32>
    %838 = arith.mulf %836, %837 : vector<128x128xf32>
    %839 = vector.broadcast %818 : vector<1x128xf32> to vector<128x128xf32>
    %840 = arith.addf %838, %839 : vector<128x128xf32>
    %841 = arith.truncf %840 : vector<128x128xf32> to vector<128x128xbf16>
    %c0_285 = arith.constant 0 : index
    %c0_286 = arith.constant 0 : index
    %c0_287 = arith.constant 0 : index
    %842 = vector.load %arg10[%c0_285, %c0_286, %c0_287] : memref<1x128x512xbf16, #tpu.memory_space<vmem>>, vector<1x128x512xbf16>
    %843 = vector.shape_cast %842 : vector<1x128x512xbf16> to vector<128x512xbf16>
    %cst_288 = arith.constant dense<0.000000e+00> : vector<128x512xf32>
    %844 = tpu.matmul %841, %843, %cst_288 {dimension_numbers = #tpu.dot_dimension_numbers<[1], [0], [0], [1], [0, 0, 1, 1], [], []>} : vector<128x128xbf16>, vector<128x512xbf16>, vector<128x512xf32> -> vector<128x512xf32>
    %cst_289 = arith.constant 0.000000e+00 : f32
    %845 = vector.broadcast %cst_289 : f32 to vector<128x512xf32>
    %846 = arith.maximumf %844, %845 : vector<128x512xf32>
    %847 = arith.truncf %846 : vector<128x512xf32> to vector<128x512xbf16>
    %c0_290 = arith.constant 0 : index
    %c0_291 = arith.constant 0 : index
    %c0_292 = arith.constant 0 : index
    %848 = vector.load %arg11[%c0_290, %c0_291, %c0_292] : memref<1x512x128xbf16, #tpu.memory_space<vmem>>, vector<1x512x128xbf16>
    %849 = vector.shape_cast %848 : vector<1x512x128xbf16> to vector<512x128xbf16>
    %cst_293 = arith.constant dense<0.000000e+00> : vector<128x128xf32>
    %850 = tpu.matmul %847, %849, %cst_293 {dimension_numbers = #tpu.dot_dimension_numbers<[1], [0], [0], [1], [0, 0, 1, 1], [], []>} : vector<128x512xbf16>, vector<512x128xbf16>, vector<128x128xf32> -> vector<128x128xf32>
    %851 = arith.addf %814, %850 : vector<128x128xf32>
    %c0_294 = arith.constant 0 : index
    %c0_295 = arith.constant 0 : index
    %852 = vector.load %arg17[%c0_294, %c0_295] : memref<128x128xf32, #tpu.memory_space<vmem>>, vector<128x128xf32>
    tpu.vector_store %arg17[%c0_294, %c0_295], %851 {strides = array<i32>} : memref<128x128xf32, #tpu.memory_space<vmem>>, vector<128x128xf32>,
    %c1_i32 = arith.constant 1 : i32
    %853 = arith.cmpi eq, %arg1, %c1_i32 : i32
    %854 = arith.extui %853 : i1 to i32
    %c0_i32_296 = arith.constant 0 : i32
    %855 = arith.cmpi ne, %854, %c0_i32_296 : i32
    scf.if %855 {
      %c0_297 = arith.constant 0 : index
      %c0_298 = arith.constant 0 : index
      %856 = vector.load %arg12[%c0_297, %c0_298] : memref<1x128xf32, #tpu.memory_space<vmem>>, vector<1x128xf32>
      %c0_299 = arith.constant 0 : index
      %c0_300 = arith.constant 0 : index
      %857 = vector.load %arg13[%c0_299, %c0_300] : memref<1x128xf32, #tpu.memory_space<vmem>>, vector<1x128xf32>
      %cst_301 = arith.constant dense<0.000000e+00> : vector<128xf32>
      %858 = vector.multi_reduction <add>, %851, %cst_301 [1] : vector<128x128xf32> to vector<128xf32>
      %859 = vector.shape_cast %858 : vector<128xf32> to vector<128x1xf32>
      %cst_302 = arith.constant 1.280000e+02 : f32
      %860 = vector.broadcast %cst_302 : f32 to vector<128x1xf32>
      %861 = arith.divf %859, %860 : vector<128x1xf32>
      %862 = arith.mulf %851, %851 : vector<128x128xf32>
      %cst_303 = arith.constant dense<0.000000e+00> : vector<128xf32>
      %863 = vector.multi_reduction <add>, %862, %cst_303 [1] : vector<128x128xf32> to vector<128xf32>
      %864 = vector.shape_cast %863 : vector<128xf32> to vector<128x1xf32>
      %cst_304 = arith.constant 1.280000e+02 : f32
      %865 = vector.broadcast %cst_304 : f32 to vector<128x1xf32>
      %866 = arith.divf %864, %865 : vector<128x1xf32>
      %867 = arith.mulf %861, %861 : vector<128x1xf32>
      %868 = arith.subf %866, %867 : vector<128x1xf32>
      %869 = vector.broadcast %861 : vector<128x1xf32> to vector<128x128xf32>
      %870 = arith.subf %851, %869 : vector<128x128xf32>
      %cst_305 = arith.constant 9.99999974E-6 : f32
      %871 = vector.broadcast %cst_305 : f32 to vector<128x1xf32>
      %872 = arith.addf %868, %871 : vector<128x1xf32>
      %873 = math.rsqrt %872 : vector<128x1xf32>
      %874 = vector.broadcast %873 : vector<128x1xf32> to vector<128x128xf32>
      %875 = arith.mulf %870, %874 : vector<128x128xf32>
      %876 = vector.broadcast %856 : vector<1x128xf32> to vector<128x128xf32>
      %877 = arith.mulf %875, %876 : vector<128x128xf32>
      %878 = vector.broadcast %857 : vector<1x128xf32> to vector<128x128xf32>
      %879 = arith.addf %877, %878 : vector<128x128xf32>
      %880 = arith.truncf %879 : vector<128x128xf32> to vector<128x128xbf16>
      %c0_306 = arith.constant 0 : index
      %c0_307 = arith.constant 0 : index
      %881 = vector.load %arg14[%c0_306, %c0_307] : memref<128x128xbf16, #tpu.memory_space<vmem>>, vector<128x128xbf16>
      %cst_308 = arith.constant dense<0.000000e+00> : vector<128x128xf32>
      %882 = tpu.matmul %880, %881, %cst_308 {dimension_numbers = #tpu.dot_dimension_numbers<[1], [0], [0], [1], [0, 0, 1, 1], [], []>} : vector<128x128xbf16>, vector<128x128xbf16>, vector<128x128xf32> -> vector<128x128xf32>
      %c0_309 = arith.constant 0 : index
      %c0_310 = arith.constant 0 : index
      %883 = vector.load %arg15[%c0_309, %c0_310] : memref<1x128xf32, #tpu.memory_space<vmem>>, vector<1x128xf32>
      %884 = vector.broadcast %883 : vector<1x128xf32> to vector<128x128xf32>
      %885 = arith.addf %882, %884 : vector<128x128xf32>
      %c0_311 = arith.constant 0 : index
      %c0_312 = arith.constant 0 : index
      %c0_313 = arith.constant 0 : index
      %886 = vector.load %arg16[%c0_311, %c0_312, %c0_313] : memref<1x128x128xf32, #tpu.memory_space<vmem>>, vector<1x128x128xf32>
      %887 = vector.shape_cast %886 : vector<1x128x128xf32> to vector<128x128xf32>
      %888 = vector.shape_cast %885 : vector<128x128xf32> to vector<1x128x128xf32>
      tpu.vector_store %arg16[%c0_311, %c0_312, %c0_313], %888 {strides = array<i32>} : memref<1x128x128xf32, #tpu.memory_space<vmem>>, vector<1x128x128xf32>,
    } else {
    }
    return
  }
  func.func @transform_0(%arg0: i32, %arg1: i32) -> (i32, i32, i32) {
    %c0_i32 = arith.constant 0 : i32
    %c0_i32_0 = arith.constant 0 : i32
    %c0_i32_1 = arith.constant 0 : i32
    return %arg0, %c0_i32, %c0_i32_0 : i32, i32, i32
  }
  func.func @transform_1(%arg0: i32, %arg1: i32) -> (i32, i32, i32) {
    %c0_i32 = arith.constant 0 : i32
    %c0_i32_0 = arith.constant 0 : i32
    %c0_i32_1 = arith.constant 0 : i32
    return %arg1, %c0_i32, %c0_i32_0 : i32, i32, i32
  }
  func.func @transform_2(%arg0: i32, %arg1: i32) -> (i32, i32, i32) {
    %c0_i32 = arith.constant 0 : i32
    %c0_i32_0 = arith.constant 0 : i32
    %c0_i32_1 = arith.constant 0 : i32
    return %arg1, %c0_i32, %c0_i32_0 : i32, i32, i32
  }
  func.func @transform_3(%arg0: i32, %arg1: i32) -> (i32, i32, i32) {
    %c0_i32 = arith.constant 0 : i32
    %c0_i32_0 = arith.constant 0 : i32
    %c0_i32_1 = arith.constant 0 : i32
    return %arg1, %c0_i32, %c0_i32_0 : i32, i32, i32
  }
  func.func @transform_4(%arg0: i32, %arg1: i32) -> (i32, i32, i32) {
    %c0_i32 = arith.constant 0 : i32
    %c0_i32_0 = arith.constant 0 : i32
    %c0_i32_1 = arith.constant 0 : i32
    return %arg1, %c0_i32, %c0_i32_0 : i32, i32, i32
  }
  func.func @transform_5(%arg0: i32, %arg1: i32) -> (i32, i32, i32) {
    %c0_i32 = arith.constant 0 : i32
    %c0_i32_0 = arith.constant 0 : i32
    %c0_i32_1 = arith.constant 0 : i32
    return %arg1, %c0_i32, %c0_i32_0 : i32, i32, i32
  }
  func.func @transform_6(%arg0: i32, %arg1: i32) -> (i32, i32, i32) {
    %c0_i32 = arith.constant 0 : i32
    %c0_i32_0 = arith.constant 0 : i32
    %c0_i32_1 = arith.constant 0 : i32
    return %arg1, %c0_i32, %c0_i32_0 : i32, i32, i32
  }
  func.func @transform_7(%arg0: i32, %arg1: i32) -> (i32, i32, i32) {
    %c0_i32 = arith.constant 0 : i32
    %c0_i32_0 = arith.constant 0 : i32
    %c0_i32_1 = arith.constant 0 : i32
    return %arg1, %c0_i32, %c0_i32_0 : i32, i32, i32
  }
  func.func @transform_8(%arg0: i32, %arg1: i32) -> (i32, i32, i32) {
    %c0_i32 = arith.constant 0 : i32
    %c0_i32_0 = arith.constant 0 : i32
    %c0_i32_1 = arith.constant 0 : i32
    return %arg1, %c0_i32, %c0_i32_0 : i32, i32, i32
  }
  func.func @transform_9(%arg0: i32, %arg1: i32) -> (i32, i32, i32) {
    %c0_i32 = arith.constant 0 : i32
    %c0_i32_0 = arith.constant 0 : i32
    %c0_i32_1 = arith.constant 0 : i32
    return %arg1, %c0_i32, %c0_i32_0 : i32, i32, i32
  }
  func.func @transform_10(%arg0: i32, %arg1: i32) -> (i32, i32) {
    %c0_i32 = arith.constant 0 : i32
    %c0_i32_0 = arith.constant 0 : i32
    %c0_i32_1 = arith.constant 0 : i32
    return %c0_i32, %c0_i32_0 : i32, i32
  }
  func.func @transform_11(%arg0: i32, %arg1: i32) -> (i32, i32) {
    %c0_i32 = arith.constant 0 : i32
    %c0_i32_0 = arith.constant 0 : i32
    %c0_i32_1 = arith.constant 0 : i32
    return %c0_i32, %c0_i32_0 : i32, i32
  }
  func.func @transform_12(%arg0: i32, %arg1: i32) -> (i32, i32) {
    %c0_i32 = arith.constant 0 : i32
    %c0_i32_0 = arith.constant 0 : i32
    %c0_i32_1 = arith.constant 0 : i32
    return %c0_i32, %c0_i32_0 : i32, i32
  }
  func.func @transform_13(%arg0: i32, %arg1: i32) -> (i32, i32) {
    %c0_i32 = arith.constant 0 : i32
    %c0_i32_0 = arith.constant 0 : i32
    %c0_i32_1 = arith.constant 0 : i32
    return %c0_i32, %c0_i32_0 : i32, i32
  }
  func.func @transform_14(%arg0: i32, %arg1: i32) -> (i32, i32, i32) {
    %c0_i32 = arith.constant 0 : i32
    %c0_i32_0 = arith.constant 0 : i32
    %c0_i32_1 = arith.constant 0 : i32
    return %arg0, %c0_i32, %c0_i32_0 : i32, i32, i32
  }
}

</mosaic_0001>

<bundles_post_ra>
// kernel: tpu_custom_call.1
= control target key start
LH: loop header
LB: loop body
LE: loop exit
PB: predicated region body
PF: predicated region fallthrough
CT: control target
= control target key end

     0   :  { %s11418_s0 = inlined_call_operand.hbm [shape: f32[2,128,128], index: 0, kind: input, shape index: {}]   ;;  %s11419_s1 = inlined_call_operand.hbm [shape: bf16[2,128,384], index: 1, kind: input, shape index: {}]   ;;  %s11420_s2 = inlined_call_operand.hbm [shape: bf16[2,128,128], index: 2, kind: input, shape index: {}]   ;;  %s11421_s3 = inlined_call_operand.vmem [shape: f32[2,1,128], index: 3, kind: input, shape index: {}]   ;;  %s11422_s4 = inlined_call_operand.hbm [shape: f32[2,1,128], index: 4, kind: input, shape index: {}]   ;;  %s11423_s5 = inlined_call_operand.vmem [shape: f32[2,1,128], index: 5, kind: input, shape index: {}]   ;;  %s11424_s6 = inlined_call_operand.hbm [shape: f32[2,1,128], index: 6, kind: input, shape index: {}]   ;;  %s11425_s7 = inlined_call_operand.vmem [shape: f32[2,1,128], index: 7, kind: input, shape index: {}]   ;;  %s11426_s8 = inlined_call_operand.hbm [shape: bf16[2,128,512], index: 8, kind: input, shape index: {}]   ;;  %s11427_s9 = inlined_call_operand.hbm [shape: bf16[2,512,128], index: 9, kind: input, shape index: {}]   ;;  %s11428_s10 = inlined_call_operand.vmem [shape: f32[1,128], index: 10, kind: input, shape index: {}]   ;;  %s11429_s11 = inlined_call_operand.vmem [shape: f32[1,128], index: 11, kind: input, shape index: {}]   ;;  %s11430_s12 = inlined_call_operand.hbm [shape: bf16[128,128], index: 12, kind: input, shape index: {}]   ;;  %s11431_s13 = inlined_call_operand.vmem [shape: f32[1,128], index: 13, kind: input, shape index: {}]   ;;  %s11432_s14 = inlined_call_operand.hbm [shape: f32[2,128,128], index: 14, kind: output, shape index: {}]  }
   0x1   :  { %11473 = sst [smem:[#allocation63_spill]] %s11418_s0 }
   0x2   :  { %11474 = sst [smem:[#allocation64_spill]] %s11419_s1 }
   0x3   :  { %11475 = sst [smem:[#allocation65_spill]] %s11420_s2 }
   0x4   :  { %11476 = sst [smem:[#allocation66_spill]] %s11421_s3 }
   0x5   :  { %11477 = sst [smem:[#allocation67_spill]] %s11422_s4 }
   0x6   :  { %11478 = sst [smem:[#allocation68_spill]] %s11423_s5 }
   0x7   :  { %11479 = sst [smem:[#allocation69_spill]] %s11424_s6 }
   0x8   :  { %11480 = sst [smem:[#allocation70_spill]] %s11425_s7 }
   0x9   :  { %11481 = sst [smem:[#allocation71_spill]] %s11426_s8 }
   0xa   :  { %11482 = sst [smem:[#allocation72_spill]] %s11427_s9 }
   0xb   :  { %11483 = sst [smem:[#allocation73_spill]] %s11428_s10 }
   0xc   :  { %11484 = sst [smem:[#allocation74_spill]] %s11429_s11 }
   0xd   :  { %11485 = sst [smem:[#allocation75_spill]] %s11430_s12 }
   0xe   :  { %11486 = sst [smem:[#allocation76_spill]] %s11431_s13 }
   0xf   :  { %11487 = sst [smem:[#allocation77_spill]] %s11432_s14 }
  0x10   :  { %19 = vsyncpa [#allocation5], 0 }
  0x11   :  { %21 = vsyncpa [#allocation5 + $0x1], 0 }
  0x12   :  { %22 = vsyncpa [#allocation8], 0 }
  0x13   :  { %24 = vsyncpa [#allocation8 + $0x1], 0 }
  0x14   :  { %25 = vsyncpa [#allocation11], 0 }
  0x15   :  { %27 = vsyncpa [#allocation11 + $0x1], 0 }
  0x16   :  { %28 = vsyncpa [#allocation14], 0 }
  0x17   :  { %30 = vsyncpa [#allocation14 + $0x1], 0 }
  0x18   :  { %31 = vsyncpa [#allocation17], 0 }
  0x19   :  { %32 = vsyncpa [#allocation6], 0 }
  0x1a   :  { %34 = vsyncpa [#allocation6 + $0x1], 0  ;;  %s8077_s29 = smov 0   ;;  %s8079_s30 = smov 0  }
  0x1b   :  { %s8081_s15 = smov 0   ;;  %s8083_s16 = smov 0  }
  0x1c   :  { %s8085_s17 = smov 0   ;;  %s8087_s18 = smov 0  }
  0x1d   :  { %s8089_s19 = smov 0   ;;  %s8091_s20 = smov 0  }
  0x1e   :  { %s8093_s21 = smov 0   ;;  %s8095_s22 = smov 0  }
  0x1f   :  { %s8097_s23 = smov 0  }
  0x20 LB: > { %11488 = sst [smem:[#allocation25_spill]] %s7953_s15  ;;  %p67_p0 = scmp.eq.s32.totalorder %s7985_s23, 0  ;;  %s7985_s23 = sphi %s8097_s23, %s40_s23   ;;  %s7981_s22 = sphi %s8095_s22, %s11635_s22   ;;  %s7977_s21 = sphi %s8093_s21, %s11641_s21   ;;  %s7973_s20 = sphi %s8091_s20, %s11633_s20   ;;  %s7969_s19 = sphi %s8089_s19, %s11640_s19   ;;  %s7965_s18 = sphi %s8087_s18, %s11632_s18   ;;  %s7961_s17 = sphi %s8085_s17, %s11639_s17   ;;  %s7957_s16 = sphi %s8083_s16, %s11638_s16   ;;  %s7953_s15 = sphi %s8081_s15, %s11630_s15   ;;  %s7949_s30 = sphi %s8079_s30, %s11637_s30   ;;  %s7945_s29 = sphi %s8077_s29, %s11636_s29  }
  0x21   : > { %11489 = sst [smem:[#allocation26_spill]] %s7957_s16  ;;  %p92_p1 = scmp.ne.s32.totalorder %s7953_s15, %s7949_s30 }
  0x22   : > { %11490 = sst [smem:[#allocation27_spill]] %s7965_s18  ;;  %p7122_p2 = scmp.lt.s32.totalorder %s7985_s23, 4 }
  0x23   : > { %11491 = sst [smem:[#allocation28_spill]] %s7969_s19  ;;  %s8138_s25 = sand.u32 1, %s7985_s23  }
  0x24   : > { %11492 = sst [smem:[#allocation29_spill]] %s7973_s20  ;;  %p94_p3 = por %p92_p1, %p67_p0 }
  0x25   : > { %11493 = sst [smem:[#allocation30_spill]] %s7981_s22  ;;  %s8143_s26 = sand.u32 1, %s7953_s15  }
  0x26   : > { %11494 = sst [smem:[#allocation31_spill]] %s7985_s23  ;;  %s7069_s27 = smul.u32 192, %s7977_s21 }
  0x27   : > { %s7068_s28 = smul.u32 192, %s8143_s26  ;;  %p8149_p4 = pnand %p7122_p2, %p94_p3 }
  0x28   : > { %s11496_s1 = sld [smem:[#allocation64_spill]]  ;;  %s11437_s5 = scalar_lea.sflag [#allocation8], %s8138_s25 }
  0x29   : > { %s489_s10 = scalar_lea.vmem [#allocation7], %s7068_s28  ;;  %s7987_s3 = smov 192  }
  0x2a   : > { %s497_s7 = sshll.u32 %s489_s10, 4  ;;  %s7988_s19 = smov 12   ;;  %s498_s7 = int_to_ptr.vmem [resolvable:$true] %s497_s7 }
  0x2b   : > { %s11497_s4 = sld [smem:[#allocation67_spill]]  ;;  %s11435_s10 = scalar_lea.sflag [#allocation11], %s8138_s25 }
  0x2c   : > { %s6419_s28 = sshll.u32 %s8143_s26, 8  ;;  %s6921_s2 = sshll.u32 %s7977_s21, 8 }
  0x2d   : > { %s11498_s8 = sld [smem:[#allocation71_spill]]  ;;  %s585_s6 = scalar_lea.vmem [#allocation13], %s6419_s28 }
  0x2e   : > { %s494_s13 = scalar_lea.hbm %s11496_s1, %s7069_s27  ;;  %s538_s27 = scalar_lea.vmem [#allocation10], %s8143_s26 }
  0x2f   : > { %s495_s11 = sshll.u32 %s494_s13, 4  ;;  %s545_s1 = sshll.u32 %s538_s27, 4  ;;  %s496_s11 = int_to_ptr.hbm [resolvable:$true] %s495_s11  ;;  %s546_s1 = int_to_ptr.vmem [resolvable:$true] %s545_s1 }
  0x30   : > { %7101 = dma.hbm_to_vmem [thread:$0]  (!%p8149_p4), %s496_s11, 3072, %s498_s7, %s11437_s5, %s7987_s3, %s7987_s3, %s7988_s19  }
  0x31   : > { %s541_s24 = scalar_lea.hbm %s11497_s4, %s7977_s21  ;;  %s593_s11 = sshll.u32 %s585_s6, 4  ;;  %s594_s11 = int_to_ptr.vmem [resolvable:$true] %s593_s11 }
  0x32   : > { %s543_s13 = sshll.u32 %s541_s24, 4  ;;  %s11436_s20 = scalar_lea.sflag [#allocation14], %s8138_s25  ;;  %s544_s13 = int_to_ptr.hbm [resolvable:$true] %s543_s13 }
  0x33   : > { %7107 = dma.hbm_to_vmem [thread:$0]  (!%p8149_p4), %s544_s13, 16, %s546_s1, %s11435_s10  }
  0x34   : > { %s590_s7 = scalar_lea.hbm %s11498_s8, %s6921_s2  ;;  %s7989_s24 = smov 256  }
  0x35   : > { %s591_s19 = sshll.u32 %s590_s7, 4  ;;  %s7990_s27 = smov 16   ;;  %s592_s19 = int_to_ptr.hbm [resolvable:$true] %s591_s19 }
  0x36   : > { %7113 = dma.hbm_to_vmem [thread:$0]  (!%p8149_p4), %s592_s19, 4096, %s594_s11, %s11436_s20, %s7989_s24, %s7989_s24, %s7990_s27  }
  0x37   : > { %s11499_s9 = sld [smem:[#allocation72_spill]]  ;;  %s607_s3 = scalar_lea.vmem [#allocation15], %s6419_s28 }
  0x38   : > { %s615_s10 = sshll.u32 %s607_s3, 4  ;;  %s8189_s7 = sadd.s32 4294967295, %s7985_s23   ;;  %s8184_s10 = int_to_ptr.vmem [resolvable:$true] %s615_s10 }
  0x39   : > { %p11442_p5 = scmp.eq.s32.totalorder %s8189_s7, 0  ;;  %p98_p6 = scmp.ne.s32.totalorder %s7949_s30, %s7945_s29 }
  0x3a   : > { %p414_p7 = scmp.eq.s32.totalorder %s8189_s7, 3  ;;  %p6409_p8 = scmp.ge.s32.totalorder %s7985_s23, 1 }
  0x3b   : > { %p8198_p9 = por %p98_p6, %p11442_p5  ;;  %p427_p10 = scmp.lt.s32.totalorder %s7985_s23, 5 }
  0x3c   : > { %s11501_s12 = sld [smem:[#allocation75_spill]]  ;;  %s7991_s24 = smov [#allocation16]  }
  0x3d   : > { %s612_s0 = scalar_lea.hbm %s11499_s9, %s6921_s2  ;;  %p8206_p11 = pnand %p6409_p8, %p427_p10 }
  0x3e   : > { %s613_s6 = sshll.u32 %s612_s0, 4  ;;  %s446_s27 = sshll.u32 %s7991_s24, 4  ;;  %s8186_s6 = int_to_ptr.hbm [resolvable:$true] %s613_s6  ;;  %s447_s27 = int_to_ptr.vmem [resolvable:$true] %s446_s27 }
  0x3f   : > { %p7091_p12 = pneg %p8206_p11  ;;  %s11438_s1 = smov 64  }
  0x40   : > { %s11440_s13 = smov 4   ;;  %s6408_s0 = sadd.s32 4294967294, %s7985_s23  }
  0x41   : > { %p7092_p13 = pnand %p7091_p12, %p11442_p5  ;;  %s49_s3 = sadd.s32 1, %s7977_s21 }
  0x42   : > { %s444_s19 = sshll.u32 %s11501_s12, 4  ;;  %p50_p1 = scmp.ge.s32.totalorder %s49_s3, 2  ;;  %s445_s19 = int_to_ptr.hbm [resolvable:$true] %s444_s19 }
  0x43   : > { %7094 = dma.hbm_to_vmem [thread:$0]  (!%p7092_p13), %s445_s19, 1024, %s447_s27, [#allocation17], %s11438_s1, %s11438_s1, %s11440_s13  }
  0x44   : > { %s52_s28 = sadd.s32 1, %s7981_s22  ;;  %s59_s11 = sadd.s32 1, %s7965_s18 }
  0x45   : > { %p66_p3 = scmp.ne.s32.totalorder %s7965_s18, %s7961_s17  ;;  %s11643_s3 = smov (%p50_p1, %s49_s3), 0 }
  0x46   : > { %11503 = sst [smem:[#allocation32_spill]] %s11643_s3  ;;  %s11645_s28 = smov (!%p50_p1, %s52_s28), %s7981_s22 }
  0x47   : > { %p8228_p6 = por %p67_p0, %p66_p3  ;;  %p72_p8 = scmp.ne.s32.totalorder %s7961_s17, %s7957_s16 }
  0x48   : > { %p54_p10 = scmp.ge.s32.totalorder %s11645_s28, 2  ;;  %s82_s24 = ssub.s32 %s7977_s21, %s11643_s3 }
  0x49   : > { %p8241_p12 = por %p11442_p5, %p72_p8  ;;  %p83_p13 = scmp.eq.s32.totalorder %s82_s24, 0 }
  0x4a   : > { %s11647_s28 = smov (%p54_p10, %s11645_s28), 0  ;;  %s11507_s20 = sadd.s32 1, %s7953_s15 }
  0x4b   : > { %11506 = sst [smem:[#allocation33_spill]] %s11647_s28  ;;  %s56_s1 = ssub.s32 %s7981_s22, %s11647_s28 }
  0x4c   : > { %s8250_s5 = scalar_select %p83_p13, %s7953_s15, %s11507_s20  }
  0x4d   : > { %p8256_p0 = por %p414_p7, %p66_p3  ;;  %p57_p1 = scmp.eq.s32.totalorder %s56_s1, 0 }
  0x4e   : > { %11508 = sst [smem:[#allocation34_spill]] %s8250_s5  ;;  %p420_p5 = scmp.eq.s32.totalorder %s6408_s0, 3 }
  0x4f   : > { %s11509_s13 = scalar_select %p8256_p0, 1, 0 }
  0x50   : > { %s463_s4 = sand.u32 1, %s7965_s18   ;;  %s6919_s8 = sshll.u32 %s7981_s22, 7 }
  0x51   : > { %11510 = sst [smem:[#allocation35_spill]] %s11509_s13  ;;  %p8268_p10 = por %p420_p5, %p72_p8 }
  0x52   : > { %s8263_s24 = scalar_select %p57_p1, %s7965_s18, %s59_s11  }
  0x53   : > { %s11512_s20 = scalar_select %p8268_p10, 1, 0 }
  0x54   : > { %11511 = sst [smem:[#allocation36_spill]] %s8263_s24  ;;  %s6412_s9 = sshll.u32 %s463_s4, 7 }
  0x55   : > { %11513 = sst [smem:[#allocation37_spill]] %s11512_s20  ;;  %s467_s13 = scalar_lea.vmem [#allocation4], %s6412_s9 }
  0x56   : > { %s11514_s3 = sld [smem:[#allocation63_spill]]  ;;  %s475_s1 = sshll.u32 %s467_s13, 4  ;;  %s476_s1 = int_to_ptr.vmem [resolvable:$true] %s475_s1 }
  0x57   : > { %p7096_p5 = pnand %p7122_p2, %p8228_p6  ;;  %s6416_s0 = sshll.u32 %s8143_s26, 6 }
  0x58   : > { %s464_s11 = scalar_lea.sflag [#allocation5], %s463_s4  ;;  %s7994_s22 = smov 128  }
  0x59   : > { %s7995_s24 = smov 8   ;;  %s11515_s12 = sld [smem:[#allocation65_spill]] }
  0x5a   : > { %s11516_s4 = smov 4   ;;  %s11517_s18 = smov 64  }
  0x5b   : > { %s11518_s20 = scalar_lea.sflag [#allocation8], %s8138_s25 }
  0x5c   : > { %s472_s5 = scalar_lea.hbm %s11514_s3, %s6919_s8  ;;  %s511_s3 = scalar_lea.vmem [#allocation9], %s6416_s0 }
  0x5d   : > { %s473_s15 = sshll.u32 %s472_s5, 4  ;;  %s6920_s5 = sshll.u32 %s7977_s21, 6  ;;  %s474_s15 = int_to_ptr.hbm [resolvable:$true] %s473_s15 }
  0x5e   : > { %7098 = dma.hbm_to_vmem [thread:$0]  (!%p7096_p5), %s474_s15, 2048, %s476_s1, %s464_s11, %s7994_s22, %s7994_s22, %s7995_s24  }
  0x5f   : > { %s516_s13 = scalar_lea.hbm %s11515_s12, %s6920_s5  ;;  %s519_s28 = sshll.u32 %s511_s3, 4  ;;  %s520_s28 = int_to_ptr.vmem [resolvable:$true] %s519_s28 }
  0x60   : > { %s517_s19 = sshll.u32 %s516_s13, 4  ;;  %s11519_s24 = sld [smem:[#allocation69_spill]]  ;;  %s518_s19 = int_to_ptr.hbm [resolvable:$true] %s517_s19 }
  0x61   : > { %7104 = dma.hbm_to_vmem [thread:$0]  (!%p8149_p4), %s518_s19, 1024, %s520_s28, %s11518_s20, %s11517_s18, %s11517_s18, %s11516_s4  }
  0x62   : > { %s561_s11 = scalar_lea.vmem [#allocation12], %s8143_s26  ;;  %s11520_s0 = scalar_lea.sflag [#allocation11], %s8138_s25 }
  0x63   : > { %s568_s16 = sshll.u32 %s561_s11, 4  ;;  %s11521_s5 = scalar_lea.sflag [#allocation14], %s8138_s25  ;;  %s569_s16 = int_to_ptr.vmem [resolvable:$true] %s568_s16 }
  0x64   : > { %7116 = dma.hbm_to_vmem [thread:$0]  (!%p8149_p4), %s8186_s6, 4096, %s8184_s10, %s11521_s5, %s11517_s18, %s11517_s18, %s11516_s4  }
  0x65   : > { %627 = sbr.rel (%p8206_p11) target bundleno = 4113 (0x1011), region = 76 }
  0x66   : > { %s564_s1 = scalar_lea.hbm %s11519_s24, %s7977_s21 }
  0x67   : > { %s566_s23 = sshll.u32 %s564_s1, 4  ;;  %s567_s23 = int_to_ptr.hbm [resolvable:$true] %s566_s23 }
  0x68   : > { %7110 = dma.hbm_to_vmem [thread:$0]  (!%p8149_p4), %s567_s23, 16, %s569_s16, %s11520_s0  }
  0x6a   : > { %s8312_s20 = sand.u32 1, %s7961_s17  }
  0x6b   : > { %s6426_s26 = sshll.u32 %s8312_s20, 7  ;;  %s630_s8 = scalar_lea.sflag [#allocation5], %s8312_s20 }
  0x6c   : > { %s8318_s16 = scalar_lea.vmem [#allocation4], %s6426_s26 }
  0x6d   : > { %7920 = dma.done.wait (%p8241_p12), %s630_s8, 2048  }
  0x6e   : > { %7922 = vsyncadd (%p8241_p12), %s630_s8, 4294965248  ;;  %s639_s14 = sand.u32 1, %s8189_s7   ;;  %s8326_s18 = sand.u32 1, %s7949_s30  }
  0x6f   : > { %s7070_s23 = smul.u32 192, %s8326_s18  ;;  %s640_s25 = scalar_lea.sflag [#allocation8], %s639_s14 }
  0x71   : > { %s8329_s10 = scalar_lea.vmem [#allocation7], %s7070_s23 }
  0x72   : > { %7924 = dma.done.wait (%p8198_p9), %s640_s25, 4096  }
  0x73   : > { %7926 = vsyncadd (%p8198_p9), %s640_s25, 4294963200  ;;  %s6427_s6 = sshll.u32 %s8326_s18, 6  ;;  %s660_s27 = scalar_lea.sflag [#allocation11], %s639_s14 }
  0x74   : > { %s8336_s29 = scalar_lea.vmem [#allocation9], %s6427_s6  ;;  %s662_s9 = scalar_lea.vmem [#allocation10], %s8326_s18 }
  0x75   : > { %7928 = dma.done.wait (%p8198_p9), %s660_s27, 32  }
  0x76   : > { %7930 = vsyncadd (%p8198_p9), %s660_s27, 4294967264  ;;  %s6428_s12 = sshll.u32 %s8326_s18, 8  ;;  %s671_s13 = scalar_lea.vmem [#allocation12], %s8326_s18 }
  0x77   : > { %s678_s3 = scalar_lea.sflag [#allocation14], %s639_s14  ;;  %s8345_s28 = scalar_lea.vmem [#allocation13], %s6428_s12 }
  0x78   : > { %7932 = dma.done.wait (%p8198_p9), %s678_s3, 8192  }
  0x79   : > { %7934 = vsyncadd (%p8198_p9), %s678_s3, 4294959104  ;;  %s8351_s19 = scalar_lea.vmem [#allocation15], %s6428_s12  ;;  %p11522_p2 = scmp.eq.s32.totalorder %s8189_s7, 0 }
  0x7b   : > { %7936 = dma.done.wait (%p11522_p2), [#allocation17], 1024   ;;  %p11523_p4 = pmov %p11522_p2 }
  0x7c   : > { %s11524_s4 = sld [smem:[#allocation28_spill]]  ;;  %s8377_s6 = scalar_lea.vmem [#allocation18], %s6426_s26 }
  0x7d   : > { %7938 = vsyncadd (%p11523_p4), [#allocation17], 4294966272  ;;  %s11525_s1 = sld [smem:[#allocation66_spill]] }
  0x7e   : > { %s11526_s5 = sld [smem:[#allocation68_spill]] }
  0x7f   : > { %s11527_s23 = sld [smem:[#allocation70_spill]] }
  0x82   : > { %p779_p7 = scmp.lt.s32.totalorder %s11524_s4, 1  ;;  %p6432_p9 = scmp.ne.s32.totalorder %s11524_s4, 0 }
  0x84   : > { %s8359_s15 = scalar_select %p779_p7, %s11524_s4, 1 }
  0x85   : > { %792 = sbr.rel (%p6432_p9) target bundleno = 155 (0x9b), region = 112 }
  0x86   : > { %s8365_s2 = scalar_lea.vmem %s11525_s1, %s8359_s15  ;;  %s784_s8 = scalar_lea.vmem %s11526_s5, %s8359_s15 }
  0x87   : > { %s787_s25 = scalar_lea.vmem %s11527_s23, %s8359_s15 }
  0x8a   : > { %v793_v0 = vld [vmem:[%s8318_s16] sm:$0xff]  ;;  %v794_v1 = vld [vmem:[%s8318_s16 + $0x8] sm:$0xff]  ;;  %v795_v2 = vld [vmem:[%s8318_s16 + $0x10] sm:$0xff] }
  0x8b   : > { %809 = vst [vmem:[#allocation2 + $0x30] sm:$0xff] %v793_v0  ;;  %v796_v3 = vld [vmem:[%s8318_s16 + $0x18] sm:$0xff]  ;;  %v797_v4 = vld [vmem:[%s8318_s16 + $0x20] sm:$0xff]  ;;  %v798_v5 = vld [vmem:[%s8318_s16 + $0x28] sm:$0xff] }
  0x8c   : > { %810 = vst [vmem:[#allocation2] sm:$0xff] %v794_v1  ;;  %v799_v6 = vld [vmem:[%s8318_s16 + $0x30] sm:$0xff]  ;;  %v800_v7 = vld [vmem:[%s8318_s16 + $0x38] sm:$0xff]  ;;  %v801_v8 = vld [vmem:[%s8318_s16 + $0x40] sm:$0xff] }
  0x8d   : > { %811 = vst [vmem:[#allocation2 + $0x58] sm:$0xff] %v795_v2  ;;  %v802_v9 = vld [vmem:[%s8318_s16 + $0x48] sm:$0xff]  ;;  %v803_v10 = vld [vmem:[%s8318_s16 + $0x50] sm:$0xff]  ;;  %v804_v11 = vld [vmem:[%s8318_s16 + $0x58] sm:$0xff] }
  0x8e   : > { %812 = vst [vmem:[#allocation2 + $0x18] sm:$0xff] %v796_v3  ;;  %v805_v12 = vld [vmem:[%s8318_s16 + $0x60] sm:$0xff]  ;;  %v806_v13 = vld [vmem:[%s8318_s16 + $0x68] sm:$0xff]  ;;  %v807_v14 = vld [vmem:[%s8318_s16 + $0x70] sm:$0xff] }
  0x8f   : > { %813 = vst [vmem:[#allocation2 + $0x50] sm:$0xff] %v797_v4  ;;  %v808_v15 = vld [vmem:[%s8318_s16 + $0x78] sm:$0xff] }
  0x90   : > { %814 = vst [vmem:[#allocation2 + $0x68] sm:$0xff] %v798_v5 }
  0x91   : > { %815 = vst [vmem:[#allocation2 + $0x8] sm:$0xff] %v799_v6 }
  0x92   : > { %816 = vst [vmem:[#allocation2 + $0x48] sm:$0xff] %v800_v7 }
  0x93   : > { %817 = vst [vmem:[#allocation2 + $0x40] sm:$0xff] %v801_v8 }
  0x94   : > { %818 = vst [vmem:[#allocation2 + $0x20] sm:$0xff] %v802_v9 }
  0x95   : > { %819 = vst [vmem:[#allocation2 + $0x10] sm:$0xff] %v803_v10 }
  0x96   : > { %820 = vst [vmem:[#allocation2 + $0x38] sm:$0xff] %v804_v11 }
  0x97   : > { %821 = vst [vmem:[#allocation2 + $0x60] sm:$0xff] %v805_v12 }
  0x98   : > { %822 = vst [vmem:[#allocation2 + $0x70] sm:$0xff] %v806_v13 }
  0x99   : > { %823 = vst [vmem:[#allocation2 + $0x78] sm:$0xff] %v807_v14 }
  0x9a   : > { %824 = vst [vmem:[#allocation2 + $0x28] sm:$0xff] %v808_v15 }
  0x9b PF: > { %v8396_v16 = vld [vmem:[#allocation2 + $0x30] sm:$0xff]  ;;  %v8398_v17 = vld [vmem:[#allocation2 + $0x58] sm:$0xff]  ;;  %v8404_v19 = vld [vmem:[#allocation2] sm:$0xff]  ;;  %v7996_v48 = vmov 128.0   ;;  %s7997_s27 = smov 96   ;;  %s7999_s12 = smov 32  }
  0x9c   : > { %843 = vadd.xlane.f32.xlu0 %v8396_v16  ;;  %v898_v18 = vmul.f32 %v8396_v16, %v8396_v16  ;;  %847 = vadd.xlane.f32.xlu2 %v8398_v17  ;;  %v8406_v20 = vld [vmem:[#allocation2 + $0x18] sm:$0xff]  ;;  %v899_v21 = vmul.f32 %v8404_v19, %v8404_v19  ;;  %v900_v22 = vmul.f32 %v8398_v17, %v8398_v17  ;;  %v8414_v23 = vld [vmem:[#allocation2 + $0x50] sm:$0xff]  ;;  %v8419_v25 = vld [vmem:[#allocation2 + $0x68] sm:$0xff]  ;;  %7233 = vrcp.f32 %v7996_v48  ;;  %s11607_s3 = sld [smem:[#allocation28_spill]] }
  0x9d   : > { %v901_v24 = vmul.f32 %v8406_v20, %v8406_v20  ;;  %v903_v26 = vmul.f32 %v8419_v25, %v8419_v25  ;;  %v902_v27 = vmul.f32 %v8414_v23, %v8414_v23  ;;  %v8426_v28 = vld [vmem:[#allocation2 + $0x8] sm:$0xff]  ;;  %v8436_v32 = vld [vmem:[#allocation2 + $0x20] sm:$0xff]  ;;  %v8444_v35 = vld [vmem:[#allocation2 + $0x10] sm:$0xff] }
  0x9e   : > { %914 = vadd.xlane.f32.xlu1 %v898_v18  ;;  %v904_v29 = vmul.f32 %v8426_v28, %v8426_v28  ;;  %v8430_v30 = vld [vmem:[#allocation2 + $0x48] sm:$0xff]  ;;  %v8438_v33 = vld [vmem:[#allocation2 + $0x40] sm:$0xff]  ;;  %v907_v36 = vmul.f32 %v8436_v32, %v8436_v32  ;;  %v8449_v37 = vld [vmem:[#allocation2 + $0x38] sm:$0xff]  ;;  %v908_v39 = vmul.f32 %v8444_v35, %v8444_v35 }
  0x9f   : > { %v905_v31 = vmul.f32 %v8430_v30, %v8430_v30  ;;  %v906_v34 = vmul.f32 %v8438_v33, %v8438_v33  ;;  %v909_v38 = vmul.f32 %v8449_v37, %v8449_v37  ;;  %v8456_v40 = vld [vmem:[#allocation2 + $0x60] sm:$0xff]  ;;  %v8460_v42 = vld [vmem:[#allocation2 + $0x70] sm:$0xff]  ;;  %v6519_v50 = vld [vmem:[%s8329_s10 + $0xa8] sm:$0xf] }
  0xa0   : > { %v910_v41 = vmul.f32 %v8456_v40, %v8456_v40  ;;  %v911_v43 = vmul.f32 %v8460_v42, %v8460_v42  ;;  %v8466_v44 = vld [vmem:[#allocation2 + $0x78] sm:$0xff]  ;;  %v6945_v51 = vld [vmem:[%s8329_s10 + $0xb0] sm:$0xf0]  ;;  %v6944_v52 = vld [vmem:[%s8329_s10 + $0xac] sm:$0xf] }
  0xa1   : > { %v8469_v45 = vld [vmem:[#allocation2 + $0x28] sm:$0xff]  ;;  %v912_v46 = vmul.f32 %v8466_v44, %v8466_v44  ;;  %v6520_v53 = vor.u32 %v6945_v51, %v6519_v50  ;;  %v6521_v54 = vld [vmem:[%s8329_s10 + $0xb4] sm:$0xf0]  ;;  %v6527_v55 = vld [vmem:[%s8329_s10 + $0xb0] sm:$0xf] }
  0xa2   : > { %v913_v47 = vmul.f32 %v8469_v45, %v8469_v45  ;;  %v8476_v49 = vpop.eup %7233  ;;  %v6946_v56 = vld [vmem:[%s8329_s10 + $0xb8] sm:$0xf0]  ;;  %v6524_v57 = vor.u32 %v6944_v52, %v6521_v54  ;;  %v6507_v60 = vld [vmem:[%s8329_s10 + $0x90] sm:$0xf]  ;;  %v6941_v62 = vld [vmem:[%s8329_s10 + $0x94] sm:$0xf] }
  0xa3   : > { %v6528_v58 = vor.u32 %v6946_v56, %v6527_v55  ;;  %v876_v59 = vmul.f32 128.0, %v8476_v49  ;;  %1408 = vmatpush.bf16.msra.mxu0 %v6520_v53  ;;  %v6942_v61 = vld [vmem:[%s8329_s10 + $0x98] sm:$0xf0]  ;;  %v6509_v0 = vld [vmem:[%s8329_s10 + $0x9c] sm:$0xf0]  ;;  %vm880_vm0 = vweird.f32 %v8476_v49  ;;  %p6881_p11 = scmp.ne.s32.totalorder %s11607_s3, 1 }
  0xa4   : > { %845 = vadd.xlane.f32.xlu0 %v8404_v19  ;;  %849 = vadd.xlane.f32.xlu2 %v8406_v20  ;;  %v6508_v63 = vor.u32 %v6942_v61, %v6507_v60  ;;  %v6515_v1 = vld [vmem:[%s8329_s10 + $0x98] sm:$0xf]  ;;  %v6943_v2 = vld [vmem:[%s8329_s10 + $0xa0] sm:$0xf0]  ;;  %v6512_v3 = vor.u32 %v6941_v62, %v6509_v0  ;;  %v6938_v8 = vld [vmem:[%s8329_s10 + $0x7c] sm:$0xf] }
  0xa5   : > { %1457 = vmatpush.bf16.msra.mxu1 %v6524_v57  ;;  %1506 = vmatpush.bf16.msra.mxu2 %v6528_v58  ;;  %v6516_v4 = vor.u32 %v6943_v2, %v6515_v1  ;;  %v877_v5 = vsub.f32 1.0, %v876_v59  ;;  %v6495_v6 = vld [vmem:[%s8329_s10 + $0x78] sm:$0xf]  ;;  %v6939_v7 = vld [vmem:[%s8329_s10 + $0x80] sm:$0xf0]  ;;  %s11611_s4 = sld [smem:[#allocation73_spill]] (!%p6881_p11) }
  0xa6   : > { %916 = vadd.xlane.f32.xlu1 %v899_v21  ;;  %v6496_v9 = vor.u32 %v6939_v7, %v6495_v6  ;;  %v6497_v10 = vld [vmem:[%s8329_s10 + $0x84] sm:$0xf0]  ;;  %v6503_v11 = vld [vmem:[%s8329_s10 + $0x80] sm:$0xf]  ;;  %v6940_v12 = vld [vmem:[%s8329_s10 + $0x88] sm:$0xf0] }
  0xa7   : > { %1409 = vmatpush.bf16.msra.mxu0 %v6508_v63  ;;  %v6500_v13 = vor.u32 %v6938_v8, %v6497_v10  ;;  %v6504_v14 = vor.u32 %v6940_v12, %v6503_v11  ;;  %v6483_v15 = vld [vmem:[%s8329_s10 + $0x60] sm:$0xf]  ;;  %v6936_v18 = vld [vmem:[%s8329_s10 + $0x68] sm:$0xf0]  ;;  %v6935_v21 = vld [vmem:[%s8329_s10 + $0x64] sm:$0xf] }
  0xa8   : > { %v6934_v48 = vld [vmem:[%s8329_s10 + $0x58] sm:$0xf0]  ;;  %v6459_v52 = vld [vmem:[%s8329_s10 + $0x30] sm:$0xf]  ;;  %v6929_v54 = vld [vmem:[%s8329_s10 + $0x34] sm:$0xf] }
  0xa9   : > { %1458 = vmatpush.bf16.msra.mxu1 %v6512_v3  ;;  %1507 = vmatpush.bf16.msra.mxu2 %v6516_v4  ;;  %v6930_v53 = vld [vmem:[%s8329_s10 + $0x38] sm:$0xf0]  ;;  %v6461_v57 = vld [vmem:[%s8329_s10 + $0x3c] sm:$0xf0]  ;;  %v6467_v58 = vld [vmem:[%s8329_s10 + $0x38] sm:$0xf] }
  0xaa   : > { %v6460_v56 = vor.u32 %v6930_v53, %v6459_v52  ;;  %v6931_v59 = vld [vmem:[%s8329_s10 + $0x40] sm:$0xf0]  ;;  %v6464_v60 = vor.u32 %v6929_v54, %v6461_v57  ;;  %v6447_v0 = vld [vmem:[%s8329_s10 + $0x18] sm:$0xf]  ;;  %v6926_v2 = vld [vmem:[%s8329_s10 + $0x1c] sm:$0xf] }
  0xab   : > { %1410 = vmatpush.bf16.msra.mxu0 %v6496_v9  ;;  %v6468_v61 = vor.u32 %v6931_v59, %v6467_v58  ;;  %v6927_v1 = vld [vmem:[%s8329_s10 + $0x20] sm:$0xf0]  ;;  %v6449_v4 = vld [vmem:[%s8329_s10 + $0x24] sm:$0xf0]  ;;  %v6928_v6 = vld [vmem:[%s8329_s10 + $0x28] sm:$0xf0] }
  0xac   : > { %918 = vadd.xlane.f32.xlu0 %v900_v22  ;;  %851 = vadd.xlane.f32.xlu2 %v8414_v23  ;;  %v878_v22 = vmul.f32 %v8476_v49, %v877_v5  ;;  %v6448_v3 = vor.u32 %v6927_v1, %v6447_v0  ;;  %v6455_v5 = vld [vmem:[%s8329_s10 + $0x20] sm:$0xf]  ;;  %v6452_v8 = vor.u32 %v6926_v2, %v6449_v4  ;;  %v6924_v11 = vld [vmem:[%s8329_s10 + $0x8] sm:$0xf0]  ;;  %v6923_v12 = vld [vmem:[%s8329_s10 + $0x4] sm:$0xf] }
  0xad   : > { %1459 = vmatpush.bf16.msra.mxu1 %v6500_v13  ;;  %1508 = vmatpush.bf16.msra.mxu2 %v6504_v14  ;;  %v6456_v9 = vor.u32 %v6928_v6, %v6455_v5  ;;  %v6435_v10 = vld [vmem:[%s8329_s10] sm:$0xf]  ;;  %s11612_s24 = sld [smem:[#allocation74_spill]] (!%p6881_p11) }
  0xae   : > { %920 = vadd.xlane.f32.xlu1 %v901_v24  ;;  %v6484_v24 = vor.u32 %v6936_v18, %v6483_v15  ;;  %v6437_v15 = vld [vmem:[%s8329_s10 + $0xc] sm:$0xf0]  ;;  %v6443_v18 = vld [vmem:[%s8329_s10 + $0x8] sm:$0xf]  ;;  %s11621_s11 = sld [smem:[#allocation76_spill]] (!%p6881_p11) }
  0xb0   : > { %1411 = vmatpush.bf16.msra.mxu0 %v6484_v24 }
  0xb4   : > { %853 = vadd.xlane.f32.xlu0 %v8419_v25  ;;  %924 = vadd.xlane.f32.xlu2 %v903_v26  ;;  %v6485_v26 = vld [vmem:[%s8329_s10 + $0x6c] sm:$0xf0] }
  0xb6   : > { %922 = vadd.xlane.f32.xlu1 %v902_v27  ;;  %v6491_v27 = vld [vmem:[%s8329_s10 + $0x68] sm:$0xf] }
  0xbc   : > { %855 = vadd.xlane.f32.xlu0 %v8426_v28  ;;  %926 = vadd.xlane.f32.xlu2 %v904_v29  ;;  %v6937_v29 = vld [vmem:[%s8329_s10 + $0x70] sm:$0xf0] }
  0xbe   : > { %857 = vadd.xlane.f32.xlu1 %v8430_v30 }
  0xc4   : > { %928 = vadd.xlane.f32.xlu0 %v905_v31  ;;  %861 = vadd.xlane.f32.xlu2 %v8436_v32  ;;  %v6488_v31 = vor.u32 %v6935_v21, %v6485_v26  ;;  %v6925_v21 = vld [vmem:[%s8329_s10 + $0x10] sm:$0xf0]  ;;  %v6440_v26 = vor.u32 %v6923_v12, %v6437_v15 }
  0xc6   : > { %859 = vadd.xlane.f32.xlu1 %v8438_v33  ;;  %1460 = vmatpush.bf16.msra.mxu1 %v6488_v31 }
  0xcc   : > { %930 = vadd.xlane.f32.xlu0 %v906_v34  ;;  %863 = vadd.xlane.f32.xlu2 %v8444_v35  ;;  %v6492_v34 = vor.u32 %v6937_v29, %v6491_v27  ;;  %v6444_v27 = vor.u32 %v6925_v21, %v6443_v18 }
  0xce   : > { %932 = vadd.xlane.f32.xlu1 %v907_v36  ;;  %1509 = vmatpush.bf16.msra.mxu2 %v6492_v34  ;;  %v6471_v36 = vld [vmem:[%s8329_s10 + $0x48] sm:$0xf] }
  0xd4   : > { %865 = vadd.xlane.f32.xlu0 %v8449_v37  ;;  %936 = vadd.xlane.f32.xlu2 %v909_v38  ;;  %v6933_v38 = vld [vmem:[%s8329_s10 + $0x50] sm:$0xf0] }
  0xd6   : > { %934 = vadd.xlane.f32.xlu1 %v908_v39  ;;  %v6932_v39 = vld [vmem:[%s8329_s10 + $0x4c] sm:$0xf] }
  0xdc   : > { %867 = vadd.xlane.f32.xlu0 %v8456_v40  ;;  %938 = vadd.xlane.f32.xlu2 %v910_v41  ;;  %v879_v41 = vadd.f32 %v8476_v49, %v878_v22  ;;  %v6436_v22 = vor.u32 %v6924_v11, %v6435_v10 }
  0xde   : > { %869 = vadd.xlane.f32.xlu1 %v8460_v42  ;;  %v8516_v55 = vsel %vm880_vm0, %v8476_v49, %v879_v41 }
  0xdf   : > { %11528 = vst [vmem:[#allocation38_spill] sm:$0xff] %v8516_v55 }
  0xe4   : > { %940 = vadd.xlane.f32.xlu0 %v911_v43  ;;  %873 = vadd.xlane.f32.xlu2 %v8469_v45  ;;  %v6472_v43 = vor.u32 %v6933_v38, %v6471_v36 }
  0xe6   : > { %871 = vadd.xlane.f32.xlu1 %v8466_v44  ;;  %1412 = vmatpush.bf16.msra.mxu0 %v6472_v43 }
  0xea   : > { %1413 = vmatpush.bf16.msra.mxu0 %v6460_v56 }
  0xec   : > { %942 = vadd.xlane.f32.xlu0 %v912_v46  ;;  %v6473_v46 = vld [vmem:[%s8329_s10 + $0x54] sm:$0xf0] }
  0xed   : > { %v6476_v50 = vor.u32 %v6932_v39, %v6473_v46 }
  0xee   : > { %944 = vadd.xlane.f32.xlu1 %v913_v47  ;;  %v6479_v47 = vld [vmem:[%s8329_s10 + $0x50] sm:$0xf]  ;;  %1414 = vmatpush.bf16.msra.mxu0 %v6448_v3 }
  0xef   : > { %v6480_v51 = vor.u32 %v6934_v48, %v6479_v47  ;;  %1461 = vmatpush.bf16.msra.mxu1 %v6476_v50 }
  0xf1   : > { %1510 = vmatpush.bf16.msra.mxu2 %v6480_v51 }
  0xf2   : > { %1415 = vmatpush.bf16.msra.mxu0 %v6436_v22 }
  0xf3   : > { %1462 = vmatpush.bf16.msra.mxu1 %v6464_v60 }
  0xf5   : > { %1511 = vmatpush.bf16.msra.mxu2 %v6468_v61 }
  0xf7   : > { %1463 = vmatpush.bf16.msra.mxu1 %v6452_v8 }
  0xf9   : > { %1512 = vmatpush.bf16.msra.mxu2 %v6456_v9 }
  0xfb   : > { %1464 = vmatpush.bf16.msra.mxu1 %v6440_v26 }
  0xfd   : > { %1513 = vmatpush.bf16.msra.mxu2 %v6444_v27 }
 0x10f   : > { %v844_v62 = vpop.xlane.xlu0 %843  ;;  %v848_v63 = vpop.xlane.xlu2 %847 }
 0x110   : > { %v8525_v49 = vmul.f32 %v8516_v55, %v844_v62  ;;  %v8546_v43 = vmul.f32 %v8516_v55, %v848_v63 }
 0x111   : > { %v915_v7 = vpop.xlane.xlu1 %914 }
 0x112   : > { %v962_v13 = vmul.f32 %v8525_v49, %v8525_v49  ;;  %v946_v14 = vmul.f32 %v915_v7, %v8516_v55  ;;  %v964_v51 = vmul.f32 %v8546_v43, %v8546_v43 }
 0x114   : > { %v978_v24 = vsub.f32 %v946_v14, %v962_v13 }
 0x116   : > { %v1010_v29 = vadd.f32 1e-05, %v978_v24  ;;  %v994_v24 = vsub.f32 %v8396_v16, %v8525_v49 }
 0x117   : > { %v846_v31 = vpop.xlane.xlu0 %845  ;;  %v850_v34 = vpop.xlane.xlu2 %849 }
 0x118   : > { %7235 = vrsqrt.f32 %v1010_v29  ;;  %v8540_v36 = vmul.f32 %v8516_v55, %v846_v31  ;;  %v8549_v47 = vmul.f32 %v8516_v55, %v850_v34  ;;  %vm1032_vm2 = vweird.f32 %v1010_v29 }
 0x119   : > { %v917_v38 = vpop.xlane.xlu1 %916 }
 0x11a   : > { %v963_v39 = vmul.f32 %v8540_v36, %v8540_v36  ;;  %v947_v41 = vmul.f32 %v917_v38, %v8516_v55  ;;  %v965_v56 = vmul.f32 %v8549_v47, %v8549_v47 }
 0x11c   : > { %v979_v46 = vsub.f32 %v947_v41, %v963_v39  ;;  %v8585_v39 = vld [vmem:[%s662_s9] ss:$0 sm:$0xff]  ;;  %s7998_s9 = smov 64  }
 0x11e   : > { %v7236_v48 = vpop.eup %7235  ;;  %v1011_v50 = vadd.f32 1e-05, %v979_v46 }
 0x11f   : > { %v1027_v52 = vmul.f32 %v7236_v48, %v1010_v29  ;;  %v919_v53 = vpop.xlane.xlu0 %918  ;;  %v852_v54 = vpop.xlane.xlu2 %851  ;;  %vm1033_vm1 = vweird.f32 %v7236_v48 }
 0x120   : > { %7237 = vrsqrt.f32 %v1011_v50  ;;  %v948_v57 = vmul.f32 %v919_v53, %v8516_v55  ;;  %v8560_v1 = vmul.f32 %v8516_v55, %v852_v54  ;;  %vm1034_vm3 = vmor %vm1032_vm2, %vm1033_vm1  ;;  %vm1042_vm5 = vweird.f32 %v1011_v50 }
 0x121   : > { %v1028_v58 = vmul.f32 %v7236_v48, %v1027_v52  ;;  %v921_v59 = vpop.xlane.xlu1 %920  ;;  %v995_v52 = vsub.f32 %v8404_v19, %v8540_v36  ;;  %v8608_v19 = vld [vmem:[%s784_s8] ss:$0 sm:$0xff] }
 0x122   : > { %v980_v60 = vsub.f32 %v948_v57, %v964_v51  ;;  %v949_v61 = vmul.f32 %v921_v59, %v8516_v55  ;;  %v966_v9 = vmul.f32 %v8560_v1, %v8560_v1 }
 0x123   : > { %v1029_v62 = vmul.f32 0.5, %v1028_v58 }
 0x124   : > { %v8557_v63 = vadd.f32 1e-05, %v980_v60  ;;  %v981_v0 = vsub.f32 %v949_v61, %v965_v56 }
 0x125   : > { %v1030_v2 = vsub.f32 1.5, %v1029_v62 }
 0x126   : > { %v7238_v3 = vpop.eup %7237  ;;  %7239 = vrsqrt.f32 %v8557_v63  ;;  %v8563_v4 = vadd.f32 1e-05, %v981_v0  ;;  %vm1052_vm9 = vweird.f32 %v8557_v63 }
 0x127   : > { %v1031_v5 = vmul.f32 %v7236_v48, %v1030_v2  ;;  %v1037_v6 = vmul.f32 %v7238_v3, %v1011_v50  ;;  %v854_v7 = vpop.xlane.xlu0 %853  ;;  %v925_v8 = vpop.xlane.xlu2 %924  ;;  %vm1043_vm4 = vweird.f32 %v7238_v3 }
 0x128   : > { %7241 = vrsqrt.f32 %v8563_v4  ;;  %v8569_v10 = vmul.f32 %v8516_v55, %v854_v7  ;;  %v951_v11 = vmul.f32 %v925_v8, %v8516_v55  ;;  %vm1044_vm6 = vmor %vm1042_vm5, %vm1043_vm4  ;;  %vm1062_vm7 = vweird.f32 %v8563_v4 }
 0x129   : > { %v1038_v12 = vmul.f32 %v7238_v3, %v1037_v6  ;;  %v923_v13 = vpop.xlane.xlu1 %922  ;;  %v1035_v21 = vsel %vm1034_vm3, %v7236_v48, %v1031_v5 }
 0x12a   : > { %v967_v14 = vmul.f32 %v8569_v10, %v8569_v10  ;;  %v950_v15 = vmul.f32 %v923_v13, %v8516_v55  ;;  %v1186_v38 = vmul.f32 %v1035_v21, %v994_v24  ;;  %v997_v13 = vsub.f32 %v8406_v20, %v8549_v47 }
 0x12b   : > { %v1039_v18 = vmul.f32 0.5, %v1038_v12 }
 0x12c   : > { %v8575_v22 = vpop.eup %7239  ;;  %v983_v26 = vsub.f32 %v951_v11, %v967_v14  ;;  %v982_v27 = vsub.f32 %v950_v15, %v966_v9  ;;  %v1205_v60 = vmul.f32 %v8585_v39, %v1186_v38 }
 0x12d   : > { %v1040_v31 = vsub.f32 1.5, %v1039_v18  ;;  %v1047_v29 = vmul.f32 %v8575_v22, %v8557_v63  ;;  %vm1053_vm10 = vweird.f32 %v8575_v22 }
 0x12e   : > { %v8581_v34 = vpop.eup %7241  ;;  %v8587_v41 = vadd.f32 1e-05, %v983_v26  ;;  %v8589_v46 = vadd.f32 1e-05, %v982_v27  ;;  %v1224_v8 = vadd.f32 %v8608_v19, %v1205_v60  ;;  %vm8643_vm12 = vmor %vm1052_vm9, %vm1053_vm10 }
 0x12f   : > { %v1041_v48 = vmul.f32 %v7238_v3, %v1040_v31  ;;  %v1048_v16 = vmul.f32 %v8575_v22, %v1047_v29  ;;  %v1057_v49 = vmul.f32 %v8581_v34, %v8563_v4  ;;  %v856_v51 = vpop.xlane.xlu0 %855  ;;  %v927_v54 = vpop.xlane.xlu2 %926  ;;  %vm1063_vm8 = vweird.f32 %v8581_v34 }
 0x130   : > { %7243 = vrsqrt.f32 %v8587_v41  ;;  %v8598_v53 = vmul.f32 %v8516_v55, %v856_v51  ;;  %v952_v2 = vmul.f32 %v927_v54, %v8516_v55  ;;  %vm8635_vm11 = vmor %vm1062_vm7, %vm1063_vm8  ;;  %vm1082_vm13 = vweird.f32 %v8587_v41 }
 0x131   : > { %v1049_v56 = vmul.f32 0.5, %v1048_v16  ;;  %v1058_v50 = vmul.f32 %v8581_v34, %v1057_v49  ;;  %v1045_v57 = vsel %vm1044_vm6, %v7238_v3, %v1041_v48  ;;  %7245 = vrsqrt.f32 %v8589_v46  ;;  %v858_v58 = vpop.xlane.xlu1 %857 }
 0x132   : > { %v1187_v59 = vmul.f32 %v1045_v57, %v995_v52  ;;  %v968_v36 = vmul.f32 %v8598_v53, %v8598_v53  ;;  %v8613_v61 = vmul.f32 %v8516_v55, %v858_v58  ;;  %v996_v49 = vsub.f32 %v8398_v17, %v8546_v43 }
 0x133   : > { %v1050_v62 = vsub.f32 1.5, %v1049_v56  ;;  %v1059_v0 = vmul.f32 0.5, %v1058_v50  ;;  %vm1072_vm15 = vweird.f32 %v8589_v46 }
 0x134   : > { %v1206_v3 = vmul.f32 %v8585_v39, %v1187_v59  ;;  %v984_v6 = vsub.f32 %v952_v2, %v968_v36  ;;  %v969_v11 = vmul.f32 %v8613_v61, %v8613_v61 }
 0x135   : > { %v1060_v5 = vsub.f32 1.5, %v1059_v0  ;;  %v1051_v14 = vmul.f32 %v8575_v22, %v1050_v62 }
 0x136   : > { %v8621_v7 = vpop.eup %7243  ;;  %v1225_v9 = vadd.f32 %v8608_v19, %v1206_v3  ;;  %v8649_v27 = vadd.f32 1e-05, %v984_v6 }
 0x137   : > { %v8627_v12 = vpop.eup %7245  ;;  %v1061_v15 = vmul.f32 %v8581_v34, %v1060_v5  ;;  %v1077_v21 = vmul.f32 %v8621_v7, %v8587_v41  ;;  %v929_v24 = vpop.xlane.xlu0 %928  ;;  %v1055_v51 = vsel %vm8643_vm12, %v8575_v22, %v1051_v14  ;;  %vm1083_vm14 = vweird.f32 %v8621_v7 }
 0x138   : > { %v1240_v20 = vpack.c.bf16 %v1225_v9, %v1224_v8  ;;  %v1067_v47 = vmul.f32 %v8627_v12, %v8589_v46  ;;  %v953_v4 = vmul.f32 %v929_v24, %v8516_v55  ;;  %v862_v38 = vpop.xlane.xlu2 %861  ;;  %7247 = vrsqrt.f32 %v8649_v27  ;;  %vm8690_vm1 = vmor %vm1082_vm13, %vm1083_vm14 }
 0x139   : > { %v1078_v31 = vmul.f32 %v8621_v7, %v1077_v21  ;;  %v860_v29 = vpop.xlane.xlu1 %859  ;;  %v1065_v16 = vsel %vm8635_vm11, %v8581_v34, %v1061_v15  ;;  %v8669_v50 = vmul.f32 %v8516_v55, %v862_v38  ;;  %v1188_v17 = vmul.f32 %v1055_v51, %v996_v49 }
 0x13a   : > { %1416 = vmatmul.bf16.vlgmr.msra.gmra.mxu0 %v1240_v20  ;;  %1465 = vmatmul.bf16.vlgmr.msra.gmra.mxu1 %v1240_v20  ;;  %v1068_v63 = vmul.f32 %v8627_v12, %v1067_v47  ;;  %v985_v48 = vsub.f32 %v953_v4, %v969_v11  ;;  %v8663_v52 = vmul.f32 %v8516_v55, %v860_v29  ;;  %vm1073_vm0 = vweird.f32 %v8627_v12 }
 0x13b   : > { %1514 = vmatmul.bf16.vlgmr.msra.gmra.mxu2 %v1240_v20  ;;  %v1189_v56 = vmul.f32 %v1065_v16, %v997_v13  ;;  %v1079_v34 = vmul.f32 0.5, %v1078_v31  ;;  %v971_v59 = vmul.f32 %v8669_v50, %v8669_v50  ;;  %v1207_v3 = vmul.f32 %v8585_v39, %v1188_v17  ;;  %vm8699_vm2 = vmor %vm1072_vm15, %vm1073_vm0 }
 0x13c   : > { %v8666_v54 = vadd.f32 1e-05, %v985_v48  ;;  %v1069_v57 = vmul.f32 0.5, %v1068_v63  ;;  %v970_v43 = vmul.f32 %v8663_v52, %v8663_v52  ;;  %v998_v20 = vsub.f32 %v8414_v23, %v8560_v1 }
 0x13d   : > { %v1208_v58 = vmul.f32 %v8585_v39, %v1189_v56  ;;  %v1080_v60 = vsub.f32 1.5, %v1079_v34  ;;  %v1226_v24 = vadd.f32 %v8608_v19, %v1207_v3  ;;  %v999_v47 = vsub.f32 %v8419_v25, %v8569_v10 }
 0x13e   : > { %7249 = vrsqrt.f32 %v8666_v54  ;;  %v1070_v36 = vsub.f32 1.5, %v1069_v57  ;;  %v8678_v2 = vpop.eup %7247  ;;  %vm1092_vm3 = vweird.f32 %v8649_v27  ;;  %vm1102_vm5 = vweird.f32 %v8666_v54 }
 0x13f   : > { %v931_v22 = vpop.xlane.xlu0 %930  ;;  %v1227_v11 = vadd.f32 %v8608_v19, %v1208_v58  ;;  %v1081_v14 = vmul.f32 %v8621_v7, %v1080_v60  ;;  %v1087_v18 = vmul.f32 %v8678_v2, %v8649_v27  ;;  %vm1093_vm4 = vweird.f32 %v8678_v2 }
 0x140   : > { %v954_v62 = vmul.f32 %v931_v22, %v8516_v55  ;;  %v864_v6 = vpop.xlane.xlu2 %863  ;;  %v1071_v15 = vmul.f32 %v8627_v12, %v1070_v36  ;;  %vm8747_vm7 = vmor %vm1092_vm3, %vm1093_vm4 }
 0x141   : > { %v933_v0 = vpop.xlane.xlu1 %932  ;;  %v1241_v4 = vpack.c.bf16 %v1227_v11, %v1226_v24  ;;  %v1088_v38 = vmul.f32 %v8678_v2, %v1087_v18  ;;  %v1085_v16 = vsel %vm8690_vm1, %v8621_v7, %v1081_v14  ;;  %v8726_v10 = vmul.f32 %v8516_v55, %v864_v6 }
 0x142   : > { %v955_v5 = vmul.f32 %v933_v0, %v8516_v55  ;;  %v986_v8 = vsub.f32 %v954_v62, %v970_v43  ;;  %v1075_v48 = vsel %vm8699_vm2, %v8627_v12, %v1071_v15  ;;  %v1191_v1 = vmul.f32 %v1085_v16, %v999_v47 }
 0x143   : > { %v1190_v25 = vmul.f32 %v1075_v48, %v998_v20  ;;  %v1089_v49 = vmul.f32 0.5, %v1088_v38  ;;  %v972_v43 = vmul.f32 %v8726_v10, %v8726_v10  ;;  %v1000_v15 = vsub.f32 %v8426_v28, %v8598_v53 }
 0x144   : > { %v8686_v9 = vpop.eup %7249  ;;  %v987_v13 = vsub.f32 %v955_v5, %v971_v59  ;;  %v8704_v26 = vadd.f32 1e-05, %v986_v8  ;;  %v1210_v17 = vmul.f32 %v8585_v39, %v1191_v1  ;;  %v1001_v18 = vsub.f32 %v8430_v30, %v8613_v61 }
 0x145   : > { %v1097_v46 = vmul.f32 %v8686_v9, %v8666_v54  ;;  %v1209_v57 = vmul.f32 %v8585_v39, %v1190_v25  ;;  %v1090_v59 = vsub.f32 1.5, %v1089_v49  ;;  %vm1103_vm6 = vweird.f32 %v8686_v9 }
 0x146   : > { %v8710_v31 = vadd.f32 1e-05, %v987_v13  ;;  %7251 = vrsqrt.f32 %v8704_v26  ;;  %v1229_v5 = vadd.f32 %v8608_v19, %v1210_v17  ;;  %vm8756_vm8 = vmor %vm1102_vm5, %vm1103_vm6  ;;  %vm1112_vm9 = vweird.f32 %v8704_v26 }
 0x147   : > { %v866_v29 = vpop.xlane.xlu0 %865  ;;  %v1098_v63 = vmul.f32 %v8686_v9, %v1097_v46  ;;  %v1228_v3 = vadd.f32 %v8608_v19, %v1209_v57  ;;  %v1091_v8 = vmul.f32 %v8678_v2, %v1090_v59 }
 0x148   : > { %v8722_v23 = vmul.f32 %v8516_v55, %v866_v29  ;;  %7253 = vrsqrt.f32 %v8710_v31  ;;  %v937_v12 = vpop.xlane.xlu2 %936  ;;  %vm1122_vm11 = vweird.f32 %v8710_v31 }
 0x149   : > { %v1099_v51 = vmul.f32 0.5, %v1098_v63  ;;  %v935_v56 = vpop.xlane.xlu1 %934  ;;  %v957_v34 = vmul.f32 %v937_v12, %v8516_v55  ;;  %v1242_v46 = vpack.c.bf16 %v1229_v5, %v1228_v3  ;;  %v1095_v47 = vsel %vm8747_vm7, %v8678_v2, %v1091_v8 }
 0x14a   : > { %1470 = vmatmul.bf16.gmra.mxu1 %v1241_v4  ;;  %1421 = vmatmul.bf16.gmra.mxu0 %v1241_v4  ;;  %v973_v7 = vmul.f32 %v8722_v23, %v8722_v23  ;;  %v956_v22 = vmul.f32 %v935_v56, %v8516_v55  ;;  %v1192_v30 = vmul.f32 %v1095_v47, %v1000_v15 }
 0x14b   : > { %1519 = vmatmul.bf16.gmra.mxu2 %v1241_v4  ;;  %v1100_v60 = vsub.f32 1.5, %v1099_v51  ;;  %v1003_v8 = vsub.f32 %v8436_v32, %v8669_v50 }
 0x14c   : > { %v8736_v58 = vpop.eup %7251  ;;  %v989_v62 = vsub.f32 %v957_v34, %v973_v7  ;;  %v988_v6 = vsub.f32 %v956_v22, %v972_v43  ;;  %v1211_v25 = vmul.f32 %v8585_v39, %v1192_v30 }
 0x14d   : > { %v1101_v27 = vmul.f32 %v8686_v9, %v1100_v60  ;;  %v1107_v54 = vmul.f32 %v8736_v58, %v8704_v26  ;;  %vm1113_vm10 = vweird.f32 %v8736_v58 }
 0x14e   : > { %v8738_v36 = vpop.eup %7253  ;;  %v8760_v41 = vadd.f32 1e-05, %v989_v62  ;;  %v8766_v21 = vadd.f32 1e-05, %v988_v6  ;;  %v1230_v43 = vadd.f32 %v8608_v19, %v1211_v25  ;;  %vm8803_vm13 = vmor %vm1112_vm9, %vm1113_vm10  ;;  %v1002_v6 = vsub.f32 %v8438_v33, %v8663_v52 }
 0x14f   : > { %v868_v0 = vpop.xlane.xlu0 %867  ;;  %v1117_v13 = vmul.f32 %v8738_v36, %v8710_v31  ;;  %v1108_v24 = vmul.f32 %v8736_v58, %v1107_v54  ;;  %v1105_v4 = vsel %vm8756_vm8, %v8686_v9, %v1101_v27  ;;  %vm1123_vm12 = vweird.f32 %v8738_v36 }
 0x150   : > { %7255 = vrsqrt.f32 %v8760_v41  ;;  %v8778_v28 = vmul.f32 %v8516_v55, %v868_v0  ;;  %v1193_v53 = vmul.f32 %v1105_v4, %v1001_v18  ;;  %v939_v2 = vpop.xlane.xlu2 %938  ;;  %vm8812_vm14 = vmor %vm1122_vm11, %vm1123_vm12  ;;  %vm1142_vm15 = vweird.f32 %v8760_v41 }
 0x151   : > { %v1118_v20 = vmul.f32 %v8738_v36, %v1117_v13  ;;  %v870_v29 = vpop.xlane.xlu1 %869  ;;  %7257 = vrsqrt.f32 %v8766_v21  ;;  %v1109_v38 = vmul.f32 0.5, %v1108_v24  ;;  %v958_v16 = vmul.f32 %v939_v2, %v8516_v55 }
 0x152   : > { %v8782_v61 = vmul.f32 %v8516_v55, %v870_v29  ;;  %v974_v48 = vmul.f32 %v8778_v28, %v8778_v28  ;;  %v1212_v1 = vmul.f32 %v8585_v39, %v1193_v53  ;;  %vm1132_vm1 = vweird.f32 %v8766_v21 }
 0x153   : > { %v1119_v63 = vmul.f32 0.5, %v1118_v20  ;;  %v1110_v56 = vsub.f32 1.5, %v1109_v38 }
 0x154   : > { %v975_v12 = vmul.f32 %v8782_v61, %v8782_v61  ;;  %v990_v57 = vsub.f32 %v958_v16, %v974_v48  ;;  %v1231_v22 = vadd.f32 %v8608_v19, %v1212_v1 }
 0x155   : > { %v1120_v7 = vsub.f32 1.5, %v1119_v63  ;;  %v1111_v60 = vmul.f32 %v8736_v58, %v1110_v56 }
 0x156   : > { %v8792_v51 = vpop.eup %7255  ;;  %v8816_v5 = vadd.f32 1e-05, %v990_v57  ;;  %v1243_v11 = vpack.c.bf16 %v1231_v22, %v1230_v43  ;;  %v1004_v57 = vsub.f32 %v8444_v35, %v8726_v10 }
 0x157   : > { %v941_v9 = vpop.xlane.xlu0 %940  ;;  %v8794_v34 = vpop.eup %7257  ;;  %v1121_v26 = vmul.f32 %v8738_v36, %v1120_v7  ;;  %v1137_v31 = vmul.f32 %v8792_v51, %v8760_v41  ;;  %v1115_v14 = vsel %vm8803_vm13, %v8736_v58, %v1111_v60  ;;  %vm1143_vm0 = vweird.f32 %v8792_v51 }
 0x158   : > { %v959_v49 = vmul.f32 %v941_v9, %v8516_v55  ;;  %v1127_v0 = vmul.f32 %v8794_v34, %v8766_v21  ;;  %v874_v18 = vpop.xlane.xlu2 %873  ;;  %7259 = vrsqrt.f32 %v8816_v5  ;;  %v1194_v33 = vmul.f32 %v1115_v14, %v1002_v6  ;;  %vm8859_vm3 = vmor %vm1142_vm15, %vm1143_vm0 }
 0x159   : > { %v872_v17 = vpop.xlane.xlu1 %871  ;;  %v1138_v54 = vmul.f32 %v8792_v51, %v1137_v31  ;;  %v1125_v15 = vsel %vm8812_vm14, %v8738_v36, %v1121_v26  ;;  %v8838_v50 = vmul.f32 %v8516_v55, %v874_v18  ;;  %vm1133_vm2 = vweird.f32 %v8794_v34 }
 0x15a   : > { %1475 = vmatmul.bf16.gmra.mxu1 %v1242_v46  ;;  %1426 = vmatmul.bf16.gmra.mxu0 %v1242_v46  ;;  %v991_v59 = vsub.f32 %v959_v49, %v975_v12  ;;  %v1128_v13 = vmul.f32 %v8794_v34, %v1127_v0  ;;  %v8834_v32 = vmul.f32 %v8516_v55, %v872_v17  ;;  %vm1134_vm4 = vmor %vm1132_vm1, %vm1133_vm2  ;;  %vm1152_vm5 = vweird.f32 %v8816_v5 }
 0x15b   : > { %1524 = vmatmul.bf16.gmra.mxu2 %v1242_v46  ;;  %v1195_v52 = vmul.f32 %v1125_v15, %v1003_v8  ;;  %v1139_v46 = vmul.f32 0.5, %v1138_v54  ;;  %v1213_v4 = vmul.f32 %v8585_v39, %v1194_v33  ;;  %v977_v30 = vmul.f32 %v8838_v50, %v8838_v50 }
 0x15c   : > { %v8822_v27 = vadd.f32 1e-05, %v991_v59  ;;  %v1129_v24 = vmul.f32 0.5, %v1128_v13  ;;  %v976_v20 = vmul.f32 %v8834_v32, %v8834_v32  ;;  %v1005_v17 = vsub.f32 %v8449_v37, %v8722_v23 }
 0x15d   : > { %v1214_v29 = vmul.f32 %v8585_v39, %v1195_v52  ;;  %v1140_v38 = vsub.f32 1.5, %v1139_v46  ;;  %v1232_v16 = vadd.f32 %v8608_v19, %v1213_v4  ;;  %vm1565_vm1 = vcmask 261120  }
 0x15e   : > { %7261 = vrsqrt.f32 %v8822_v27  ;;  %v8848_v2 = vpop.eup %7259  ;;  %v1130_v63 = vsub.f32 1.5, %v1129_v24  ;;  %vm1162_vm7 = vweird.f32 %v8822_v27 }
 0x15f   : > { %v943_v58 = vpop.xlane.xlu0 %942  ;;  %v1233_v25 = vadd.f32 %v8608_v19, %v1214_v29  ;;  %v1141_v12 = vmul.f32 %v8792_v51, %v1140_v38  ;;  %v1147_v56 = vmul.f32 %v8848_v2, %v8816_v5  ;;  %vm1153_vm6 = vweird.f32 %v8848_v2 }
 0x160   : > { %v960_v47 = vmul.f32 %v943_v58, %v8516_v55  ;;  %v1131_v41 = vmul.f32 %v8794_v34, %v1130_v63  ;;  %vm1154_vm9 = vmor %vm1152_vm5, %vm1153_vm6  ;;  %v1006_v5 = vsub.f32 %v8456_v40, %v8778_v28  ;;  %v1009_v38 = vsub.f32 %v8469_v45, %v8838_v50 }
 0x161   : > { %v945_v36 = vpop.xlane.xlu1 %944  ;;  %v1244_v43 = vpack.c.bf16 %v1233_v25, %v1232_v16  ;;  %v1148_v59 = vmul.f32 %v8848_v2, %v1147_v56  ;;  %v1145_v26 = vsel %vm8859_vm3, %v8792_v51, %v1141_v12  ;;  %vm1590_vm3 = vcmask 130048  }
 0x162   : > { %v961_v53 = vmul.f32 %v945_v36, %v8516_v55  ;;  %v992_v48 = vsub.f32 %v960_v47, %v976_v20  ;;  %v1135_v62 = vsel %vm1134_vm4, %v8794_v34, %v1131_v41  ;;  %v1197_v10 = vmul.f32 %v1145_v26, %v1005_v17 }
 0x163   : > { %v1196_v35 = vmul.f32 %v1135_v62, %v1004_v57  ;;  %v1149_v37 = vmul.f32 0.5, %v1148_v59  ;;  %vm1715_vm5 = vcmask 523520   ;;  %vm1797_vm6 = vcmask 785920  }
 0x164   : > { %v8850_v9 = vpop.eup %7261  ;;  %v993_v1 = vsub.f32 %v961_v53, %v977_v30  ;;  %v1024_v7 = vadd.f32 1e-05, %v992_v48  ;;  %v1216_v0 = vmul.f32 %v8585_v39, %v1197_v10 }
 0x165   : > { %v1157_v21 = vmul.f32 %v8850_v9, %v8822_v27  ;;  %v1215_v31 = vmul.f32 %v8585_v39, %v1196_v35  ;;  %v1150_v6 = vsub.f32 1.5, %v1149_v37  ;;  %vm1163_vm8 = vweird.f32 %v8850_v9 }
 0x166   : > { %v1025_v22 = vadd.f32 1e-05, %v993_v1  ;;  %7263 = vrsqrt.f32 %v1024_v7  ;;  %vm1164_vm10 = vmor %vm1162_vm7, %vm1163_vm8  ;;  %v1007_v27 = vsub.f32 %v8460_v42, %v8782_v61  ;;  %vm1172_vm11 = vweird.f32 %v1024_v7 }
 0x167   : > { %v1158_v60 = vmul.f32 %v8850_v9, %v1157_v21  ;;  %v1234_v51 = vadd.f32 %v8608_v19, %v1215_v31  ;;  %v1151_v54 = vmul.f32 %v8848_v2, %v1150_v6  ;;  %vm1879_vm7 = vcmask 1048320  }
 0x168   : > { %7265 = vrsqrt.f32 %v1025_v22  ;;  %vm1182_vm13 = vweird.f32 %v1025_v22 }
 0x169   : > { %v1159_v23 = vmul.f32 0.5, %v1158_v60  ;;  %v1155_v58 = vsel %vm1154_vm9, %v8848_v2, %v1151_v54  ;;  %v1008_v2 = vsub.f32 %v8466_v44, %v8834_v32 }
 0x16a   : > { %1480 = vmatmul.bf16.gmra.mxu1 %v1243_v11  ;;  %1431 = vmatmul.bf16.gmra.mxu0 %v1243_v11  ;;  %v1198_v24 = vmul.f32 %v1155_v58, %v1006_v5 }
 0x16b   : > { %1529 = vmatmul.bf16.gmra.mxu2 %v1243_v11  ;;  %v1160_v34 = vsub.f32 1.5, %v1159_v23  ;;  %v1235_v11 = vadd.f32 %v8608_v19, %v1216_v0 }
 0x16c   : > { %v7264_v3 = vpop.eup %7263  ;;  %v1217_v4 = vmul.f32 %v8585_v39, %v1198_v24 }
 0x16d   : > { %v1161_v13 = vmul.f32 %v8850_v9, %v1160_v34  ;;  %v1167_v14 = vmul.f32 %v7264_v3, %v1024_v7  ;;  %v1245_v18 = vpack.c.bf16 %v1235_v11, %v1234_v51  ;;  %vm1173_vm12 = vweird.f32 %v7264_v3 }
 0x16e   : > { %v7266_v8 = vpop.eup %7265  ;;  %v1236_v61 = vadd.f32 %v8608_v19, %v1217_v4  ;;  %vm1174_vm15 = vmor %vm1172_vm11, %vm1173_vm12  ;;  %v1555_v34 = vlaneseq }
 0x16f   : > { %v1177_v15 = vmul.f32 %v7266_v8, %v1025_v22  ;;  %v1168_v33 = vmul.f32 %v7264_v3, %v1167_v14  ;;  %v1165_v46 = vsel %vm1164_vm10, %v8850_v9, %v1161_v13  ;;  %vm1183_vm14 = vweird.f32 %v7266_v8 }
 0x170   : > { %v1199_v36 = vmul.f32 %v1165_v46, %v1007_v27  ;;  %vm1184_vm0 = vmor %vm1182_vm13, %vm1183_vm14  ;;  %v1559_v51 = vand.u32 127, %v1555_v34 }
 0x171   : > { %v1178_v52 = vmul.f32 %v7266_v8, %v1177_v15  ;;  %v1169_v20 = vmul.f32 0.5, %v1168_v33 }
 0x172   : > { %v1218_v40 = vmul.f32 %v8585_v39, %v1199_v36 }
 0x173   : > { %v1179_v47 = vmul.f32 0.5, %v1178_v52  ;;  %v1170_v28 = vsub.f32 1.5, %v1169_v20 }
 0x174   : > { %v1237_v29 = vadd.f32 %v8608_v19, %v1218_v40 }
 0x175   : > { %v1180_v42 = vsub.f32 1.5, %v1179_v47  ;;  %v1171_v30 = vmul.f32 %v7264_v3, %v1170_v28 }
 0x176   : > { %v1246_v63 = vpack.c.bf16 %v1237_v29, %v1236_v61 }
 0x177   : > { %v1181_v53 = vmul.f32 %v7266_v8, %v1180_v42  ;;  %v1175_v9 = vsel %vm1174_vm15, %v7264_v3, %v1171_v30 }
 0x178   : > { %v1200_v16 = vmul.f32 %v1175_v9, %v1008_v2 }
 0x179   : > { %v1185_v48 = vsel %vm1184_vm0, %v7266_v8, %v1181_v53  ;;  %v1556_v8 = vshrl.u32 %v1555_v34, 7 }
 0x17a   : > { %1485 = vmatmul.bf16.gmra.mxu1 %v1244_v43  ;;  %1436 = vmatmul.bf16.gmra.mxu0 %v1244_v43  ;;  %v1201_v25 = vmul.f32 %v1185_v48, %v1009_v38  ;;  %v1219_v1 = vmul.f32 %v8585_v39, %v1200_v16 }
 0x17b   : > { %1534 = vmatmul.bf16.gmra.mxu2 %v1244_v43  ;;  %vm8943_vm2 = vcmp.le.s32.totalorder %v1559_v51, %v1556_v8  ;;  %v1557_v5 = vadd.s32 8, %v1556_v8 }
 0x17c   : > { %v1220_v12 = vmul.f32 %v8585_v39, %v1201_v25  ;;  %v1238_v49 = vadd.f32 %v8608_v19, %v1219_v1 }
 0x17d   : > { %vm8950_vm4 = vcmp.le.s32.totalorder %v1559_v51, %v1557_v5 }
 0x17e   : > { %v1239_v41 = vadd.f32 %v8608_v19, %v1220_v12 }
 0x180   : > { %v1247_v44 = vpack.c.bf16 %v1239_v41, %v1238_v49 }
 0x18a   : > { %1490 = vmatmul.bf16.gmra.mxu1 %v1245_v18  ;;  %1441 = vmatmul.bf16.gmra.mxu0 %v1245_v18 }
 0x18b   : > { %1539 = vmatmul.bf16.gmra.mxu2 %v1245_v18 }
 0x19a   : > { %1495 = vmatmul.bf16.gmra.mxu1 %v1246_v63  ;;  %1446 = vmatmul.bf16.gmra.mxu0 %v1246_v63 }
 0x19b   : > { %1544 = vmatmul.bf16.gmra.mxu2 %v1246_v63 }
 0x1aa   : > { %1500 = vmatmul.bf16.gmra.mxu1 %v1247_v44  ;;  %1451 = vmatmul.bf16.gmra.mxu0 %v1247_v44 }
 0x1ab   : > { %1549 = vmatmul.bf16.gmra.mxu2 %v1247_v44 }
 0x1b7   : > { %v1466_v45 = vpop.f32.mrf.mxu1  ;;  %v1417_v32 = vpop.f32.mrf.mxu0 }
 0x1be   : > { %v1515_v50 = vpop.f32.mrf.mxu2 }
 0x1bf   : > { %v1468_v56 = vpop.f32.mrf.mxu1  ;;  %v1419_v39 = vpop.f32.mrf.mxu0 }
 0x1c0   : > { %v8906_v21 = vpack.c.bf16 %v1468_v56, %v1466_v45  ;;  %v8914_v43 = vpack.c.bf16 %v1419_v39, %v1417_v32 }
 0x1c2   : > { %v1570_v7 = vsel %vm1565_vm1, %v8906_v21, 0 }
 0x1c3   : > { %1579 = vmatpush.bf16.xpose.msrb.mxu1 %v1570_v7 }
 0x1c6   : > { %v1517_v57 = vpop.f32.mrf.mxu2 }
 0x1c7   : > { %v8910_v17 = vpack.c.bf16 %v1517_v57, %v1515_v50  ;;  %v8912_v19 = vpop.f32.mrf.mxu1  ;;  %v1422_v53 = vpop.f32.mrf.mxu0 }
 0x1c9   : > { %1624 = vmatpush.bf16.msra.mxu3 %v8910_v17 }
 0x1ca   : > { %6529 = vmatmul.msk.bf16.vlgmr.msrb.gmra.mxu1 %vm1565_vm1, %v8914_v43 }
 0x1cf   : > { %v1473_v22 = vpop.f32.mrf.mxu1  ;;  %v1424_v2 = vpop.f32.mrf.mxu0 }
 0x1d0   : > { %v8979_v9 = vpack.c.bf16 %v1473_v22, %v8912_v19  ;;  %v8983_v16 = vpack.c.bf16 %v1424_v2, %v1422_v53 }
 0x1d7   : > { %v8919_v59 = vpop.f32.mrf.mxu1  ;;  %v8970_v38 = vpop.f32.mrf.mxu0 }
 0x1df   : > { %v8921_v60 = vpop.f32.mrf.mxu1  ;;  %v8974_v63 = vpop.f32.mrf.mxu0 }
 0x1e0   : > { %v9047_v53 = vpack.c.bf16 %v8974_v63, %v8970_v38 }
 0x1e7   : > { %v8923_v62 = vpop.f32.mrf.mxu1  ;;  %v1432_v48 = vpop.f32.mrf.mxu0 }
 0x1ef   : > { %v8925_v26 = vpop.f32.mrf.mxu1  ;;  %v1434_v25 = vpop.f32.mrf.mxu0 }
 0x1f0   : > { %v8987_v1 = vpack.c.bf16 %v1434_v25, %v1432_v48 }
 0x1f7   : > { %v8927_v35 = vpop.f32.mrf.mxu1  ;;  %v1437_v12 = vpop.f32.mrf.mxu0 }
 0x1ff   : > { %v8929_v10 = vpop.f32.mrf.mxu1  ;;  %v1439_v41 = vpop.f32.mrf.mxu0 }
 0x200   : > { %v8993_v49 = vpack.c.bf16 %v8929_v10, %v8927_v35  ;;  %v8999_v44 = vpack.c.bf16 %v1439_v41, %v1437_v12 }
 0x207   : > { %v8931_v37 = vpop.f32.mrf.mxu1  ;;  %v1442_v45 = vpop.f32.mrf.mxu0 }
 0x20f   : > { %v8933_v23 = vpop.f32.mrf.mxu1  ;;  %v1444_v50 = vpop.f32.mrf.mxu0 }
 0x210   : > { %v9005_v32 = vpack.c.bf16 %v8933_v23, %v8931_v37  ;;  %v9009_v56 = vpack.c.bf16 %v1444_v50, %v1442_v45 }
 0x217   : > { %v8935_v31 = vpop.f32.mrf.mxu1 }
 0x21f   : > { %v8937_v0 = vpop.f32.mrf.mxu1 }
 0x227   : > { %v8939_v3 = vpop.f32.mrf.mxu1 }
 0x22f   : > { %v8941_v6 = vpop.f32.mrf.mxu1 }
 0x247   : > { %v1581_v11 = vpop.f32.mrf.mxu1 }
 0x248   : > { %v1586_v13 = vmul.f32 0.17677669, %v1581_v11 }
 0x24a   : > { %v1588_v14 = vsel %vm8943_vm2, %v1586_v13, -1e+30 }
 0x24b   : > { %v1591_v15 = vsel %vm1590_vm3, %v1588_v14, -inf }
 0x24c   : > { %1592 = vmax.xlane.f32.xlu2 %v1591_v15 }
 0x24f   : > { %v1583_v27 = vpop.f32.mrf.mxu1 }
 0x250   : > { %v1587_v33 = vmul.f32 0.17677669, %v1583_v27 }
 0x252   : > { %v1589_v52 = vsel %vm8950_vm4, %v1587_v33, -1e+30 }
 0x253   : > { %v1594_v58 = vsel %vm1590_vm3, %v1589_v52, -inf }
 0x254   : > { %1595 = vmax.xlane.f32.xlu0 %v1594_v58 }
 0x268   : > { %1637 = vrot.lane.b32.xlu0 %v8906_v21, %s7997_s27 }
 0x270   : > { %1769 = vrot.lane.b32.xlu0 %v8910_v17, %s7998_s9 }
 0x278   : > { %1851 = vrot.lane.b32.xlu0 %v8910_v17, %s7999_s12 }
 0x2bf   : > { %v1593_v46 = vpop.xlane.xlu2 %1592 }
 0x2c0   : > { %v1597_v24 = vsub.f32 %v1588_v14, %v1593_v46 }
 0x2c2   : > { %v1599_v36 = vmul.f32 1.442695, %v1597_v24 }
 0x2c4   : > { %7267 = vpow2.f32 %v1599_v36 }
 0x2c7   : > { %v1596_v20 = vpop.xlane.xlu0 %1595 }
 0x2c8   : > { %v1598_v47 = vsub.f32 %v1589_v52, %v1596_v20 }
 0x2ca   : > { %v7268_v4 = vpop.eup %7267  ;;  %v1601_v40 = vmul.f32 1.442695, %v1598_v47 }
 0x2cb   : > { %v1603_v28 = vsel %vm1590_vm3, %v7268_v4, 0.0 }
 0x2cc   : > { %7269 = vpow2.f32 %v1601_v40  ;;  %1604 = vadd.xlane.f32.xlu1 %v1603_v28 }
 0x2d2   : > { %v7270_v42 = vpop.eup %7269 }
 0x2d3   : > { %v1606_v61 = vsel %vm1590_vm3, %v7270_v42, 0.0 }
 0x2d4   : > { %1607 = vadd.xlane.f32.xlu2 %v1606_v61 }
 0x2da   : > { %v1638_v29 = vpop.permute.xlu0 %1637 }
 0x2db   : > { %v1643_v30 = vsel %vm1565_vm1, %v1638_v29, 0 }
 0x2dc   : > { %1652 = vmatpush.bf16.xpose.msrb.mxu3 %v1643_v30  ;;  %v2198_v30 = vpack.c.bf16 %v8921_v60, %v8919_v59  ;;  %v9081_v59 = vpack.c.bf16 %v8937_v0, %v8935_v31 }
 0x2e5   : > { %1634 = vrot.lane.b32.xlu1 %v8914_v43, %s7997_s27 }
 0x2ed   : > { %1720 = vrot.lane.b32.xlu1 %v8906_v21, %s7998_s9 }
 0x2f5   : > { %1718 = vrot.lane.b32.xlu1 %v8914_v43, %s7998_s9 }
 0x2fd   : > { %1802 = vrot.lane.b32.xlu1 %v8906_v21, %s7999_s12 }
 0x305   : > { %1955 = vrot.lane.b32.xlu1 %v8979_v9, %s7997_s27 }
 0x30d   : > { %2035 = vrot.lane.b32.xlu1 %v8983_v16, %s7998_s9 }
 0x315   : > { %2665 = vrot.lane.b32.xlu1 %v8987_v1, %s7998_s9 }
 0x31d   : > { %2982 = vrot.lane.b32.xlu1 %v8993_v49, %s7998_s9 }
 0x325   : > { %3063 = vrot.lane.b32.xlu1 %v8993_v49, %s7999_s12 }
 0x32d   : > { %3061 = vrot.lane.b32.xlu1 %v8999_v44, %s7999_s12 }
 0x335   : > { %3215 = vrot.lane.b32.xlu1 %v9005_v32, %s7997_s27 }
 0x33d   : > { %3212 = vrot.lane.b32.xlu1 %v9009_v56, %s7997_s27 }
 0x33f   : > { %v1605_v21 = vpop.xlane.xlu1 %1604 }
 0x340   : > { %7271 = vrcp.f32 %v1605_v21 }
 0x345   : > { %3378 = vrot.lane.b32.xlu1 %v9005_v32, %s7999_s12 }
 0x346   : > { %v7272_v39 = vpop.eup %7271 }
 0x347   : > { %v1608_v7 = vpop.xlane.xlu2 %1607  ;;  %v1611_v19 = vmul.f32 %v7272_v39, %v7268_v4 }
 0x348   : > { %7273 = vrcp.f32 %v1608_v7 }
 0x34e   : > { %v7274_v57 = vpop.eup %7273 }
 0x34f   : > { %v1612_v22 = vmul.f32 %v7274_v57, %v7270_v42  ;;  %v2204_v57 = vsel %vm1565_vm1, %v2198_v30, 0 }
 0x351   : > { %v1613_v35 = vpack.c.bf16 %v1612_v22, %v1611_v19 }
 0x353   : > { %6530 = vmatmul.msk.bf16.vlgmr.msra.gmra.mxu3 %vm1590_vm3, %v1613_v35 }
 0x357   : > { %v1635_v10 = vpop.permute.xlu1 %1634 }
 0x35f   : > { %v9016_v37 = vpop.permute.xlu1 %1720 }
 0x360   : > { %v1726_v63 = vsel %vm1565_vm1, %v9016_v37, 0 }
 0x363   : > { %6531 = vmatmul.msk.bf16.vlgmr.msrb.gmra.mxu3 %vm1565_vm1, %v1635_v10 }
 0x367   : > { %v9019_v23 = vpop.permute.xlu1 %1718 }
 0x36f   : > { %v9021_v34 = vpop.permute.xlu1 %1802 }
 0x370   : > { %v1808_v37 = vsel %vm1565_vm1, %v9021_v34, 0 }
 0x377   : > { %v1956_v8 = vpop.permute.xlu1 %1955 }
 0x378   : > { %v1961_v51 = vsel %vm1565_vm1, %v1956_v8, 0 }
 0x379   : > { %1970 = vmatpush.bf16.xpose.msrb.mxu0 %v1961_v51 }
 0x37f   : > { %v2036_v35 = vpop.permute.xlu1 %2035 }
 0x3d6   : > { %v1626_v11 = vpop.f32.mrf.mxu3 }
 0x3d7   : > { %1631 = vst.msk [vmem:[#allocation3] sm:$0xff] %vm1565_vm1, %v1626_v11 }
 0x3de   : > { %v1628_v13 = vpop.f32.mrf.mxu3 }
 0x3df   : > { %1632 = vst.msk [vmem:[#allocation3 + $0x8] sm:$0xff] %vm1565_vm1, %v1628_v13 }
 0x3e6   : > { %v1654_v14 = vpop.f32.mrf.mxu3 }
 0x3e7   : > { %v1659_v15 = vmul.f32 0.17677669, %v1654_v14 }
 0x3e9   : > { %v1661_v5 = vsel %vm8943_vm2, %v1659_v15, -1e+30 }
 0x3ea   : > { %v1663_v27 = vsel %vm1590_vm3, %v1661_v5, -inf }
 0x3eb   : > { %1664 = vmax.xlane.f32.xlu2 %v1663_v27 }
 0x3ee   : > { %v1656_v33 = vpop.f32.mrf.mxu3 }
 0x3ef   : > { %v1660_v52 = vmul.f32 0.17677669, %v1656_v33 }
 0x3f1   : > { %v1662_v58 = vsel %vm8950_vm4, %v1660_v52, -1e+30  ;;  %v9127_v52 = vpop.f32.mrf.mxu2 }
 0x3f2   : > { %v1666_v46 = vsel %vm1590_vm3, %v1662_v58, -inf }
 0x3f3   : > { %1667 = vmax.xlane.f32.xlu2 %v1666_v46 }
 0x45e   : > { %v1665_v24 = vpop.xlane.xlu2 %1664 }
 0x45f   : > { %v1669_v36 = vsub.f32 %v1661_v5, %v1665_v24  ;;  %v9130_v24 = vpop.f32.mrf.mxu2 }
 0x461   : > { %v1671_v20 = vmul.f32 1.442695, %v1669_v36 }
 0x463   : > { %7275 = vpow2.f32 %v1671_v20  ;;  %v2666_v20 = vpop.permute.xlu1 %2665 }
 0x466   : > { %v1668_v47 = vpop.xlane.xlu2 %1667 }
 0x467   : > { %v1670_v4 = vsub.f32 %v1662_v58, %v1668_v47 }
 0x469   : > { %v7276_v40 = vpop.eup %7275  ;;  %v1673_v28 = vmul.f32 1.442695, %v1670_v4  ;;  %v9134_v4 = vpop.f32.mrf.mxu2 }
 0x46a   : > { %v1675_v42 = vsel %vm1590_vm3, %v7276_v40, 0.0 }
 0x46b   : > { %7277 = vpow2.f32 %v1673_v28  ;;  %1676 = vadd.xlane.f32.xlu2 %v1675_v42  ;;  %v2834_v28 = vsel %vm1565_vm1, %v8993_v49, 0 }
 0x471   : > { %v7278_v61 = vpop.eup %7277 }
 0x472   : > { %v1678_v29 = vsel %vm1590_vm3, %v7278_v61, 0.0 }
 0x473   : > { %1679 = vadd.xlane.f32.xlu0 %v1678_v29  ;;  %v9142_v29 = vpop.f32.mrf.mxu2 }
 0x483   : > { %1687 = vrot.lane.b32.xlu2 %v8910_v17, %s7997_s27  ;;  %v9058_v17 = vpack.c.bf16 %v8925_v26, %v8923_v62  ;;  %v1770_v62 = vpop.permute.xlu0 %1769 }
 0x487   : > { %2037 = vrot.lane.b32.xlu0 %v8979_v9, %s7998_s9 }
 0x48b   : > { %1800 = vrot.lane.b32.xlu2 %v8914_v43, %s7999_s12  ;;  %v1447_v43 = vpop.f32.mrf.mxu0  ;;  %v9093_v2 = vpop.permute.xlu0 %1851 }
 0x48f   : > { %2270 = vrot.lane.b32.xlu0 %v2198_v30, %s7997_s27 }
 0x493   : > { %1952 = vrot.lane.b32.xlu2 %v8983_v16, %s7997_s27  ;;  %v1449_v60 = vpop.f32.mrf.mxu0 }
 0x494   : > { %v9087_v26 = vpack.c.bf16 %v1449_v60, %v1447_v43 }
 0x497   : > { %2267 = vrot.lane.b32.xlu0 %v9047_v53, %s7997_s27 }
 0x49b   : > { %2118 = vrot.lane.b32.xlu2 %v8979_v9, %s7999_s12 }
 0x49f   : > { %2433 = vrot.lane.b32.xlu0 %v2198_v30, %s7999_s12 }
 0x4a3   : > { %2116 = vrot.lane.b32.xlu2 %v8983_v16, %s7999_s12 }
 0x4a7   : > { %2585 = vrot.lane.b32.xlu0 %v9058_v17, %s7997_s27 }
 0x4ab   : > { %2352 = vrot.lane.b32.xlu2 %v2198_v30, %s7998_s9 }
 0x4af   : > { %2980 = vrot.lane.b32.xlu0 %v8999_v44, %s7998_s9 }
 0x4b3   : > { %2350 = vrot.lane.b32.xlu2 %v9047_v53, %s7998_s9 }
 0x4b7   : > { %3297 = vrot.lane.b32.xlu0 %v9005_v32, %s7998_s9 }
 0x4bb   : > { %2431 = vrot.lane.b32.xlu2 %v9047_v53, %s7999_s12 }
 0x4bf   : > { %3295 = vrot.lane.b32.xlu0 %v9009_v56, %s7998_s9 }
 0x4c3   : > { %2667 = vrot.lane.b32.xlu2 %v9058_v17, %s7998_s9 }
 0x4c7   : > { %3376 = vrot.lane.b32.xlu0 %v9009_v56, %s7999_s12 }
 0x4cb   : > { %2582 = vrot.lane.b32.xlu2 %v8987_v1, %s7997_s27 }
 0x4cf   : > { %3612 = vrot.lane.b32.xlu0 %v9081_v59, %s7998_s9 }
 0x4d3   : > { %2748 = vrot.lane.b32.xlu2 %v9058_v17, %s7999_s12 }
 0x4d7   : > { %3527 = vrot.lane.b32.xlu0 %v9087_v26, %s7997_s27 }
 0x4db   : > { %2746 = vrot.lane.b32.xlu2 %v8987_v1, %s7999_s12 }
 0x4de   : > { %v1677_v31 = vpop.xlane.xlu2 %1676 }
 0x4df   : > { %3610 = vrot.lane.b32.xlu0 %v9087_v26, %s7998_s9  ;;  %7279 = vrcp.f32 %v1677_v31 }
 0x4e3   : > { %2900 = vrot.lane.b32.xlu2 %v8993_v49, %s7997_s27 }
 0x4e5   : > { %v7280_v48 = vpop.eup %7279 }
 0x4e6   : > { %v1688_v0 = vpop.permute.xlu2 %1687  ;;  %v1680_v38 = vpop.xlane.xlu0 %1679  ;;  %v1683_v12 = vmul.f32 %v7280_v48, %v7276_v40 }
 0x4e7   : > { %7281 = vrcp.f32 %v1680_v38  ;;  %3691 = vrot.lane.b32.xlu0 %v9087_v26, %s7999_s12  ;;  %1700 = vmatpush.bf16.msra.mxu3 %v1688_v0  ;;  %v2983_v40 = vpop.permute.xlu1 %2982  ;;  %v3149_v38 = vsel %vm1565_vm1, %v9005_v32, 0 }
 0x4eb   : > { %1735 = vmatpush.bf16.xpose.msrb.mxu3 %v1726_v63  ;;  %2897 = vrot.lane.b32.xlu2 %v8999_v44, %s7997_s27 }
 0x4ed   : > { %v7282_v25 = vpop.eup %7281 }
 0x4ee   : > { %v1684_v41 = vmul.f32 %v7282_v25, %v7278_v61  ;;  %v9105_v45 = vpop.permute.xlu2 %1800 }
 0x4ef   : > { %v3064_v30 = vpop.permute.xlu1 %3063 }
 0x4f0   : > { %v1685_v50 = vpack.c.bf16 %v1684_v41, %v1683_v12 }
 0x4f2   : > { %6532 = vmatmul.msk.bf16.vlgmr.msra.gmra.mxu3 %vm1590_vm3, %v1685_v50 }
 0x4f3   : > { %1782 = vmatpush.bf16.msra.mxu3 %v1770_v62  ;;  %v3069_v62 = vsel %vm1565_vm1, %v3064_v30, 0 }
 0x4f6   : > { %v1953_v21 = vpop.permute.xlu2 %1952 }
 0x4f7   : > { %6539 = vmatmul.msk.bf16.vlgmr.msrb.gmra.mxu0 %vm1565_vm1, %v1953_v21  ;;  %v3062_v43 = vpop.permute.xlu1 %3061  ;;  %v1452_v21 = vpop.f32.mrf.mxu0 }
 0x4f9   : > { %v2038_v7 = vpop.permute.xlu0 %2037 }
 0x4fa   : > { %v2043_v39 = vsel %vm1565_vm1, %v2038_v7, 0 }
 0x4fb   : > { %2052 = vmatpush.bf16.xpose.msrb.mxu2 %v2043_v39 }
 0x4fe   : > { %v2119_v19 = vpop.permute.xlu2 %2118 }
 0x4ff   : > { %v2124_v22 = vsel %vm1565_vm1, %v2119_v19, 0  ;;  %v3216_v0 = vpop.permute.xlu1 %3215  ;;  %v1454_v19 = vpop.f32.mrf.mxu0 }
 0x500   : > { %2133 = vmatpush.bf16.xpose.msra.mxu0 %v2124_v22  ;;  %v3221_v25 = vsel %vm1565_vm1, %v3216_v0, 0 }
 0x501   : > { %v2271_v10 = vpop.permute.xlu0 %2270 }
 0x502   : > { %v2276_v8 = vsel %vm1565_vm1, %v2271_v10, 0  ;;  %6533 = vmatmul.msk.bf16.vlgmr.msrb.gmra.mxu3 %vm1565_vm1, %v9019_v23  ;;  %6541 = vmatmul.msk.bf16.vlgmr.msrb.gmra.mxu2 %vm1565_vm1, %v2036_v35  ;;  %v2519_v23 = vsel %vm1565_vm1, %v9058_v17, 0  ;;  %v2988_v17 = vsel %vm1565_vm1, %v2983_v40, 0  ;;  %v3464_v35 = vsel %vm1565_vm1, %v9081_v59, 0 }
 0x503   : > { %2213 = vmatpush.bf16.xpose.msra.mxu2 %v2204_v57  ;;  %1817 = vmatpush.bf16.xpose.msrb.mxu3 %v1808_v37 }
 0x506   : > { %v2117_v51 = vpop.permute.xlu2 %2116 }
 0x507   : > { %6543 = vmatmul.msk.bf16.vlgmr.msra.gmra.mxu0 %vm1565_vm1, %v2117_v51  ;;  %v3213_v41 = vpop.permute.xlu1 %3212 }
 0x508   : > { %2285 = vmatpush.bf16.xpose.msrb.mxu0 %v2276_v8 }
 0x509   : > { %v2268_v11 = vpop.permute.xlu0 %2267 }
 0x50e   : > { %v2353_v13 = vpop.permute.xlu2 %2352 }
 0x50f   : > { %v2358_v14 = vsel %vm1565_vm1, %v2353_v13, 0  ;;  %v3379_v32 = vpop.permute.xlu1 %3378 }
 0x510   : > { %2367 = vmatpush.bf16.xpose.msrb.mxu2 %v2358_v14  ;;  %v3384_v39 = vsel %vm1565_vm1, %v3379_v32, 0 }
 0x511   : > { %v2434_v15 = vpop.permute.xlu0 %2433 }
 0x512   : > { %v2439_v34 = vsel %vm1565_vm1, %v2434_v15, 0  ;;  %6545 = vmatmul.msk.bf16.vlgmr.msra.gmra.mxu2 %vm1565_vm1, %v9047_v53 }
 0x513   : > { %2448 = vmatpush.bf16.xpose.msra.mxu0 %v2439_v34 }
 0x516   : > { %v2351_v5 = vpop.permute.xlu2 %2350 }
 0x517   : > { %6547 = vmatmul.msk.bf16.vlgmr.msrb.gmra.mxu0 %vm1565_vm1, %v2268_v11 }
 0x518   : > { %2528 = vmatpush.bf16.xpose.msra.mxu2 %v2519_v23 }
 0x519   : > { %v2586_v27 = vpop.permute.xlu0 %2585 }
 0x51a   : > { %v2591_v33 = vsel %vm1565_vm1, %v2586_v27, 0 }
 0x51b   : > { %2600 = vmatpush.bf16.xpose.msrb.mxu0 %v2591_v33  ;;  %v9195_v33 = vpack.c.bf16 %v8941_v6, %v8939_v3 }
 0x51e   : > { %v2432_v58 = vpop.permute.xlu2 %2431 }
 0x521   : > { %v2981_v63 = vpop.permute.xlu0 %2980 }
 0x522   : > { %6549 = vmatmul.msk.bf16.vlgmr.msrb.gmra.mxu2 %vm1565_vm1, %v2351_v5 }
 0x526   : > { %v2668_v46 = vpop.permute.xlu2 %2667 }
 0x527   : > { %v2673_v36 = vsel %vm1565_vm1, %v2668_v46, 0  ;;  %6551 = vmatmul.msk.bf16.vlgmr.msra.gmra.mxu0 %vm1565_vm1, %v2432_v58  ;;  %v3779_v46 = vsel %vm1565_vm1, %v9195_v33, 0 }
 0x528   : > { %2682 = vmatpush.bf16.xpose.msrb.mxu2 %v2673_v36 }
 0x529   : > { %v3298_v50 = vpop.permute.xlu0 %3297 }
 0x52a   : > { %v3303_v7 = vsel %vm1565_vm1, %v3298_v50, 0 }
 0x52e   : > { %v2583_v47 = vpop.permute.xlu2 %2582 }
 0x531   : > { %v3296_v57 = vpop.permute.xlu0 %3295 }
 0x532   : > { %6553 = vmatmul.msk.bf16.vlgmr.msra.gmra.mxu2 %vm1565_vm1, %v8987_v1  ;;  %v9146_v1 = vpop.f32.mrf.mxu2 }
 0x533   : > { %2843 = vmatpush.bf16.xpose.msra.mxu2 %v2834_v28 }
 0x536   : > { %v2749_v42 = vpop.permute.xlu2 %2748 }
 0x537   : > { %v2754_v61 = vsel %vm1565_vm1, %v2749_v42, 0  ;;  %6555 = vmatmul.msk.bf16.vlgmr.msrb.gmra.mxu0 %vm1565_vm1, %v2583_v47 }
 0x538   : > { %2763 = vmatpush.bf16.xpose.msra.mxu0 %v2754_v61 }
 0x539   : > { %v3377_v37 = vpop.permute.xlu0 %3376 }
 0x53a   : > { %v9151_v31 = vpop.f32.mrf.mxu2 }
 0x53e   : > { %v2747_v53 = vpop.permute.xlu2 %2746 }
 0x542   : > { %6557 = vmatmul.msk.bf16.vlgmr.msrb.gmra.mxu2 %vm1565_vm1, %v2666_v20  ;;  %v9159_v12 = vpop.f32.mrf.mxu2 }
 0x543   : > { %2997 = vmatpush.bf16.xpose.msrb.mxu2 %v2988_v17 }
 0x546   : > { %v2901_v49 = vpop.permute.xlu2 %2900 }
 0x547   : > { %v2906_v60 = vsel %vm1565_vm1, %v2901_v49, 0  ;;  %6559 = vmatmul.msk.bf16.vlgmr.msra.gmra.mxu0 %vm1565_vm1, %v2747_v53 }
 0x548   : > { %2915 = vmatpush.bf16.xpose.msrb.mxu0 %v2906_v60 }
 0x54e   : > { %v2898_v48 = vpop.permute.xlu2 %2897 }
 0x550   : > { %3078 = vmatpush.bf16.xpose.msra.mxu0 %v3069_v62 }
 0x552   : > { %6561 = vmatmul.msk.bf16.vlgmr.msra.gmra.mxu2 %vm1565_vm1, %v8999_v44  ;;  %v9163_v44 = vpop.f32.mrf.mxu2 }
 0x553   : > { %3158 = vmatpush.bf16.xpose.msra.mxu2 %v3149_v38 }
 0x557   : > { %6563 = vmatmul.msk.bf16.vlgmr.msrb.gmra.mxu0 %vm1565_vm1, %v2898_v48 }
 0x558   : > { %3230 = vmatpush.bf16.xpose.msrb.mxu0 %v3221_v25 }
 0x55a   : > { %v9167_v22 = vpop.f32.mrf.mxu2 }
 0x562   : > { %6565 = vmatmul.msk.bf16.vlgmr.msrb.gmra.mxu2 %vm1565_vm1, %v2981_v63  ;;  %v9177_v51 = vpop.f32.mrf.mxu2 }
 0x563   : > { %3312 = vmatpush.bf16.xpose.msrb.mxu2 %v3303_v7 }
 0x567   : > { %6567 = vmatmul.msk.bf16.vlgmr.msra.gmra.mxu0 %vm1565_vm1, %v3062_v43  ;;  %v9222_v43 = vpack.c.bf16 %v1454_v19, %v1452_v21 }
 0x568   : > { %3393 = vmatpush.bf16.xpose.msra.mxu0 %v3384_v39 }
 0x56a   : > { %v9186_v23 = vpop.f32.mrf.mxu2 }
 0x572   : > { %6569 = vmatmul.msk.bf16.vlgmr.msra.gmra.mxu2 %vm1565_vm1, %v9009_v56  ;;  %v3613_v56 = vpop.permute.xlu0 %3612  ;;  %v9191_v27 = vpop.f32.mrf.mxu2 }
 0x573   : > { %3473 = vmatpush.bf16.xpose.msra.mxu2 %v3464_v35  ;;  %v3618_v5 = vsel %vm1565_vm1, %v3613_v56, 0  ;;  %11552 = vst [vmem:[#allocation39_spill] sm:$0xff] %v9191_v27 }
 0x574   : > { %v9173_v10 = vpop.f32.mrf.mxu0 }
 0x575   : > { %v1702_v8 = vpop.f32.mrf.mxu3 }
 0x576   : > { %1709 = vrot.lane.b32.xlu1 %v1702_v8, %s7999_s12 }
 0x577   : > { %6571 = vmatmul.msk.bf16.vlgmr.msrb.gmra.mxu0 %vm1565_vm1, %v3213_v41 }
 0x57a   : > { %v9203_v36 = vpop.f32.mrf.mxu2  ;;  %v9205_v20 = vpop.permute.xlu0 %3527 }
 0x57b   : > { %11553 = vst [vmem:[#allocation40_spill] sm:$0xff] %v9203_v36 }
 0x57c   : > { %v1974_v11 = vpop.f32.mrf.mxu0 }
 0x57d   : > { %v1978_v13 = vmul.f32 0.17677669, %v1974_v11  ;;  %v1704_v14 = vpop.f32.mrf.mxu3 }
 0x57e   : > { %1711 = vrot.lane.b32.xlu2 %v1704_v14, %s7999_s12 }
 0x57f   : > { %v9182_v15 = vsel %vm8950_vm4, %v1978_v13, -1e+30 }
 0x580   : > { %v1984_v34 = vsel %vm1590_vm3, %v9182_v15, -inf }
 0x581   : > { %1985 = vmax.xlane.f32.xlu0 %v1984_v34 }
 0x582   : > { %6573 = vmatmul.msk.bf16.vlgmr.msrb.gmra.mxu2 %vm1565_vm1, %v3296_v57  ;;  %v9213_v28 = vpop.f32.mrf.mxu2  ;;  %v3611_v42 = vpop.permute.xlu0 %3610 }
 0x583   : > { %3627 = vmatpush.bf16.xpose.msrb.mxu2 %v3618_v5  ;;  %11554 = vst [vmem:[#allocation41_spill] sm:$0xff] %v9213_v28 }
 0x584   : > { %v2135_v17 = vpop.f32.mrf.mxu0 }
 0x585   : > { %v1737_v58 = vpop.f32.mrf.mxu3  ;;  %v2140_v60 = vmul.f32 0.17677669, %v2135_v17 }
 0x586   : > { %v1742_v47 = vmul.f32 0.17677669, %v1737_v58  ;;  %v1977_v58 = vmul.f32 0.17677669, %v9173_v10 }
 0x587   : > { %6575 = vmatmul.msk.bf16.vlgmr.msra.gmra.mxu0 %vm1565_vm1, %v3377_v37  ;;  %v9232_v0 = vsel %vm8943_vm2, %v2140_v60, -1e+30 }
 0x588   : > { %v9209_v3 = vsel %vm8943_vm2, %v1742_v47, -1e+30  ;;  %v2144_v63 = vsel %vm1590_vm3, %v9232_v0, -inf  ;;  %v9275_v47 = vsel %vm8943_vm2, %v1977_v58, -1e+30 }
 0x58a   : > { %v2054_v53 = vpop.f32.mrf.mxu2 }
 0x58b   : > { %v2059_v13 = vmul.f32 0.17677669, %v2054_v53 }
 0x58c   : > { %v9226_v62 = vpop.f32.mrf.mxu0 }
 0x58d   : > { %v1739_v40 = vpop.f32.mrf.mxu3  ;;  %v9267_v34 = vsel %vm8943_vm2, %v2059_v13, -1e+30 }
 0x58e   : > { %v1743_v6 = vmul.f32 0.17677669, %v1739_v40  ;;  %v2063_v5 = vsel %vm1590_vm3, %v9267_v34, -inf  ;;  %v1981_v40 = vsel %vm1590_vm3, %v9275_v47, -inf }
 0x590   : > { %v9218_v61 = vsel %vm8950_vm4, %v1743_v6, -1e+30 }
 0x591   : > { %v1749_v30 = vsel %vm1590_vm3, %v9218_v61, -inf }
 0x592   : > { %6577 = vmatmul.msk.bf16.vlgmr.msra.gmra.mxu2 %vm1565_vm1, %v9087_v26  ;;  %v1746_v26 = vsel %vm1590_vm3, %v9209_v3, -inf  ;;  %v2056_v49 = vpop.f32.mrf.mxu2 }
 0x593   : > { %3788 = vmatpush.bf16.xpose.msra.mxu2 %v3779_v46  ;;  %v2060_v6 = vmul.f32 0.17677669, %v2056_v49 }
 0x594   : > { %v2287_v25 = vpop.f32.mrf.mxu0 }
 0x595   : > { %3927 = vrot.lane.b32.xlu0 %v9195_v33, %s7998_s9  ;;  %v2292_v21 = vmul.f32 0.17677669, %v2287_v25 }
 0x597   : > { %v9248_v32 = vsel %vm8943_vm2, %v2292_v21, -1e+30 }
 0x598   : > { %v2296_v57 = vsel %vm1590_vm3, %v9248_v32, -inf }
 0x59a   : > { %v2215_v38 = vpop.f32.mrf.mxu2 }
 0x59b   : > { %v2220_v48 = vmul.f32 0.17677669, %v2215_v38 }
 0x59c   : > { %v2289_v39 = vpop.f32.mrf.mxu0 }
 0x59d   : > { %v9240_v41 = vsel %vm8943_vm2, %v2220_v48, -1e+30  ;;  %v2293_v19 = vmul.f32 0.17677669, %v2289_v39 }
 0x59e   : > { %v2224_v50 = vsel %vm1590_vm3, %v9240_v41, -inf }
 0x59f   : > { %v9254_v35 = vsel %vm8950_vm4, %v2293_v19, -1e+30 }
 0x5a0   : > { %1747 = vmax.xlane.f32.xlu1 %v1746_v26  ;;  %v9281_v26 = vsel %vm8950_vm4, %v2060_v6, -1e+30 }
 0x5a1   : > { %v2066_v10 = vsel %vm1590_vm3, %v9281_v26, -inf }
 0x5a2   : > { %6581 = vmatmul.msk.bf16.vlgmr.msrb.gmra.mxu2 %vm1565_vm1, %v3611_v42  ;;  %v2217_v7 = vpop.f32.mrf.mxu2  ;;  %v3692_v42 = vpop.permute.xlu0 %3691 }
 0x5a4   : > { %v2450_v39 = vpop.f32.mrf.mxu0 }
 0x5a7   : > { %1750 = vmax.xlane.f32.xlu2 %v1749_v30 }
 0x5aa   : > { %v2369_v37 = vpop.f32.mrf.mxu2 }
 0x5ab   : > { %v2374_v8 = vmul.f32 0.17677669, %v2369_v37 }
 0x5ac   : > { %v2452_v58 = vpop.f32.mrf.mxu0 }
 0x5ad   : > { %v9261_v14 = vsel %vm8943_vm2, %v2374_v8, -1e+30 }
 0x5ae   : > { %v2378_v56 = vsel %vm1590_vm3, %v9261_v14, -inf }
 0x5b2   : > { %6585 = vmatmul.msk.bf16.vlgmr.msra.gmra.mxu2 %vm1565_vm1, %v9222_v43 }
 0x5b9   : > { %3845 = vrot.lane.b32.xlu1 %v9195_v33, %s7997_s27 }
 0x5bf   : > { %3530 = vrot.lane.b32.xlu2 %v9081_v59, %s7997_s27  ;;  %2145 = vmax.xlane.f32.xlu0 %v2144_v63 }
 0x5c7   : > { %3693 = vrot.lane.b32.xlu2 %v9081_v59, %s7999_s12  ;;  %2225 = vmax.xlane.f32.xlu0 %v2224_v50  ;;  %v2299_v59 = vsel %vm1590_vm3, %v9254_v35, -inf }
 0x5cf   : > { %2297 = vmax.xlane.f32.xlu0 %v2296_v57 }
 0x5d7   : > { %2300 = vmax.xlane.f32.xlu0 %v2299_v59  ;;  %v2371_v59 = vpop.f32.mrf.mxu2 }
 0x5d8   : > { %v1712_v11 = vpop.permute.xlu2 %1711 }
 0x5d9   : > { %1717 = vst.msk [vmem:[#allocation3 + $0x8] sm:$0xff] %vm1715_vm5, %v1712_v11 }
 0x5df   : > { %2379 = vmax.xlane.f32.xlu0 %v2378_v56 }
 0x5e3   : > { %2064 = vmax.xlane.f32.xlu1 %v2063_v5 }
 0x5e8   : > { %v1710_v46 = vpop.permute.xlu1 %1709 }
 0x5e9   : > { %1716 = vst.msk [vmem:[#allocation3] sm:$0xff] %vm1715_vm5, %v1710_v46 }
 0x5f0   : > { %1982 = vmax.xlane.f32.xlu2 %v1981_v40 }
 0x5f4   : > { %v1986_v30 = vpop.xlane.xlu0 %1985 }
 0x5f5   : > { %v1988_v40 = vsub.f32 %v9182_v15, %v1986_v30 }
 0x5f8   : > { %2067 = vmax.xlane.f32.xlu2 %v2066_v10  ;;  %v2456_v10 = vmul.f32 0.17677669, %v2452_v58 }
 0x5fc   : > { %3925 = vrot.lane.b32.xlu1 %v9222_v43, %s7998_s9 }
 0x604   : > { %4008 = vrot.lane.b32.xlu1 %v9195_v33, %s7999_s12 }
 0x607   : > { %v3928_v53 = vpop.permute.xlu0 %3927 }
 0x608   : > { %v3933_v17 = vsel %vm1565_vm1, %v3928_v53, 0  ;;  %v1991_v53 = vmul.f32 1.442695, %v1988_v40 }
 0x609   : > { %3942 = vmatpush.bf16.xpose.msrb.mxu2 %v3933_v17  ;;  %v2530_v17 = vpop.f32.mrf.mxu2 }
 0x610   : > { %3842 = vrot.lane.b32.xlu2 %v9222_v43, %s7997_s27 }
 0x613   : > { %v1748_v49 = vpop.xlane.xlu1 %1747 }
 0x614   : > { %v1752_v60 = vsub.f32 %v9209_v3, %v1748_v49  ;;  %v2221_v3 = vmul.f32 0.17677669, %v2217_v7  ;;  %v9323_v49 = vsel %vm8950_vm4, %v2456_v10, -1e+30  ;;  %v2535_v10 = vmul.f32 0.17677669, %v2530_v17 }
 0x615   : > { %v2462_v15 = vsel %vm1590_vm3, %v9323_v49, -inf }
 0x616   : > { %v1754_v38 = vmul.f32 1.442695, %v1752_v60  ;;  %v9305_v11 = vsel %vm8950_vm4, %v2221_v3, -1e+30 }
 0x617   : > { %v2227_v46 = vsel %vm1590_vm3, %v9305_v11, -inf }
 0x618   : > { %7283 = vpow2.f32 %v1754_v38  ;;  %v2532_v38 = vpop.f32.mrf.mxu2 }
 0x61a   : > { %v1751_v63 = vpop.xlane.xlu2 %1750 }
 0x61b   : > { %v1753_v48 = vsub.f32 %v9218_v61, %v1751_v63  ;;  %v2455_v61 = vmul.f32 0.17677669, %v2450_v39 }
 0x61d   : > { %v1756_v25 = vmul.f32 1.442695, %v1753_v48  ;;  %v9313_v7 = vsel %vm8943_vm2, %v2455_v61, -1e+30  ;;  %v2536_v48 = vmul.f32 0.17677669, %v2532_v38 }
 0x61e   : > { %v9294_v50 = vpop.eup %7283  ;;  %v2459_v6 = vsel %vm1590_vm3, %v9313_v7, -inf }
 0x61f   : > { %7285 = vpow2.f32 %v1756_v25  ;;  %v1758_v33 = vsel %vm1590_vm3, %v9294_v50, 0.0  ;;  %v9340_v25 = vsel %vm8950_vm4, %v2536_v48, -1e+30 }
 0x620   : > { %1759 = vadd.xlane.f32.xlu0 %v1758_v33  ;;  %7287 = vpow2.f32 %v1991_v53  ;;  %v2542_v33 = vsel %vm1590_vm3, %v9340_v25, -inf }
 0x622   : > { %v3531_v21 = vpop.permute.xlu2 %3530 }
 0x623   : > { %v3536_v57 = vsel %vm1565_vm1, %v3531_v21, 0 }
 0x624   : > { %3545 = vmatpush.bf16.xpose.msrb.mxu0 %v3536_v57 }
 0x625   : > { %v9299_v19 = vpop.eup %7285 }
 0x626   : > { %v1761_v37 = vsel %vm1590_vm3, %v9299_v19, 0.0 }
 0x628   : > { %1762 = vadd.xlane.f32.xlu0 %v1761_v37 }
 0x62a   : > { %v3694_v8 = vpop.permute.xlu2 %3693 }
 0x62b   : > { %v3699_v13 = vsel %vm1565_vm1, %v3694_v8, 0  ;;  %v3846_v56 = vpop.permute.xlu1 %3845  ;;  %6579 = vmatmul.msk.bf16.vlgmr.msrb.gmra.mxu0 %vm1565_vm1, %v9205_v20  ;;  %v2141_v20 = vmul.f32 0.17677669, %v9226_v62  ;;  %v9334_v62 = vpop.eup %7287 }
 0x62c   : > { %v3851_v5 = vsel %vm1565_vm1, %v3846_v56, 0  ;;  %3708 = vmatpush.bf16.xpose.msra.mxu0 %v3699_v13  ;;  %v1996_v63 = vsel %vm1590_vm3, %v9334_v62, 0.0 }
 0x62d   : > { %v9327_v60 = vsel %vm8950_vm4, %v2141_v20, -1e+30 }
 0x62e   : > { %2228 = vmax.xlane.f32.xlu1 %v2227_v46  ;;  %v2147_v30 = vsel %vm1590_vm3, %v9327_v60, -inf }
 0x630   : > { %2460 = vmax.xlane.f32.xlu0 %v2459_v6 }
 0x632   : > { %v2146_v37 = vpop.xlane.xlu0 %2145 }
 0x634   : > { %3860 = vmatpush.bf16.xpose.msrb.mxu0 %v3851_v5  ;;  %v2602_v5 = vpop.f32.mrf.mxu0 }
 0x638   : > { %2463 = vmax.xlane.f32.xlu0 %v2462_v15 }
 0x639   : > { %2148 = vmax.xlane.f32.xlu2 %v2147_v30 }
 0x63a   : > { %v9353_v58 = vpop.xlane.xlu0 %2225 }
 0x63b   : > { %6583 = vmatmul.msk.bf16.vlgmr.msra.gmra.mxu0 %vm1565_vm1, %v3692_v42 }
 0x63c   : > { %v2604_v15 = vpop.f32.mrf.mxu0 }
 0x640   : > { %1997 = vadd.xlane.f32.xlu0 %v1996_v63 }
 0x642   : > { %v9371_v63 = vpop.xlane.xlu0 %2297 }
 0x648   : > { %2543 = vmax.xlane.f32.xlu0 %v2542_v33  ;;  %v2150_v33 = vsub.f32 %v9232_v0, %v2146_v37 }
 0x64a   : > { %v2301_v37 = vpop.xlane.xlu0 %2300 }
 0x651   : > { %4006 = vrot.lane.b32.xlu2 %v9222_v43, %s7999_s12 }
 0x656   : > { %v2065_v42 = vpop.xlane.xlu1 %2064 }
 0x657   : > { %v2069_v21 = vsub.f32 %v9267_v34, %v2065_v42  ;;  %v2608_v42 = vmul.f32 0.17677669, %v2604_v15 }
 0x659   : > { %v2071_v39 = vmul.f32 1.442695, %v2069_v21 }
 0x65b   : > { %7289 = vpow2.f32 %v2071_v39  ;;  %v2607_v39 = vmul.f32 0.17677669, %v2602_v5 }
 0x661   : > { %v9347_v57 = vpop.eup %7289 }
 0x662   : > { %v2075_v3 = vsel %vm1590_vm3, %v9347_v57, 0.0 }
 0x663   : > { %v1983_v61 = vpop.xlane.xlu2 %1982  ;;  %2076 = vadd.xlane.f32.xlu0 %v2075_v3  ;;  %v2152_v3 = vmul.f32 1.442695, %v2150_v33 }
 0x664   : > { %v1987_v8 = vsub.f32 %v9275_v47, %v1983_v61  ;;  %v2375_v47 = vmul.f32 0.17677669, %v2371_v59  ;;  %v9383_v61 = vsel %vm8950_vm4, %v2608_v42, -1e+30 }
 0x665   : > { %v2614_v0 = vsel %vm1590_vm3, %v9383_v61, -inf }
 0x666   : > { %v1989_v13 = vmul.f32 1.442695, %v1987_v8  ;;  %v9369_v38 = vsel %vm8950_vm4, %v2375_v47, -1e+30  ;;  %v9387_v8 = vsel %vm8943_vm2, %v2607_v39, -1e+30 }
 0x667   : > { %v2381_v21 = vsel %vm1590_vm3, %v9369_v38, -inf }
 0x668   : > { %7291 = vpow2.f32 %v1989_v13  ;;  %v2611_v13 = vsel %vm1590_vm3, %v9387_v8, -inf }
 0x66b   : > { %v2068_v56 = vpop.xlane.xlu2 %2067 }
 0x66c   : > { %v2070_v43 = vsub.f32 %v9281_v26, %v2068_v56  ;;  %v9363_v26 = vsel %vm8943_vm2, %v2535_v10, -1e+30  ;;  %v2684_v56 = vpop.f32.mrf.mxu2  ;;  %v9405_v10 = vpack.c.bf16 %v9130_v24, %v9127_v52 }
 0x66d   : > { %v2539_v59 = vsel %vm1590_vm3, %v9363_v26, -inf }
 0x66e   : > { %v9355_v34 = vpop.eup %7291  ;;  %v2073_v46 = vmul.f32 1.442695, %v2070_v43  ;;  %v3926_v40 = vpop.permute.xlu1 %3925 }
 0x66f   : > { %6589 = vmatmul.msk.bf16.vlgmr.msrb.gmra.mxu2 %vm1565_vm1, %v3926_v40  ;;  %v1993_v6 = vsel %vm1590_vm3, %v9355_v34, 0.0  ;;  %v9397_v40 = vpop.xlane.xlu0 %2379 }
 0x670   : > { %7293 = vpow2.f32 %v2073_v46  ;;  %1994 = vadd.xlane.f32.xlu1 %v1993_v6  ;;  %v2689_v46 = vmul.f32 0.17677669, %v2684_v56 }
 0x671   : > { %7295 = vpow2.f32 %v2152_v3  ;;  %v2230_v3 = vsub.f32 %v9240_v41, %v9353_v58 }
 0x672   : > { %v9401_v6 = vsel %vm8943_vm2, %v2689_v46, -1e+30 }
 0x673   : > { %v3843_v20 = vpop.permute.xlu2 %3842 }
 0x674   : > { %6587 = vmatmul.msk.bf16.vlgmr.msrb.gmra.mxu0 %vm1565_vm1, %v3843_v20  ;;  %v2686_v47 = vpop.f32.mrf.mxu2  ;;  %v2693_v20 = vsel %vm1590_vm3, %v9401_v6, -inf }
 0x675   : > { %v2690_v15 = vmul.f32 0.17677669, %v2686_v47  ;;  %v2765_v47 = vpop.f32.mrf.mxu0 }
 0x676   : > { %v9365_v53 = vpop.eup %7293  ;;  %v4009_v30 = vpop.permute.xlu1 %4008 }
 0x677   : > { %v4014_v17 = vsel %vm1565_vm1, %v4009_v30, 0  ;;  %v2078_v48 = vsel %vm1590_vm3, %v9365_v53, 0.0  ;;  %v9393_v5 = vpop.eup %7295 }
 0x678   : > { %4023 = vmatpush.bf16.xpose.msra.mxu0 %v4014_v17  ;;  %2540 = vmax.xlane.f32.xlu1 %v2539_v59  ;;  %v2156_v43 = vsel %vm1590_vm3, %v9393_v5, 0.0  ;;  %v9415_v17 = vsel %vm8950_vm4, %v2690_v15, -1e+30 }
 0x679   : > { %2079 = vadd.xlane.f32.xlu0 %v2078_v48  ;;  %v2696_v52 = vsel %vm1590_vm3, %v9415_v17, -inf }
 0x67a   : > { %2382 = vmax.xlane.f32.xlu2 %v2381_v21 }
 0x67c   : > { %v2845_v58 = vpop.f32.mrf.mxu2 }
 0x681   : > { %2615 = vmax.xlane.f32.xlu0 %v2614_v0 }
 0x682   : > { %2612 = vmax.xlane.f32.xlu2 %v2611_v13 }
 0x68a   : > { %2157 = vadd.xlane.f32.xlu2 %v2156_v43  ;;  %v2232_v43 = vmul.f32 1.442695, %v2230_v3 }
 0x691   : > { %2005 = vrot.lane.b32.xlu1 %v9405_v10, %s7997_s27 }
 0x692   : > { %2694 = vmax.xlane.f32.xlu2 %v2693_v20 }
 0x693   : > { %v1760_v30 = vpop.xlane.xlu0 %1759 }
 0x694   : > { %7297 = vrcp.f32 %v1760_v30 }
 0x695   : > { %2086 = vrot.lane.b32.xlu0 %v9405_v10, %s7998_s9 }
 0x69a   : > { %2697 = vmax.xlane.f32.xlu2 %v2696_v52  ;;  %v7298_v59 = vpop.eup %7297 }
 0x69b   : > { %v1763_v24 = vpop.xlane.xlu0 %1762  ;;  %v1766_v33 = vmul.f32 %v7298_v59, %v9294_v50  ;;  %v2847_v59 = vpop.f32.mrf.mxu2 }
 0x69c   : > { %7299 = vrcp.f32 %v1763_v24 }
 0x6a1   : > { %v2229_v13 = vpop.xlane.xlu1 %2228 }
 0x6a2   : > { %v7300_v48 = vpop.eup %7299  ;;  %v2231_v46 = vsub.f32 %v9305_v11, %v2229_v13  ;;  %v1889_v11 = vsel %vm1565_vm1, %v8979_v9, 0  ;;  %v2302_v9 = vsub.f32 %v9248_v32, %v9371_v63  ;;  %v2770_v13 = vmul.f32 0.17677669, %v2765_v47 }
 0x6a3   : > { %v1767_v42 = vmul.f32 %v7300_v48, %v9299_v19  ;;  %v2303_v19 = vsub.f32 %v9254_v35, %v2301_v37 }
 0x6a4   : > { %v2304_v48 = vmul.f32 1.442695, %v2302_v9 }
 0x6a5   : > { %v1768_v21 = vpack.c.bf16 %v1767_v42, %v1766_v33  ;;  %v2851_v42 = vmul.f32 0.17677669, %v2847_v59 }
 0x6a7   : > { %6534 = vmatmul.msk.bf16.vlgmr.msra.gmra.mxu3 %vm1590_vm3, %v1768_v21  ;;  %v9461_v63 = vsel %vm8950_vm4, %v2851_v42, -1e+30 }
 0x6a8   : > { %1864 = vmatpush.bf16.msra.mxu3 %v9093_v2  ;;  %v2234_v2 = vmul.f32 1.442695, %v2231_v46 }
 0x6ac   : > { %v2149_v39 = vpop.xlane.xlu2 %2148 }
 0x6ad   : > { %v2151_v0 = vsub.f32 %v9327_v60, %v2149_v39  ;;  %v2306_v60 = vmul.f32 1.442695, %v2303_v19  ;;  %v2857_v39 = vsel %vm1590_vm3, %v9461_v63, -inf }
 0x6af   : > { %v2154_v56 = vmul.f32 1.442695, %v2151_v0 }
 0x6b1   : > { %7301 = vpow2.f32 %v2154_v56  ;;  %v2850_v56 = vmul.f32 0.17677669, %v2845_v58 }
 0x6b2   : > { %2167 = vrot.lane.b32.xlu2 %v9405_v10, %s7999_s12  ;;  %7303 = vpow2.f32 %v2232_v43  ;;  %v9471_v43 = vsel %vm8943_vm2, %v2770_v13, -1e+30 }
 0x6b3   : > { %7305 = vpow2.f32 %v2234_v2  ;;  %v9475_v46 = vsel %vm8943_vm2, %v2850_v56, -1e+30  ;;  %v2461_v2 = vpop.xlane.xlu0 %2460 }
 0x6b4   : > { %v4007_v50 = vpop.permute.xlu2 %4006  ;;  %7307 = vpow2.f32 %v2306_v60  ;;  %v2854_v19 = vsel %vm1590_vm3, %v9475_v46, -inf }
 0x6b5   : > { %6591 = vmatmul.msk.bf16.vlgmr.msra.gmra.mxu0 %vm1565_vm1, %v4007_v50  ;;  %7309 = vpow2.f32 %v2304_v48  ;;  %v2774_v50 = vsel %vm1590_vm3, %v9471_v43, -inf }
 0x6b7   : > { %v9431_v41 = vpop.eup %7301  ;;  %6535 = vmatmul.msk.bf16.vlgmr.msrb.gmra.mxu3 %vm1565_vm1, %v9105_v45  ;;  %v2767_v45 = vpop.f32.mrf.mxu0 }
 0x6b8   : > { %1898 = vmatpush.bf16.xpose.msrb.mxu3 %v1889_v11  ;;  %v2159_v20 = vsel %vm1590_vm3, %v9431_v41, 0.0  ;;  %v9439_v35 = vpop.eup %7303  ;;  %v2771_v24 = vmul.f32 0.17677669, %v2767_v45 }
 0x6b9   : > { %11555 = vst [vmem:[#allocation42_spill] sm:$0xff] %v9439_v35  ;;  %v2236_v37 = vsel %vm1590_vm3, %v9439_v35, 0.0  ;;  %v9443_v15 = vpop.eup %7305 }
 0x6ba   : > { %11556 = vst [vmem:[#allocation43_spill] sm:$0xff] %v9443_v15  ;;  %v2239_v30 = vsel %vm1590_vm3, %v9443_v15, 0.0  ;;  %v9449_v52 = vpop.eup %7307  ;;  %v9455_v21 = vsel %vm8950_vm4, %v2771_v24, -1e+30 }
 0x6bb   : > { %2160 = vadd.xlane.f32.xlu1 %v2159_v20  ;;  %v2311_v33 = vsel %vm1590_vm3, %v9449_v52, 0.0  ;;  %v2777_v32 = vsel %vm1590_vm3, %v9455_v21, -inf  ;;  %v9465_v3 = vpop.eup %7309  ;;  %v9481_v47 = vpop.xlane.xlu0 %2463 }
 0x6bc   : > { %v2308_v0 = vsel %vm1590_vm3, %v9465_v3, 0.0 }
 0x6bf   : > { %2237 = vadd.xlane.f32.xlu0 %v2236_v37 }
 0x6c3   : > { %2240 = vadd.xlane.f32.xlu1 %v2239_v30  ;;  %v1998_v20 = vpop.xlane.xlu0 %1997 }
 0x6c7   : > { %2312 = vadd.xlane.f32.xlu0 %v2311_v33 }
 0x6cb   : > { %2778 = vmax.xlane.f32.xlu1 %v2777_v32 }
 0x6cf   : > { %2858 = vmax.xlane.f32.xlu0 %v2857_v39 }
 0x6d3   : > { %2309 = vadd.xlane.f32.xlu1 %v2308_v0 }
 0x6db   : > { %2775 = vmax.xlane.f32.xlu2 %v2774_v50  ;;  %2855 = vmax.xlane.f32.xlu1 %v2854_v19 }
 0x6e3   : > { %v1995_v60 = vpop.xlane.xlu1 %1994 }
 0x6e4   : > { %7311 = vrcp.f32 %v1995_v60 }
 0x6e5   : > { %7313 = vrcp.f32 %v1998_v20 }
 0x6ea   : > { %v7312_v9 = vpop.eup %7311 }
 0x6eb   : > { %v9487_v37 = vpop.xlane.xlu1 %2540  ;;  %v7314_v30 = vpop.eup %7313  ;;  %v2001_v24 = vmul.f32 %v7312_v9, %v9355_v34 }
 0x6ec   : > { %v2002_v59 = vmul.f32 %v7314_v30, %v9334_v62 }
 0x6ed   : > { %v9483_v11 = vpop.xlane.xlu2 %2382 }
 0x6ee   : > { %v2003_v33 = vpack.c.bf16 %v2002_v59, %v2001_v24  ;;  %v2384_v59 = vsub.f32 %v9261_v14, %v9397_v40  ;;  %v2917_v40 = vpop.f32.mrf.mxu0 }
 0x6f5   : > { %v9485_v58 = vpop.xlane.xlu2 %2612 }
 0x6fd   : > { %v2158_v45 = vpop.xlane.xlu2 %2157 }
 0x6fe   : > { %7315 = vrcp.f32 %v2158_v45 }
 0x703   : > { %v2006_v48 = vpop.permute.xlu1 %2005 }
 0x704   : > { %2018 = vmatpush.bf16.msra.mxu1 %v2006_v48  ;;  %v7316_v56 = vpop.eup %7315  ;;  %v2386_v48 = vmul.f32 1.442695, %v2384_v59 }
 0x705   : > { %v9491_v42 = vpop.xlane.xlu2 %2694  ;;  %v2164_v50 = vmul.f32 %v7316_v56, %v9393_v5 }
 0x707   : > { %6540 = vmatmul.msk.bf16.vlgmr.msra.gmra.mxu1 %vm1590_vm3, %v2003_v33 }
 0x70d   : > { %v9494_v32 = vpop.xlane.xlu2 %2697 }
 0x715   : > { %v2168_v39 = vpop.permute.xlu2 %2167 }
 0x716   : > { %2180 = vmatpush.bf16.msrb.mxu1 %v2168_v39 }
 0x72a   : > { %v1784_v0 = vpop.f32.mrf.mxu3 }
 0x72b   : > { %1791 = vrot.lane.b32.xlu0 %v1784_v0, %s7998_s9  ;;  %v9519_v0 = vpack.c.bf16 %v9142_v29, %v9134_v4 }
 0x72e   : > { %v2161_v13 = vpop.xlane.xlu1 %2160 }
 0x72f   : > { %7317 = vrcp.f32 %v2161_v13 }
 0x730   : > { %7319 = vpow2.f32 %v2386_v48  ;;  %v9550_v48 = vpop.f32.mrf.mxu0 }
 0x732   : > { %v1786_v34 = vpop.f32.mrf.mxu3 }
 0x733   : > { %1793 = vrot.lane.b32.xlu0 %v1786_v34, %s7998_s9  ;;  %v2465_v34 = vsub.f32 %v9313_v7, %v2461_v2 }
 0x735   : > { %v7318_v62 = vpop.eup %7317 }
 0x736   : > { %v2165_v19 = vmul.f32 %v7318_v62, %v9431_v41  ;;  %v9509_v41 = vpop.xlane.xlu0 %2543  ;;  %v9525_v14 = vpop.eup %7319  ;;  %v2922_v62 = vmul.f32 0.17677669, %v2917_v40 }
 0x737   : > { %11557 = vst [vmem:[#allocation44_spill] sm:$0xff] %v9525_v14  ;;  %v2390_v56 = vsel %vm1590_vm3, %v9525_v14, 0.0 }
 0x738   : > { %v2166_v60 = vpack.c.bf16 %v2165_v19, %v2164_v50  ;;  %v2467_v50 = vmul.f32 1.442695, %v2465_v34  ;;  %v9534_v4 = vsel %vm8943_vm2, %v2922_v62, -1e+30  ;;  %v3080_v62 = vpop.f32.mrf.mxu0 }
 0x739   : > { %v2926_v29 = vsel %vm1590_vm3, %v9534_v4, -inf }
 0x73a   : > { %v1819_v20 = vpop.f32.mrf.mxu3  ;;  %6544 = vmatmul.msk.bf16.vlgmr.msrb.gmra.mxu1 %vm1590_vm3, %v2166_v60  ;;  %7321 = vpow2.f32 %v2467_v50  ;;  %v2999_v60 = vpop.f32.mrf.mxu2 }
 0x73b   : > { %v1824_v5 = vmul.f32 0.17677669, %v1819_v20 }
 0x73d   : > { %v9513_v33 = vsel %vm8943_vm2, %v1824_v5, -1e+30 }
 0x73e   : > { %v1828_v39 = vsel %vm1590_vm3, %v9513_v33, -inf  ;;  %v9521_v13 = vpop.xlane.xlu0 %2076 }
 0x740   : > { %v9538_v20 = vpop.eup %7321 }
 0x741   : > { %v2471_v2 = vsel %vm1590_vm3, %v9538_v20, 0.0 }
 0x742   : > { %v1821_v9 = vpop.f32.mrf.mxu3  ;;  %v3001_v5 = vpop.f32.mrf.mxu2 }
 0x743   : > { %v1825_v30 = vmul.f32 0.17677669, %v1821_v9  ;;  %v3004_v9 = vmul.f32 0.17677669, %v2999_v60  ;;  %v3005_v34 = vmul.f32 0.17677669, %v3001_v5  ;;  %v2617_v5 = vsub.f32 %v9387_v8, %v9485_v58 }
 0x744   : > { %v3085_v60 = vmul.f32 0.17677669, %v3080_v62 }
 0x745   : > { %v9503_v45 = vsel %vm8950_vm4, %v1825_v30, -1e+30  ;;  %v2466_v30 = vsub.f32 %v9323_v49, %v9481_v47  ;;  %v9558_v49 = vsel %vm8950_vm4, %v3005_v34, -1e+30  ;;  %v2619_v34 = vmul.f32 1.442695, %v2617_v5 }
 0x746   : > { %v1831_v24 = vsel %vm1590_vm3, %v9503_v45, -inf  ;;  %v9530_v19 = vpop.xlane.xlu0 %2079  ;;  %v3011_v47 = vsel %vm1590_vm3, %v9558_v49, -inf }
 0x747   : > { %1832 = vmax.xlane.f32.xlu1 %v1831_v24  ;;  %v9546_v24 = vsel %vm8943_vm2, %v3004_v9, -1e+30  ;;  %v9568_v9 = vsel %vm8943_vm2, %v3085_v60, -1e+30 }
 0x748   : > { %v3008_v40 = vsel %vm1590_vm3, %v9546_v24, -inf }
 0x74a   : > { %v9585_v60 = vpop.f32.mrf.mxu2 }
 0x74e   : > { %v2616_v7 = vpop.xlane.xlu0 %2615  ;;  %v2776_v14 = vpop.xlane.xlu2 %2775 }
 0x756   : > { %v9548_v59 = vpop.permute.xlu0 %2086 }
 0x75d   : > { %1829 = vmax.xlane.f32.xlu0 %v1828_v39  ;;  %v2469_v39 = vmul.f32 1.442695, %v2466_v30  ;;  %v3082_v30 = vpop.f32.mrf.mxu0 }
 0x75f   : > { %7323 = vpow2.f32 %v2469_v39  ;;  %v3089_v39 = vsel %vm1590_vm3, %v9568_v9, -inf }
 0x760   : > { %2320 = vrot.lane.b32.xlu1 %v9519_v0, %s7997_s27  ;;  %7325 = vpow2.f32 %v2619_v34  ;;  %v3162_v34 = vpop.f32.mrf.mxu2 }
 0x761   : > { %v3166_v36 = vmul.f32 0.17677669, %v3162_v34 }
 0x765   : > { %2391 = vadd.xlane.f32.xlu0 %v2390_v56  ;;  %v9554_v56 = vpop.xlane.xlu0 %2237  ;;  %v9562_v50 = vpop.eup %7323 }
 0x766   : > { %11558 = vst [vmem:[#allocation45_spill] sm:$0xff] %v9554_v56  ;;  %v9587_v5 = vpop.eup %7325 }
 0x76d   : > { %2927 = vmax.xlane.f32.xlu0 %v2926_v29  ;;  %v2474_v29 = vsel %vm1590_vm3, %v9562_v50, 0.0 }
 0x775   : > { %2472 = vadd.xlane.f32.xlu0 %v2471_v2  ;;  %v2313_v2 = vpop.xlane.xlu0 %2312 }
 0x77d   : > { %3009 = vmax.xlane.f32.xlu0 %v3008_v40  ;;  %v3086_v40 = vmul.f32 0.17677669, %v3082_v30  ;;  %v9576_v55 = vpop.xlane.xlu0 %2858 }
 0x77f   : > { %v9580_v62 = vsel %vm8950_vm4, %v3086_v40, -1e+30 }
 0x780   : > { %v3092_v8 = vsel %vm1590_vm3, %v9580_v62, -inf }
 0x785   : > { %3012 = vmax.xlane.f32.xlu0 %v3011_v47  ;;  %v9574_v47 = vpop.xlane.xlu1 %2240 }
 0x786   : > { %11559 = vst [vmem:[#allocation46_spill] sm:$0xff] %v9574_v47 }
 0x78a   : > { %2475 = vadd.xlane.f32.xlu1 %v2474_v29  ;;  %v2618_v29 = vsub.f32 %v9383_v61, %v2616_v7  ;;  %v2623_v61 = vsel %vm1590_vm3, %v9587_v5, 0.0 }
 0x78c   : > { %v2621_v58 = vmul.f32 1.442695, %v2618_v29  ;;  %v2699_v29 = vsub.f32 %v9401_v6, %v9491_v42  ;;  %v3232_v6 = vpop.f32.mrf.mxu0  ;;  %v2780_v42 = vsub.f32 %v9471_v43, %v2776_v14  ;;  %v3314_v14 = vpop.f32.mrf.mxu2 }
 0x78d   : > { %v3237_v34 = vmul.f32 0.17677669, %v3232_v6 }
 0x78e   : > { %7327 = vpow2.f32 %v2621_v58  ;;  %v2701_v58 = vmul.f32 1.442695, %v2699_v29 }
 0x78f   : > { %v9615_v56 = vsel %vm8943_vm2, %v3237_v34, -1e+30 }
 0x790   : > { %7329 = vpow2.f32 %v2701_v58  ;;  %v2782_v58 = vmul.f32 1.442695, %v2780_v42 }
 0x792   : > { %3090 = vmax.xlane.f32.xlu1 %v3089_v39  ;;  %v9589_v39 = vpop.xlane.xlu1 %2778 }
 0x794   : > { %v9594_v40 = vpop.eup %7327  ;;  %v3234_v47 = vpop.f32.mrf.mxu0 }
 0x795   : > { %v2626_v28 = vsel %vm1590_vm3, %v9594_v40, 0.0 }
 0x796   : > { %v9607_v35 = vpop.eup %7329 }
 0x797   : > { %11560 = vst [vmem:[#allocation47_spill] sm:$0xff] %v9607_v35 }
 0x79a   : > { %3093 = vmax.xlane.f32.xlu1 %v3092_v8  ;;  %v2310_v8 = vpop.xlane.xlu1 %2309 }
 0x79d   : > { %v1792_v30 = vpop.permute.xlu0 %1791 }
 0x79e   : > { %1798 = vst.msk [vmem:[#allocation3] sm:$0xff] %vm1797_vm6, %v1792_v30  ;;  %v9603_v30 = vsel %vm8950_vm4, %v3166_v36, -1e+30 }
 0x7a2   : > { %2624 = vadd.xlane.f32.xlu1 %v2623_v61  ;;  %v3172_v61 = vsel %vm1590_vm3, %v9603_v30, -inf }
 0x7a5   : > { %v1794_v7 = vpop.permute.xlu0 %1793 }
 0x7a6   : > { %1799 = vst.msk [vmem:[#allocation3 + $0x8] sm:$0xff] %vm1797_vm6, %v1794_v7  ;;  %v2856_v7 = vpop.xlane.xlu1 %2855 }
 0x7aa   : > { %2627 = vadd.xlane.f32.xlu1 %v2626_v28  ;;  %v2705_v28 = vsel %vm1590_vm3, %v9607_v35, 0.0 }
 0x7b2   : > { %3173 = vmax.xlane.f32.xlu1 %v3172_v61  ;;  %v3241_v61 = vsel %vm1590_vm3, %v9615_v56, -inf }
 0x7ba   : > { %v1833_v29 = vpop.xlane.xlu1 %1832  ;;  %2706 = vadd.xlane.f32.xlu1 %v2705_v28 }
 0x7bb   : > { %v1835_v36 = vsub.f32 %v9503_v45, %v1833_v29 }
 0x7bd   : > { %v1838_v15 = vmul.f32 1.442695, %v1835_v36  ;;  %v3316_v36 = vpop.f32.mrf.mxu2 }
 0x7bf   : > { %7331 = vpow2.f32 %v1838_v15  ;;  %v3319_v15 = vmul.f32 0.17677669, %v3314_v14 }
 0x7c0   : > { %7333 = vpow2.f32 %v2782_v58 }
 0x7c1   : > { %7335 = vrcp.f32 %v2310_v8  ;;  %v9629_v34 = vsel %vm8943_vm2, %v3319_v15, -1e+30  ;;  %v2385_v15 = vsub.f32 %v9369_v38, %v9483_v11  ;;  %v3395_v38 = vpop.f32.mrf.mxu0 }
 0x7c2   : > { %3242 = vmax.xlane.f32.xlu1 %v3241_v61  ;;  %7337 = vrcp.f32 %v2313_v2  ;;  %v2860_v61 = vsub.f32 %v9475_v46, %v2856_v7  ;;  %v3323_v2 = vsel %vm1590_vm3, %v9629_v34, -inf }
 0x7c3   : > { %v2388_v46 = vmul.f32 1.442695, %v2385_v15 }
 0x7c5   : > { %v9619_v43 = vpop.eup %7331 }
 0x7c6   : > { %v9621_v6 = vpop.eup %7333  ;;  %v1843_v45 = vsel %vm1590_vm3, %v9619_v43, 0.0 }
 0x7c7   : > { %1844 = vadd.xlane.f32.xlu0 %v1843_v45  ;;  %v2786_v42 = vsel %vm1590_vm3, %v9621_v6, 0.0  ;;  %v7336_v28 = vpop.eup %7335  ;;  %v3320_v45 = vmul.f32 0.17677669, %v3316_v36  ;;  %v3400_v36 = vmul.f32 0.17677669, %v3395_v38 }
 0x7c8   : > { %v7338_v29 = vpop.eup %7337  ;;  %v2316_v58 = vmul.f32 %v7336_v28, %v9465_v3  ;;  %v2862_v28 = vmul.f32 1.442695, %v2860_v61  ;;  %v2923_v61 = vmul.f32 0.17677669, %v9550_v48 }
 0x7c9   : > { %v2317_v14 = vmul.f32 %v7338_v29, %v9449_v52 }
 0x7ca   : > { %2787 = vadd.xlane.f32.xlu1 %v2786_v42 }
 0x7cb   : > { %v2318_v3 = vpack.c.bf16 %v2317_v14, %v2316_v58  ;;  %v9669_v14 = vsel %vm8950_vm4, %v2923_v61, -1e+30  ;;  %v2545_v61 = vsub.f32 %v9363_v26, %v9487_v37 }
 0x7cc   : > { %v2929_v15 = vsel %vm1590_vm3, %v9669_v14, -inf }
 0x7d0   : > { %v1830_v35 = vpop.xlane.xlu0 %1829 }
 0x7d1   : > { %v1834_v8 = vsub.f32 %v9513_v33, %v1830_v35  ;;  %v9642_v35 = vsel %vm8950_vm4, %v3320_v45, -1e+30 }
 0x7d2   : > { %v2321_v42 = vpop.permute.xlu1 %2320  ;;  %3324 = vmax.xlane.f32.xlu1 %v3323_v2  ;;  %v3326_v52 = vsel %vm1590_vm3, %v9642_v35, -inf  ;;  %v3397_v2 = vpop.f32.mrf.mxu0 }
 0x7d3   : > { %v1836_v27 = vmul.f32 1.442695, %v1834_v8  ;;  %2333 = vmatpush.bf16.msra.mxu1 %v2321_v42  ;;  %v9663_v8 = vsel %vm8943_vm2, %v3400_v36, -1e+30  ;;  %v3401_v42 = vmul.f32 0.17677669, %v3397_v2 }
 0x7d4   : > { %v3404_v45 = vsel %vm1590_vm3, %v9663_v8, -inf }
 0x7d5   : > { %7339 = vpow2.f32 %v1836_v27  ;;  %v9675_v48 = vsel %vm8950_vm4, %v3401_v42, -1e+30 }
 0x7d6   : > { %6548 = vmatmul.msk.bf16.vlgmr.msra.gmra.mxu1 %vm1590_vm3, %v2318_v3  ;;  %7341 = vpow2.f32 %v2862_v28  ;;  %v3407_v3 = vsel %vm1590_vm3, %v9675_v48, -inf  ;;  %v2546_v28 = vsub.f32 %v9340_v25, %v9509_v41  ;;  %v3238_v41 = vmul.f32 0.17677669, %v3234_v47 }
 0x7d7   : > { %7343 = vpow2.f32 %v2388_v46  ;;  %v9707_v47 = vpack.c.bf16 %v9151_v31, %v9146_v1 }
 0x7d8   : > { %v2549_v46 = vmul.f32 1.442695, %v2546_v28  ;;  %v3165_v28 = vmul.f32 0.17677669, %v9585_v60  ;;  %v2861_v60 = vsub.f32 %v9461_v63, %v9576_v55 }
 0x7da   : > { %3327 = vmax.xlane.f32.xlu1 %v3326_v52  ;;  %7345 = vpow2.f32 %v2549_v46  ;;  %v2700_v52 = vsub.f32 %v9415_v17, %v9494_v32  ;;  %v9695_v17 = vsel %vm8950_vm4, %v3238_v41, -1e+30  ;;  %v9720_v26 = vsel %vm8943_vm2, %v3165_v28, -1e+30 }
 0x7db   : > { %v9646_v33 = vpop.eup %7339  ;;  %2482 = vrot.lane.b32.xlu0 %v9519_v0, %s7999_s12  ;;  %v3244_v32 = vsel %vm1590_vm3, %v9695_v17, -inf  ;;  %v3169_v31 = vsel %vm1590_vm3, %v9720_v26, -inf  ;;  %v2864_v41 = vmul.f32 1.442695, %v2861_v60 }
 0x7dc   : > { %v1840_v27 = vsel %vm1590_vm3, %v9646_v33, 0.0  ;;  %v9652_v11 = vpop.eup %7341 }
 0x7dd   : > { %1841 = vadd.xlane.f32.xlu2 %v1840_v27  ;;  %11561 = vst [vmem:[#allocation48_spill] sm:$0xff] %v9652_v11  ;;  %v9654_v7 = vpop.eup %7343  ;;  %v2866_v29 = vsel %vm1590_vm3, %v9652_v11, 0.0  ;;  %v2703_v27 = vmul.f32 1.442695, %v2700_v52 }
 0x7de   : > { %v2393_v58 = vsel %vm1590_vm3, %v9654_v7, 0.0 }
 0x7df   : > { %7347 = vpow2.f32 %v2703_v27 }
 0x7e0   : > { %v9683_v38 = vpop.eup %7345 }
 0x7e2   : > { %2867 = vadd.xlane.f32.xlu1 %v2866_v29  ;;  %v2554_v29 = vsel %vm1590_vm3, %v9683_v38, 0.0 }
 0x7e5   : > { %2394 = vadd.xlane.f32.xlu2 %v2393_v58  ;;  %v9689_v36 = vpop.eup %7347  ;;  %v9699_v58 = vpop.xlane.xlu0 %2391 }
 0x7e6   : > { %v2708_v25 = vsel %vm1590_vm3, %v9689_v36, 0.0 }
 0x7ea   : > { %3405 = vmax.xlane.f32.xlu1 %v3404_v45  ;;  %v2547_v45 = vmul.f32 1.442695, %v2545_v61 }
 0x7ec   : > { %7349 = vpow2.f32 %v2547_v45 }
 0x7ed   : > { %2930 = vmax.xlane.f32.xlu2 %v2929_v15  ;;  %v9703_v2 = vpop.xlane.xlu0 %2927 }
 0x7f2   : > { %3408 = vmax.xlane.f32.xlu1 %v3407_v3  ;;  %v9711_v15 = vpop.eup %7349 }
 0x7f3   : > { %v2551_v3 = vsel %vm1590_vm3, %v9711_v15, 0.0 }
 0x7f5   : > { %v2473_v42 = vpop.xlane.xlu0 %2472 }
 0x7fd   : > { %v3010_v1 = vpop.xlane.xlu0 %3009  ;;  %v2476_v46 = vpop.xlane.xlu1 %2475 }
 0x7fe   : > { %7351 = vrcp.f32 %v2476_v46 }
 0x7ff   : > { %7353 = vrcp.f32 %v2473_v42 }
 0x804   : > { %v7352_v27 = vpop.eup %7351 }
 0x805   : > { %2555 = vadd.xlane.f32.xlu0 %v2554_v29  ;;  %2401 = vrot.lane.b32.xlu2 %v9519_v0, %s7998_s9  ;;  %v3013_v37 = vpop.xlane.xlu0 %3012  ;;  %v7354_v29 = vpop.eup %7353 }
 0x80d   : > { %2709 = vadd.xlane.f32.xlu0 %v2708_v25  ;;  %v2480_v25 = vmul.f32 %v7352_v27, %v9562_v50 }
 0x815   : > { %3245 = vmax.xlane.f32.xlu0 %v3244_v32  ;;  %v2479_v32 = vmul.f32 %v7354_v29, %v9538_v20 }
 0x817   : > { %v2481_v45 = vpack.c.bf16 %v2480_v25, %v2479_v32  ;;  %v2781_v25 = vsub.f32 %v9455_v21, %v9589_v39 }
 0x829   : > { %2716 = vrot.lane.b32.xlu0 %v9707_v47, %s7998_s9 }
 0x82e   : > { %2552 = vadd.xlane.f32.xlu2 %v2551_v3  ;;  %v3015_v3 = vsub.f32 %v9558_v49, %v3013_v37  ;;  %v3475_v37 = vpop.f32.mrf.mxu2 }
 0x830   : > { %v3018_v63 = vmul.f32 1.442695, %v3015_v3 }
 0x831   : > { %2797 = vrot.lane.b32.xlu0 %v9707_v47, %s7999_s12 }
 0x836   : > { %3170 = vmax.xlane.f32.xlu2 %v3169_v31  ;;  %v3477_v32 = vpop.f32.mrf.mxu2 }
 0x83a   : > { %v1845_v52 = vpop.xlane.xlu0 %1844 }
 0x83b   : > { %7355 = vrcp.f32 %v1845_v52 }
 0x83c   : > { %7357 = vpow2.f32 %v2864_v41  ;;  %v2784_v41 = vmul.f32 1.442695, %v2781_v25 }
 0x841   : > { %v7356_v55 = vpop.eup %7355 }
 0x842   : > { %v9732_v50 = vpop.eup %7357  ;;  %v1849_v20 = vmul.f32 %v7356_v55, %v9619_v43 }
 0x843   : > { %11562 = vst [vmem:[#allocation49_spill] sm:$0xff] %v9732_v50  ;;  %v2869_v27 = vsel %vm1590_vm3, %v9732_v50, 0.0 }
 0x84d   : > { %v2483_v61 = vpop.permute.xlu0 %2482 }
 0x84e   : > { %2635 = vrot.lane.b32.xlu2 %v9707_v47, %s7997_s27  ;;  %2495 = vmatpush.bf16.msrb.mxu1 %v2483_v61 }
 0x850   : > { %v1842_v42 = vpop.xlane.xlu2 %1841 }
 0x851   : > { %7359 = vrcp.f32 %v1842_v42  ;;  %6552 = vmatmul.msk.bf16.vlgmr.msrb.gmra.mxu1 %vm1590_vm3, %v2481_v45  ;;  %v3481_v45 = vmul.f32 0.17677669, %v3477_v32  ;;  %v2932_v42 = vsub.f32 %v9534_v4, %v9703_v2  ;;  %v3547_v2 = vpop.f32.mrf.mxu0 }
 0x852   : > { %7361 = vpow2.f32 %v3018_v63 }
 0x853   : > { %v2934_v39 = vmul.f32 1.442695, %v2932_v42  ;;  %v9761_v3 = vsel %vm8950_vm4, %v3481_v45, -1e+30 }
 0x857   : > { %v7360_v28 = vpop.eup %7359 }
 0x858   : > { %v1848_v31 = vmul.f32 %v7360_v28, %v9646_v33  ;;  %v9736_v46 = vpop.xlane.xlu2 %2394  ;;  %v9742_v49 = vpop.eup %7361  ;;  %v3552_v28 = vmul.f32 0.17677669, %v3547_v2 }
 0x859   : > { %11563 = vst [vmem:[#allocation50_spill] sm:$0xff] %v9742_v49  ;;  %v3023_v33 = vsel %vm1590_vm3, %v9742_v49, 0.0 }
 0x85a   : > { %v1850_v52 = vpack.c.bf16 %v1849_v20, %v1848_v31  ;;  %v3480_v31 = vmul.f32 0.17677669, %v3475_v37 }
 0x85b   : > { %2870 = vadd.xlane.f32.xlu0 %v2869_v27  ;;  %v9781_v27 = vsel %vm8943_vm2, %v3552_v28, -1e+30 }
 0x85c   : > { %6536 = vmatmul.msk.bf16.vlgmr.msra.gmra.mxu3 %vm1590_vm3, %v1850_v52 }
 0x85d   : > { %1942 = vmatpush.bf16.msra.mxu3 %v9405_v10  ;;  %v3014_v10 = vsub.f32 %v9546_v24, %v3010_v1  ;;  %v9767_v1 = vpop.xlane.xlu1 %3090 }
 0x85e   : > { %v3095_v49 = vsub.f32 %v9568_v9, %v9767_v1 }
 0x85f   : > { %v3016_v21 = vmul.f32 1.442695, %v3014_v10  ;;  %v9797_v10 = vpack.c.bf16 %v9163_v44, %v9159_v12 }
 0x860   : > { %v2931_v60 = vpop.xlane.xlu2 %2930 }
 0x861   : > { %v2933_v43 = vsub.f32 %v9669_v14, %v2931_v60  ;;  %v9785_v60 = vsel %vm8943_vm2, %v3480_v31, -1e+30 }
 0x863   : > { %v2936_v29 = vmul.f32 1.442695, %v2933_v43  ;;  %3024 = vadd.xlane.f32.xlu0 %v3023_v33  ;;  %v3556_v43 = vsel %vm1590_vm3, %v9781_v27, -inf  ;;  %v3484_v33 = vsel %vm1590_vm3, %v9785_v60, -inf }
 0x865   : > { %7363 = vpow2.f32 %v2936_v29  ;;  %v3094_v52 = vpop.xlane.xlu1 %3093 }
 0x866   : > { %7365 = vpow2.f32 %v2784_v41 }
 0x867   : > { %7367 = vpow2.f32 %v3016_v21 }
 0x868   : > { %7369 = vpow2.f32 %v2934_v39  ;;  %v9793_v32 = vpop.permute.xlu2 %2401 }
 0x86b   : > { %v9749_v61 = vpop.eup %7363 }
 0x86c   : > { %6537 = vmatmul.msk.bf16.vlgmr.msrb.gmra.mxu3 %vm1565_vm1, %v8983_v16  ;;  %v2941_v14 = vsel %vm1590_vm3, %v9749_v61, 0.0  ;;  %v9763_v24 = vpop.eup %7365  ;;  %v3487_v16 = vsel %vm1590_vm3, %v9761_v3, -inf }
 0x86d   : > { %2099 = vmatpush.bf16.msrb.mxu3 %v9548_v59  ;;  %2942 = vadd.xlane.f32.xlu1 %v2941_v14  ;;  %v2789_v4 = vsel %vm1590_vm3, %v9763_v24, 0.0  ;;  %v9771_v59 = vpop.eup %7367  ;;  %v2625_v29 = vpop.xlane.xlu1 %2624 }
 0x86e   : > { %11564 = vst [vmem:[#allocation51_spill] sm:$0xff] %v9771_v59  ;;  %v9773_v55 = vpop.eup %7369  ;;  %v3020_v63 = vsel %vm1590_vm3, %v9771_v59, 0.0 }
 0x86f   : > { %v2938_v20 = vsel %vm1590_vm3, %v9773_v55, 0.0 }
 0x875   : > { %3488 = vmax.xlane.f32.xlu1 %v3487_v16  ;;  %v2628_v25 = vpop.xlane.xlu1 %2627 }
 0x877   : > { %2790 = vadd.xlane.f32.xlu2 %v2789_v4 }
 0x878   : > { %v2556_v37 = vpop.xlane.xlu0 %2555 }
 0x879   : > { %7371 = vrcp.f32 %v2556_v37 }
 0x87d   : > { %3021 = vadd.xlane.f32.xlu1 %v3020_v63  ;;  %v9799_v14 = vpop.xlane.xlu1 %3173 }
 0x87f   : > { %2939 = vadd.xlane.f32.xlu2 %v2938_v20  ;;  %v7372_v21 = vpop.eup %7371 }
 0x880   : > { %v9791_v41 = vpop.xlane.xlu0 %2709  ;;  %v9810_v12 = vmul.f32 %v7372_v21, %v9683_v38 }
 0x885   : > { %3557 = vmax.xlane.f32.xlu1 %v3556_v43  ;;  %v9805_v16 = vpop.xlane.xlu1 %2706 }
 0x887   : > { %3485 = vmax.xlane.f32.xlu2 %v3484_v33 }
 0x888   : > { %v9803_v45 = vpop.xlane.xlu0 %3245 }
 0x89b   : > { %v9807_v4 = vpop.permute.xlu0 %2716 }
 0x89f   : > { %2950 = vrot.lane.b32.xlu2 %v9797_v10, %s7997_s27 }
 0x8a1   : > { %v2553_v42 = vpop.xlane.xlu2 %2552 }
 0x8a2   : > { %7373 = vrcp.f32 %v2553_v42 }
 0x8a3   : > { %7375 = vrcp.f32 %v2628_v25  ;;  %v2798_v37 = vpop.permute.xlu0 %2797 }
 0x8a4   : > { %7377 = vrcp.f32 %v2625_v29  ;;  %v9821_v29 = vpop.xlane.xlu1 %3242 }
 0x8a8   : > { %v7374_v39 = vpop.eup %7373 }
 0x8a9   : > { %v9813_v44 = vmul.f32 %v7374_v39, %v9711_v15  ;;  %v9815_v2 = vpop.xlane.xlu2 %3170  ;;  %v7376_v28 = vpop.eup %7375  ;;  %v3096_v15 = vsub.f32 %v9580_v62, %v3094_v52 }
 0x8aa   : > { %v7378_v20 = vpop.eup %7377  ;;  %v2632_v31 = vmul.f32 %v7376_v28, %v9594_v40 }
 0x8ab   : > { %v2631_v43 = vmul.f32 %v7378_v20, %v9587_v5  ;;  %v3099_v25 = vmul.f32 1.442695, %v3096_v15 }
 0x8ac   : > { %v2788_v42 = vpop.xlane.xlu1 %2787 }
 0x8ad   : > { %v2633_v38 = vpack.c.bf16 %v2632_v31, %v2631_v43  ;;  %7379 = vpow2.f32 %v3099_v25 }
 0x8ae   : > { %7381 = vrcp.f32 %v2788_v42 }
 0x8b1   : > { %v2636_v33 = vpop.permute.xlu2 %2635 }
 0x8b2   : > { %2648 = vmatpush.bf16.msra.mxu1 %v2636_v33 }
 0x8b3   : > { %v9825_v21 = vpop.eup %7379 }
 0x8b4   : > { %v9827_v39 = vpop.xlane.xlu1 %3324  ;;  %v3104_v5 = vsel %vm1590_vm3, %v9825_v21, 0.0  ;;  %v7382_v33 = vpop.eup %7381 }
 0x8b5   : > { %6556 = vmatmul.msk.bf16.vlgmr.msra.gmra.mxu1 %vm1590_vm3, %v2633_v38  ;;  %v2794_v38 = vmul.f32 %v7382_v33, %v9621_v6 }
 0x8b6   : > { %2810 = vmatpush.bf16.msrb.mxu1 %v2798_v37 }
 0x8bc   : > { %v9831_v40 = vpop.xlane.xlu1 %3327 }
 0x8c4   : > { %v9833_v28 = vpop.xlane.xlu1 %2867 }
 0x8c5   : > { %11565 = vst [vmem:[#allocation52_spill] sm:$0xff] %v9833_v28 }
 0x8c8   : > { %3105 = vadd.xlane.f32.xlu2 %v3104_v5 }
 0x8cc   : > { %v9836_v31 = vpop.xlane.xlu1 %3405 }
 0x8d4   : > { %v9839_v43 = vpop.xlane.xlu1 %3408 }
 0x8df   : > { %v1866_v20 = vpop.f32.mrf.mxu3 }
 0x8e0   : > { %1873 = vrot.lane.b32.xlu1 %v1866_v20, %s7997_s27  ;;  %v2943_v63 = vpop.xlane.xlu1 %2942 }
 0x8e7   : > { %v1868_v62 = vpop.f32.mrf.mxu3 }
 0x8e8   : > { %1875 = vrot.lane.b32.xlu0 %v1868_v62, %s7997_s27 }
 0x8ea   : > { %v2791_v52 = vpop.xlane.xlu2 %2790 }
 0x8eb   : > { %7383 = vrcp.f32 %v2791_v52 }
 0x8ef   : > { %v1900_v62 = vpop.f32.mrf.mxu3 }
 0x8f1   : > { %v7384_v37 = vpop.eup %7383 }
 0x8f2   : > { %v2795_v15 = vmul.f32 %v7384_v37, %v9763_v24  ;;  %v2940_v25 = vpop.xlane.xlu2 %2939  ;;  %v1905_v24 = vmul.f32 0.17677669, %v1900_v62  ;;  %v3097_v37 = vmul.f32 1.442695, %v3095_v49 }
 0x8f3   : > { %7385 = vrcp.f32 %v2940_v25 }
 0x8f4   : > { %v2796_v5 = vpack.c.bf16 %v2795_v15, %v2794_v38  ;;  %7387 = vrcp.f32 %v2943_v63  ;;  %v9852_v63 = vsel %vm8943_vm2, %v1905_v24, -1e+30 }
 0x8f5   : > { %7389 = vpow2.f32 %v3097_v37  ;;  %v1909_v9 = vsel %vm1590_vm3, %v9852_v63, -inf }
 0x8f6   : > { %6560 = vmatmul.msk.bf16.vlgmr.msrb.gmra.mxu1 %vm1590_vm3, %v2796_v5 }
 0x8f7   : > { %v1902_v15 = vpop.f32.mrf.mxu3 }
 0x8f8   : > { %v1906_v1 = vmul.f32 0.17677669, %v1902_v15 }
 0x8f9   : > { %v7386_v42 = vpop.eup %7385 }
 0x8fa   : > { %v9844_v20 = vpop.xlane.xlu2 %3485  ;;  %v7388_v52 = vpop.eup %7387  ;;  %v2946_v59 = vmul.f32 %v7386_v42, %v9773_v55  ;;  %v9861_v49 = vsel %vm8950_vm4, %v1906_v1, -1e+30  ;;  %v9886_v1 = vld [vmem:[%s8336_s29 + $0x38] sm:$0xff] }
 0x8fb   : > { %v2947_v6 = vmul.f32 %v7388_v52, %v9749_v61  ;;  %v3629_v55 = vpop.f32.mrf.mxu2  ;;  %v9857_v61 = vpop.eup %7389  ;;  %v1912_v5 = vsel %vm1590_vm3, %v9861_v49, -inf  ;;  %11566 = vst [vmem:[#allocation53_spill] sm:$0xff] %v9886_v1  ;;  %4179 = vmatpush.bf16.msrb.mxu0 %v9886_v1  ;;  %7028 = vmatpush.bf16.msra.mxu2 %v9886_v1  ;;  %v3490_v54 = vsub.f32 %v9785_v60, %v9844_v20 }
 0x8fc   : > { %v3101_v25 = vsel %vm1590_vm3, %v9857_v61, 0.0  ;;  %v3634_v42 = vmul.f32 0.17677669, %v3629_v55  ;;  %v9890_v55 = vld [vmem:[%s8336_s29 + $0x30] sm:$0xff] }
 0x8fd   : > { %v2948_v38 = vpack.c.bf16 %v2947_v6, %v2946_v59  ;;  %v3549_v59 = vpop.f32.mrf.mxu0  ;;  %11567 = vst [vmem:[#allocation54_spill] sm:$0xff] %v9890_v55 }
 0x8fe   : > { %v3553_v62 = vmul.f32 0.17677669, %v3549_v59  ;;  %v9869_v52 = vsel %vm8943_vm2, %v3634_v42, -1e+30  ;;  %v9895_v59 = vld [vmem:[%s8336_s29 + $0x28] sm:$0xff]  ;;  %v9912_v42 = vpop.xlane.xlu1 %3488 }
 0x8ff   : > { %4180 = vmatpush.bf16.msrb.mxu0 %v9890_v55  ;;  %11568 = vst [vmem:[#allocation55_spill] sm:$0xff] %v9895_v59  ;;  %7030 = vmatpush.bf16.msra.mxu2 %v9890_v55 }
 0x900   : > { %v9873_v6 = vsel %vm8950_vm4, %v3553_v62, -1e+30  ;;  %v9915_v62 = vld [vmem:[%s8336_s29 + $0x10] sm:$0xff] }
 0x901   : > { %v3559_v37 = vsel %vm1590_vm3, %v9873_v6, -inf  ;;  %11571 = vst [vmem:[#allocation58_spill] sm:$0xff] %v9915_v62 }
 0x902   : > { %v2951_v33 = vpop.permute.xlu2 %2950 }
 0x903   : > { %2963 = vmatpush.bf16.msra.mxu1 %v2951_v33  ;;  %v3631_v24 = vpop.f32.mrf.mxu2  ;;  %v3638_v33 = vsel %vm1590_vm3, %v9869_v52, -inf  ;;  %4181 = vmatpush.bf16.msrb.mxu0 %v9895_v59 }
 0x904   : > { %7032 = vmatpush.bf16.msra.mxu2 %v9895_v59 }
 0x906   : > { %6564 = vmatmul.msk.bf16.vlgmr.msra.gmra.mxu1 %vm1590_vm3, %v2948_v38  ;;  %v3635_v38 = vmul.f32 0.17677669, %v3631_v24  ;;  %v9920_v24 = vld [vmem:[%s8336_s29 + $0x8] sm:$0xff] }
 0x907   : > { %11572 = vst [vmem:[#allocation59_spill] sm:$0xff] %v9920_v24 }
 0x908   : > { %v9881_v15 = vsel %vm8950_vm4, %v3635_v38, -1e+30  ;;  %v3175_v38 = vsub.f32 %v9720_v26, %v9815_v2 }
 0x90a   : > { %1910 = vmax.xlane.f32.xlu1 %v1909_v9  ;;  %v3641_v9 = vsel %vm1590_vm3, %v9881_v15, -inf }
 0x90b   : > { %v3790_v55 = vpop.f32.mrf.mxu2 }
 0x90c   : > { %v3795_v1 = vmul.f32 0.17677669, %v3790_v55  ;;  %v9957_v55 = vpop.f32.mrf.mxu0 }
 0x90e   : > { %v9947_v2 = vsel %vm8943_vm2, %v3795_v1, -1e+30 }
 0x912   : > { %3102 = vadd.xlane.f32.xlu1 %v3101_v25  ;;  %1913 = vmax.xlane.f32.xlu0 %v1912_v5  ;;  %v9900_v25 = vld [vmem:[%s8336_s29 + $0x20] sm:$0xff]  ;;  %v9908_v5 = vld [vmem:[%s8336_s29 + $0x18] sm:$0xff] }
 0x913   : > { %11569 = vst [vmem:[#allocation56_spill] sm:$0xff] %v9900_v25  ;;  %4182 = vmatpush.bf16.msrb.mxu0 %v9900_v25  ;;  %7034 = vmatpush.bf16.msra.mxu2 %v9900_v25 }
 0x914   : > { %11570 = vst [vmem:[#allocation57_spill] sm:$0xff] %v9908_v5  ;;  %v3712_v11 = vpop.f32.mrf.mxu0 }
 0x917   : > { %4183 = vmatpush.bf16.msrb.mxu0 %v9908_v5  ;;  %7036 = vmatpush.bf16.msra.mxu2 %v9908_v5 }
 0x91a   : > { %3639 = vmax.xlane.f32.xlu1 %v3638_v33  ;;  %3560 = vmax.xlane.f32.xlu0 %v3559_v37  ;;  %v9924_v33 = vpop.xlane.xlu1 %3021  ;;  %v9927_v37 = vld [vmem:[%s8336_s29] sm:$0xff] }
 0x91b   : > { %4184 = vmatpush.bf16.msrb.mxu0 %v9915_v62  ;;  %7038 = vmatpush.bf16.msra.mxu2 %v9915_v62  ;;  %11573 = vst [vmem:[#allocation60_spill] sm:$0xff] %v9924_v33  ;;  %v3177_v62 = vmul.f32 1.442695, %v3175_v38  ;;  %v9953_v33 = vpack.c.bf16 %v9177_v51, %v9167_v22 }
 0x91c   : > { %11574 = vst [vmem:[#allocation61_spill] sm:$0xff] %v9927_v37  ;;  %v9965_v50 = vpop.f32.mrf.mxu0 }
 0x91d   : > { %7391 = vpow2.f32 %v3177_v62  ;;  %v3799_v62 = vsel %vm1590_vm3, %v9947_v2, -inf }
 0x91f   : > { %4185 = vmatpush.bf16.msrb.mxu0 %v9920_v24  ;;  %7040 = vmatpush.bf16.msra.mxu2 %v9920_v24 }
 0x922   : > { %3642 = vmax.xlane.f32.xlu1 %v3641_v9  ;;  %v9933_v9 = vpop.xlane.xlu0 %2870  ;;  %v9935_v5 = vpop.xlane.xlu1 %3557 }
 0x923   : > { %4186 = vmatpush.bf16.msrb.mxu0 %v9927_v37  ;;  %7042 = vmatpush.bf16.msra.mxu2 %v9927_v37  ;;  %v9940_v59 = vpop.eup %7391 }
 0x924   : > { %v3181_v37 = vsel %vm1590_vm3, %v9940_v59, 0.0 }
 0x92a   : > { %v9937_v25 = vpop.xlane.xlu0 %3024 }
 0x92b   : > { %11575 = vst [vmem:[#allocation62_spill] sm:$0xff] %v9937_v25 }
 0x92e   : > { %3031 = vrot.lane.b32.xlu0 %v9797_v10, %s7998_s9 }
 0x952   : > { %v1874_v24 = vpop.permute.xlu1 %1873 }
 0x953   : > { %1880 = vst.msk [vmem:[#allocation3] sm:$0xff] %vm1879_vm7, %v1874_v24 }
 0x958   : > { %3182 = vadd.xlane.f32.xlu0 %v3181_v37 }
 0x95a   : > { %v1876_v26 = vpop.permute.xlu0 %1875  ;;  %v4087_v24 = vld [vmem:[#allocation3] sm:$0xff] }
 0x95b   : > { %1881 = vst.msk [vmem:[#allocation3 + $0x8] sm:$0xff] %vm1879_vm7, %v1876_v26  ;;  %v3176_v26 = vsub.f32 %v9603_v30, %v9799_v14  ;;  %v3247_v14 = vsub.f32 %v9615_v56, %v9821_v29  ;;  %v3248_v56 = vsub.f32 %v9695_v17, %v9803_v45 }
 0x960   : > { %3800 = vmax.xlane.f32.xlu0 %v3799_v62 }
 0x962   : > { %v4088_v38 = vld [vmem:[#allocation3 + $0x8] sm:$0xff] }
 0x963   : > { %v4103_v25 = vpack.c.bf16 %v4088_v38, %v4087_v24  ;;  %v3179_v24 = vmul.f32 1.442695, %v3176_v26  ;;  %v3864_v26 = vpop.f32.mrf.mxu0 }
 0x965   : > { %4187 = vmatmul.bf16.vlgmr.msrb.gmra.mxu0 %v4103_v25 }
 0x974   : > { %3265 = vrot.lane.b32.xlu0 %v9953_v33, %s7997_s27 }
 0x97d   : > { %v1911_v37 = vpop.xlane.xlu1 %1910 }
 0x97e   : > { %v1915_v1 = vsub.f32 %v9852_v63, %v1911_v37 }
 0x980   : > { %v1917_v62 = vmul.f32 1.442695, %v1915_v1  ;;  %v3716_v1 = vmul.f32 0.17677669, %v3712_v11 }
 0x982   : > { %7393 = vpow2.f32 %v1917_v62  ;;  %v3249_v62 = vmul.f32 1.442695, %v3247_v14  ;;  %v4025_v14 = vpop.f32.mrf.mxu0 }
 0x983   : > { %7395 = vpow2.f32 %v3179_v24  ;;  %v3868_v24 = vmul.f32 0.17677669, %v3864_v26 }
 0x985   : > { %v1914_v25 = vpop.xlane.xlu0 %1913 }
 0x986   : > { %v1916_v38 = vsub.f32 %v9861_v49, %v1914_v25  ;;  %v9983_v25 = vsel %vm8950_vm4, %v3716_v1, -1e+30 }
 0x987   : > { %v3722_v11 = vsel %vm1590_vm3, %v9983_v25, -inf }
 0x988   : > { %v9963_v22 = vpop.eup %7393  ;;  %v1919_v51 = vmul.f32 1.442695, %v1916_v38  ;;  %v9991_v38 = vsel %vm8950_vm4, %v3868_v24, -1e+30  ;;  %v3329_v24 = vsub.f32 %v9629_v34, %v9827_v39 }
 0x989   : > { %v1921_v28 = vsel %vm1590_vm3, %v9963_v22, 0.0  ;;  %v9969_v63 = vpop.eup %7395 }
 0x98a   : > { %7397 = vpow2.f32 %v1919_v51  ;;  %1922 = vadd.xlane.f32.xlu2 %v1921_v28  ;;  %v3184_v49 = vsel %vm1590_vm3, %v9969_v63, 0.0  ;;  %v3491_v28 = vsub.f32 %v9761_v3, %v9912_v42  ;;  %v3251_v51 = vmul.f32 1.442695, %v3248_v56 }
 0x98b   : > { %7399 = vpow2.f32 %v3249_v62  ;;  %v3874_v3 = vsel %vm1590_vm3, %v9991_v38, -inf  ;;  %v4030_v62 = vmul.f32 0.17677669, %v4025_v14  ;;  %v3330_v14 = vsub.f32 %v9642_v35, %v9831_v40 }
 0x98c   : > { %v3494_v29 = vmul.f32 1.442695, %v3491_v28  ;;  %v3792_v28 = vpop.f32.mrf.mxu2  ;;  %v3410_v35 = vsub.f32 %v9663_v8, %v9836_v31 }
 0x98e   : > { %7401 = vpow2.f32 %v3494_v29  ;;  %v3561_v29 = vpop.xlane.xlu0 %3560 }
 0x98f   : > { %7403 = vpow2.f32 %v3251_v51  ;;  %v3796_v51 = vmul.f32 0.17677669, %v3792_v28 }
 0x990   : > { %v9971_v30 = vpop.eup %7397 }
 0x991   : > { %v1924_v37 = vsel %vm1590_vm3, %v9971_v30, 0.0  ;;  %v9995_v42 = vpop.eup %7399  ;;  %v10024_v39 = vsel %vm8950_vm4, %v3796_v51, -1e+30 }
 0x992   : > { %3185 = vadd.xlane.f32.xlu2 %v3184_v49  ;;  %1925 = vadd.xlane.f32.xlu1 %v1924_v37  ;;  %v3253_v17 = vsel %vm1590_vm3, %v9995_v42, 0.0  ;;  %v3562_v49 = vsub.f32 %v9781_v27, %v9935_v5  ;;  %v10003_v37 = vpop.xlane.xlu1 %3102  ;;  %v10015_v27 = vsel %vm8943_vm2, %v4030_v62, -1e+30  ;;  %v3331_v5 = vmul.f32 1.442695, %v3329_v24 }
 0x993   : > { %v4034_v34 = vsel %vm1590_vm3, %v10015_v27, -inf }
 0x994   : > { %v9999_v45 = vpop.eup %7401  ;;  %v3564_v56 = vmul.f32 1.442695, %v3562_v49 }
 0x995   : > { %v3499_v1 = vsel %vm1590_vm3, %v9999_v45, 0.0  ;;  %v10007_v26 = vpop.eup %7403 }
 0x996   : > { %7405 = vpow2.f32 %v3564_v56 }
 0x997   : > { %7407 = vpow2.f32 %v3331_v5 }
 0x99a   : > { %3723 = vmax.xlane.f32.xlu2 %v3722_v11  ;;  %v3256_v11 = vsel %vm1590_vm3, %v10007_v26, 0.0 }
 0x99c   : > { %v10030_v62 = vpop.eup %7405 }
 0x99d   : > { %v3568_v24 = vsel %vm1590_vm3, %v10030_v62, 0.0  ;;  %v10035_v56 = vpop.eup %7407 }
 0x99e   : > { %3875 = vmax.xlane.f32.xlu0 %v3874_v3  ;;  %v3563_v3 = vsub.f32 %v9873_v6, %v3561_v29  ;;  %v3333_v6 = vmul.f32 1.442695, %v3330_v14 }
 0x9a0   : > { %v3566_v49 = vmul.f32 1.442695, %v3563_v3 }
 0x9a2   : > { %3254 = vadd.xlane.f32.xlu2 %v3253_v17  ;;  %v3640_v17 = vpop.xlane.xlu1 %3639  ;;  %7409 = vpow2.f32 %v3566_v49 }
 0x9a3   : > { %v3644_v28 = vsub.f32 %v9869_v52, %v3640_v17  ;;  %7411 = vpow2.f32 %v3333_v6  ;;  %v3412_v52 = vmul.f32 1.442695, %v3410_v35  ;;  %v3715_v6 = vmul.f32 0.17677669, %v9957_v55 }
 0x9a4   : > { %v3411_v35 = vsub.f32 %v9675_v48, %v9839_v43 }
 0x9a5   : > { %v3646_v40 = vmul.f32 1.442695, %v3644_v28 }
 0x9a6   : > { %3500 = vadd.xlane.f32.xlu0 %v3499_v1  ;;  %v3802_v1 = vsel %vm1590_vm3, %v10024_v39, -inf }
 0x9a7   : > { %7413 = vpow2.f32 %v3646_v40 }
 0x9a8   : > { %v10041_v51 = vpop.eup %7409  ;;  %7415 = vpow2.f32 %v3412_v52 }
 0x9a9   : > { %v3571_v3 = vsel %vm1590_vm3, %v10041_v51, 0.0 }
 0x9aa   : > { %3257 = vadd.xlane.f32.xlu2 %v3256_v11  ;;  %v3643_v29 = vpop.xlane.xlu1 %3642  ;;  %v3335_v11 = vsel %vm1590_vm3, %v10035_v56, 0.0 }
 0x9ab   : > { %3112 = vrot.lane.b32.xlu1 %v9797_v10, %s7999_s12  ;;  %v3645_v5 = vsub.f32 %v9881_v15, %v3643_v29  ;;  %v3867_v29 = vmul.f32 0.17677669, %v9965_v50 }
 0x9ad   : > { %v3648_v8 = vmul.f32 1.442695, %v3645_v5  ;;  %v10074_v55 = vsel %vm8943_vm2, %v3867_v29, -1e+30  ;;  %v3944_v5 = vpop.f32.mrf.mxu2 }
 0x9ae   : > { %4035 = vmax.xlane.f32.xlu0 %v4034_v34  ;;  %v10046_v34 = vpop.eup %7411  ;;  %v3871_v52 = vsel %vm1590_vm3, %v10074_v55, -inf  ;;  %v3949_v50 = vmul.f32 0.17677669, %v3944_v5 }
 0x9af   : > { %v3338_v31 = vsel %vm1590_vm3, %v10046_v34, 0.0  ;;  %v10050_v17 = vpop.eup %7413  ;;  %7417 = vpow2.f32 %v3648_v8 }
 0x9b0   : > { %v3650_v14 = vsel %vm1590_vm3, %v10050_v17, 0.0  ;;  %v10054_v49 = vpop.eup %7415  ;;  %v10086_v43 = vsel %vm8943_vm2, %v3949_v50, -1e+30 }
 0x9b1   : > { %v3416_v15 = vsel %vm1590_vm3, %v10054_v49, 0.0 }
 0x9b2   : > { %3803 = vmax.xlane.f32.xlu2 %v3802_v1 }
 0x9b5   : > { %v10058_v1 = vpop.eup %7417  ;;  %v3946_v8 = vpop.f32.mrf.mxu2 }
 0x9b6   : > { %3569 = vadd.xlane.f32.xlu0 %v3568_v24  ;;  %v3653_v28 = vsel %vm1590_vm3, %v10058_v1, 0.0  ;;  %v10065_v24 = vsel %vm8943_vm2, %v3715_v6, -1e+30 }
 0x9b7   : > { %v3719_v40 = vsel %vm1590_vm3, %v10065_v24, -inf }
 0x9ba   : > { %3336 = vadd.xlane.f32.xlu2 %v3335_v11  ;;  %v3414_v11 = vmul.f32 1.442695, %v3411_v35  ;;  %v10098_v35 = vpop.permute.xlu0 %3031 }
 0x9bc   : > { %7419 = vpow2.f32 %v3414_v11 }
 0x9be   : > { %3572 = vadd.xlane.f32.xlu0 %v3571_v3 }
 0x9c2   : > { %3339 = vadd.xlane.f32.xlu2 %v3338_v31  ;;  %v10078_v3 = vpop.eup %7419  ;;  %v3953_v31 = vsel %vm1590_vm3, %v10086_v43, -inf }
 0x9c3   : > { %v3419_v48 = vsel %vm1590_vm3, %v10078_v3, 0.0 }
 0x9c6   : > { %3651 = vadd.xlane.f32.xlu0 %v3650_v14  ;;  %v3950_v14 = vmul.f32 0.17677669, %v3946_v8 }
 0x9ca   : > { %3417 = vadd.xlane.f32.xlu2 %v3416_v15  ;;  %v10092_v15 = vsel %vm8950_vm4, %v3950_v14, -1e+30 }
 0x9cb   : > { %v3956_v6 = vsel %vm1590_vm3, %v10092_v15, -inf  ;;  %v3183_v11 = vpop.xlane.xlu0 %3182 }
 0x9ce   : > { %3654 = vadd.xlane.f32.xlu0 %v3653_v28  ;;  %v3106_v28 = vpop.xlane.xlu2 %3105 }
 0x9d5   : > { %3720 = vmax.xlane.f32.xlu1 %v3719_v40  ;;  %v3492_v40 = vmul.f32 1.442695, %v3490_v54 }
 0x9d7   : > { %7421 = vpow2.f32 %v3492_v40 }
 0x9d8   : > { %7423 = vrcp.f32 %v3183_v11 }
 0x9dd   : > { %3872 = vmax.xlane.f32.xlu1 %v3871_v52 }
 0x9e2   : > { %3346 = vrot.lane.b32.xlu2 %v9953_v33, %s7998_s9 }
 0x9e5   : > { %3420 = vadd.xlane.f32.xlu1 %v3419_v48  ;;  %v10100_v48 = vpop.eup %7421 }
 0x9e6   : > { %v7424_v50 = vpop.eup %7423  ;;  %v3496_v8 = vsel %vm1590_vm3, %v10100_v48, 0.0 }
 0x9e7   : > { %v10105_v14 = vmul.f32 %v7424_v50, %v9940_v59 }
 0x9ed   : > { %3954 = vmax.xlane.f32.xlu1 %v3953_v31 }
 0x9f5   : > { %3957 = vmax.xlane.f32.xlu1 %v3956_v6 }
 0x9fd   : > { %v1923_v29 = vpop.xlane.xlu2 %1922 }
 0x9fe   : > { %7425 = vrcp.f32 %v1923_v29 }
 0xa04   : > { %v7426_v31 = vpop.eup %7425 }
 0xa05   : > { %v3186_v52 = vpop.xlane.xlu2 %3185  ;;  %v1926_v5 = vpop.xlane.xlu1 %1925  ;;  %v1929_v40 = vmul.f32 %v7426_v31, %v9963_v22 }
 0xa06   : > { %7427 = vrcp.f32 %v3186_v52  ;;  %v3801_v22 = vpop.xlane.xlu0 %3800 }
 0xa07   : > { %7429 = vrcp.f32 %v1926_v5 }
 0xa08   : > { %7431 = vrcp.f32 %v10003_v37 }
 0xa09   : > { %7433 = vrcp.f32 %v9530_v19 }
 0xa0a   : > { %7435 = vrcp.f32 %v3106_v28 }
 0xa0b   : > { %3497 = vadd.xlane.f32.xlu2 %v3496_v8  ;;  %7437 = vrcp.f32 %v9521_v13 }
 0xa0c   : > { %v7428_v60 = vpop.eup %7427 }
 0xa0d   : > { %v7430_v20 = vpop.eup %7429  ;;  %v10108_v6 = vmul.f32 %v7428_v60, %v9969_v63  ;;  %v3724_v54 = vpop.xlane.xlu2 %3723 }
 0xa0e   : > { %v1930_v29 = vmul.f32 %v7430_v20, %v9971_v30  ;;  %3427 = vrot.lane.b32.xlu1 %v9953_v33, %s7999_s12  ;;  %v7432_v63 = vpop.eup %7431  ;;  %v3266_v20 = vpop.permute.xlu0 %3265 }
 0xa0f   : > { %v3191_v11 = vpack.c.bf16 %v10108_v6, %v10105_v14  ;;  %v7434_v30 = vpop.eup %7433  ;;  %v3109_v8 = vmul.f32 %v7432_v63, %v9857_v61 }
 0xa10   : > { %v1931_v52 = vpack.c.bf16 %v1930_v29, %v1929_v40  ;;  %v7436_v5 = vpop.eup %7435  ;;  %v2084_v31 = vmul.f32 %v7434_v30, %v9365_v53  ;;  %v11576_v40 = vld [vmem:[#allocation39_spill] sm:$0xff]  ;;  %v11577_v53 = vld [vmem:[#allocation46_spill] sm:$0xff] }
 0xa11   : > { %v7438_v50 = vpop.eup %7437  ;;  %v3110_v37 = vmul.f32 %v7436_v5, %v9825_v21  ;;  %v10127_v29 = vpack.c.bf16 %v11576_v40, %v9186_v23  ;;  %v11579_v30 = vld [vmem:[#allocation43_spill] sm:$0xff] }
 0xa12   : > { %6538 = vmatmul.msk.bf16.vlgmr.msra.gmra.mxu3 %vm1590_vm3, %v1931_v52  ;;  %v2083_v19 = vmul.f32 %v7438_v50, %v9347_v57  ;;  %v11578_v57 = vld [vmem:[#allocation45_spill] sm:$0xff]  ;;  %v4027_v50 = vpop.f32.mrf.mxu0 }
 0xa13   : > { %2257 = vmatpush.bf16.msra.mxu3 %v9519_v0  ;;  %v3111_v0 = vpack.c.bf16 %v3110_v37, %v3109_v8  ;;  %v11580_v8 = vld [vmem:[#allocation42_spill] sm:$0xff] }
 0xa14   : > { %v2085_v13 = vpack.c.bf16 %v2084_v31, %v2083_v19  ;;  %v4031_v19 = vmul.f32 0.17677669, %v4027_v50 }
 0xa15   : > { %v3255_v59 = vpop.xlane.xlu2 %3254 }
 0xa1d   : > { %v3113_v60 = vpop.permute.xlu1 %3112  ;;  %v3258_v28 = vpop.xlane.xlu2 %3257 }
 0xa1e   : > { %3125 = vmatpush.bf16.msrb.mxu1 %v3113_v60  ;;  %7439 = vrcp.f32 %v3258_v28 }
 0xa1f   : > { %7441 = vrcp.f32 %v11577_v53 }
 0xa20   : > { %7443 = vrcp.f32 %v3255_v59  ;;  %v3726_v59 = vsub.f32 %v9983_v25, %v3724_v54  ;;  %v3805_v25 = vsub.f32 %v9947_v2, %v3801_v22 }
 0xa21   : > { %6568 = vmatmul.msk.bf16.vlgmr.msrb.gmra.mxu1 %vm1590_vm3, %v3111_v0  ;;  %7445 = vrcp.f32 %v11578_v57 }
 0xa22   : > { %3278 = vmatpush.bf16.msra.mxu1 %v3266_v20  ;;  %6542 = vmatmul.msk.bf16.vlgmr.msrb.gmra.mxu3 %vm1590_vm3, %v2085_v13  ;;  %v3729_v20 = vmul.f32 1.442695, %v3726_v59  ;;  %7447 = vrcp.f32 %v9736_v46  ;;  %v3807_v0 = vmul.f32 1.442695, %v3805_v25  ;;  %v11581_v46 = vld [vmem:[#allocation44_spill] sm:$0xff] }
 0xa23   : > { %2414 = vmatpush.bf16.msrb.mxu3 %v9793_v32  ;;  %3580 = vrot.lane.b32.xlu2 %v10127_v29, %s7997_s27  ;;  %7449 = vrcp.f32 %v9699_v58 }
 0xa24   : > { %v7440_v21 = vpop.eup %7439  ;;  %7451 = vpow2.f32 %v3729_v20 }
 0xa25   : > { %v7442_v61 = vpop.eup %7441  ;;  %v3262_v63 = vmul.f32 %v7440_v21, %v10007_v26  ;;  %v10149_v26 = vsel %vm8950_vm4, %v4031_v19, -1e+30  ;;  %7453 = vpow2.f32 %v3807_v0  ;;  %v3804_v40 = vpop.xlane.xlu2 %3803 }
 0xa26   : > { %v7444_v52 = vpop.eup %7443  ;;  %v2245_v5 = vmul.f32 %v7442_v61, %v11579_v30  ;;  %v3806_v22 = vsub.f32 %v10024_v39, %v3804_v40  ;;  %v10196_v19 = vpop.f32.mrf.mxu1 }
 0xa27   : > { %v7446_v23 = vpop.eup %7445  ;;  %v3261_v32 = vmul.f32 %v7444_v52, %v9995_v42  ;;  %v4037_v42 = vsel %vm1590_vm3, %v10149_v26, -inf }
 0xa28   : > { %v2244_v31 = vmul.f32 %v7446_v23, %v11580_v8  ;;  %v7448_v54 = vpop.eup %7447  ;;  %v3809_v57 = vmul.f32 1.442695, %v3806_v22  ;;  %v3876_v23 = vpop.xlane.xlu0 %3875  ;;  %v11586_v22 = vld [vmem:[#allocation41_spill] sm:$0xff] }
 0xa29   : > { %v3263_v37 = vpack.c.bf16 %v3262_v63, %v3261_v32  ;;  %v7450_v28 = vpop.eup %7449 }
 0xa2a   : > { %v2246_v60 = vpack.c.bf16 %v2245_v5, %v2244_v31  ;;  %v10155_v13 = vpop.eup %7451  ;;  %v2398_v18 = vmul.f32 %v7450_v28, %v11581_v46  ;;  %7455 = vpow2.f32 %v3809_v57  ;;  %v11584_v46 = vld [vmem:[#allocation52_spill] sm:$0xff] }
 0xa2b   : > { %3661 = vrot.lane.b32.xlu2 %v10127_v29, %s7998_s9  ;;  %v3734_v58 = vsel %vm1590_vm3, %v10155_v13, 0.0  ;;  %v10164_v53 = vpop.eup %7453 }
 0xa30   : > { %v10169_v63 = vpop.eup %7455 }
 0xa31   : > { %6572 = vmatmul.msk.bf16.vlgmr.msra.gmra.mxu1 %vm1590_vm3, %v3263_v37  ;;  %v3814_v32 = vsel %vm1590_vm3, %v10169_v63, 0.0  ;;  %v11583_v37 = vld [vmem:[#allocation47_spill] sm:$0xff] }
 0xa32   : > { %6546 = vmatmul.msk.bf16.vlgmr.msra.gmra.mxu3 %vm1590_vm3, %v2246_v60 }
 0xa33   : > { %2572 = vmatpush.bf16.msra.mxu3 %v9707_v47  ;;  %v2399_v47 = vmul.f32 %v7448_v54, %v9654_v7  ;;  %v3811_v7 = vsel %vm1590_vm3, %v10164_v53, 0.0 }
 0xa35   : > { %v2400_v2 = vpack.c.bf16 %v2399_v47, %v2398_v18 }
 0xa38   : > { %4038 = vmax.xlane.f32.xlu1 %v4037_v42 }
 0xa40   : > { %3735 = vadd.xlane.f32.xlu1 %v3734_v58  ;;  %v2022_v58 = vpop.f32.mrf.mxu1 }
 0xa42   : > { %6550 = vmatmul.msk.bf16.vlgmr.msrb.gmra.mxu3 %vm1590_vm3, %v2400_v2 }
 0xa43   : > { %2729 = vmatpush.bf16.msrb.mxu3 %v9807_v4  ;;  %v11582_v4 = vpack.c.bf16 %v9810_v12, %v9813_v44  ;;  %v10186_v44 = vpop.xlane.xlu0 %3500 }
 0xa48   : > { %v3721_v21 = vpop.xlane.xlu1 %3720  ;;  %3812 = vadd.xlane.f32.xlu1 %v3811_v7 }
 0xa49   : > { %v3725_v61 = vsub.f32 %v10065_v24, %v3721_v21  ;;  %v3878_v24 = vsub.f32 %v9991_v38, %v3876_v23 }
 0xa4b   : > { %v3727_v52 = vmul.f32 1.442695, %v3725_v61  ;;  %v4036_v25 = vpop.xlane.xlu0 %4035 }
 0xa4d   : > { %7457 = vpow2.f32 %v3727_v52  ;;  %v11588_v52 = vld [vmem:[#allocation48_spill] sm:$0xff] }
 0xa4e   : > { %7459 = vrcp.f32 %v9791_v41  ;;  %v10188_v41 = vpop.xlane.xlu2 %3336 }
 0xa4f   : > { %7461 = vrcp.f32 %v9805_v16 }
 0xa50   : > { %v3873_v39 = vpop.xlane.xlu1 %3872 }
 0xa51   : > { %v3877_v30 = vsub.f32 %v10074_v55, %v3873_v39  ;;  %v3881_v55 = vmul.f32 1.442695, %v3878_v24  ;;  %v11589_v24 = vld [vmem:[#allocation60_spill] sm:$0xff] }
 0xa52   : > { %6554 = vmatmul.msk.bf16.vlgmr.msra.gmra.mxu3 %vm1590_vm3, %v11582_v4  ;;  %v10226_v4 = vpop.f32.mrf.mxu1 }
 0xa53   : > { %v10176_v5 = vpop.eup %7457  ;;  %v3879_v50 = vmul.f32 1.442695, %v3877_v30  ;;  %2887 = vmatpush.bf16.msra.mxu3 %v9797_v10 }
 0xa54   : > { %3815 = vadd.xlane.f32.xlu2 %v3814_v32  ;;  %v3731_v12 = vsel %vm1590_vm3, %v10176_v5, 0.0  ;;  %v7460_v8 = vpop.eup %7459 }
 0xa55   : > { %7463 = vpow2.f32 %v3879_v50  ;;  %3732 = vadd.xlane.f32.xlu0 %v3731_v12  ;;  %v7462_v31 = vpop.eup %7461  ;;  %v2714_v59 = vmul.f32 %v7460_v8, %v9689_v36  ;;  %v4040_v36 = vsub.f32 %v10015_v27, %v4036_v25  ;;  %v11590_v50 = vld [vmem:[#allocation62_spill] sm:$0xff] }
 0xa56   : > { %7465 = vpow2.f32 %v3881_v55  ;;  %v2713_v60 = vmul.f32 %v7462_v31, %v11583_v37  ;;  %v10201_v28 = vpop.xlane.xlu2 %3339  ;;  %v3570_v55 = vpop.xlane.xlu0 %3569  ;;  %v11592_v25 = vld [vmem:[#allocation50_spill] sm:$0xff] }
 0xa57   : > { %7467 = vrcp.f32 %v9933_v9  ;;  %v4042_v40 = vmul.f32 1.442695, %v4040_v36  ;;  %v11585_v9 = vld [vmem:[#allocation40_spill] sm:$0xff] }
 0xa58   : > { %v3421_v38 = vpop.xlane.xlu1 %3420  ;;  %v2715_v20 = vpack.c.bf16 %v2714_v59, %v2713_v60  ;;  %7469 = vrcp.f32 %v11584_v46  ;;  %v10214_v27 = vpack.c.bf16 %v11586_v22, %v11585_v9  ;;  %v11591_v60 = vld [vmem:[#allocation51_spill] sm:$0xff] }
 0xa5a   : > { %v2184_v37 = vpop.f32.mrf.mxu1 }
 0xa5b   : > { %v10190_v10 = vpop.eup %7463 }
 0xa5c   : > { %v3883_v16 = vsel %vm1590_vm3, %v10190_v10, 0.0  ;;  %v10198_v54 = vpop.eup %7465 }
 0xa5d   : > { %3884 = vadd.xlane.f32.xlu1 %v3883_v16  ;;  %v3886_v18 = vsel %vm1590_vm3, %v10198_v54, 0.0 }
 0xa5e   : > { %v3418_v21 = vpop.xlane.xlu2 %3417 }
 0xa60   : > { %v3955_v42 = vpop.xlane.xlu1 %3954 }
 0xa61   : > { %v3959_v0 = vsub.f32 %v10086_v43, %v3955_v42  ;;  %v7468_v43 = vpop.eup %7467 }
 0xa62   : > { %6558 = vmatmul.msk.bf16.vlgmr.msrb.gmra.mxu3 %vm1590_vm3, %v2715_v20  ;;  %v7470_v2 = vpop.eup %7469 }
 0xa63   : > { %v3961_v47 = vmul.f32 1.442695, %v3959_v0  ;;  %3044 = vmatpush.bf16.msrb.mxu3 %v10098_v35  ;;  %v11587_v35 = vld [vmem:[#allocation49_spill] sm:$0xff]  ;;  %v2874_v23 = vmul.f32 %v7470_v2, %v11588_v52 }
 0xa64   : > { %v2875_v7 = vmul.f32 %v7468_v43, %v11587_v35 }
 0xa65   : > { %7471 = vpow2.f32 %v3961_v47  ;;  %3887 = vadd.xlane.f32.xlu1 %v3886_v18  ;;  %v3573_v18 = vpop.xlane.xlu0 %3572 }
 0xa66   : > { %7473 = vpow2.f32 %v4042_v40  ;;  %v2876_v39 = vpack.c.bf16 %v2875_v7, %v2874_v23  ;;  %v3347_v12 = vpop.permute.xlu2 %3346 }
 0xa67   : > { %7475 = vrcp.f32 %v11589_v24 }
 0xa68   : > { %7477 = vrcp.f32 %v11590_v50  ;;  %v3958_v8 = vpop.xlane.xlu1 %3957 }
 0xa69   : > { %3742 = vrot.lane.b32.xlu0 %v10127_v29, %s7999_s12  ;;  %7479 = vrcp.f32 %v3421_v38 }
 0xa6a   : > { %7481 = vrcp.f32 %v3418_v21 }
 0xa6b   : > { %v10216_v57 = vpop.eup %7471  ;;  %7483 = vrcp.f32 %v3573_v18 }
 0xa6c   : > { %3976 = vrot.lane.b32.xlu2 %v10214_v27, %s7998_s9  ;;  %v3965_v61 = vsel %vm1590_vm3, %v10216_v57, 0.0  ;;  %v10224_v30 = vpop.eup %7473  ;;  %7485 = vrcp.f32 %v3570_v55 }
 0xa6d   : > { %3966 = vadd.xlane.f32.xlu1 %v3965_v61  ;;  %v4046_v32 = vsel %vm1590_vm3, %v10224_v30, 0.0  ;;  %v7476_v31 = vpop.eup %7475  ;;  %v3652_v24 = vpop.xlane.xlu0 %3651 }
 0xa6e   : > { %v7478_v59 = vpop.eup %7477  ;;  %v3028_v20 = vmul.f32 %v7476_v31, %v11591_v60 }
 0xa6f   : > { %v7480_v16 = vpop.eup %7479  ;;  %v3029_v42 = vmul.f32 %v7478_v59, %v11592_v25 }
 0xa70   : > { %v3425_v0 = vmul.f32 %v7480_v16, %v10078_v3  ;;  %v3960_v3 = vsub.f32 %v10092_v15, %v3958_v8 }
 0xa71   : > { %3895 = vrot.lane.b32.xlu0 %v10214_v27, %s7997_s27  ;;  %v3030_v38 = vpack.c.bf16 %v3029_v42, %v3028_v20 }
 0xa72   : > { %6562 = vmatmul.msk.bf16.vlgmr.msra.gmra.mxu3 %vm1590_vm3, %v2876_v39  ;;  %v3963_v22 = vmul.f32 1.442695, %v3960_v3 }
 0xa73   : > { %3202 = vmatpush.bf16.msra.mxu3 %v9953_v33  ;;  %v7482_v33 = vpop.eup %7481 }
 0xa74   : > { %2029 = vrot.lane.b32.xlu2 %v2022_v58, %s7999_s12  ;;  %v3424_v47 = vmul.f32 %v7482_v33, %v10054_v49  ;;  %v2335_v58 = vpop.f32.mrf.mxu1  ;;  %v7484_v2 = vpop.eup %7483  ;;  %7487 = vpow2.f32 %v3963_v22 }
 0xa75   : > { %4047 = vadd.xlane.f32.xlu1 %v4046_v32  ;;  %v7486_v9 = vpop.eup %7485  ;;  %v3577_v49 = vmul.f32 %v7484_v2, %v10041_v51  ;;  %7489 = vrcp.f32 %v10201_v28 }
 0xa76   : > { %v3426_v40 = vpack.c.bf16 %v3425_v0, %v3424_v47  ;;  %v3576_v35 = vmul.f32 %v7486_v9, %v10030_v62  ;;  %7491 = vrcp.f32 %v10188_v41 }
 0xa78   : > { %v3578_v21 = vpack.c.bf16 %v3577_v49, %v3576_v35  ;;  %v11593_v35 = vld [vmem:[#allocation53_spill] sm:$0xff] }
 0xa7a   : > { %v10258_v62 = vpop.eup %7487 }
 0xa7b   : > { %v7490_v15 = vpop.eup %7489  ;;  %v3968_v14 = vsel %vm1590_vm3, %v10258_v62, 0.0 }
 0xa7c   : > { %2191 = vrot.lane.b32.xlu2 %v2184_v37, %s7997_s27  ;;  %v10247_v7 = vpop.f32.mrf.mxu1  ;;  %v7492_v6 = vpop.eup %7491 }
 0xa7d   : > { %v3343_v28 = vmul.f32 %v7492_v6, %v10035_v56 }
 0xa7e   : > { %v3498_v36 = vpop.xlane.xlu2 %3497 }
 0xa7f   : > { %7493 = vrcp.f32 %v3498_v36 }
 0xa80   : > { %v3428_v46 = vpop.permute.xlu1 %3427  ;;  %7495 = vrcp.f32 %v10186_v44  ;;  %v3655_v44 = vpop.xlane.xlu0 %3654 }
 0xa81   : > { %3440 = vmatpush.bf16.msrb.mxu1 %v3428_v46 }
 0xa82   : > { %6566 = vmatmul.msk.bf16.vlgmr.msrb.gmra.mxu3 %vm1590_vm3, %v3030_v38 }
 0xa83   : > { %3359 = vmatpush.bf16.msrb.mxu3 %v3347_v12 }
 0xa84   : > { %6576 = vmatmul.msk.bf16.vlgmr.msrb.gmra.mxu1 %vm1590_vm3, %v3426_v40  ;;  %v10260_v61 = vpop.f32.mrf.mxu1 }
 0xa85   : > { %v7494_v50 = vpop.eup %7493 }
 0xa86   : > { %v3581_v43 = vpop.permute.xlu2 %3580  ;;  %v7496_v32 = vpop.eup %7495  ;;  %v3504_v56 = vmul.f32 %v7494_v50, %v10100_v48 }
 0xa87   : > { %3593 = vmatpush.bf16.msra.mxu1 %v3581_v43  ;;  %v3505_v31 = vmul.f32 %v7496_v32, %v9999_v45 }
 0xa89   : > { %v3506_v16 = vpack.c.bf16 %v3505_v31, %v3504_v56  ;;  %v11599_v56 = vld [vmem:[#allocation59_spill] sm:$0xff] }
 0xa8c   : > { %v2499_v23 = vpop.f32.mrf.mxu1 }
 0xa8e   : > { %v3662_v52 = vpop.permute.xlu2 %3661 }
 0xa92   : > { %6570 = vmatmul.msk.bf16.vlgmr.msra.gmra.mxu3 %vm1590_vm3, %v3191_v11  ;;  %v3344_v11 = vmul.f32 %v7490_v15, %v10046_v34  ;;  %v11594_v15 = vld [vmem:[#allocation54_spill] sm:$0xff] }
 0xa93   : > { %3517 = vmatpush.bf16.msra.mxu3 %v10127_v29 }
 0xa94   : > { %6580 = vmatmul.msk.bf16.vlgmr.msra.gmra.mxu1 %vm1590_vm3, %v3578_v21  ;;  %v3345_v41 = vpack.c.bf16 %v3344_v11, %v3343_v28  ;;  %v2650_v12 = vpop.f32.mrf.mxu1 }
 0xa95   : > { %v1944_v51 = vpop.f32.mrf.mxu3 }
 0xa96   : > { %1949 = vst.msk [vmem:[#allocation3 + $0x10] sm:$0xff] %vm1565_vm1, %v1944_v51 }
 0xa9b   : > { %3969 = vadd.xlane.f32.xlu0 %v3968_v14 }
 0xa9c   : > { %v10281_v37 = vpop.f32.mrf.mxu1 }
 0xa9d   : > { %v1946_v29 = vpop.f32.mrf.mxu3 }
 0xa9e   : > { %1950 = vst.msk [vmem:[#allocation3 + $0x18] sm:$0xff] %vm1565_vm1, %v1946_v29  ;;  %v11595_v29 = vld [vmem:[#allocation55_spill] sm:$0xff] }
 0xaa2   : > { %6574 = vmatmul.msk.bf16.vlgmr.msrb.gmra.mxu3 %vm1590_vm3, %v3345_v41 }
 0xaa3   : > { %3674 = vmatpush.bf16.msrb.mxu3 %v3662_v52 }
 0xaa4   : > { %v10288_v42 = vpop.f32.mrf.mxu1 }
 0xaa5   : > { %v10269_v39 = vpop.f32.mrf.mxu3 }
 0xaab   : > { %v4039_v34 = vpop.xlane.xlu1 %4038 }
 0xaac   : > { %v4041_v55 = vsub.f32 %v10149_v26, %v4039_v34  ;;  %v2814_v18 = vpop.f32.mrf.mxu1  ;;  %v11598_v34 = vld [vmem:[#allocation58_spill] sm:$0xff] }
 0xaad   : > { %v2103_v8 = vpop.f32.mrf.mxu3 }
 0xaae   : > { %v4044_v59 = vmul.f32 1.442695, %v4041_v55  ;;  %2110 = vrot.lane.b32.xlu2 %v2103_v8, %s7998_s9 }
 0xaaf   : > { %2027 = vrot.lane.b32.xlu0 %v10196_v19, %s7999_s12 }
 0xab0   : > { %7497 = vpow2.f32 %v4044_v59  ;;  %v11600_v59 = vld [vmem:[#allocation61_spill] sm:$0xff] }
 0xab1   : > { %7499 = vrcp.f32 %v3655_v44 }
 0xab2   : > { %6578 = vmatmul.msk.bf16.vlgmr.msra.gmra.mxu3 %vm1590_vm3, %v3506_v16  ;;  %7501 = vrcp.f32 %v3652_v24 }
 0xab3   : > { %3832 = vmatpush.bf16.msra.mxu3 %v10214_v27  ;;  %v3736_v60 = vpop.xlane.xlu1 %3735 }
 0xab4   : > { %v2965_v22 = vpop.f32.mrf.mxu1 }
 0xab5   : > { %v2259_v48 = vpop.f32.mrf.mxu3 }
 0xab6   : > { %v10279_v26 = vpop.eup %7497  ;;  %2264 = vst.msk [vmem:[#allocation3 + $0x20] sm:$0xff] %vm1565_vm1, %v2259_v48 }
 0xab7   : > { %2342 = vrot.lane.b32.xlu0 %v2335_v58, %s7999_s12  ;;  %v4049_v45 = vsel %vm1590_vm3, %v10279_v26, 0.0  ;;  %v7500_v19 = vpop.eup %7499 }
 0xab8   : > { %4050 = vadd.xlane.f32.xlu1 %v4049_v45  ;;  %v7502_v20 = vpop.eup %7501  ;;  %v3659_v33 = vmul.f32 %v7500_v19, %v10058_v1 }
 0xab9   : > { %v3658_v0 = vmul.f32 %v7502_v20, %v10050_v17 }
 0xabb   : > { %v3660_v36 = vpack.c.bf16 %v3659_v33, %v3658_v0  ;;  %v3813_v38 = vpop.xlane.xlu1 %3812 }
 0xabc   : > { %7503 = vrcp.f32 %v3813_v38  ;;  %v2967_v11 = vpop.f32.mrf.mxu1 }
 0xabd   : > { %v2261_v25 = vpop.f32.mrf.mxu3 }
 0xabe   : > { %2265 = vst.msk [vmem:[#allocation3 + $0x28] sm:$0xff] %vm1565_vm1, %v2261_v25 }
 0xac2   : > { %6582 = vmatmul.msk.bf16.vlgmr.msrb.gmra.mxu3 %vm1590_vm3, %v3660_v36  ;;  %v7504_v40 = vpop.eup %7503 }
 0xac3   : > { %v3819_v17 = vmul.f32 %v7504_v40, %v10164_v53 }
 0xac5   : > { %v2416_v47 = vpop.f32.mrf.mxu3 }
 0xac6   : > { %2423 = vrot.lane.b32.xlu2 %v2416_v47, %s7998_s9 }
 0xac7   : > { %v3816_v46 = vpop.xlane.xlu2 %3815 }
 0xac8   : > { %7505 = vrcp.f32 %v3816_v46  ;;  %v3733_v1 = vpop.xlane.xlu0 %3732 }
 0xac9   : > { %7507 = vrcp.f32 %v3733_v1 }
 0xaca   : > { %7509 = vrcp.f32 %v3736_v60 }
 0xacd   : > { %v2418_v43 = vpop.f32.mrf.mxu3 }
 0xace   : > { %v7506_v58 = vpop.eup %7505  ;;  %2506 = vrot.lane.b32.xlu2 %v2499_v23, %s7997_s27  ;;  %2425 = vrot.lane.b32.xlu0 %v2418_v43, %s7998_s9  ;;  %v11596_v23 = vld [vmem:[#allocation56_spill] sm:$0xff] }
 0xacf   : > { %v3820_v3 = vmul.f32 %v7506_v58, %v10169_v63  ;;  %v3977_v2 = vpop.permute.xlu2 %3976  ;;  %v7508_v51 = vpop.eup %7507 }
 0xad0   : > { %3989 = vmatpush.bf16.msrb.mxu3 %v3977_v2  ;;  %v3885_v49 = vpop.xlane.xlu1 %3884  ;;  %v7510_v63 = vpop.eup %7509 }
 0xad1   : > { %v3821_v9 = vpack.c.bf16 %v3820_v3, %v3819_v17  ;;  %4057 = vrot.lane.b32.xlu1 %v10214_v27, %s7999_s12  ;;  %v3739_v27 = vmul.f32 %v7508_v51, %v10176_v5  ;;  %v3740_v14 = vmul.f32 %v7510_v63, %v10155_v13  ;;  %v3127_v5 = vpop.f32.mrf.mxu1 }
 0xad3   : > { %6586 = vmatmul.msk.bf16.vlgmr.msra.gmra.mxu3 %vm1590_vm3, %v3821_v9  ;;  %v3741_v28 = vpack.c.bf16 %v3740_v14, %v3739_v27 }
 0xad4   : > { %7029 = vmatpush.bf16.msra.mxu3 %v11593_v35 }
 0xad5   : > { %v2574_v21 = vpop.f32.mrf.mxu3 }
 0xad6   : > { %2579 = vst.msk [vmem:[#allocation3 + $0x30] sm:$0xff] %vm1565_vm1, %v2574_v21  ;;  %2657 = vrot.lane.b32.xlu0 %v2650_v12, %s7999_s12 }
 0xad7   : > { %v2030_v53 = vpop.permute.xlu2 %2029 }
 0xad8   : > { %2034 = vst.msk [vmem:[#allocation3 + $0x18] sm:$0xff] %vm1715_vm5, %v2030_v53  ;;  %7031 = vmatpush.bf16.msra.mxu3 %v11594_v15  ;;  %v3888_v41 = vpop.xlane.xlu1 %3887 }
 0xad9   : > { %2189 = vrot.lane.b32.xlu1 %v10226_v4, %s7997_s27  ;;  %7511 = vrcp.f32 %v3888_v41  ;;  %v11597_v4 = vld [vmem:[#allocation57_spill] sm:$0xff]  ;;  %v3129_v31 = vpop.f32.mrf.mxu1 }
 0xada   : > { %7513 = vrcp.f32 %v3885_v49 }
 0xadb   : > { %v3743_v6 = vpop.permute.xlu0 %3742 }
 0xadc   : > { %3755 = vmatpush.bf16.msrb.mxu1 %v3743_v6  ;;  %7033 = vmatpush.bf16.msra.mxu3 %v11595_v29 }
 0xadd   : > { %v2576_v52 = vpop.f32.mrf.mxu3 }
 0xade   : > { %2580 = vst.msk [vmem:[#allocation3 + $0x38] sm:$0xff] %vm1565_vm1, %v2576_v52 }
 0xadf   : > { %6584 = vmatmul.msk.bf16.vlgmr.msrb.gmra.mxu1 %vm1590_vm3, %v3741_v28  ;;  %v7512_v50 = vpop.eup %7511  ;;  %v2192_v44 = vpop.permute.xlu2 %2191 }
 0xae0   : > { %7035 = vmatpush.bf16.msra.mxu3 %v11596_v23  ;;  %v7514_v32 = vpop.eup %7513  ;;  %v3892_v12 = vmul.f32 %v7512_v50, %v10198_v54  ;;  %v3967_v45 = vpop.xlane.xlu1 %3966 }
 0xae1   : > { %2108 = vrot.lane.b32.xlu1 %v10269_v39, %s7998_s9  ;;  %v3891_v39 = vmul.f32 %v7514_v32, %v10190_v10  ;;  %v3280_v10 = vpop.f32.mrf.mxu1  ;;  %7515 = vrcp.f32 %v3967_v45 }
 0xae3   : > { %v3896_v13 = vpop.permute.xlu0 %3895  ;;  %v3893_v55 = vpack.c.bf16 %v3892_v12, %v3891_v39 }
 0xae4   : > { %3908 = vmatpush.bf16.msra.mxu1 %v3896_v13  ;;  %7037 = vmatpush.bf16.msra.mxu3 %v11597_v4 }
 0xae5   : > { %v2731_v24 = vpop.f32.mrf.mxu3 }
 0xae6   : > { %2738 = vrot.lane.b32.xlu2 %v2731_v24, %s7998_s9 }
 0xae7   : > { %v7516_v20 = vpop.eup %7515 }
 0xae8   : > { %7039 = vmatpush.bf16.msra.mxu3 %v11598_v34  ;;  %v3973_v0 = vmul.f32 %v7516_v20, %v10216_v57  ;;  %v4048_v43 = vpop.xlane.xlu1 %4047 }
 0xae9   : > { %2344 = vrot.lane.b32.xlu1 %v10247_v7, %s7999_s12  ;;  %v3282_v16 = vpop.f32.mrf.mxu1 }
 0xaec   : > { %7041 = vmatpush.bf16.msra.mxu3 %v11599_v56 }
 0xaed   : > { %v2733_v8 = vpop.f32.mrf.mxu3 }
 0xaee   : > { %2821 = vrot.lane.b32.xlu2 %v2814_v18, %s7997_s27  ;;  %2740 = vrot.lane.b32.xlu0 %v2733_v8, %s7998_s9 }
 0xaef   : > { %6588 = vmatmul.msk.bf16.vlgmr.msra.gmra.mxu1 %vm1590_vm3, %v3893_v55 }
 0xaf0   : > { %7043 = vmatpush.bf16.msra.mxu3 %v11600_v59 }
 0xaf1   : > { %2504 = vrot.lane.b32.xlu1 %v10260_v61, %s7997_s27 }
 0xaf5   : > { %v2889_v54 = vpop.f32.mrf.mxu3 }
 0xaf6   : > { %2894 = vst.msk [vmem:[#allocation3 + $0x40] sm:$0xff] %vm1565_vm1, %v2889_v54  ;;  %2972 = vrot.lane.b32.xlu0 %v2965_v22, %s7999_s12 }
 0xaf9   : > { %2659 = vrot.lane.b32.xlu1 %v10281_v37, %s7999_s12 }
 0xafd   : > { %v2891_v7 = vpop.f32.mrf.mxu3 }
 0xafe   : > { %2895 = vst.msk [vmem:[#allocation3 + $0x48] sm:$0xff] %vm1565_vm1, %v2891_v7 }
 0xb01   : > { %2819 = vrot.lane.b32.xlu1 %v10288_v42, %s7997_s27  ;;  %v3442_v19 = vpop.f32.mrf.mxu1 }
 0xb05   : > { %v3046_v48 = vpop.f32.mrf.mxu3 }
 0xb06   : > { %3053 = vrot.lane.b32.xlu2 %v3046_v48, %s7998_s9 }
 0xb08   : > { %v2111_v61 = vpop.permute.xlu2 %2110 }
 0xb09   : > { %2115 = vst.msk [vmem:[#allocation3 + $0x18] sm:$0xff] %vm1797_vm6, %v2111_v61  ;;  %2974 = vrot.lane.b32.xlu1 %v2967_v11, %s7999_s12  ;;  %v3444_v33 = vpop.f32.mrf.mxu1 }
 0xb0a   : > { %2196 = vst.msk [vmem:[#allocation3 + $0x18] sm:$0xff] %vm1879_vm7, %v2192_v44 }
 0xb0d   : > { %v3048_v37 = vpop.f32.mrf.mxu3 }
 0xb0e   : > { %3136 = vrot.lane.b32.xlu2 %v3129_v31, %s7997_s27  ;;  %3055 = vrot.lane.b32.xlu0 %v3048_v37, %s7998_s9  ;;  %v3970_v60 = vpop.xlane.xlu0 %3969 }
 0xb0f   : > { %7517 = vrcp.f32 %v3970_v60 }
 0xb11   : > { %3134 = vrot.lane.b32.xlu1 %v3127_v5, %s7997_s27  ;;  %v3595_v46 = vpop.f32.mrf.mxu1  ;;  %v4090_v52 = vld [vmem:[#allocation3 + $0x18] sm:$0xff] }
 0xb15   : > { %v7518_v25 = vpop.eup %7517  ;;  %v3204_v42 = vpop.f32.mrf.mxu3 }
 0xb16   : > { %v3974_v36 = vmul.f32 %v7518_v25, %v10258_v62  ;;  %3209 = vst.msk [vmem:[#allocation3 + $0x50] sm:$0xff] %vm1565_vm1, %v3204_v42  ;;  %3287 = vrot.lane.b32.xlu0 %v3280_v10, %s7999_s12 }
 0xb18   : > { %v3975_v38 = vpack.c.bf16 %v3974_v36, %v3973_v0 }
 0xb19   : > { %3289 = vrot.lane.b32.xlu1 %v3282_v16, %s7999_s12  ;;  %v3597_v62 = vpop.f32.mrf.mxu1 }
 0xb1a   : > { %6590 = vmatmul.msk.bf16.vlgmr.msrb.gmra.mxu3 %vm1590_vm3, %v3975_v38 }
 0xb1d   : > { %v3206_v47 = vpop.f32.mrf.mxu3 }
 0xb1e   : > { %3210 = vst.msk [vmem:[#allocation3 + $0x58] sm:$0xff] %vm1565_vm1, %v3206_v47 }
 0xb20   : > { %v2424_v1 = vpop.permute.xlu2 %2423 }
 0xb21   : > { %3449 = vrot.lane.b32.xlu1 %v3442_v19, %s7997_s27  ;;  %v2028_v18 = vpop.permute.xlu0 %2027 }
 0xb22   : > { %2033 = vst.msk [vmem:[#allocation3 + $0x10] sm:$0xff] %vm1715_vm5, %v2028_v18 }
 0xb25   : > { %v3361_v57 = vpop.f32.mrf.mxu3 }
 0xb26   : > { %3368 = vrot.lane.b32.xlu2 %v3361_v57, %s7998_s9 }
 0xb28   : > { %v2507_v35 = vpop.permute.xlu2 %2506 }
 0xb29   : > { %3604 = vrot.lane.b32.xlu1 %v3597_v62, %s7999_s12  ;;  %v2343_v40 = vpop.permute.xlu0 %2342 }
 0xb2a   : > { %2348 = vst.msk [vmem:[#allocation3 + $0x20] sm:$0xff] %vm1715_vm5, %v2343_v40 }
 0xb2b   : > { %2429 = vst.msk [vmem:[#allocation3 + $0x20] sm:$0xff] %vm1797_vm6, %v2424_v1  ;;  %v4051_v17 = vpop.xlane.xlu1 %4050 }
 0xb2c   : > { %7519 = vrcp.f32 %v4051_v17 }
 0xb2d   : > { %v3363_v58 = vpop.f32.mrf.mxu3  ;;  %7521 = vrcp.f32 %v4048_v43 }
 0xb2e   : > { %3370 = vrot.lane.b32.xlu0 %v3363_v58, %s7998_s9  ;;  %3451 = vrot.lane.b32.xlu2 %v3444_v33, %s7997_s27  ;;  %v4188_v58 = vpop.f32.mrf.mxu0 }
 0xb32   : > { %v7520_v9 = vpop.eup %7519 }
 0xb33   : > { %v7522_v22 = vpop.eup %7521  ;;  %v4055_v21 = vmul.f32 %v7520_v9, %v10279_v26 }
 0xb34   : > { %v4054_v51 = vmul.f32 %v7522_v22, %v10224_v30 }
 0xb35   : > { %v3519_v3 = vpop.f32.mrf.mxu3 }
 0xb36   : > { %3524 = vst.msk [vmem:[#allocation3 + $0x60] sm:$0xff] %vm1565_vm1, %v3519_v3  ;;  %3602 = vrot.lane.b32.xlu0 %v3595_v46, %s7999_s12  ;;  %v4056_v63 = vpack.c.bf16 %v4055_v21, %v4054_v51  ;;  %v10406_v3 = vld [vmem:[%s8365_s2] ss:$0 sm:$0xff]  ;;  %v4190_v9 = vpop.f32.mrf.mxu0 }
 0xb37   : > { %v4191_v21 = vadd.f32 %v10406_v3, %v4190_v9 }
 0xb3d   : > { %v3521_v2 = vpop.f32.mrf.mxu3 }
 0xb3e   : > { %3525 = vst.msk [vmem:[#allocation3 + $0x68] sm:$0xff] %vm1565_vm1, %v3521_v2  ;;  %v4189_v2 = vadd.f32 %v10406_v3, %v4188_v58  ;;  %v7565_v58 = vld [vmem:[#allocation2 + $0x10] sm:$0xff] }
 0xb40   : > { %v2426_v49 = vpop.permute.xlu0 %2425  ;;  %v2739_v14 = vpop.permute.xlu2 %2738 }
 0xb43   : > { %v4058_v53 = vpop.permute.xlu1 %4057 }
 0xb44   : > { %4070 = vmatpush.bf16.msrb.mxu1 %v4058_v53  ;;  %v7556_v53 = vld [vmem:[#allocation2] sm:$0xff] }
 0xb45   : > { %v3676_v15 = vpop.f32.mrf.mxu3 }
 0xb46   : > { %3683 = vrot.lane.b32.xlu2 %v3676_v15, %s7998_s9 }
 0xb47   : > { %6592 = vmatmul.msk.bf16.vlgmr.msrb.gmra.mxu1 %vm1590_vm3, %v4056_v63  ;;  %v10415_v63 = vadd.f32 %v7556_v53, %v4191_v21  ;;  %v7566_v21 = vld [vmem:[#allocation2 + $0x38] sm:$0xff] }
 0xb48   : > { %v2658_v27 = vpop.permute.xlu0 %2657  ;;  %v2822_v4 = vpop.permute.xlu2 %2821 }
 0xb49   : > { %2663 = vst.msk [vmem:[#allocation3 + $0x30] sm:$0xff] %vm1715_vm5, %v2658_v27  ;;  %v4295_v15 = vmul.f32 %v10415_v63, %v10415_v63 }
 0xb4a   : > { %2744 = vst.msk [vmem:[#allocation3 + $0x30] sm:$0xff] %vm1797_vm6, %v2739_v14 }
 0xb4b   : > { %v2190_v6 = vpop.permute.xlu1 %2189 }
 0xb4d   : > { %v3678_v11 = vpop.f32.mrf.mxu3 }
 0xb4e   : > { %3685 = vrot.lane.b32.xlu0 %v3678_v11, %s7998_s9 }
 0xb53   : > { %v2109_v26 = vpop.permute.xlu1 %2108 }
 0xb54   : > { %2114 = vst.msk [vmem:[#allocation3 + $0x10] sm:$0xff] %vm1797_vm6, %v2109_v26 }
 0xb55   : > { %2195 = vst.msk [vmem:[#allocation3 + $0x10] sm:$0xff] %vm1879_vm7, %v2190_v6 }
 0xb56   : > { %v3834_v30 = vpop.f32.mrf.mxu3 }
 0xb57   : > { %3839 = vst.msk [vmem:[#allocation3 + $0x70] sm:$0xff] %vm1565_vm1, %v3834_v30  ;;  %v7557_v30 = vld [vmem:[#allocation2 + $0x58] sm:$0xff] }
 0xb5b   : > { %v2345_v29 = vpop.permute.xlu1 %2344 }
 0xb5c   : > { %2349 = vst.msk [vmem:[#allocation3 + $0x28] sm:$0xff] %vm1715_vm5, %v2345_v29  ;;  %v3757_v28 = vpop.f32.mrf.mxu1  ;;  %v4089_v41 = vld [vmem:[#allocation3 + $0x10] sm:$0xff] }
 0xb5d   : > { %2430 = vst.msk [vmem:[#allocation3 + $0x28] sm:$0xff] %vm1797_vm6, %v2426_v49  ;;  %3764 = vrot.lane.b32.xlu1 %v3757_v28, %s7997_s27  ;;  %v4104_v23 = vpack.c.bf16 %v4090_v52, %v4089_v41  ;;  %v7555_v49 = vld [vmem:[#allocation2 + $0x30] sm:$0xff] }
 0xb5e   : > { %2511 = vst.msk [vmem:[#allocation3 + $0x28] sm:$0xff] %vm1879_vm7, %v2507_v35  ;;  %v3836_v13 = vpop.f32.mrf.mxu3  ;;  %v10410_v35 = vadd.f32 %v7555_v49, %v4189_v2 }
 0xb5f   : > { %3840 = vst.msk [vmem:[#allocation3 + $0x78] sm:$0xff] %vm1565_vm1, %v3836_v13  ;;  %4192 = vmatmul.bf16.gmra.mxu0 %v4104_v23 }
 0xb60   : > { %v2741_v5 = vpop.permute.xlu0 %2740  ;;  %v3054_v34 = vpop.permute.xlu2 %3053 }
 0xb63   : > { %v2505_v24 = vpop.permute.xlu1 %2504 }
 0xb64   : > { %2510 = vst.msk [vmem:[#allocation3 + $0x20] sm:$0xff] %vm1879_vm7, %v2505_v24  ;;  %v3759_v50 = vpop.f32.mrf.mxu1 }
 0xb65   : > { %3766 = vrot.lane.b32.xlu2 %v3759_v50, %s7997_s27  ;;  %v4092_v56 = vld [vmem:[#allocation3 + $0x28] sm:$0xff]  ;;  %v7558_v50 = vld [vmem:[#allocation2 + $0x18] sm:$0xff] }
 0xb68   : > { %v2973_v32 = vpop.permute.xlu0 %2972  ;;  %v3137_v48 = vpop.permute.xlu2 %3136 }
 0xb69   : > { %2978 = vst.msk [vmem:[#allocation3 + $0x40] sm:$0xff] %vm1715_vm5, %v2973_v32 }
 0xb6a   : > { %3059 = vst.msk [vmem:[#allocation3 + $0x40] sm:$0xff] %vm1797_vm6, %v3054_v34 }
 0xb6b   : > { %v2660_v12 = vpop.permute.xlu1 %2659  ;;  %v4091_v39 = vld [vmem:[#allocation3 + $0x20] sm:$0xff] }
 0xb6c   : > { %2664 = vst.msk [vmem:[#allocation3 + $0x38] sm:$0xff] %vm1715_vm5, %v2660_v12  ;;  %v3910_v55 = vpop.f32.mrf.mxu1  ;;  %v4105_v8 = vpack.c.bf16 %v4092_v56, %v4091_v39  ;;  %v7559_v39 = vld [vmem:[#allocation2 + $0x68] sm:$0xff] }
 0xb6d   : > { %2745 = vst.msk [vmem:[#allocation3 + $0x38] sm:$0xff] %vm1797_vm6, %v2741_v5  ;;  %3917 = vrot.lane.b32.xlu0 %v3910_v55, %s7999_s12  ;;  %v4294_v5 = vmul.f32 %v10410_v35, %v10410_v35 }
 0xb6e   : > { %2826 = vst.msk [vmem:[#allocation3 + $0x38] sm:$0xff] %vm1879_vm7, %v2822_v4  ;;  %4197 = vmatmul.bf16.vlgmr.msra.gmra.mxu2 %v4105_v8 }
 0xb73   : > { %v2820_v31 = vpop.permute.xlu1 %2819 }
 0xb74   : > { %2825 = vst.msk [vmem:[#allocation3 + $0x30] sm:$0xff] %vm1879_vm7, %v2820_v31  ;;  %v3912_v59 = vpop.f32.mrf.mxu1  ;;  %v7560_v31 = vld [vmem:[#allocation2 + $0x50] sm:$0xff] }
 0xb75   : > { %3919 = vrot.lane.b32.xlu1 %v3912_v59, %s7999_s12  ;;  %v4094_v7 = vld [vmem:[#allocation3 + $0x38] sm:$0xff] }
 0xb7b   : > { %v2975_v54 = vpop.permute.xlu1 %2974  ;;  %v4093_v10 = vld [vmem:[#allocation3 + $0x30] sm:$0xff] }
 0xb7c   : > { %2979 = vst.msk [vmem:[#allocation3 + $0x48] sm:$0xff] %vm1715_vm5, %v2975_v54  ;;  %v4106_v44 = vpack.c.bf16 %v4094_v7, %v4093_v10  ;;  %v7561_v7 = vld [vmem:[#allocation2 + $0x8] sm:$0xff] }
 0xb7e   : > { %4202 = vmatmul.bf16.gmra.mxu2 %v4106_v44 }
 0xb80   : > { %v3056_v16 = vpop.permute.xlu0 %3055  ;;  %v3369_v19 = vpop.permute.xlu2 %3368 }
 0xb81   : > { %3060 = vst.msk [vmem:[#allocation3 + $0x48] sm:$0xff] %vm1797_vm6, %v3056_v16 }
 0xb82   : > { %3141 = vst.msk [vmem:[#allocation3 + $0x48] sm:$0xff] %vm1879_vm7, %v3137_v48 }
 0xb83   : > { %v3135_v61 = vpop.permute.xlu1 %3134 }
 0xb84   : > { %3140 = vst.msk [vmem:[#allocation3 + $0x40] sm:$0xff] %vm1879_vm7, %v3135_v61 }
 0xb88   : > { %v3288_v45 = vpop.permute.xlu0 %3287  ;;  %v3452_v38 = vpop.permute.xlu2 %3451 }
 0xb89   : > { %3293 = vst.msk [vmem:[#allocation3 + $0x50] sm:$0xff] %vm1715_vm5, %v3288_v45  ;;  %v4096_v20 = vld [vmem:[#allocation3 + $0x48] sm:$0xff] }
 0xb8a   : > { %3374 = vst.msk [vmem:[#allocation3 + $0x50] sm:$0xff] %vm1797_vm6, %v3369_v19  ;;  %v7562_v45 = vld [vmem:[#allocation2 + $0x48] sm:$0xff] }
 0xb8b   : > { %v3290_v37 = vpop.permute.xlu1 %3289  ;;  %v4095_v60 = vld [vmem:[#allocation3 + $0x40] sm:$0xff] }
 0xb8c   : > { %3294 = vst.msk [vmem:[#allocation3 + $0x58] sm:$0xff] %vm1715_vm5, %v3290_v37  ;;  %v4107_v33 = vpack.c.bf16 %v4096_v20, %v4095_v60 }
 0xb8e   : > { %4207 = vmatmul.bf16.gmra.mxu2 %v4107_v33 }
 0xb93   : > { %v3450_v25 = vpop.permute.xlu1 %3449 }
 0xb94   : > { %3455 = vst.msk [vmem:[#allocation3 + $0x50] sm:$0xff] %vm1879_vm7, %v3450_v25  ;;  %v7563_v25 = vld [vmem:[#allocation2 + $0x40] sm:$0xff] }
 0xb9b   : > { %v3605_v42 = vpop.permute.xlu1 %3604  ;;  %v4097_v57 = vld [vmem:[#allocation3 + $0x50] sm:$0xff] }
 0xb9c   : > { %3609 = vst.msk [vmem:[#allocation3 + $0x68] sm:$0xff] %vm1715_vm5, %v3605_v42 }
 0xb9d   : > { %v3991_v0 = vpop.f32.mrf.mxu3 }
 0xb9e   : > { %3998 = vrot.lane.b32.xlu2 %v3991_v0, %s7998_s9 }
 0xba0   : > { %v3371_v36 = vpop.permute.xlu0 %3370  ;;  %v3684_v18 = vpop.permute.xlu2 %3683 }
 0xba1   : > { %3375 = vst.msk [vmem:[#allocation3 + $0x58] sm:$0xff] %vm1797_vm6, %v3371_v36 }
 0xba2   : > { %3456 = vst.msk [vmem:[#allocation3 + $0x58] sm:$0xff] %vm1879_vm7, %v3452_v38 }
 0xba5   : > { %v3993_v47 = vpop.f32.mrf.mxu3 }
 0xba6   : > { %4000 = vrot.lane.b32.xlu0 %v3993_v47, %s7998_s9 }
 0xba8   : > { %v3603_v46 = vpop.permute.xlu0 %3602 }
 0xba9   : > { %3608 = vst.msk [vmem:[#allocation3 + $0x60] sm:$0xff] %vm1715_vm5, %v3603_v46  ;;  %v4098_v62 = vld [vmem:[#allocation3 + $0x58] sm:$0xff] }
 0xbaa   : > { %3689 = vst.msk [vmem:[#allocation3 + $0x60] sm:$0xff] %vm1797_vm6, %v3684_v18  ;;  %v4108_v40 = vpack.c.bf16 %v4098_v62, %v4097_v57  ;;  %v7564_v18 = vld [vmem:[#allocation2 + $0x20] sm:$0xff] }
 0xbac   : > { %4212 = vmatmul.bf16.vlgmr.msra.gmra.mxu3 %v4108_v40 }
 0xbbf   : > { %v3767_v1 = vpop.permute.xlu2 %3766 }
 0xbc0   : > { %v3686_v43 = vpop.permute.xlu0 %3685 }
 0xbc1   : > { %3690 = vst.msk [vmem:[#allocation3 + $0x68] sm:$0xff] %vm1797_vm6, %v3686_v43 }
 0xbc2   : > { %3771 = vst.msk [vmem:[#allocation3 + $0x68] sm:$0xff] %vm1879_vm7, %v3767_v1 }
 0xbc4   : > { %v4072_v17 = vpop.f32.mrf.mxu1 }
 0xbc5   : > { %4079 = vrot.lane.b32.xlu1 %v4072_v17, %s7997_s27 }
 0xbc9   : > { %v4100_v14 = vld [vmem:[#allocation3 + $0x68] sm:$0xff] }
 0xbcc   : > { %v4074_v22 = vpop.f32.mrf.mxu1 }
 0xbcd   : > { %4081 = vrot.lane.b32.xlu2 %v4074_v22, %s7997_s27 }
 0xbcf   : > { %v3765_v51 = vpop.permute.xlu1 %3764 }
 0xbd0   : > { %3770 = vst.msk [vmem:[#allocation3 + $0x60] sm:$0xff] %vm1879_vm7, %v3765_v51  ;;  %4246 = vadd.xlane.f32.xlu0 %v10410_v35 }
 0xbd7   : > { %v4099_v27 = vld [vmem:[#allocation3 + $0x60] sm:$0xff] }
 0xbd8   : > { %4312 = vadd.xlane.f32.xlu0 %v4295_v15  ;;  %v4109_v6 = vpack.c.bf16 %v4100_v14, %v4099_v27 }
 0xbda   : > { %4217 = vmatmul.bf16.gmra.mxu3 %v4109_v6  ;;  %v6739_v6 = vld [vmem:[%s8345_s28 + $0xe0] sm:$0xf] }
 0xbdc   : > { %v4193_v11 = vpop.f32.mrf.mxu0 }
 0xbdd   : > { %v4194_v26 = vadd.f32 %v10406_v3, %v4193_v11  ;;  %v6985_v11 = vld [vmem:[%s8345_s28 + $0xec] sm:$0xf0] }
 0xbdf   : > { %v10420_v29 = vadd.f32 %v7557_v30, %v4194_v26  ;;  %v3918_v28 = vpop.permute.xlu0 %3917  ;;  %v6983_v26 = vld [vmem:[%s8345_s28 + $0xe4] sm:$0xf]  ;;  %v6740_v30 = vor.u32 %v6985_v11, %v6739_v6 }
 0xbe0   : > { %3923 = vst.msk [vmem:[#allocation3 + $0x70] sm:$0xff] %vm1715_vm5, %v3918_v28  ;;  %v6741_v28 = vld [vmem:[%s8345_s28 + $0xf0] sm:$0xf0]  ;;  %v6967_v6 = vld [vmem:[%s8345_s28 + $0x64] sm:$0xf] }
 0xbe1   : > { %v4296_v41 = vmul.f32 %v10420_v29, %v10420_v29  ;;  %4836 = vmatpush.bf16.msrb.mxu3 %v6740_v30  ;;  %v6683_v30 = vld [vmem:[%s8345_s28 + $0x68] sm:$0xf] }
 0xbe3   : > { %4314 = vadd.xlane.f32.xlu0 %v4296_v41  ;;  %v6747_v41 = vld [vmem:[%s8345_s28 + $0xe8] sm:$0xf] }
 0xbe4   : > { %v4195_v13 = vpop.f32.mrf.mxu0 }
 0xbe5   : > { %v4196_v4 = vadd.f32 %v10406_v3, %v4195_v13 }
 0xbe7   : > { %v3920_v52 = vpop.permute.xlu1 %3919  ;;  %v10431_v32 = vadd.f32 %v7558_v50, %v4196_v4  ;;  %v6749_v4 = vld [vmem:[%s8345_s28 + $0xf8] sm:$0xf0]  ;;  %v6723_v50 = vld [vmem:[%s8345_s28 + $0xc0] sm:$0xf] }
 0xbe8   : > { %3924 = vst.msk [vmem:[#allocation3 + $0x78] sm:$0xff] %vm1715_vm5, %v3920_v52  ;;  %v6986_v52 = vld [vmem:[%s8345_s28 + $0xf4] sm:$0xf0] }
 0xbe9   : > { %v4297_v8 = vmul.f32 %v10431_v32, %v10431_v32  ;;  %v6748_v13 = vor.u32 %v6986_v52, %v6747_v41 }
 0xbeb   : > { %4934 = vmatpush.bf16.msra.mxu1 %v6748_v13  ;;  %v6968_v13 = vld [vmem:[%s8345_s28 + $0x6c] sm:$0xf] }
 0xbef   : > { %4248 = vadd.xlane.f32.xlu1 %v10415_v63 }
 0xbf1   : > { %v4198_v23 = vpop.f32.mrf.mxu2 }
 0xbf2   : > { %v4199_v55 = vadd.f32 %v10406_v3, %v4198_v23  ;;  %v6744_v23 = vor.u32 %v6983_v26, %v6741_v28  ;;  %v6677_v26 = vld [vmem:[%s8345_s28 + $0x70] sm:$0xf0]  ;;  %v6970_v28 = vld [vmem:[%s8345_s28 + $0x74] sm:$0xf0] }
 0xbf3   : > { %v6680_v52 = vor.u32 %v6967_v6, %v6677_v26  ;;  %v6955_v6 = vld [vmem:[%s8345_s28 + $0x4] sm:$0xf] }
 0xbf4   : > { %v10442_v59 = vadd.f32 %v7560_v31, %v4199_v55  ;;  %4885 = vmatpush.bf16.msra.mxu0 %v6744_v23  ;;  %v6725_v55 = vld [vmem:[%s8345_s28 + $0xd0] sm:$0xf0]  ;;  %v6982_v31 = vld [vmem:[%s8345_s28 + $0xd4] sm:$0xf0]  ;;  %v6684_v23 = vor.u32 %v6970_v28, %v6683_v30 }
 0xbf5   : > { %v6629_v28 = vld [vmem:[%s8345_s28 + $0x10] sm:$0xf0] }
 0xbf6   : > { %4310 = vadd.xlane.f32.xlu2 %v4294_v5  ;;  %v4298_v16 = vmul.f32 %v10442_v59, %v10442_v59  ;;  %v6984_v5 = vld [vmem:[%s8345_s28 + $0xec] sm:$0xf] }
 0xbf7   : > { %4250 = vadd.xlane.f32.xlu1 %v10420_v29 }
 0xbf8   : > { %v3999_v24 = vpop.permute.xlu2 %3998 }
 0xbf9   : > { %4004 = vst.msk [vmem:[#allocation3 + $0x70] sm:$0xff] %vm1797_vm6, %v3999_v24  ;;  %v4200_v34 = vpop.f32.mrf.mxu2  ;;  %v6752_v24 = vor.u32 %v6984_v5, %v6749_v4  ;;  %v6685_v5 = vld [vmem:[%s8345_s28 + $0x78] sm:$0xf0] }
 0xbfa   : > { %v4201_v12 = vadd.f32 %v10406_v3, %v4200_v34  ;;  %v6981_v34 = vld [vmem:[%s8345_s28 + $0xcc] sm:$0xf0] }
 0xbfb   : > { %4983 = vmatpush.bf16.msrb.mxu2 %v6752_v24  ;;  %v6688_v24 = vor.u32 %v6968_v13, %v6685_v5 }
 0xbfc   : > { %v10435_v56 = vadd.f32 %v7559_v39, %v4201_v12  ;;  %v6979_v12 = vld [vmem:[%s8345_s28 + $0xc4] sm:$0xf]  ;;  %v6724_v39 = vor.u32 %v6981_v34, %v6723_v50  ;;  %v6659_v50 = vld [vmem:[%s8345_s28 + $0x40] sm:$0xf]  ;;  %v6965_v34 = vld [vmem:[%s8345_s28 + $0x4c] sm:$0xf0] }
 0xbfe   : > { %4252 = vadd.xlane.f32.xlu2 %v10431_v32  ;;  %4256 = vadd.xlane.f32.xlu0 %v10435_v56  ;;  %v4299_v37 = vmul.f32 %v10435_v56, %v10435_v56 }
 0xbff   : > { %4316 = vadd.xlane.f32.xlu1 %v4297_v8  ;;  %v6731_v8 = vld [vmem:[%s8345_s28 + $0xc8] sm:$0xf]  ;;  %4837 = vmatpush.bf16.msrb.mxu3 %v6724_v39  ;;  %v7567_v39 = vld [vmem:[#allocation2 + $0x60] sm:$0xff] }
 0xc01   : > { %v4203_v54 = vpop.f32.mrf.mxu2 }
 0xc02   : > { %v4204_v10 = vadd.f32 %v10406_v3, %v4203_v54  ;;  %v6728_v54 = vor.u32 %v6979_v12, %v6725_v55  ;;  %v6963_v12 = vld [vmem:[%s8345_s28 + $0x44] sm:$0xf] }
 0xc04   : > { %v10445_v44 = vadd.f32 %v7561_v7, %v4204_v10  ;;  %v6732_v10 = vor.u32 %v6982_v31, %v6731_v8  ;;  %v6980_v7 = vld [vmem:[%s8345_s28 + $0xcc] sm:$0xf]  ;;  %4886 = vmatpush.bf16.msra.mxu0 %v6728_v54  ;;  %v6660_v8 = vor.u32 %v6965_v34, %v6659_v50  ;;  %v6661_v31 = vld [vmem:[%s8345_s28 + $0x50] sm:$0xf0]  ;;  %v6667_v54 = vld [vmem:[%s8345_s28 + $0x48] sm:$0xf] }
 0xc05   : > { %v6956_v34 = vld [vmem:[%s8345_s28 + $0xc] sm:$0xf] }
 0xc06   : > { %4254 = vadd.xlane.f32.xlu2 %v10442_v59  ;;  %4258 = vadd.xlane.f32.xlu0 %v10445_v44  ;;  %v4300_v0 = vmul.f32 %v10445_v44, %v10445_v44 }
 0xc07   : > { %4318 = vadd.xlane.f32.xlu1 %v4298_v16  ;;  %v6733_v16 = vld [vmem:[%s8345_s28 + $0xd8] sm:$0xf0]  ;;  %4935 = vmatpush.bf16.msra.mxu1 %v6732_v10  ;;  %v6966_v10 = vld [vmem:[%s8345_s28 + $0x54] sm:$0xf0] }
 0xc09   : > { %v4205_v48 = vpop.f32.mrf.mxu2 }
 0xc0a   : > { %v4206_v61 = vadd.f32 %v10406_v3, %v4205_v48  ;;  %v6736_v48 = vor.u32 %v6980_v7, %v6733_v16  ;;  %v6664_v16 = vor.u32 %v6963_v12, %v6661_v31  ;;  %v6637_v12 = vld [vmem:[%s8345_s28 + $0x18] sm:$0xf0] }
 0xc0c   : > { %v10452_v19 = vadd.f32 %v7562_v45, %v4206_v61  ;;  %v6707_v61 = vld [vmem:[%s8345_s28 + $0xa0] sm:$0xf]  ;;  %v6977_v45 = vld [vmem:[%s8345_s28 + $0xac] sm:$0xf0]  ;;  %4984 = vmatpush.bf16.msrb.mxu2 %v6736_v48  ;;  %v6668_v48 = vor.u32 %v6966_v10, %v6667_v54  ;;  %v6640_v54 = vor.u32 %v6956_v34, %v6637_v12 }
 0xc0e   : > { %4320 = vadd.xlane.f32.xlu2 %v4299_v37  ;;  %v4301_v60 = vmul.f32 %v10452_v19, %v10452_v19  ;;  %v6975_v37 = vld [vmem:[%s8345_s28 + $0xa4] sm:$0xf] }
 0xc0f   : > { %4260 = vadd.xlane.f32.xlu1 %v10452_v19 }
 0xc10   : > { %4324 = vadd.xlane.f32.xlu0 %v4301_v60  ;;  %v6708_v60 = vor.u32 %v6977_v45, %v6707_v61  ;;  %v6964_v61 = vld [vmem:[%s8345_s28 + $0x4c] sm:$0xf]  ;;  %v6669_v45 = vld [vmem:[%s8345_s28 + $0x58] sm:$0xf0] }
 0xc11   : > { %v4208_v20 = vpop.f32.mrf.mxu2 }
 0xc12   : > { %v4209_v33 = vadd.f32 %v10406_v3, %v4208_v20  ;;  %v6709_v20 = vld [vmem:[%s8345_s28 + $0xb0] sm:$0xf0]  ;;  %4838 = vmatpush.bf16.msrb.mxu3 %v6708_v60 }
 0xc14   : > { %v10460_v42 = vadd.f32 %v7563_v25, %v4209_v33  ;;  %v6715_v33 = vld [vmem:[%s8345_s28 + $0xa8] sm:$0xf]  ;;  %v6978_v25 = vld [vmem:[%s8345_s28 + $0xb4] sm:$0xf0] }
 0xc16   : > { %4322 = vadd.xlane.f32.xlu2 %v4300_v0  ;;  %v4302_v36 = vmul.f32 %v10460_v42, %v10460_v42  ;;  %v6712_v0 = vor.u32 %v6975_v37, %v6709_v20  ;;  %v6672_v20 = vor.u32 %v6964_v61, %v6669_v45 }
 0xc17   : > { %4262 = vadd.xlane.f32.xlu1 %v10460_v42 }
 0xc18   : > { %4326 = vadd.xlane.f32.xlu0 %v4302_v36  ;;  %v4001_v38 = vpop.permute.xlu0 %4000  ;;  %v6716_v36 = vor.u32 %v6978_v25, %v6715_v33  ;;  %4887 = vmatpush.bf16.msra.mxu0 %v6712_v0  ;;  %v11601_v33 = vld [vmem:[#allocation38_spill] sm:$0xff] }
 0xc19   : > { %4005 = vst.msk [vmem:[#allocation3 + $0x78] sm:$0xff] %vm1797_vm6, %v4001_v38  ;;  %v4210_v47 = vpop.f32.mrf.mxu2  ;;  %v6976_v38 = vld [vmem:[%s8345_s28 + $0xac] sm:$0xf]  ;;  %v6643_v0 = vld [vmem:[%s8345_s28 + $0x20] sm:$0xf] }
 0xc1a   : > { %v4211_v46 = vadd.f32 %v10406_v3, %v4210_v47  ;;  %v6717_v47 = vld [vmem:[%s8345_s28 + $0xb8] sm:$0xf0]  ;;  %4936 = vmatpush.bf16.msra.mxu1 %v6716_v36  ;;  %v6961_v36 = vld [vmem:[%s8345_s28 + $0x2c] sm:$0xf0] }
 0xc1c   : > { %v10469_v57 = vadd.f32 %v7564_v18, %v4211_v46  ;;  %v6720_v46 = vor.u32 %v6976_v38, %v6717_v47  ;;  %v6959_v38 = vld [vmem:[%s8345_s28 + $0x24] sm:$0xf] }
 0xc1e   : > { %4264 = vadd.xlane.f32.xlu2 %v10469_v57  ;;  %v4303_v62 = vmul.f32 %v10469_v57, %v10469_v57  ;;  %4985 = vmatpush.bf16.msrb.mxu2 %v6720_v46  ;;  %v6644_v46 = vor.u32 %v6961_v36, %v6643_v0 }
 0xc20   : > { %4328 = vadd.xlane.f32.xlu1 %v4303_v62  ;;  %v6691_v62 = vld [vmem:[%s8345_s28 + $0x80] sm:$0xf] }
 0xc27   : > { %v4082_v40 = vpop.permute.xlu2 %4081 }
 0xc28   : > { %4086 = vst.msk [vmem:[#allocation3 + $0x78] sm:$0xff] %vm1879_vm7, %v4082_v40  ;;  %v6973_v40 = vld [vmem:[%s8345_s28 + $0x8c] sm:$0xf0] }
 0xc2f   : > { %v4213_v1 = vpop.f32.mrf.mxu3  ;;  %v4102_v27 = vld [vmem:[#allocation3 + $0x78] sm:$0xff] }
 0xc30   : > { %v4214_v43 = vadd.f32 %v10406_v3, %v4213_v1  ;;  %v6971_v1 = vld [vmem:[%s8345_s28 + $0x84] sm:$0xf] }
 0xc32   : > { %v10476_v17 = vadd.f32 %v7565_v58, %v4214_v43  ;;  %v6692_v43 = vor.u32 %v6973_v40, %v6691_v62  ;;  %v6693_v58 = vld [vmem:[%s8345_s28 + $0x90] sm:$0xf0]  ;;  %v6651_v40 = vld [vmem:[%s8345_s28 + $0x28] sm:$0xf] }
 0xc33   : > { %v6645_v62 = vld [vmem:[%s8345_s28 + $0x30] sm:$0xf0] }
 0xc34   : > { %4266 = vadd.xlane.f32.xlu2 %v10476_v17  ;;  %v4304_v2 = vmul.f32 %v10476_v17, %v10476_v17  ;;  %4839 = vmatpush.bf16.msrb.mxu3 %v6692_v43 }
 0xc36   : > { %4330 = vadd.xlane.f32.xlu1 %v4304_v2  ;;  %v6699_v2 = vld [vmem:[%s8345_s28 + $0x88] sm:$0xf] }
 0xc37   : > { %v4215_v9 = vpop.f32.mrf.mxu3  ;;  %v4080_v22 = vpop.permute.xlu1 %4079 }
 0xc38   : > { %v4216_v49 = vadd.f32 %v10406_v3, %v4215_v9  ;;  %4085 = vst.msk [vmem:[#allocation3 + $0x70] sm:$0xff] %vm1879_vm7, %v4080_v22  ;;  %v6974_v9 = vld [vmem:[%s8345_s28 + $0x94] sm:$0xf0]  ;;  %v6696_v22 = vor.u32 %v6971_v1, %v6693_v58 }
 0xc39   : > { %v6962_v1 = vld [vmem:[%s8345_s28 + $0x34] sm:$0xf0] }
 0xc3a   : > { %v10483_v51 = vadd.f32 %v7566_v21, %v4216_v49  ;;  %v6700_v49 = vor.u32 %v6974_v9, %v6699_v2  ;;  %v6972_v21 = vld [vmem:[%s8345_s28 + $0x8c] sm:$0xf]  ;;  %4888 = vmatpush.bf16.msra.mxu0 %v6696_v22  ;;  %v6648_v9 = vor.u32 %v6959_v38, %v6645_v62  ;;  %v6652_v22 = vor.u32 %v6962_v1, %v6651_v40 }
 0xc3c   : > { %4268 = vadd.xlane.f32.xlu0 %v10483_v51  ;;  %v4305_v53 = vmul.f32 %v10483_v51, %v10483_v51  ;;  %4937 = vmatpush.bf16.msra.mxu1 %v6700_v49  ;;  %v6653_v49 = vld [vmem:[%s8345_s28 + $0x38] sm:$0xf0] }
 0xc3e   : > { %4332 = vadd.xlane.f32.xlu2 %v4305_v53  ;;  %v6701_v53 = vld [vmem:[%s8345_s28 + $0x98] sm:$0xf0]  ;;  %4889 = vmatpush.bf16.msra.mxu0 %v6680_v52  ;;  %v6958_v52 = vld [vmem:[%s8345_s28 + $0x14] sm:$0xf0] }
 0xc3f   : > { %v4101_v15 = vld [vmem:[#allocation3 + $0x70] sm:$0xff] }
 0xc40   : > { %v4110_v14 = vpack.c.bf16 %v4102_v27, %v4101_v15  ;;  %v6704_v15 = vor.u32 %v6972_v21, %v6701_v53  ;;  %v6675_v27 = vld [vmem:[%s8345_s28 + $0x60] sm:$0xf]  ;;  %4938 = vmatpush.bf16.msra.mxu1 %v6684_v23 }
 0xc42   : > { %4222 = vmatmul.bf16.gmra.mxu3 %v4110_v14  ;;  %v6969_v14 = vld [vmem:[%s8345_s28 + $0x6c] sm:$0xf0]  ;;  %4986 = vmatpush.bf16.msrb.mxu2 %v6704_v15 }
 0xc43   : > { %v10512_v18 = vpop.xlane.xlu0 %4246  ;;  %v6676_v11 = vor.u32 %v6969_v14, %v6675_v27  ;;  %4890 = vmatpush.bf16.msra.mxu0 %v6664_v16  ;;  %v6627_v27 = vld [vmem:[%s8345_s28] sm:$0xf]  ;;  %v6957_v14 = vld [vmem:[%s8345_s28 + $0xc] sm:$0xf0] }
 0xc44   : > { %4939 = vmatpush.bf16.msra.mxu1 %v6668_v48  ;;  %v10552_v47 = vmul.f32 %v10512_v18, %v11601_v33  ;;  %v6960_v18 = vld [vmem:[%s8345_s28 + $0x2c] sm:$0xf]  ;;  %v6628_v30 = vor.u32 %v6957_v14, %v6627_v27 }
 0xc45   : > { %4840 = vmatpush.bf16.msrb.mxu3 %v6676_v11  ;;  %v6656_v53 = vor.u32 %v6960_v18, %v6653_v49  ;;  %v7568_v11 = vld [vmem:[#allocation2 + $0x70] sm:$0xff] }
 0xc46   : > { %4987 = vmatpush.bf16.msrb.mxu2 %v6688_v24  ;;  %v4358_v23 = vmul.f32 %v10552_v47, %v10552_v47  ;;  %v6632_v24 = vor.u32 %v6955_v6, %v6629_v28 }
 0xc47   : > { %4891 = vmatpush.bf16.msra.mxu0 %v6648_v9 }
 0xc48   : > { %4940 = vmatpush.bf16.msra.mxu1 %v6652_v22 }
 0xc49   : > { %4841 = vmatpush.bf16.msrb.mxu3 %v6660_v8 }
 0xc4a   : > { %4988 = vmatpush.bf16.msrb.mxu2 %v6672_v20 }
 0xc4b   : > { %v4313_v7 = vpop.xlane.xlu0 %4312  ;;  %4892 = vmatpush.bf16.msra.mxu0 %v6632_v24 }
 0xc4c   : > { %v4343_v43 = vmul.f32 %v4313_v7, %v11601_v33 }
 0xc4d   : > { %4842 = vmatpush.bf16.msrb.mxu3 %v6644_v46 }
 0xc4e   : > { %4989 = vmatpush.bf16.msrb.mxu2 %v6656_v53 }
 0xc51   : > { %4843 = vmatpush.bf16.msrb.mxu3 %v6628_v30 }
 0xc52   : > { %4990 = vmatpush.bf16.msrb.mxu2 %v6640_v54 }
 0xc56   : > { %v4315_v13 = vpop.xlane.xlu0 %4314 }
 0xc57   : > { %v4344_v16 = vmul.f32 %v4315_v13, %v11601_v33  ;;  %v10610_v13 = vld [vmem:[%s671_s13] ss:$0 sm:$0xff] }
 0xc5d   : > { %v4218_v41 = vpop.f32.mrf.mxu3 }
 0xc5e   : > { %v4219_v4 = vadd.f32 %v10406_v3, %v4218_v41  ;;  %v6635_v41 = vld [vmem:[%s8345_s28 + $0x8] sm:$0xf] }
 0xc5f   : > { %v6636_v50 = vor.u32 %v6958_v52, %v6635_v41 }
 0xc60   : > { %v10534_v55 = vadd.f32 %v7567_v39, %v4219_v4 }
 0xc61   : > { %4941 = vmatpush.bf16.msra.mxu1 %v6636_v50 }
 0xc62   : > { %v4249_v37 = vpop.xlane.xlu1 %4248  ;;  %4270 = vadd.xlane.f32.xlu0 %v10534_v55  ;;  %v4306_v60 = vmul.f32 %v10534_v55, %v10534_v55 }
 0xc63   : > { %v10545_v25 = vmul.f32 %v4249_v37, %v11601_v33 }
 0xc64   : > { %4334 = vadd.xlane.f32.xlu2 %v4306_v60 }
 0xc65   : > { %v4359_v58 = vmul.f32 %v10545_v25, %v10545_v25  ;;  %v4220_v2 = vpop.f32.mrf.mxu3  ;;  %v4391_v6 = vsub.f32 %v10415_v63, %v10545_v25 }
 0xc66   : > { %v4221_v21 = vadd.f32 %v10406_v3, %v4220_v2 }
 0xc67   : > { %v4375_v15 = vsub.f32 %v4343_v43, %v4359_v58 }
 0xc68   : > { %v10566_v26 = vadd.f32 %v7568_v11, %v4221_v21 }
 0xc69   : > { %v4407_v5 = vadd.f32 1e-05, %v4375_v15  ;;  %v4311_v4 = vpop.xlane.xlu2 %4310 }
 0xc6a   : > { %v4342_v39 = vmul.f32 %v4311_v4, %v11601_v33  ;;  %v4251_v8 = vpop.xlane.xlu1 %4250  ;;  %4272 = vadd.xlane.f32.xlu1 %v10566_v26  ;;  %v4307_v31 = vmul.f32 %v10566_v26, %v10566_v26 }
 0xc6b   : > { %7523 = vrsqrt.f32 %v4407_v5  ;;  %v10580_v10 = vmul.f32 %v4251_v8, %v11601_v33  ;;  %vm4438_vm9 = vweird.f32 %v4407_v5  ;;  %v4390_v8 = vsub.f32 %v10410_v35, %v10552_v47 }
 0xc6c   : > { %v4374_v7 = vsub.f32 %v4342_v39, %v4358_v23  ;;  %4336 = vadd.xlane.f32.xlu0 %v4307_v31 }
 0xc6d   : > { %v4360_v48 = vmul.f32 %v10580_v10, %v10580_v10 }
 0xc6e   : > { %v4406_v61 = vadd.f32 1e-05, %v4374_v7 }
 0xc6f   : > { %v4376_v45 = vsub.f32 %v4344_v16, %v4360_v48  ;;  %v10626_v48 = vld [vmem:[%s787_s25] ss:$0 sm:$0xff] }
 0xc70   : > { %7525 = vrsqrt.f32 %v4406_v61  ;;  %vm4428_vm12 = vweird.f32 %v4406_v61 }
 0xc71   : > { %v7524_v37 = vpop.eup %7523  ;;  %v10585_v60 = vadd.f32 1e-05, %v4376_v45  ;;  %v4253_v20 = vpop.xlane.xlu2 %4252 }
 0xc72   : > { %v4257_v0 = vpop.xlane.xlu0 %4256  ;;  %v4433_v36 = vmul.f32 %v7524_v37, %v4407_v5  ;;  %v10588_v38 = vmul.f32 %v4253_v20, %v11601_v33  ;;  %v4317_v46 = vpop.xlane.xlu1 %4316  ;;  %vm4439_vm8 = vweird.f32 %v7524_v37 }
 0xc73   : > { %7527 = vrsqrt.f32 %v10585_v60  ;;  %v4345_v62 = vmul.f32 %v4317_v46, %v11601_v33  ;;  %vm4440_vm10 = vmor %vm4438_vm9, %vm4439_vm8  ;;  %v10615_v34 = vmul.f32 %v4257_v0, %v11601_v33  ;;  %vm4448_vm0 = vweird.f32 %v10585_v60 }
 0xc74   : > { %v4434_v40 = vmul.f32 %v7524_v37, %v4433_v36  ;;  %v4361_v1 = vmul.f32 %v10588_v38, %v10588_v38 }
 0xc75   : > { %v4363_v0 = vmul.f32 %v10615_v34, %v10615_v34 }
 0xc76   : > { %v7526_v43 = vpop.eup %7525  ;;  %v4435_v58 = vmul.f32 0.5, %v4434_v40  ;;  %v4377_v2 = vsub.f32 %v4345_v62, %v4361_v1 }
 0xc77   : > { %v4423_v9 = vmul.f32 %v7526_v43, %v4406_v61  ;;  %vm4429_vm11 = vweird.f32 %v7526_v43 }
 0xc78   : > { %v4436_v22 = vsub.f32 1.5, %v4435_v58  ;;  %v10594_v18 = vadd.f32 1e-05, %v4377_v2  ;;  %vm4430_vm13 = vmor %vm4428_vm12, %vm4429_vm11 }
 0xc79   : > { %v10596_v49 = vpop.eup %7527  ;;  %v4424_v21 = vmul.f32 %v7526_v43, %v4423_v9  ;;  %v4255_v53 = vpop.xlane.xlu2 %4254 }
 0xc7a   : > { %v4437_v15 = vmul.f32 %v7524_v37, %v4436_v22  ;;  %v4443_v27 = vmul.f32 %v10596_v49, %v10585_v60  ;;  %7529 = vrsqrt.f32 %v10594_v18  ;;  %v4319_v14 = vpop.xlane.xlu1 %4318  ;;  %v10604_v30 = vmul.f32 %v4255_v53, %v11601_v33  ;;  %v4259_v28 = vpop.xlane.xlu0 %4258 }
 0xc7b   : > { %v4425_v11 = vmul.f32 0.5, %v4424_v21  ;;  %v4346_v23 = vmul.f32 %v4319_v14, %v11601_v33  ;;  %vm4449_vm14 = vweird.f32 %v10596_v49  ;;  %vm4458_vm2 = vweird.f32 %v10594_v18 }
 0xc7c   : > { %v4441_v41 = vsel %vm4440_vm10, %v7524_v37, %v4437_v15  ;;  %v4444_v52 = vmul.f32 %v10596_v49, %v4443_v27  ;;  %v4362_v25 = vmul.f32 %v10604_v30, %v10604_v30  ;;  %vm10653_vm1 = vmor %vm4448_vm0, %vm4449_vm14 }
 0xc7d   : > { %v4583_v5 = vmul.f32 %v4441_v41, %v4391_v6  ;;  %v4426_v4 = vsub.f32 1.5, %v4425_v11 }
 0xc7e   : > { %v4445_v24 = vmul.f32 0.5, %v4444_v52  ;;  %v4378_v12 = vsub.f32 %v4346_v23, %v4362_v25 }
 0xc7f   : > { %v4427_v50 = vmul.f32 %v7526_v43, %v4426_v4  ;;  %v4602_v31 = vmul.f32 %v10610_v13, %v4583_v5 }
 0xc80   : > { %v7530_v39 = vpop.eup %7529  ;;  %v4446_v45 = vsub.f32 1.5, %v4445_v24  ;;  %v10628_v37 = vadd.f32 1e-05, %v4378_v12 }
 0xc81   : > { %v4431_v54 = vsel %vm4430_vm13, %v7526_v43, %v4427_v50  ;;  %v4453_v7 = vmul.f32 %v7530_v39, %v10594_v18  ;;  %v4321_v16 = vpop.xlane.xlu2 %4320  ;;  %v10640_v43 = vmul.f32 %v4259_v28, %v11601_v33  ;;  %v4621_v9 = vadd.f32 %v10626_v48, %v4602_v31 }
 0xc82   : > { %v4582_v61 = vmul.f32 %v4431_v54, %v4390_v8  ;;  %v4347_v20 = vmul.f32 %v4321_v16, %v11601_v33  ;;  %v4261_v47 = vpop.xlane.xlu1 %4260  ;;  %7531 = vrsqrt.f32 %v10628_v37  ;;  %v4447_v22 = vmul.f32 %v10596_v49, %v4446_v45 }
 0xc83   : > { %v4454_v36 = vmul.f32 %v7530_v39, %v4453_v7  ;;  %v10634_v46 = vmul.f32 %v4261_v47, %v11601_v33  ;;  %v4325_v62 = vpop.xlane.xlu0 %4324  ;;  %vm4459_vm15 = vweird.f32 %v7530_v39  ;;  %v4393_v28 = vsub.f32 %v10431_v32, %v10588_v38 }
 0xc84   : > { %v4601_v40 = vmul.f32 %v10610_v13, %v4582_v61  ;;  %v4379_v58 = vsub.f32 %v4347_v20, %v4363_v0  ;;  %v4349_v21 = vmul.f32 %v4325_v62, %v11601_v33  ;;  %v4451_v60 = vsel %vm10653_vm1, %v10596_v49, %v4447_v22  ;;  %vm4460_vm3 = vmor %vm4458_vm2, %vm4459_vm15 }
 0xc85   : > { %v4455_v1 = vmul.f32 0.5, %v4454_v36  ;;  %v4365_v2 = vmul.f32 %v10634_v46, %v10634_v46  ;;  %v4364_v5 = vmul.f32 %v10640_v43, %v10640_v43  ;;  %v4392_v18 = vsub.f32 %v10420_v29, %v10580_v10 }
 0xc86   : > { %v4620_v53 = vadd.f32 %v10626_v48, %v4601_v40  ;;  %v10648_v27 = vadd.f32 1e-05, %v4379_v58  ;;  %vm4468_vm7 = vweird.f32 %v10628_v37 }
 0xc87   : > { %v4456_v15 = vsub.f32 1.5, %v4455_v1  ;;  %v4381_v14 = vsub.f32 %v4349_v21, %v4365_v2  ;;  %v4584_v8 = vmul.f32 %v4451_v60, %v4392_v18 }
 0xc88   : > { %v4636_v6 = vpack.c.bf16 %v4621_v9, %v4620_v53  ;;  %7533 = vrsqrt.f32 %v10648_v27  ;;  %v10661_v23 = vpop.eup %7531  ;;  %vm4478_vm6 = vweird.f32 %v10648_v27 }
 0xc89   : > { %v4457_v41 = vmul.f32 %v7530_v39, %v4456_v15  ;;  %v4323_v52 = vpop.xlane.xlu2 %4322  ;;  %v10668_v4 = vadd.f32 1e-05, %v4381_v14  ;;  %v4463_v50 = vmul.f32 %v10661_v23, %v10628_v37  ;;  %v4603_v20 = vmul.f32 %v10610_v13, %v4584_v8 }
 0xc8a   : > { %v4348_v38 = vmul.f32 %v4323_v52, %v11601_v33  ;;  %v4263_v25 = vpop.xlane.xlu1 %4262  ;;  %4844 = vmatmul.bf16.vlgmr.msrb.gmra.mxu3 %v4636_v6  ;;  %4893 = vmatmul.bf16.vlgmr.msra.gmra.mxu0 %v4636_v6  ;;  %vm4469_vm4 = vweird.f32 %v10661_v23 }
 0xc8b   : > { %v4461_v24 = vsel %vm4460_vm3, %v7530_v39, %v4457_v41  ;;  %4942 = vmatmul.bf16.vlgmr.msra.gmra.mxu1 %v4636_v6  ;;  %4991 = vmatmul.bf16.vlgmr.msrb.gmra.mxu2 %v4636_v6  ;;  %v4464_v31 = vmul.f32 %v10661_v23, %v4463_v50  ;;  %7535 = vrsqrt.f32 %v10668_v4  ;;  %v10680_v7 = vmul.f32 %v4263_v25, %v11601_v33  ;;  %v4327_v39 = vpop.xlane.xlu0 %4326  ;;  %vm4470_vm9 = vmor %vm4468_vm7, %vm4469_vm4 }
 0xc8c   : > { %v4585_v49 = vmul.f32 %v4461_v24, %v4393_v28  ;;  %v4380_v12 = vsub.f32 %v4348_v38, %v4364_v5  ;;  %v4350_v62 = vmul.f32 %v4327_v39, %v11601_v33  ;;  %v4622_v53 = vadd.f32 %v10626_v48, %v4603_v20 }
 0xc8d   : > { %v4465_v10 = vmul.f32 0.5, %v4464_v31  ;;  %v4366_v36 = vmul.f32 %v10680_v7, %v10680_v7  ;;  %v4395_v24 = vsub.f32 %v10435_v56, %v10615_v34  ;;  %vm4498_vm14 = vweird.f32 %v10668_v4 }
 0xc8e   : > { %v10677_v54 = vadd.f32 1e-05, %v4380_v12  ;;  %v7534_v16 = vpop.eup %7533  ;;  %v4604_v45 = vmul.f32 %v10610_v13, %v4585_v49  ;;  %v4394_v12 = vsub.f32 %v10442_v59, %v10604_v30 }
 0xc8f   : > { %v4473_v61 = vmul.f32 %v7534_v16, %v10648_v27  ;;  %v4466_v1 = vsub.f32 1.5, %v4465_v10  ;;  %vm4479_vm5 = vweird.f32 %v7534_v16  ;;  %v4382_v11 = vsub.f32 %v4350_v62, %v4366_v36 }
 0xc90   : > { %7537 = vrsqrt.f32 %v10677_v54  ;;  %v4623_v21 = vadd.f32 %v10626_v48, %v4604_v45  ;;  %vm4480_vm8 = vmor %vm4478_vm6, %vm4479_vm5  ;;  %vm4488_vm12 = vweird.f32 %v10677_v54 }
 0xc91   : > { %v4265_v47 = vpop.xlane.xlu2 %4264  ;;  %v4474_v0 = vmul.f32 %v7534_v16, %v4473_v61  ;;  %v10692_v2 = vpop.eup %7535  ;;  %v4467_v28 = vmul.f32 %v10661_v23, %v4466_v1  ;;  %v10716_v49 = vadd.f32 1e-05, %v4382_v11 }
 0xc92   : > { %v10690_v40 = vmul.f32 %v4265_v47, %v11601_v33  ;;  %v4493_v41 = vmul.f32 %v10692_v2, %v10668_v4  ;;  %v4637_v38 = vpack.c.bf16 %v4623_v21, %v4622_v53  ;;  %vm4499_vm11 = vweird.f32 %v10692_v2 }
 0xc93   : > { %v4329_v58 = vpop.xlane.xlu1 %4328  ;;  %v4475_v9 = vmul.f32 0.5, %v4474_v0  ;;  %v4471_v27 = vsel %vm4470_vm9, %v10661_v23, %v4467_v28  ;;  %vm4500_vm15 = vmor %vm4498_vm14, %vm4499_vm11  ;;  %vm4508_vm4 = vweird.f32 %v10716_v49 }
 0xc94   : > { %v4367_v22 = vmul.f32 %v10690_v40, %v10690_v40  ;;  %v4351_v15 = vmul.f32 %v4329_v58, %v11601_v33  ;;  %v4494_v37 = vmul.f32 %v10692_v2, %v4493_v41  ;;  %v4586_v31 = vmul.f32 %v4471_v27, %v4394_v12 }
 0xc95   : > { %v4476_v6 = vsub.f32 1.5, %v4475_v9 }
 0xc96   : > { %v10699_v14 = vpop.eup %7537  ;;  %v4383_v60 = vsub.f32 %v4351_v15, %v4367_v22  ;;  %v4605_v23 = vmul.f32 %v10610_v13, %v4586_v31 }
 0xc97   : > { %v4483_v52 = vmul.f32 %v10699_v14, %v10677_v54  ;;  %v4477_v5 = vmul.f32 %v7534_v16, %v4476_v6  ;;  %vm4489_vm10 = vweird.f32 %v10699_v14  ;;  %v4396_v6 = vsub.f32 %v10445_v44, %v10640_v43 }
 0xc98   : > { %v10710_v18 = vadd.f32 1e-05, %v4383_v60  ;;  %v4624_v36 = vadd.f32 %v10626_v48, %v4605_v23  ;;  %vm10741_vm13 = vmor %vm4488_vm12, %vm4489_vm10 }
 0xc99   : > { %v4484_v25 = vmul.f32 %v10699_v14, %v4483_v52  ;;  %v4481_v50 = vsel %vm4480_vm8, %v7534_v16, %v4477_v5  ;;  %v4495_v16 = vmul.f32 0.5, %v4494_v37 }
 0xc9a   : > { %4849 = vmatmul.bf16.gmra.mxu3 %v4637_v38  ;;  %4898 = vmatmul.bf16.gmra.mxu0 %v4637_v38  ;;  %v4587_v8 = vmul.f32 %v4481_v50, %v4395_v24  ;;  %7539 = vrsqrt.f32 %v10710_v18  ;;  %vm4518_vm2 = vweird.f32 %v10710_v18 }
 0xc9b   : > { %4947 = vmatmul.bf16.gmra.mxu1 %v4637_v38  ;;  %4996 = vmatmul.bf16.gmra.mxu2 %v4637_v38  ;;  %v4485_v34 = vmul.f32 0.5, %v4484_v25  ;;  %7541 = vrsqrt.f32 %v10716_v49  ;;  %v4496_v45 = vsub.f32 1.5, %v4495_v16 }
 0xc9c   : > { %v4606_v10 = vmul.f32 %v10610_v13, %v4587_v8 }
 0xc9d   : > { %v4486_v39 = vsub.f32 1.5, %v4485_v34  ;;  %v4497_v62 = vmul.f32 %v10692_v2, %v4496_v45 }
 0xc9e   : > { %v4625_v30 = vadd.f32 %v10626_v48, %v4606_v10 }
 0xc9f   : > { %v4487_v47 = vmul.f32 %v10699_v14, %v4486_v39  ;;  %v4501_v41 = vsel %vm4500_vm15, %v10692_v2, %v4497_v62  ;;  %v4399_v62 = vsub.f32 %v10469_v57, %v10690_v40 }
 0xca0   : > { %v10725_v61 = vpop.eup %7539  ;;  %v4638_v21 = vpack.c.bf16 %v4625_v30, %v4624_v36 }
 0xca1   : > { %v10728_v20 = vpop.eup %7541  ;;  %v4513_v0 = vmul.f32 %v10725_v61, %v10710_v18  ;;  %v4491_v53 = vsel %vm10741_vm13, %v10699_v14, %v4487_v47  ;;  %v4397_v14 = vsub.f32 %v10452_v19, %v10634_v46  ;;  %vm4519_vm0 = vweird.f32 %v10725_v61 }
 0xca2   : > { %v4503_v1 = vmul.f32 %v10728_v20, %v10716_v49  ;;  %v4588_v52 = vmul.f32 %v4491_v53, %v4396_v6  ;;  %vm4509_vm1 = vweird.f32 %v10728_v20  ;;  %vm4520_vm3 = vmor %vm4518_vm2, %vm4519_vm0  ;;  %v4398_v18 = vsub.f32 %v10460_v42, %v10680_v7 }
 0xca3   : > { %v4514_v54 = vmul.f32 %v10725_v61, %v4513_v0  ;;  %v4589_v5 = vmul.f32 %v4501_v41, %v4397_v14  ;;  %vm4510_vm5 = vmor %vm4508_vm4, %vm4509_vm1 }
 0xca4   : > { %v4504_v4 = vmul.f32 %v10728_v20, %v4503_v1  ;;  %v4607_v50 = vmul.f32 %v10610_v13, %v4588_v52 }
 0xca5   : > { %v4515_v43 = vmul.f32 0.5, %v4514_v54  ;;  %v4608_v8 = vmul.f32 %v10610_v13, %v4589_v5 }
 0xca6   : > { %v4505_v25 = vmul.f32 0.5, %v4504_v4  ;;  %v4626_v16 = vadd.f32 %v10626_v48, %v4607_v50 }
 0xca7   : > { %v4267_v58 = vpop.xlane.xlu2 %4266  ;;  %v4516_v27 = vsub.f32 1.5, %v4515_v43  ;;  %v4627_v45 = vadd.f32 %v10626_v48, %v4608_v8 }
 0xca8   : > { %v10746_v22 = vmul.f32 %v4267_v58, %v11601_v33  ;;  %v4506_v34 = vsub.f32 1.5, %v4505_v25 }
 0xca9   : > { %v4331_v15 = vpop.xlane.xlu1 %4330  ;;  %v4517_v10 = vmul.f32 %v10725_v61, %v4516_v27  ;;  %v4639_v0 = vpack.c.bf16 %v4627_v45, %v4626_v16 }
 0xcaa   : > { %v4368_v11 = vmul.f32 %v10746_v22, %v10746_v22  ;;  %v4352_v28 = vmul.f32 %v4331_v15, %v11601_v33  ;;  %4854 = vmatmul.bf16.gmra.mxu3 %v4638_v21  ;;  %4903 = vmatmul.bf16.gmra.mxu0 %v4638_v21  ;;  %v4507_v30 = vmul.f32 %v10728_v20, %v4506_v34 }
 0xcab   : > { %4952 = vmatmul.bf16.gmra.mxu1 %v4638_v21  ;;  %5001 = vmatmul.bf16.gmra.mxu2 %v4638_v21  ;;  %v4521_v36 = vsel %vm4520_vm3, %v10725_v61, %v4517_v10  ;;  %v4400_v27 = vsub.f32 %v10476_v17, %v10746_v22 }
 0xcac   : > { %v4384_v60 = vsub.f32 %v4352_v28, %v4368_v11  ;;  %v4511_v1 = vsel %vm4510_vm5, %v10728_v20, %v4507_v30  ;;  %v4591_v9 = vmul.f32 %v4521_v36, %v4399_v62 }
 0xcad   : > { %v4590_v53 = vmul.f32 %v4511_v1, %v4398_v18 }
 0xcae   : > { %v10762_v38 = vadd.f32 1e-05, %v4384_v60  ;;  %v4610_v61 = vmul.f32 %v10610_v13, %v4591_v9  ;;  %v7569_v60 = vld [vmem:[#allocation2 + $0x78] sm:$0xff] }
 0xcaf   : > { %v4269_v24 = vpop.xlane.xlu0 %4268  ;;  %v4609_v40 = vmul.f32 %v10610_v13, %v4590_v53 }
 0xcb0   : > { %7543 = vrsqrt.f32 %v10762_v38  ;;  %v10766_v2 = vmul.f32 %v4269_v24, %v11601_v33  ;;  %v4629_v20 = vadd.f32 %v10626_v48, %v4610_v61  ;;  %vm4528_vm10 = vweird.f32 %v10762_v38 }
 0xcb1   : > { %v4333_v37 = vpop.xlane.xlu2 %4332  ;;  %v4628_v4 = vadd.f32 %v10626_v48, %v4609_v40 }
 0xcb2   : > { %v4369_v46 = vmul.f32 %v10766_v2, %v10766_v2  ;;  %v4353_v12 = vmul.f32 %v4333_v37, %v11601_v33  ;;  %v4401_v24 = vsub.f32 %v10483_v51, %v10766_v2  ;;  %v7571_v2 = vld [vmem:[#allocation2 + $0x28] sm:$0xff] }
 0xcb3   : > { %v4640_v5 = vpack.c.bf16 %v4629_v20, %v4628_v4 }
 0xcb4   : > { %v4385_v31 = vsub.f32 %v4353_v12, %v4369_v46  ;;  %v7570_v12 = vld [vmem:[%s8365_s2] ss:$0 sm:$0xff] }
 0xcb6   : > { %v7544_v39 = vpop.eup %7543  ;;  %v4417_v23 = vadd.f32 1e-05, %v4385_v31 }
 0xcb7   : > { %v4523_v47 = vmul.f32 %v7544_v39, %v10762_v38  ;;  %vm4529_vm7 = vweird.f32 %v7544_v39 }
 0xcb8   : > { %7545 = vrsqrt.f32 %v4417_v23  ;;  %vm4538_vm8 = vweird.f32 %v4417_v23  ;;  %vm4530_vm11 = vmor %vm4528_vm10, %vm4529_vm7 }
 0xcb9   : > { %v4524_v58 = vmul.f32 %v7544_v39, %v4523_v47 }
 0xcba   : > { %4859 = vmatmul.bf16.gmra.mxu3 %v4639_v0  ;;  %4908 = vmatmul.bf16.gmra.mxu0 %v4639_v0 }
 0xcbb   : > { %4957 = vmatmul.bf16.gmra.mxu1 %v4639_v0  ;;  %5006 = vmatmul.bf16.gmra.mxu2 %v4639_v0  ;;  %v4525_v49 = vmul.f32 0.5, %v4524_v58 }
 0xcbd   : > { %v4526_v6 = vsub.f32 1.5, %v4525_v49 }
 0xcbe   : > { %v7546_v21 = vpop.eup %7545 }
 0xcbf   : > { %v4533_v54 = vmul.f32 %v7546_v21, %v4417_v23  ;;  %vm4539_vm6 = vweird.f32 %v7546_v21  ;;  %v4527_v14 = vmul.f32 %v7544_v39, %v4526_v6 }
 0xcc0   : > { %vm4540_vm9 = vmor %vm4538_vm8, %vm4539_vm6 }
 0xcc1   : > { %v4534_v15 = vmul.f32 %v7546_v21, %v4533_v54  ;;  %v4531_v50 = vsel %vm4530_vm11, %v7544_v39, %v4527_v14 }
 0xcc2   : > { %v4592_v46 = vmul.f32 %v4531_v50, %v4400_v27 }
 0xcc3   : > { %v4535_v11 = vmul.f32 0.5, %v4534_v15 }
 0xcc4   : > { %v4611_v10 = vmul.f32 %v10610_v13, %v4592_v46 }
 0xcc5   : > { %v4536_v28 = vsub.f32 1.5, %v4535_v11  ;;  %v4223_v41 = vpop.f32.mrf.mxu3 }
 0xcc6   : > { %v4224_v7 = vadd.f32 %v10406_v3, %v4223_v41  ;;  %v4630_v45 = vadd.f32 %v10626_v48, %v4611_v10 }
 0xcc7   : > { %v4537_v52 = vmul.f32 %v7546_v21, %v4536_v28 }
 0xcc8   : > { %v10793_v43 = vadd.f32 %v7569_v60, %v4224_v7 }
 0xcc9   : > { %v4541_v25 = vsel %vm4540_vm9, %v7546_v21, %v4537_v52 }
 0xcca   : > { %4274 = vadd.xlane.f32.xlu1 %v10793_v43  ;;  %4864 = vmatmul.bf16.gmra.mxu3 %v4640_v5  ;;  %v4308_v3 = vmul.f32 %v10793_v43, %v10793_v43  ;;  %v4593_v37 = vmul.f32 %v4541_v25, %v4401_v24 }
 0xccb   : > { %4913 = vmatmul.bf16.gmra.mxu0 %v4640_v5  ;;  %4962 = vmatmul.bf16.gmra.mxu1 %v4640_v5 }
 0xccc   : > { %5011 = vmatmul.bf16.gmra.mxu2 %v4640_v5  ;;  %4338 = vadd.xlane.f32.xlu0 %v4308_v3  ;;  %v4612_v31 = vmul.f32 %v10610_v13, %v4593_v37 }
 0xccd   : > { %v4225_v38 = vpop.f32.mrf.mxu3 }
 0xcce   : > { %v4226_v8 = vadd.f32 %v7570_v12, %v4225_v38  ;;  %v4631_v22 = vadd.f32 %v10626_v48, %v4612_v31  ;;  %v7010_v31 = vld [vmem:[%s8351_s19 + $0xb8] sm:$0xff] }
 0xccf   : > { %5482 = vmatpush.bf16.msrb.mxu1 %v7010_v31  ;;  %v7004_v31 = vld [vmem:[%s8351_s19 + $0x88] sm:$0xff] }
 0xcd0   : > { %v10804_v34 = vadd.f32 %v7571_v2, %v4226_v8  ;;  %v4641_v36 = vpack.c.bf16 %v4631_v22, %v4630_v45  ;;  %v6994_v8 = vld [vmem:[%s8351_s19 + $0x38] sm:$0xff]  ;;  %v7009_v45 = vld [vmem:[%s8351_s19 + $0xb0] sm:$0xff] }
 0xcd1   : > { %v7002_v2 = vld [vmem:[%s8351_s19 + $0x78] sm:$0xff]  ;;  %5384 = vmatpush.bf16.msra.mxu3 %v6994_v8 }
 0xcd2   : > { %4276 = vadd.xlane.f32.xlu2 %v10804_v34  ;;  %v4309_v16 = vmul.f32 %v10804_v34, %v10804_v34  ;;  %5433 = vmatpush.bf16.msrb.mxu0 %v7002_v2 }
 0xcd3   : > { %5483 = vmatpush.bf16.msrb.mxu1 %v7009_v45 }
 0xcd4   : > { %4340 = vadd.xlane.f32.xlu1 %v4309_v16  ;;  %v7018_v16 = vld [vmem:[%s8351_s19 + $0xf8] sm:$0xff] }
 0xcd5   : > { %v4271_v39 = vpop.xlane.xlu0 %4270  ;;  %5531 = vmatpush.bf16.msra.mxu2 %v7018_v16  ;;  %v7012_v16 = vld [vmem:[%s8351_s19 + $0xc8] sm:$0xff] }
 0xcd6   : > { %v4290_v23 = vmul.f32 %v4271_v39, %v11601_v33  ;;  %v6993_v39 = vld [vmem:[%s8351_s19 + $0x30] sm:$0xff] }
 0xcd7   : > { %v4335_v30 = vpop.xlane.xlu2 %4334  ;;  %5385 = vmatpush.bf16.msra.mxu3 %v6993_v39  ;;  %v6987_v39 = vld [vmem:[%s8351_s19] sm:$0xff] }
 0xcd8   : > { %v4370_v47 = vmul.f32 %v4290_v23, %v4290_v23  ;;  %v4354_v0 = vmul.f32 %v4335_v30, %v11601_v33  ;;  %v4402_v52 = vsub.f32 %v10534_v55, %v4290_v23  ;;  %v7001_v23 = vld [vmem:[%s8351_s19 + $0x70] sm:$0xff] }
 0xcd9   : > { %5434 = vmatpush.bf16.msrb.mxu0 %v7001_v23  ;;  %v6995_v23 = vld [vmem:[%s8351_s19 + $0x40] sm:$0xff] }
 0xcda   : > { %v4386_v62 = vsub.f32 %v4354_v0, %v4370_v47  ;;  %4869 = vmatmul.bf16.gmra.mxu3 %v4641_v36  ;;  %v7017_v47 = vld [vmem:[%s8351_s19 + $0xf0] sm:$0xff] }
 0xcdb   : > { %4918 = vmatmul.bf16.gmra.mxu0 %v4641_v36  ;;  %4967 = vmatmul.bf16.gmra.mxu1 %v4641_v36 }
 0xcdc   : > { %v4418_v1 = vadd.f32 1e-05, %v4386_v62  ;;  %5016 = vmatmul.bf16.gmra.mxu2 %v4641_v36 }
 0xcdd   : > { %v4273_v58 = vpop.xlane.xlu1 %4272  ;;  %5532 = vmatpush.bf16.msra.mxu2 %v7017_v47  ;;  %v7011_v47 = vld [vmem:[%s8351_s19 + $0xc0] sm:$0xff] }
 0xcde   : > { %7547 = vrsqrt.f32 %v4418_v1  ;;  %v4291_v18 = vmul.f32 %v4273_v58, %v11601_v33  ;;  %vm4548_vm13 = vweird.f32 %v4418_v1  ;;  %v7000_v58 = vld [vmem:[%s8351_s19 + $0x68] sm:$0xff] }
 0xcdf   : > { %v4337_v9 = vpop.xlane.xlu0 %4336  ;;  %5435 = vmatpush.bf16.msrb.mxu0 %v7000_v58 }
 0xce0   : > { %v4371_v21 = vmul.f32 %v4291_v18, %v4291_v18  ;;  %v4355_v53 = vmul.f32 %v4337_v9, %v11601_v33  ;;  %v4403_v24 = vsub.f32 %v10566_v26, %v4291_v18  ;;  %v7008_v18 = vld [vmem:[%s8351_s19 + $0xa8] sm:$0xff] }
 0xce1   : > { %v7016_v9 = vld [vmem:[%s8351_s19 + $0xe8] sm:$0xff]  ;;  %5484 = vmatpush.bf16.msrb.mxu1 %v7008_v18 }
 0xce2   : > { %v4387_v49 = vsub.f32 %v4355_v53, %v4371_v21  ;;  %5533 = vmatpush.bf16.msra.mxu2 %v7016_v9 }
 0xce4   : > { %v7548_v54 = vpop.eup %7547  ;;  %v4419_v61 = vadd.f32 1e-05, %v4387_v49 }
 0xce5   : > { %v4543_v15 = vmul.f32 %v7548_v54, %v4418_v1  ;;  %vm4549_vm12 = vweird.f32 %v7548_v54  ;;  %v6992_v1 = vld [vmem:[%s8351_s19 + $0x28] sm:$0xff] }
 0xce6   : > { %7549 = vrsqrt.f32 %v4419_v61  ;;  %vm4550_vm14 = vmor %vm4548_vm13, %vm4549_vm12  ;;  %vm4558_vm0 = vweird.f32 %v4419_v61  ;;  %5386 = vmatpush.bf16.msra.mxu3 %v6992_v1 }
 0xce7   : > { %v4544_v40 = vmul.f32 %v7548_v54, %v4543_v15  ;;  %v7007_v15 = vld [vmem:[%s8351_s19 + $0xa0] sm:$0xff] }
 0xce8   : > { %5485 = vmatpush.bf16.msrb.mxu1 %v7007_v15 }
 0xce9   : > { %v4545_v6 = vmul.f32 0.5, %v4544_v40 }
 0xceb   : > { %v4546_v11 = vsub.f32 1.5, %v4545_v6  ;;  %v7015_v6 = vld [vmem:[%s8351_s19 + $0xe0] sm:$0xff] }
 0xcec   : > { %v7550_v20 = vpop.eup %7549  ;;  %5534 = vmatpush.bf16.msra.mxu2 %v7015_v6 }
 0xced   : > { %v4547_v28 = vmul.f32 %v7548_v54, %v4546_v11  ;;  %v4553_v41 = vmul.f32 %v7550_v20, %v4419_v61  ;;  %vm4559_vm15 = vweird.f32 %v7550_v20  ;;  %v6999_v61 = vld [vmem:[%s8351_s19 + $0x60] sm:$0xff] }
 0xcee   : > { %vm4560_vm1 = vmor %vm4558_vm0, %vm4559_vm15  ;;  %5436 = vmatpush.bf16.msrb.mxu0 %v6999_v61 }
 0xcef   : > { %v4554_v7 = vmul.f32 %v7550_v20, %v4553_v41  ;;  %v4551_v4 = vsel %vm4550_vm14, %v7548_v54, %v4547_v28  ;;  %v6991_v54 = vld [vmem:[%s8351_s19 + $0x20] sm:$0xff]  ;;  %v6990_v28 = vld [vmem:[%s8351_s19 + $0x18] sm:$0xff] }
 0xcf0   : > { %v4594_v5 = vmul.f32 %v4551_v4, %v4402_v52  ;;  %5387 = vmatpush.bf16.msra.mxu3 %v6991_v54  ;;  %v6998_v41 = vld [vmem:[%s8351_s19 + $0x58] sm:$0xff] }
 0xcf1   : > { %v4555_v14 = vmul.f32 0.5, %v4554_v7  ;;  %v7006_v7 = vld [vmem:[%s8351_s19 + $0x98] sm:$0xff] }
 0xcf2   : > { %v4613_v27 = vmul.f32 %v10610_v13, %v4594_v5  ;;  %5437 = vmatpush.bf16.msrb.mxu0 %v6998_v41  ;;  %v6997_v5 = vld [vmem:[%s8351_s19 + $0x50] sm:$0xff]  ;;  %5486 = vmatpush.bf16.msrb.mxu1 %v7006_v7 }
 0xcf3   : > { %v4556_v60 = vsub.f32 1.5, %v4555_v14  ;;  %v7014_v14 = vld [vmem:[%s8351_s19 + $0xd8] sm:$0xff] }
 0xcf4   : > { %v4632_v38 = vadd.f32 %v10626_v48, %v4613_v27  ;;  %5388 = vmatpush.bf16.msra.mxu3 %v6990_v28  ;;  %5535 = vmatpush.bf16.msra.mxu2 %v7014_v14 }
 0xcf5   : > { %v4557_v25 = vmul.f32 %v7550_v20, %v4556_v60  ;;  %v6989_v60 = vld [vmem:[%s8351_s19 + $0x10] sm:$0xff] }
 0xcf6   : > { %5438 = vmatpush.bf16.msrb.mxu0 %v6997_v5 }
 0xcf7   : > { %v4561_v3 = vsel %vm4560_vm1, %v7550_v20, %v4557_v25 }
 0xcf8   : > { %v4595_v50 = vmul.f32 %v4561_v3, %v4403_v24  ;;  %v7013_v3 = vld [vmem:[%s8351_s19 + $0xd0] sm:$0xff]  ;;  %5389 = vmatpush.bf16.msra.mxu3 %v6989_v60 }
 0xcf9   : > { %5536 = vmatpush.bf16.msra.mxu2 %v7013_v3 }
 0xcfa   : > { %v4614_v37 = vmul.f32 %v10610_v13, %v4595_v50 }
 0xcfc   : > { %v4633_v46 = vadd.f32 %v10626_v48, %v4614_v37 }
 0xcfd   : > { %5537 = vmatpush.bf16.msra.mxu2 %v7012_v16 }
 0xcfe   : > { %v4642_v12 = vpack.c.bf16 %v4633_v46, %v4632_v38  ;;  %v6988_v38 = vld [vmem:[%s8351_s19 + $0x8] sm:$0xff] }
 0xcff   : > { %v6996_v46 = vld [vmem:[%s8351_s19 + $0x48] sm:$0xff]  ;;  %5390 = vmatpush.bf16.msra.mxu3 %v6988_v38 }
 0xd00   : > { %4874 = vmatmul.bf16.gmra.mxu3 %v4642_v12  ;;  %4923 = vmatmul.bf16.gmra.mxu0 %v4642_v12 }
 0xd01   : > { %4972 = vmatmul.bf16.gmra.mxu1 %v4642_v12  ;;  %5021 = vmatmul.bf16.gmra.mxu2 %v4642_v12 }
 0xd02   : > { %5439 = vmatpush.bf16.msrb.mxu0 %v6996_v46  ;;  %5538 = vmatpush.bf16.msra.mxu2 %v7011_v47 }
 0xd03   : > { %5391 = vmatpush.bf16.msra.mxu3 %v6987_v39 }
 0xd06   : > { %5440 = vmatpush.bf16.msrb.mxu0 %v6995_v23 }
 0xd07   : > { %v10863_v27 = vpop.f32.mrf.mxu0 }
 0xd08   : > { %v10869_v12 = vpop.f32.mrf.mxu1  ;;  %v5033_v46 = vmax.f32 %v10863_v27, 0.0 }
 0xd0d   : > { %v10865_v37 = vpop.f32.mrf.mxu3 }
 0xd0e   : > { %v10871_v8 = vpop.f32.mrf.mxu2 }
 0xd0f   : > { %v4896_v1 = vpop.f32.mrf.mxu0 }
 0xd10   : > { %v5037_v3 = vmax.f32 %v4896_v1, 0.0 }
 0xd12   : > { %v5097_v16 = vpack.c.bf16 %v5037_v3, %v5033_v46 }
 0xd15   : > { %v4847_v58 = vpop.f32.mrf.mxu3 }
 0xd16   : > { %v4994_v54 = vpop.f32.mrf.mxu2 }
 0xd17   : > { %v4899_v7 = vpop.f32.mrf.mxu0  ;;  %v5039_v38 = vmax.f32 %v4994_v54, 0.0 }
 0xd3d   : > { %v4275_v10 = vpop.xlane.xlu1 %4274 }
 0xd3e   : > { %v10828_v22 = vmul.f32 %v4275_v10, %v11601_v33 }
 0xd3f   : > { %v4339_v30 = vpop.xlane.xlu0 %4338 }
 0xd40   : > { %v4372_v0 = vmul.f32 %v10828_v22, %v10828_v22  ;;  %v4356_v36 = vmul.f32 %v4339_v30, %v11601_v33  ;;  %v7003_v30 = vld [vmem:[%s8351_s19 + $0x80] sm:$0xff]  ;;  %v4404_v61 = vsub.f32 %v10793_v43, %v10828_v22 }
 0xd42   : > { %v4388_v62 = vsub.f32 %v4356_v36, %v4372_v0 }
 0xd44   : > { %v10841_v21 = vadd.f32 1e-05, %v4388_v62 }
 0xd45   : > { %v4277_v53 = vpop.xlane.xlu2 %4276 }
 0xd46   : > { %7551 = vrsqrt.f32 %v10841_v21  ;;  %v10845_v49 = vmul.f32 %v4277_v53, %v11601_v33  ;;  %vm4568_vm3 = vweird.f32 %v10841_v21  ;;  %v4945_v53 = vpop.f32.mrf.mxu1 }
 0xd47   : > { %v4341_v40 = vpop.xlane.xlu1 %4340 }
 0xd48   : > { %v4373_v11 = vmul.f32 %v10845_v49, %v10845_v49  ;;  %v4357_v20 = vmul.f32 %v4341_v40, %v11601_v33  ;;  %v7005_v33 = vld [vmem:[%s8351_s19 + $0x90] sm:$0xff] }
 0xd49   : > { %5487 = vmatpush.bf16.msrb.mxu1 %v7005_v33 }
 0xd4a   : > { %v4389_v4 = vsub.f32 %v4357_v20, %v4373_v11 }
 0xd4c   : > { %v7552_v52 = vpop.eup %7551  ;;  %v4421_v24 = vadd.f32 1e-05, %v4389_v4  ;;  %v4850_v4 = vpop.f32.mrf.mxu3 }
 0xd4d   : > { %v4563_v25 = vmul.f32 %v7552_v52, %v10841_v21  ;;  %5488 = vmatpush.bf16.msrb.mxu1 %v7004_v31  ;;  %vm4569_vm2 = vweird.f32 %v7552_v52  ;;  %v4405_v21 = vsub.f32 %v10804_v34, %v10845_v49  ;;  %v4901_v49 = vpop.f32.mrf.mxu0  ;;  %v5034_v31 = vmax.f32 %v10869_v12, 0.0 }
 0xd4e   : > { %7553 = vrsqrt.f32 %v4421_v24  ;;  %vm4570_vm4 = vmor %vm4568_vm3, %vm4569_vm2  ;;  %vm4578_vm6 = vweird.f32 %v4421_v24  ;;  %v4948_v14 = vpop.f32.mrf.mxu1 }
 0xd4f   : > { %v4564_v50 = vmul.f32 %v7552_v52, %v4563_v25 }
 0xd51   : > { %v4565_v2 = vmul.f32 0.5, %v4564_v50  ;;  %5489 = vmatpush.bf16.msrb.mxu1 %v7003_v30  ;;  %v5036_v50 = vmax.f32 %v4847_v58, 0.0 }
 0xd53   : > { %v4566_v10 = vsub.f32 1.5, %v4565_v2  ;;  %v5032_v2 = vmax.f32 %v10865_v37, 0.0 }
 0xd54   : > { %v7554_v45 = vpop.eup %7553  ;;  %v4852_v25 = vpop.f32.mrf.mxu3 }
 0xd55   : > { %v4567_v0 = vmul.f32 %v7552_v52, %v4566_v10  ;;  %v4573_v36 = vmul.f32 %v7554_v45, %v4421_v24  ;;  %vm4579_vm5 = vweird.f32 %v7554_v45  ;;  %v5096_v10 = vpack.c.bf16 %v5036_v50, %v5032_v2 }
 0xd56   : > { %vm4580_vm7 = vmor %vm4578_vm6, %vm4579_vm5  ;;  %v4950_v24 = vpop.f32.mrf.mxu1  ;;  %v5044_v37 = vmax.f32 %v4852_v25, 0.0 }
 0xd57   : > { %v4574_v62 = vmul.f32 %v7554_v45, %v4573_v36  ;;  %v4571_v18 = vsel %vm4570_vm4, %v7552_v52, %v4567_v0  ;;  %v4997_v52 = vpop.f32.mrf.mxu2  ;;  %v5046_v58 = vmax.f32 %v4950_v24, 0.0 }
 0xd58   : > { %v4596_v40 = vmul.f32 %v4571_v18, %v4404_v61  ;;  %v5041_v18 = vmax.f32 %v4899_v7, 0.0  ;;  %v5043_v54 = vmax.f32 %v4997_v52, 0.0 }
 0xd59   : > { %v4575_v9 = vmul.f32 0.5, %v4574_v62  ;;  %v5045_v62 = vmax.f32 %v4901_v49, 0.0 }
 0xd5a   : > { %v4615_v28 = vmul.f32 %v10610_v13, %v4596_v40 }
 0xd5b   : > { %v4576_v15 = vsub.f32 1.5, %v4575_v9  ;;  %v5040_v9 = vmax.f32 %v4850_v4, 0.0  ;;  %v5101_v61 = vpack.c.bf16 %v5045_v62, %v5041_v18 }
 0xd5c   : > { %v4634_v22 = vadd.f32 %v10626_v48, %v4615_v28  ;;  %v4855_v30 = vpop.f32.mrf.mxu3 }
 0xd5d   : > { %v4577_v6 = vmul.f32 %v7554_v45, %v4576_v15  ;;  %v5100_v15 = vpack.c.bf16 %v5044_v37, %v5040_v9  ;;  %v5048_v4 = vmax.f32 %v4855_v30, 0.0 }
 0xd5e   : > { %v4953_v47 = vpop.f32.mrf.mxu1 }
 0xd5f   : > { %v4581_v11 = vsel %vm4580_vm7, %v7554_v45, %v4577_v6  ;;  %v4999_v33 = vpop.f32.mrf.mxu2  ;;  %v4904_v45 = vpop.f32.mrf.mxu0 }
 0xd60   : > { %v4597_v20 = vmul.f32 %v4581_v11, %v4405_v21  ;;  %v5049_v7 = vmax.f32 %v4904_v45, 0.0 }
 0xd62   : > { %v4616_v41 = vmul.f32 %v10610_v13, %v4597_v20  ;;  %v5038_v13 = vmax.f32 %v4945_v53, 0.0  ;;  %v5042_v53 = vmax.f32 %v4948_v14, 0.0  ;;  %v5050_v14 = vmax.f32 %v4953_v47, 0.0 }
 0xd64   : > { %v4635_v60 = vadd.f32 %v10626_v48, %v4616_v41  ;;  %v5035_v48 = vmax.f32 %v10871_v8, 0.0  ;;  %v5098_v39 = vpack.c.bf16 %v5038_v13, %v5034_v31  ;;  %v4857_v27 = vpop.f32.mrf.mxu3  ;;  %v5047_v8 = vmax.f32 %v4999_v33, 0.0 }
 0xd65   : > { %v5102_v40 = vpack.c.bf16 %v5046_v58, %v5042_v53 }
 0xd66   : > { %v4643_v5 = vpack.c.bf16 %v4635_v60, %v4634_v22  ;;  %v5099_v23 = vpack.c.bf16 %v5039_v38, %v5035_v48  ;;  %v4955_v1 = vpop.f32.mrf.mxu1  ;;  %v5103_v6 = vpack.c.bf16 %v5047_v8, %v5043_v54  ;;  %v5052_v22 = vmax.f32 %v4857_v27, 0.0 }
 0xd67   : > { %v5002_v0 = vpop.f32.mrf.mxu2  ;;  %v4906_v36 = vpop.f32.mrf.mxu0  ;;  %v5054_v60 = vmax.f32 %v4955_v1, 0.0 }
 0xd68   : > { %4879 = vmatmul.bf16.gmra.mxu3 %v4643_v5  ;;  %4928 = vmatmul.bf16.gmra.mxu0 %v4643_v5  ;;  %v5053_v41 = vmax.f32 %v4906_v36, 0.0  ;;  %v5051_v52 = vmax.f32 %v5002_v0, 0.0  ;;  %v5104_v33 = vpack.c.bf16 %v5052_v22, %v5048_v4 }
 0xd69   : > { %4977 = vmatmul.bf16.gmra.mxu1 %v4643_v5  ;;  %5026 = vmatmul.bf16.gmra.mxu2 %v4643_v5  ;;  %v5106_v13 = vpack.c.bf16 %v5054_v60, %v5050_v14 }
 0xd6a   : > { %v5105_v24 = vpack.c.bf16 %v5053_v41, %v5049_v7 }
 0xd6c   : > { %v4860_v11 = vpop.f32.mrf.mxu3 }
 0xd6d   : > { %v5056_v30 = vmax.f32 %v4860_v11, 0.0 }
 0xd6e   : > { %v4958_v20 = vpop.f32.mrf.mxu1 }
 0xd6f   : > { %v5004_v12 = vpop.f32.mrf.mxu2  ;;  %v4909_v21 = vpop.f32.mrf.mxu0  ;;  %v5058_v47 = vmax.f32 %v4958_v20, 0.0 }
 0xd70   : > { %v5055_v5 = vmax.f32 %v5004_v12, 0.0  ;;  %v5057_v45 = vmax.f32 %v4909_v21, 0.0 }
 0xd72   : > { %v5107_v38 = vpack.c.bf16 %v5055_v5, %v5051_v52 }
 0xd74   : > { %v4862_v25 = vpop.f32.mrf.mxu3 }
 0xd76   : > { %v4960_v3 = vpop.f32.mrf.mxu1 }
 0xd77   : > { %v5007_v28 = vpop.f32.mrf.mxu2  ;;  %v4911_v49 = vpop.f32.mrf.mxu0 }
 0xd78   : > { %5392 = vmatmul.bf16.vlgmr.msra.gmra.mxu3 %v5096_v10  ;;  %5441 = vmatmul.bf16.vlgmr.msrb.gmra.mxu0 %v5097_v16  ;;  %v5061_v16 = vmax.f32 %v4911_v49, 0.0  ;;  %v5060_v10 = vmax.f32 %v4862_v25, 0.0  ;;  %v5059_v0 = vmax.f32 %v5007_v28, 0.0 }
 0xd79   : > { %5490 = vmatmul.bf16.vlgmr.msrb.gmra.mxu1 %v5098_v39  ;;  %5539 = vmatmul.bf16.vlgmr.msra.gmra.mxu2 %v5099_v23  ;;  %v5062_v39 = vmax.f32 %v4960_v3, 0.0 }
 0xd7a   : > { %v5109_v36 = vpack.c.bf16 %v5061_v16, %v5057_v45  ;;  %v5108_v27 = vpack.c.bf16 %v5060_v10, %v5056_v30 }
 0xd7b   : > { %v5110_v62 = vpack.c.bf16 %v5062_v39, %v5058_v47 }
 0xd7c   : > { %v4865_v2 = vpop.f32.mrf.mxu3 }
 0xd7e   : > { %v4963_v31 = vpop.f32.mrf.mxu1 }
 0xd7f   : > { %v5009_v50 = vpop.f32.mrf.mxu2  ;;  %v4914_v46 = vpop.f32.mrf.mxu0  ;;  %v5066_v20 = vmax.f32 %v4963_v31, 0.0 }
 0xd80   : > { %v5063_v23 = vmax.f32 %v5009_v50, 0.0 }
 0xd82   : > { %v5111_v37 = vpack.c.bf16 %v5063_v23, %v5059_v0 }
 0xd84   : > { %v4867_v12 = vpop.f32.mrf.mxu3 }
 0xd85   : > { %v5068_v9 = vmax.f32 %v4867_v12, 0.0 }
 0xd86   : > { %v4965_v58 = vpop.f32.mrf.mxu1 }
 0xd87   : > { %v5012_v48 = vpop.f32.mrf.mxu2  ;;  %v4916_v1 = vpop.f32.mrf.mxu0  ;;  %v5070_v53 = vmax.f32 %v4965_v58, 0.0 }
 0xd88   : > { %5397 = vmatmul.bf16.gmra.mxu3 %v5100_v15  ;;  %5446 = vmatmul.bf16.gmra.mxu0 %v5101_v61  ;;  %v5069_v18 = vmax.f32 %v4916_v1, 0.0  ;;  %v5067_v28 = vmax.f32 %v5012_v48, 0.0 }
 0xd89   : > { %5495 = vmatmul.bf16.gmra.mxu1 %v5102_v40  ;;  %5544 = vmatmul.bf16.gmra.mxu2 %v5103_v6  ;;  %v5065_v40 = vmax.f32 %v4914_v46, 0.0  ;;  %v5064_v6 = vmax.f32 %v4865_v2, 0.0  ;;  %v5114_v60 = vpack.c.bf16 %v5070_v53, %v5066_v20 }
 0xd8b   : > { %v5113_v41 = vpack.c.bf16 %v5069_v18, %v5065_v40  ;;  %v5112_v22 = vpack.c.bf16 %v5068_v9, %v5064_v6 }
 0xd8c   : > { %v4870_v15 = vpop.f32.mrf.mxu3 }
 0xd8d   : > { %v5072_v50 = vmax.f32 %v4870_v15, 0.0 }
 0xd8e   : > { %v4968_v21 = vpop.f32.mrf.mxu1 }
 0xd8f   : > { %v5014_v8 = vpop.f32.mrf.mxu2  ;;  %v4919_v61 = vpop.f32.mrf.mxu0 }
 0xd90   : > { %v5071_v54 = vmax.f32 %v5014_v8, 0.0  ;;  %v5073_v3 = vmax.f32 %v4919_v61, 0.0 }
 0xd92   : > { %v5115_v5 = vpack.c.bf16 %v5071_v54, %v5067_v28 }
 0xd94   : > { %v4872_v4 = vpop.f32.mrf.mxu3 }
 0xd95   : > { %v5076_v25 = vmax.f32 %v4872_v4, 0.0 }
 0xd96   : > { %v4970_v14 = vpop.f32.mrf.mxu1 }
 0xd97   : > { %v5017_v11 = vpop.f32.mrf.mxu2  ;;  %v4921_v7 = vpop.f32.mrf.mxu0  ;;  %v5116_v48 = vpack.c.bf16 %v5076_v25, %v5072_v50 }
 0xd98   : > { %5402 = vmatmul.bf16.gmra.mxu3 %v5104_v33  ;;  %5451 = vmatmul.bf16.gmra.mxu0 %v5105_v24  ;;  %v5077_v49 = vmax.f32 %v4921_v7, 0.0  ;;  %v5078_v24 = vmax.f32 %v4970_v14, 0.0 }
 0xd99   : > { %5500 = vmatmul.bf16.gmra.mxu1 %v5106_v13  ;;  %5549 = vmatmul.bf16.gmra.mxu2 %v5107_v38  ;;  %v5074_v13 = vmax.f32 %v4968_v21, 0.0  ;;  %v5075_v38 = vmax.f32 %v5017_v11, 0.0 }
 0xd9a   : > { %v5117_v31 = vpack.c.bf16 %v5077_v49, %v5073_v3 }
 0xd9b   : > { %v5118_v39 = vpack.c.bf16 %v5078_v24, %v5074_v13 }
 0xd9c   : > { %v4875_v2 = vpop.f32.mrf.mxu3 }
 0xd9d   : > { %v5080_v12 = vmax.f32 %v4875_v2, 0.0 }
 0xd9e   : > { %v4973_v16 = vpop.f32.mrf.mxu1 }
 0xd9f   : > { %v5019_v52 = vpop.f32.mrf.mxu2  ;;  %v4924_v46 = vpop.f32.mrf.mxu0  ;;  %v5082_v58 = vmax.f32 %v4973_v16, 0.0 }
 0xda0   : > { %v5079_v33 = vmax.f32 %v5019_v52, 0.0  ;;  %v5081_v1 = vmax.f32 %v4924_v46, 0.0 }
 0xda2   : > { %v5119_v23 = vpack.c.bf16 %v5079_v33, %v5075_v38 }
 0xda4   : > { %v4877_v30 = vpop.f32.mrf.mxu3 }
 0xda6   : > { %v4975_v47 = vpop.f32.mrf.mxu1 }
 0xda7   : > { %v5022_v10 = vpop.f32.mrf.mxu2  ;;  %v4926_v45 = vpop.f32.mrf.mxu0 }
 0xda8   : > { %5407 = vmatmul.bf16.gmra.mxu3 %v5108_v27  ;;  %5456 = vmatmul.bf16.gmra.mxu0 %v5109_v36  ;;  %v5085_v36 = vmax.f32 %v4926_v45, 0.0  ;;  %v5084_v27 = vmax.f32 %v4877_v30, 0.0  ;;  %v5083_v8 = vmax.f32 %v5022_v10, 0.0 }
 0xda9   : > { %5505 = vmatmul.bf16.gmra.mxu1 %v5110_v62  ;;  %5554 = vmatmul.bf16.gmra.mxu2 %v5111_v37  ;;  %v5086_v62 = vmax.f32 %v4975_v47, 0.0 }
 0xdaa   : > { %v5121_v18 = vpack.c.bf16 %v5085_v36, %v5081_v1  ;;  %v5120_v9 = vpack.c.bf16 %v5084_v27, %v5080_v12 }
 0xdab   : > { %v5122_v53 = vpack.c.bf16 %v5086_v62, %v5082_v58 }
 0xdaf   : > { %v5024_v0 = vpop.f32.mrf.mxu2 }
 0xdb0   : > { %v5087_v37 = vmax.f32 %v5024_v0, 0.0 }
 0xdb2   : > { %v5123_v54 = vpack.c.bf16 %v5087_v37, %v5083_v8 }
 0xdb8   : > { %5412 = vmatmul.bf16.gmra.mxu3 %v5112_v22  ;;  %5461 = vmatmul.bf16.gmra.mxu0 %v5113_v41 }
 0xdb9   : > { %5510 = vmatmul.bf16.gmra.mxu1 %v5114_v60  ;;  %5559 = vmatmul.bf16.gmra.mxu2 %v5115_v5 }
 0xdc8   : > { %5417 = vmatmul.bf16.gmra.mxu3 %v5116_v48  ;;  %5466 = vmatmul.bf16.gmra.mxu0 %v5117_v31 }
 0xdc9   : > { %5515 = vmatmul.bf16.gmra.mxu1 %v5118_v39  ;;  %5564 = vmatmul.bf16.gmra.mxu2 %v5119_v23 }
 0xdd8   : > { %5422 = vmatmul.bf16.gmra.mxu3 %v5120_v9  ;;  %5471 = vmatmul.bf16.gmra.mxu0 %v5121_v18 }
 0xdd9   : > { %5520 = vmatmul.bf16.gmra.mxu1 %v5122_v53  ;;  %5569 = vmatmul.bf16.gmra.mxu2 %v5123_v54 }
 0xde5   : > { %v4929_v61 = vpop.f32.mrf.mxu0 }
 0xde6   : > { %v4978_v15 = vpop.f32.mrf.mxu1  ;;  %v5089_v11 = vmax.f32 %v4929_v61, 0.0 }
 0xde7   : > { %v5090_v41 = vmax.f32 %v4978_v15, 0.0 }
 0xdeb   : > { %v4880_v40 = vpop.f32.mrf.mxu3 }
 0xdec   : > { %v5027_v6 = vpop.f32.mrf.mxu2  ;;  %v5088_v4 = vmax.f32 %v4880_v40, 0.0 }
 0xded   : > { %v4931_v21 = vpop.f32.mrf.mxu0  ;;  %v5091_v49 = vmax.f32 %v5027_v6, 0.0 }
 0xdee   : > { %v5093_v20 = vmax.f32 %v4931_v21, 0.0  ;;  %v4980_v28 = vpop.f32.mrf.mxu1 }
 0xdef   : > { %v5094_v22 = vmax.f32 %v4980_v28, 0.0 }
 0xdf0   : > { %v5125_v60 = vpack.c.bf16 %v5093_v20, %v5089_v11 }
 0xdf1   : > { %v5126_v5 = vpack.c.bf16 %v5094_v22, %v5090_v41 }
 0xdf2   : > { %5476 = vmatmul.bf16.gmra.mxu0 %v5125_v60 }
 0xdf3   : > { %5525 = vmatmul.bf16.gmra.mxu1 %v5126_v5  ;;  %v4882_v7 = vpop.f32.mrf.mxu3 }
 0xdf4   : > { %v5092_v14 = vmax.f32 %v4882_v7, 0.0  ;;  %v5029_v52 = vpop.f32.mrf.mxu2 }
 0xdf5   : > { %v5095_v25 = vmax.f32 %v5029_v52, 0.0  ;;  %v5442_v24 = vpop.f32.mrf.mxu0 }
 0xdf6   : > { %v5124_v33 = vpack.c.bf16 %v5092_v14, %v5088_v4  ;;  %v5491_v3 = vpop.f32.mrf.mxu1 }
 0xdf7   : > { %v5127_v50 = vpack.c.bf16 %v5095_v25, %v5091_v49 }
 0xdf8   : > { %5427 = vmatmul.bf16.gmra.mxu3 %v5124_v33 }
 0xdf9   : > { %5574 = vmatmul.bf16.gmra.mxu2 %v5127_v50 }
 0xdfb   : > { %v5393_v13 = vpop.f32.mrf.mxu3 }
 0xdfc   : > { %v5443_v38 = vadd.f32 %v5442_v24, %v5393_v13  ;;  %v5540_v46 = vpop.f32.mrf.mxu2 }
 0xdfd   : > { %v5444_v2 = vpop.f32.mrf.mxu0 }
 0xdfe   : > { %v5492_v31 = vadd.f32 %v5491_v3, %v5443_v38  ;;  %v5493_v48 = vpop.f32.mrf.mxu1 }
 0xe00   : > { %v5541_v16 = vadd.f32 %v5540_v46, %v5492_v31 }
 0xe02   : > { %v10893_v10 = vadd.f32 %v5541_v16, %v10410_v35 }
 0xe03   : > { %v5395_v39 = vpop.f32.mrf.mxu3 }
 0xe04   : > { %5596 = vst [vmem:[#allocation2 + $0x30] sm:$0xff] %v10893_v10  ;;  %v5445_v23 = vadd.f32 %v5444_v2, %v5395_v39  ;;  %v5542_v45 = vpop.f32.mrf.mxu2 }
 0xe05   : > { %v5447_v30 = vpop.f32.mrf.mxu0 }
 0xe06   : > { %v5494_v47 = vadd.f32 %v5493_v48, %v5445_v23  ;;  %v5496_v0 = vpop.f32.mrf.mxu1 }
 0xe08   : > { %v5543_v36 = vadd.f32 %v5542_v45, %v5494_v47 }
 0xe0a   : > { %v10897_v27 = vadd.f32 %v5543_v36, %v10415_v63 }
 0xe0b   : > { %v5398_v62 = vpop.f32.mrf.mxu3 }
 0xe0c   : > { %5597 = vst [vmem:[#allocation2] sm:$0xff] %v10897_v27  ;;  %v5448_v37 = vadd.f32 %v5447_v30, %v5398_v62  ;;  %v5545_v1 = vpop.f32.mrf.mxu2 }
 0xe0d   : > { %v5449_v12 = vpop.f32.mrf.mxu0 }
 0xe0e   : > { %v5497_v35 = vadd.f32 %v5496_v0, %v5448_v37  ;;  %v5498_v58 = vpop.f32.mrf.mxu1 }
 0xe10   : > { %v5546_v8 = vadd.f32 %v5545_v1, %v5497_v35 }
 0xe12   : > { %v10901_v18 = vadd.f32 %v5546_v8, %v10420_v29 }
 0xe13   : > { %v5400_v9 = vpop.f32.mrf.mxu3 }
 0xe14   : > { %5598 = vst [vmem:[#allocation2 + $0x58] sm:$0xff] %v10901_v18  ;;  %v5450_v53 = vadd.f32 %v5449_v12, %v5400_v9  ;;  %v5547_v54 = vpop.f32.mrf.mxu2 }
 0xe15   : > { %v5452_v61 = vpop.f32.mrf.mxu0 }
 0xe16   : > { %v5499_v63 = vadd.f32 %v5498_v58, %v5450_v53  ;;  %v5501_v15 = vpop.f32.mrf.mxu1 }
 0xe18   : > { %v5548_v40 = vadd.f32 %v5547_v54, %v5499_v63 }
 0xe1a   : > { %v10905_v6 = vadd.f32 %v5548_v40, %v10431_v32 }
 0xe1b   : > { %v5403_v21 = vpop.f32.mrf.mxu3 }
 0xe1c   : > { %5599 = vst [vmem:[#allocation2 + $0x18] sm:$0xff] %v10905_v6  ;;  %v5453_v11 = vadd.f32 %v5452_v61, %v5403_v21  ;;  %v5550_v20 = vpop.f32.mrf.mxu2 }
 0xe1d   : > { %v5454_v28 = vpop.f32.mrf.mxu0 }
 0xe1e   : > { %v5502_v29 = vadd.f32 %v5501_v15, %v5453_v11  ;;  %v5503_v41 = vpop.f32.mrf.mxu1 }
 0xe20   : > { %v5551_v22 = vadd.f32 %v5550_v20, %v5502_v29 }
 0xe22   : > { %v10909_v60 = vadd.f32 %v5551_v22, %v10442_v59 }
 0xe23   : > { %v5405_v5 = vpop.f32.mrf.mxu3 }
 0xe24   : > { %5600 = vst [vmem:[#allocation2 + $0x50] sm:$0xff] %v10909_v60  ;;  %v5455_v7 = vadd.f32 %v5454_v28, %v5405_v5  ;;  %v5552_v4 = vpop.f32.mrf.mxu2 }
 0xe25   : > { %v5457_v14 = vpop.f32.mrf.mxu0 }
 0xe26   : > { %v5504_v32 = vadd.f32 %v5503_v41, %v5455_v7  ;;  %v5506_v52 = vpop.f32.mrf.mxu1 }
 0xe28   : > { %v5553_v49 = vadd.f32 %v5552_v4, %v5504_v32 }
 0xe2a   : > { %v10913_v25 = vadd.f32 %v5553_v49, %v10435_v56 }
 0xe2b   : > { %v5408_v24 = vpop.f32.mrf.mxu3 }
 0xe2c   : > { %5601 = vst [vmem:[#allocation2 + $0x68] sm:$0xff] %v10913_v25  ;;  %v5458_v33 = vadd.f32 %v5457_v14, %v5408_v24  ;;  %v5555_v3 = vpop.f32.mrf.mxu2 }
 0xe2d   : > { %v5459_v50 = vpop.f32.mrf.mxu0 }
 0xe2e   : > { %v5507_v59 = vadd.f32 %v5506_v52, %v5458_v33  ;;  %v5508_v13 = vpop.f32.mrf.mxu1 }
 0xe30   : > { %v5556_v38 = vadd.f32 %v5555_v3, %v5507_v59 }
 0xe32   : > { %v10917_v46 = vadd.f32 %v5556_v38, %v10445_v44 }
 0xe33   : > { %v5410_v2 = vpop.f32.mrf.mxu3 }
 0xe34   : > { %5602 = vst [vmem:[#allocation2 + $0x8] sm:$0xff] %v10917_v46  ;;  %v5460_v31 = vadd.f32 %v5459_v50, %v5410_v2  ;;  %v5557_v48 = vpop.f32.mrf.mxu2 }
 0xe35   : > { %v5462_v16 = vpop.f32.mrf.mxu0 }
 0xe36   : > { %v5509_v56 = vadd.f32 %v5508_v13, %v5460_v31  ;;  %v5511_v39 = vpop.f32.mrf.mxu1 }
 0xe38   : > { %v5558_v23 = vadd.f32 %v5557_v48, %v5509_v56 }
 0xe3a   : > { %v10921_v45 = vadd.f32 %v5558_v23, %v10452_v19 }
 0xe3b   : > { %v5413_v30 = vpop.f32.mrf.mxu3 }
 0xe3c   : > { %5603 = vst [vmem:[#allocation2 + $0x48] sm:$0xff] %v10921_v45  ;;  %v5463_v47 = vadd.f32 %v5462_v16, %v5413_v30  ;;  %v5560_v0 = vpop.f32.mrf.mxu2 }
 0xe3d   : > { %v5464_v36 = vpop.f32.mrf.mxu0 }
 0xe3e   : > { %v5512_v44 = vadd.f32 %v5511_v39, %v5463_v47  ;;  %v5513_v62 = vpop.f32.mrf.mxu1 }
 0xe40   : > { %v5561_v37 = vadd.f32 %v5560_v0, %v5512_v44 }
 0xe42   : > { %v10925_v1 = vadd.f32 %v5561_v37, %v10460_v42 }
 0xe43   : > { %v5415_v12 = vpop.f32.mrf.mxu3 }
 0xe44   : > { %5604 = vst [vmem:[#allocation2 + $0x40] sm:$0xff] %v10925_v1  ;;  %v5465_v35 = vadd.f32 %v5464_v36, %v5415_v12  ;;  %v5562_v58 = vpop.f32.mrf.mxu2 }
 0xe45   : > { %v5467_v8 = vpop.f32.mrf.mxu0 }
 0xe46   : > { %v5514_v19 = vadd.f32 %v5513_v62, %v5465_v35  ;;  %v5516_v9 = vpop.f32.mrf.mxu1 }
 0xe48   : > { %v5563_v53 = vadd.f32 %v5562_v58, %v5514_v19 }
 0xe4a   : > { %v10929_v54 = vadd.f32 %v5563_v53, %v10469_v57 }
 0xe4b   : > { %v5418_v61 = vpop.f32.mrf.mxu3 }
 0xe4c   : > { %5605 = vst [vmem:[#allocation2 + $0x20] sm:$0xff] %v10929_v54  ;;  %v5468_v63 = vadd.f32 %v5467_v8, %v5418_v61  ;;  %v5565_v15 = vpop.f32.mrf.mxu2 }
 0xe4d   : > { %v5469_v42 = vpop.f32.mrf.mxu0 }
 0xe4e   : > { %v5517_v40 = vadd.f32 %v5516_v9, %v5468_v63  ;;  %v5518_v11 = vpop.f32.mrf.mxu1 }
 0xe50   : > { %v5566_v21 = vadd.f32 %v5565_v15, %v5517_v40 }
 0xe52   : > { %v10933_v20 = vadd.f32 %v5566_v21, %v10476_v17 }
 0xe53   : > { %v5420_v28 = vpop.f32.mrf.mxu3 }
 0xe54   : > { %5606 = vst [vmem:[#allocation2 + $0x10] sm:$0xff] %v10933_v20  ;;  %v5470_v29 = vadd.f32 %v5469_v42, %v5420_v28  ;;  %v5567_v41 = vpop.f32.mrf.mxu2 }
 0xe55   : > { %v5472_v5 = vpop.f32.mrf.mxu0 }
 0xe56   : > { %v5519_v22 = vadd.f32 %v5518_v11, %v5470_v29  ;;  %v5521_v4 = vpop.f32.mrf.mxu1 }
 0xe58   : > { %v5568_v57 = vadd.f32 %v5567_v41, %v5519_v22 }
 0xe5a   : > { %v10937_v7 = vadd.f32 %v5568_v57, %v10483_v51 }
 0xe5b   : > { %v5423_v14 = vpop.f32.mrf.mxu3 }
 0xe5c   : > { %5607 = vst [vmem:[#allocation2 + $0x38] sm:$0xff] %v10937_v7  ;;  %v5473_v32 = vadd.f32 %v5472_v5, %v5423_v14  ;;  %v5570_v52 = vpop.f32.mrf.mxu2 }
 0xe5d   : > { %v5474_v33 = vpop.f32.mrf.mxu0 }
 0xe5e   : > { %v5522_v49 = vadd.f32 %v5521_v4, %v5473_v32  ;;  %v5523_v59 = vpop.f32.mrf.mxu1 }
 0xe60   : > { %v5571_v17 = vadd.f32 %v5570_v52, %v5522_v49 }
 0xe62   : > { %v10941_v24 = vadd.f32 %v5571_v17, %v10534_v55 }
 0xe63   : > { %v5425_v3 = vpop.f32.mrf.mxu3 }
 0xe64   : > { %5608 = vst [vmem:[#allocation2 + $0x60] sm:$0xff] %v10941_v24  ;;  %v5475_v50 = vadd.f32 %v5474_v33, %v5425_v3  ;;  %v5572_v51 = vpop.f32.mrf.mxu2 }
 0xe66   : > { %v5524_v13 = vadd.f32 %v5523_v59, %v5475_v50 }
 0xe68   : > { %v5573_v38 = vadd.f32 %v5572_v51, %v5524_v13 }
 0xe6a   : > { %v10945_v2 = vadd.f32 %v5573_v38, %v10566_v26 }
 0xe6c   : > { %5609 = vst [vmem:[#allocation2 + $0x70] sm:$0xff] %v10945_v2 }
 0xe6f   : > { %v5477_v31 = vpop.f32.mrf.mxu0 }
 0xe70   : > { %v5526_v48 = vpop.f32.mrf.mxu1 }
 0xe77   : > { %v5479_v47 = vpop.f32.mrf.mxu0 }
 0xe78   : > { %v5528_v44 = vpop.f32.mrf.mxu1 }
 0xe7b   : > { %v5428_v16 = vpop.f32.mrf.mxu3 }
 0xe7c   : > { %v5478_v56 = vadd.f32 %v5477_v31, %v5428_v16  ;;  %v5575_v55 = vpop.f32.mrf.mxu2 }
 0xe7e   : > { %v5527_v39 = vadd.f32 %v5526_v48, %v5478_v56 }
 0xe80   : > { %v5576_v23 = vadd.f32 %v5575_v55, %v5527_v39 }
 0xe82   : > { %v10949_v30 = vadd.f32 %v5576_v23, %v10793_v43 }
 0xe83   : > { %v5430_v0 = vpop.f32.mrf.mxu3 }
 0xe84   : > { %5610 = vst [vmem:[#allocation2 + $0x78] sm:$0xff] %v10949_v30  ;;  %v5480_v36 = vadd.f32 %v5479_v47, %v5430_v0  ;;  %v5577_v62 = vpop.f32.mrf.mxu2 }
 0xe86   : > { %v5529_v26 = vadd.f32 %v5528_v44, %v5480_v36 }
 0xe88   : > { %v5578_v37 = vadd.f32 %v5577_v62, %v5529_v26  ;;  %5615 = sbr.rel (%p6881_p11) target bundleno = 4091 (0xffb), region = 116 }
 0xe8a   : > { %v10953_v12 = vadd.f32 %v5578_v37, %v10804_v34 }
 0xe8c   : > { %5611 = vst [vmem:[#allocation2 + $0x28] sm:$0xff] %v10953_v12 }
 0xe8d   : > { %5642 = vadd.xlane.f32.xlu1 %v10941_v24  ;;  %5634 = vadd.xlane.f32.xlu0 %v10925_v1  ;;  %v5674_v43 = vmul.f32 %v10925_v1, %v10925_v1  ;;  %v5675_v35 = vmul.f32 %v10929_v54, %v10929_v54  ;;  %v5679_v34 = vmul.f32 %v10945_v2, %v10945_v2  ;;  %v7026_v29 = vld [vmem:[#allocation16 + $0x38] sm:$0xff]  ;;  %v7025_v41 = vld [vmem:[#allocation16 + $0x30] sm:$0xff]  ;;  %v7024_v22 = vld [vmem:[#allocation16 + $0x28] sm:$0xff] }
 0xe8e   : > { %v5678_v58 = vmul.f32 %v10941_v24, %v10941_v24  ;;  %v5667_v8 = vmul.f32 %v10897_v27, %v10897_v27  ;;  %v5666_v19 = vmul.f32 %v10893_v10, %v10893_v10  ;;  %v5670_v9 = vmul.f32 %v10909_v60, %v10909_v60  ;;  %7045 = vmatpush.bf16.msra.mxu2 %v7026_v29  ;;  %v7023_v57 = vld [vmem:[#allocation16 + $0x20] sm:$0xff]  ;;  %v7022_v5 = vld [vmem:[#allocation16 + $0x18] sm:$0xff]  ;;  %v7021_v4 = vld [vmem:[#allocation16 + $0x10] sm:$0xff] }
 0xe8f   : > { %5698 = vadd.xlane.f32.xlu2 %v5674_v43  ;;  %v5671_v53 = vmul.f32 %v10913_v25, %v10913_v25  ;;  %v5676_v61 = vmul.f32 %v10933_v20, %v10933_v20  ;;  %v5680_v63 = vmul.f32 %v10949_v30, %v10949_v30  ;;  %v5677_v15 = vmul.f32 %v10937_v7, %v10937_v7  ;;  %v11608_v52 = vld [vmem:[#allocation38_spill] sm:$0xff]  ;;  %v7020_v3 = vld [vmem:[#allocation16 + $0x8] sm:$0xff] }
 0xe90   : > { %v5681_v40 = vmul.f32 %v10953_v12, %v10953_v12  ;;  %v5668_v42 = vmul.f32 %v10901_v18, %v10901_v18  ;;  %v5669_v21 = vmul.f32 %v10905_v6, %v10905_v6  ;;  %v5673_v11 = vmul.f32 %v10921_v45, %v10921_v45  ;;  %7046 = vmatpush.bf16.msra.mxu3 %v7026_v29  ;;  %v7019_v13 = vld [vmem:[#allocation16] sm:$0xff] }
 0xe91   : > { %v5672_v28 = vmul.f32 %v10917_v46, %v10917_v46  ;;  %6084 = vmatpush.bf16.msra.mxu0 %v7026_v29  ;;  %7044 = vmatpush.bf16.msra.mxu1 %v7026_v29 }
 0xe92   : > { %7048 = vmatpush.bf16.msra.mxu2 %v7025_v41 }
 0xe94   : > { %7049 = vmatpush.bf16.msra.mxu3 %v7025_v41 }
 0xe95   : > { %5644 = vadd.xlane.f32.xlu1 %v10945_v2  ;;  %5636 = vadd.xlane.f32.xlu0 %v10929_v54 }
 0xe96   : > { %6085 = vmatpush.bf16.msra.mxu0 %v7025_v41  ;;  %7047 = vmatpush.bf16.msra.mxu1 %v7025_v41 }
 0xe97   : > { %5700 = vadd.xlane.f32.xlu2 %v5675_v35  ;;  %7051 = vmatpush.bf16.msra.mxu2 %v7024_v22 }
 0xe98   : > { %7052 = vmatpush.bf16.msra.mxu3 %v7024_v22 }
 0xe9a   : > { %6086 = vmatpush.bf16.msra.mxu0 %v7024_v22  ;;  %7050 = vmatpush.bf16.msra.mxu1 %v7024_v22 }
 0xe9b   : > { %7054 = vmatpush.bf16.msra.mxu2 %v7023_v57 }
 0xe9c   : > { %7055 = vmatpush.bf16.msra.mxu3 %v7023_v57 }
 0xe9d   : > { %5708 = vadd.xlane.f32.xlu1 %v5679_v34  ;;  %5706 = vadd.xlane.f32.xlu0 %v5678_v58 }
 0xe9e   : > { %6087 = vmatpush.bf16.msra.mxu0 %v7023_v57  ;;  %7053 = vmatpush.bf16.msra.mxu1 %v7023_v57 }
 0xe9f   : > { %5618 = vadd.xlane.f32.xlu2 %v10893_v10  ;;  %7057 = vmatpush.bf16.msra.mxu2 %v7022_v5 }
 0xea0   : > { %7058 = vmatpush.bf16.msra.mxu3 %v7022_v5 }
 0xea2   : > { %6088 = vmatpush.bf16.msra.mxu0 %v7022_v5  ;;  %7056 = vmatpush.bf16.msra.mxu1 %v7022_v5 }
 0xea3   : > { %7060 = vmatpush.bf16.msra.mxu2 %v7021_v4 }
 0xea4   : > { %7061 = vmatpush.bf16.msra.mxu3 %v7021_v4 }
 0xea5   : > { %5626 = vadd.xlane.f32.xlu1 %v10909_v60  ;;  %5620 = vadd.xlane.f32.xlu0 %v10897_v27 }
 0xea6   : > { %6089 = vmatpush.bf16.msra.mxu0 %v7021_v4  ;;  %7059 = vmatpush.bf16.msra.mxu1 %v7021_v4 }
 0xea7   : > { %5628 = vadd.xlane.f32.xlu2 %v10913_v25  ;;  %7063 = vmatpush.bf16.msra.mxu2 %v7020_v3 }
 0xea8   : > { %7064 = vmatpush.bf16.msra.mxu3 %v7020_v3 }
 0xeaa   : > { %6090 = vmatpush.bf16.msra.mxu0 %v7020_v3  ;;  %7062 = vmatpush.bf16.msra.mxu1 %v7020_v3 }
 0xeab   : > { %7066 = vmatpush.bf16.msra.mxu2 %v7019_v13 }
 0xeac   : > { %7067 = vmatpush.bf16.msra.mxu3 %v7019_v13 }
 0xead   : > { %5684 = vadd.xlane.f32.xlu1 %v5667_v8  ;;  %5682 = vadd.xlane.f32.xlu0 %v5666_v19 }
 0xeae   : > { %6091 = vmatpush.bf16.msra.mxu0 %v7019_v13  ;;  %7065 = vmatpush.bf16.msra.mxu1 %v7019_v13 }
 0xeaf   : > { %5690 = vadd.xlane.f32.xlu2 %v5670_v9 }
 0xeb5   : > { %5638 = vadd.xlane.f32.xlu1 %v10933_v20  ;;  %5692 = vadd.xlane.f32.xlu0 %v5671_v53 }
 0xeb7   : > { %5640 = vadd.xlane.f32.xlu2 %v10937_v7 }
 0xebd   : > { %5648 = vadd.xlane.f32.xlu1 %v10953_v12  ;;  %5646 = vadd.xlane.f32.xlu0 %v10949_v30 }
 0xebf   : > { %5702 = vadd.xlane.f32.xlu2 %v5676_v61 }
 0xec5   : > { %5710 = vadd.xlane.f32.xlu1 %v5680_v63  ;;  %5704 = vadd.xlane.f32.xlu0 %v5677_v15 }
 0xec7   : > { %5712 = vadd.xlane.f32.xlu2 %v5681_v40 }
 0xecd   : > { %5624 = vadd.xlane.f32.xlu1 %v10905_v6  ;;  %5622 = vadd.xlane.f32.xlu0 %v10901_v18 }
 0xecf   : > { %5630 = vadd.xlane.f32.xlu2 %v10917_v46 }
 0xed5   : > { %5686 = vadd.xlane.f32.xlu1 %v5668_v42  ;;  %5632 = vadd.xlane.f32.xlu0 %v10921_v45 }
 0xed7   : > { %5688 = vadd.xlane.f32.xlu2 %v5669_v21 }
 0xedd   : > { %5696 = vadd.xlane.f32.xlu1 %v5673_v11  ;;  %5694 = vadd.xlane.f32.xlu0 %v5672_v28 }
 0xf00   : > { %v5643_v14 = vpop.xlane.xlu1 %5642  ;;  %v5635_v32 = vpop.xlane.xlu0 %5634 }
 0xf01   : > { %v11006_v49 = vmul.f32 %v5635_v32, %v11608_v52  ;;  %v11017_v55 = vmul.f32 %v5643_v14, %v11608_v52 }
 0xf02   : > { %v5699_v17 = vpop.xlane.xlu2 %5698 }
 0xf03   : > { %v5738_v33 = vmul.f32 %v11006_v49, %v11006_v49  ;;  %v5722_v50 = vmul.f32 %v5699_v17, %v11608_v52  ;;  %v5742_v36 = vmul.f32 %v11017_v55, %v11017_v55  ;;  %v5774_v4 = vsub.f32 %v10941_v24, %v11017_v55 }
 0xf04   : > { %v5770_v17 = vsub.f32 %v10925_v1, %v11006_v49 }
 0xf05   : > { %v5754_v59 = vsub.f32 %v5722_v50, %v5738_v33 }
 0xf07   : > { %v5786_v51 = vadd.f32 1e-05, %v5754_v59 }
 0xf08   : > { %v5645_v38 = vpop.xlane.xlu1 %5644  ;;  %v5637_v31 = vpop.xlane.xlu0 %5636 }
 0xf09   : > { %v11012_v48 = vmul.f32 %v5637_v31, %v11608_v52  ;;  %7575 = vrsqrt.f32 %v5786_v51  ;;  %v11021_v23 = vmul.f32 %v5645_v38, %v11608_v52  ;;  %vm5880_vm9 = vweird.f32 %v5786_v51 }
 0xf0a   : > { %v5701_v16 = vpop.xlane.xlu2 %5700 }
 0xf0b   : > { %v5739_v56 = vmul.f32 %v11012_v48, %v11012_v48  ;;  %v5723_v39 = vmul.f32 %v5701_v16, %v11608_v52  ;;  %v5743_v43 = vmul.f32 %v11021_v23, %v11021_v23  ;;  %v5771_v3 = vsub.f32 %v10929_v54, %v11012_v48 }
 0xf0d   : > { %v5755_v47 = vsub.f32 %v5723_v39, %v5739_v56 }
 0xf0f   : > { %v7576_v0 = vpop.eup %7575  ;;  %v5787_v44 = vadd.f32 1e-05, %v5755_v47 }
 0xf10   : > { %v5709_v26 = vpop.xlane.xlu1 %5708  ;;  %v5707_v62 = vpop.xlane.xlu0 %5706  ;;  %v5875_v37 = vmul.f32 %v7576_v0, %v5786_v51  ;;  %vm5881_vm8 = vweird.f32 %v7576_v0 }
 0xf11   : > { %v5727_v35 = vmul.f32 %v5709_v26, %v11608_v52  ;;  %v5726_v34 = vmul.f32 %v5707_v62, %v11608_v52  ;;  %7577 = vrsqrt.f32 %v5787_v44  ;;  %vm11049_vm10 = vmor %vm5880_vm9, %vm5881_vm8  ;;  %vm5890_vm11 = vweird.f32 %v5787_v44 }
 0xf12   : > { %v5619_v58 = vpop.xlane.xlu2 %5618  ;;  %v5876_v8 = vmul.f32 %v7576_v0, %v5875_v37 }
 0xf13   : > { %v5759_v19 = vsub.f32 %v5727_v35, %v5743_v43  ;;  %v5758_v9 = vsub.f32 %v5726_v34, %v5742_v36  ;;  %v11036_v22 = vmul.f32 %v5619_v58, %v11608_v52  ;;  %v11080_v43 = vld [vmem:[%s11611_s4] ss:$0 sm:$0xff] }
 0xf14   : > { %v5877_v53 = vmul.f32 0.5, %v5876_v8 }
 0xf15   : > { %v11029_v61 = vadd.f32 1e-05, %v5759_v19  ;;  %v11031_v63 = vadd.f32 1e-05, %v5758_v9  ;;  %v5730_v54 = vmul.f32 %v11036_v22, %v11036_v22 }
 0xf16   : > { %v5878_v15 = vsub.f32 1.5, %v5877_v53 }
 0xf17   : > { %7579 = vrsqrt.f32 %v11029_v61  ;;  %v7578_v40 = vpop.eup %7577  ;;  %vm5930_vm0 = vweird.f32 %v11029_v61  ;;  %vm5920_vm2 = vweird.f32 %v11031_v63 }
 0xf18   : > { %7581 = vrsqrt.f32 %v11031_v63  ;;  %v5627_v42 = vpop.xlane.xlu1 %5626  ;;  %v5621_v21 = vpop.xlane.xlu0 %5620  ;;  %v5885_v11 = vmul.f32 %v7578_v40, %v5787_v44  ;;  %v5879_v29 = vmul.f32 %v7576_v0, %v5878_v15  ;;  %vm5891_vm12 = vweird.f32 %v7578_v40 }
 0xf19   : > { %v11039_v57 = vmul.f32 %v5621_v21, %v11608_v52  ;;  %v11058_v59 = vmul.f32 %v5627_v42, %v11608_v52  ;;  %vm5892_vm13 = vmor %vm5890_vm11, %vm5891_vm12 }
 0xf1a   : > { %v5629_v28 = vpop.xlane.xlu2 %5628  ;;  %v5886_v41 = vmul.f32 %v7578_v40, %v5885_v11  ;;  %v5883_v1 = vsel %vm11049_vm10, %v7576_v0, %v5879_v29  ;;  %v11097_v29 = vld [vmem:[%s11612_s24] ss:$0 sm:$0xff] }
 0xf1b   : > { %v5731_v38 = vmul.f32 %v11039_v57, %v11039_v57  ;;  %v5734_v0 = vmul.f32 %v11058_v59, %v11058_v59  ;;  %v11075_v26 = vmul.f32 %v5629_v28, %v11608_v52  ;;  %v5962_v37 = vmul.f32 %v5883_v1, %v5770_v17 }
 0xf1c   : > { %v5887_v14 = vmul.f32 0.5, %v5886_v41 }
 0xf1d   : > { %v11041_v5 = vpop.eup %7579  ;;  %v5981_v28 = vmul.f32 %v11080_v43, %v5962_v37 }
 0xf1e   : > { %v11045_v32 = vpop.eup %7581  ;;  %v5925_v50 = vmul.f32 %v11041_v5, %v11029_v61  ;;  %v5888_v13 = vsub.f32 1.5, %v5887_v14  ;;  %vm5931_vm14 = vweird.f32 %v11041_v5 }
 0xf1f   : > { %v5915_v51 = vmul.f32 %v11045_v32, %v11031_v63  ;;  %vm5921_vm15 = vweird.f32 %v11045_v32  ;;  %vm5932_vm1 = vmor %vm5930_vm0, %vm5931_vm14 }
 0xf20   : > { %v5926_v49 = vmul.f32 %v11041_v5, %v5925_v50  ;;  %v5685_v31 = vpop.xlane.xlu1 %5684  ;;  %v5683_v48 = vpop.xlane.xlu0 %5682  ;;  %v5889_v16 = vmul.f32 %v7578_v40, %v5888_v13  ;;  %vm5922_vm3 = vmor %vm5920_vm2, %vm5921_vm15 }
 0xf21   : > { %v5916_v56 = vmul.f32 %v11045_v32, %v5915_v51  ;;  %v5715_v39 = vmul.f32 %v5685_v31, %v11608_v52  ;;  %v5714_v47 = vmul.f32 %v5683_v48, %v11608_v52  ;;  %v6000_v51 = vadd.f32 %v11097_v29, %v5981_v28 }
 0xf22   : > { %v5927_v36 = vmul.f32 0.5, %v5926_v49  ;;  %v5691_v62 = vpop.xlane.xlu2 %5690  ;;  %v5893_v9 = vsel %vm5892_vm13, %v7578_v40, %v5889_v16  ;;  %v5775_v40 = vsub.f32 %v10945_v2, %v11021_v23  ;;  %v5735_v23 = vmul.f32 %v11075_v26, %v11075_v26 }
 0xf23   : > { %v5917_v35 = vmul.f32 0.5, %v5916_v56  ;;  %v5747_v34 = vsub.f32 %v5715_v39, %v5731_v38  ;;  %v5746_v58 = vsub.f32 %v5714_v47, %v5730_v54  ;;  %v5718_v8 = vmul.f32 %v5691_v62, %v11608_v52 }
 0xf24   : > { %v5928_v19 = vsub.f32 1.5, %v5927_v36  ;;  %v5963_v11 = vmul.f32 %v5893_v9, %v5771_v3 }
 0xf25   : > { %v5918_v53 = vsub.f32 1.5, %v5917_v35  ;;  %v11087_v15 = vadd.f32 1e-05, %v5747_v34  ;;  %v11089_v42 = vadd.f32 1e-05, %v5746_v58  ;;  %v5750_v21 = vsub.f32 %v5718_v8, %v5734_v0 }
 0xf26   : > { %v5929_v44 = vmul.f32 %v11041_v5, %v5928_v19  ;;  %v5982_v33 = vmul.f32 %v11080_v43, %v5963_v11  ;;  %v5762_v35 = vsub.f32 %v10893_v10, %v11036_v22  ;;  %v5763_v8 = vsub.f32 %v10897_v27, %v11039_v57 }
 0xf27   : > { %v5919_v41 = vmul.f32 %v11045_v32, %v5918_v53  ;;  %7583 = vrsqrt.f32 %v11087_v15  ;;  %v11107_v61 = vadd.f32 1e-05, %v5750_v21  ;;  %vm5810_vm4 = vweird.f32 %v11087_v15 }
 0xf28   : > { %7585 = vrsqrt.f32 %v11089_v42  ;;  %v5639_v14 = vpop.xlane.xlu1 %5638  ;;  %v5693_v17 = vpop.xlane.xlu0 %5692  ;;  %v5933_v2 = vsel %vm5932_vm1, %v11041_v5, %v5929_v44  ;;  %v6001_v1 = vadd.f32 %v11097_v29, %v5982_v33  ;;  %vm5800_vm5 = vweird.f32 %v11089_v42 }
 0xf29   : > { %v5719_v63 = vmul.f32 %v5693_v17, %v11608_v52  ;;  %v5923_v3 = vsel %vm5922_vm3, %v11045_v32, %v5919_v41  ;;  %v5967_v50 = vmul.f32 %v5933_v2, %v5775_v40  ;;  %7587 = vrsqrt.f32 %v11107_v61 }
 0xf2a   : > { %v5641_v13 = vpop.xlane.xlu2 %5640  ;;  %v5966_v49 = vmul.f32 %v5923_v3, %v5774_v4  ;;  %v6012_v54 = vpack.c.bf16 %v6001_v1, %v6000_v51  ;;  %v11133_v4 = vmul.f32 %v5639_v14, %v11608_v52  ;;  %vm5840_vm8 = vweird.f32 %v11107_v61 }
 0xf2b   : > { %v5751_v5 = vsub.f32 %v5719_v63, %v5735_v23  ;;  %v5986_v31 = vmul.f32 %v11080_v43, %v5967_v50  ;;  %v11151_v22 = vmul.f32 %v5641_v13, %v11608_v52 }
 0xf2c   : > { %v5985_v38 = vmul.f32 %v11080_v43, %v5966_v49  ;;  %6112 = vmatmul.bf16.vlgmr.msra.gmra.mxu2 %v6012_v54  ;;  %v5740_v10 = vmul.f32 %v11133_v4, %v11133_v4 }
 0xf2d   : > { %v11123_v48 = vpop.eup %7583  ;;  %v11125_v32 = vadd.f32 1e-05, %v5751_v5  ;;  %v6005_v24 = vadd.f32 %v11097_v29, %v5986_v31  ;;  %v5741_v3 = vmul.f32 %v11151_v22, %v11151_v22 }
 0xf2e   : > { %v7586_v16 = vpop.eup %7585  ;;  %v5805_v56 = vmul.f32 %v11123_v48, %v11087_v15  ;;  %v6004_v39 = vadd.f32 %v11097_v29, %v5985_v38  ;;  %vm5811_vm6 = vweird.f32 %v11123_v48 }
 0xf2f   : > { %v5795_v55 = vmul.f32 %v7586_v16, %v11089_v42  ;;  %7589 = vrsqrt.f32 %v11125_v32  ;;  %v11136_v47 = vpop.eup %7587  ;;  %vm5801_vm7 = vweird.f32 %v7586_v16  ;;  %vm11169_vm9 = vmor %vm5810_vm4, %vm5811_vm6  ;;  %vm5850_vm14 = vweird.f32 %v11125_v32 }
 0xf30   : > { %v5806_v36 = vmul.f32 %v11123_v48, %v5805_v56  ;;  %v5649_v0 = vpop.xlane.xlu1 %5648  ;;  %v5647_v62 = vpop.xlane.xlu0 %5646  ;;  %v6014_v37 = vpack.c.bf16 %v6005_v24, %v6004_v39  ;;  %v5835_v58 = vmul.f32 %v11136_v47, %v11107_v61  ;;  %vm5841_vm10 = vweird.f32 %v11136_v47  ;;  %vm5802_vm11 = vmor %vm5800_vm5, %vm5801_vm7 }
 0xf31   : > { %v5796_v34 = vmul.f32 %v7586_v16, %v5795_v55  ;;  %v11155_v27 = vmul.f32 %v5647_v62, %v11608_v52  ;;  %v11165_v17 = vmul.f32 %v5649_v0, %v11608_v52  ;;  %vm11196_vm12 = vmor %vm5840_vm8, %vm5841_vm10 }
 0xf32   : > { %v5807_v19 = vmul.f32 0.5, %v5806_v36  ;;  %6122 = vmatmul.bf16.vlgmr.msra.gmra.mxu3 %v6014_v37  ;;  %v5703_v9 = vpop.xlane.xlu2 %5702  ;;  %v5836_v21 = vmul.f32 %v11136_v47, %v5835_v58 }
 0xf33   : > { %v5797_v53 = vmul.f32 0.5, %v5796_v34  ;;  %v5724_v57 = vmul.f32 %v5703_v9, %v11608_v52  ;;  %v5744_v13 = vmul.f32 %v11155_v27, %v11155_v27  ;;  %v5745_v56 = vmul.f32 %v11165_v17, %v11165_v17 }
 0xf34   : > { %v5808_v44 = vsub.f32 1.5, %v5807_v19  ;;  %v5837_v40 = vmul.f32 0.5, %v5836_v21  ;;  %v5766_v9 = vsub.f32 %v10909_v60, %v11058_v59  ;;  %v5767_v21 = vsub.f32 %v10913_v25, %v11075_v26 }
 0xf35   : > { %v11158_v11 = vpop.eup %7589  ;;  %v5798_v28 = vsub.f32 1.5, %v5797_v53  ;;  %v5756_v33 = vsub.f32 %v5724_v57, %v5740_v10 }
 0xf36   : > { %v5809_v41 = vmul.f32 %v11123_v48, %v5808_v44  ;;  %v5845_v14 = vmul.f32 %v11158_v11, %v11125_v32  ;;  %v5838_v63 = vsub.f32 1.5, %v5837_v40  ;;  %vm5851_vm13 = vweird.f32 %v11158_v11 }
 0xf37   : > { %v5799_v23 = vmul.f32 %v7586_v16, %v5798_v28  ;;  %v11181_v15 = vadd.f32 1e-05, %v5756_v33  ;;  %vm5852_vm15 = vmor %vm5850_vm14, %vm5851_vm13  ;;  %v5773_v33 = vsub.f32 %v10937_v7, %v11151_v22 }
 0xf38   : > { %v5846_v50 = vmul.f32 %v11158_v11, %v5845_v14  ;;  %v5711_v51 = vpop.xlane.xlu1 %5710  ;;  %v5705_v1 = vpop.xlane.xlu0 %5704  ;;  %v5813_v49 = vsel %vm11169_vm9, %v11123_v48, %v5809_v41  ;;  %v5839_v5 = vmul.f32 %v11136_v47, %v5838_v63  ;;  %v5772_v14 = vsub.f32 %v10933_v20, %v11133_v4 }
 0xf39   : > { %v5728_v54 = vmul.f32 %v5711_v51, %v11608_v52  ;;  %v5725_v42 = vmul.f32 %v5705_v1, %v11608_v52  ;;  %v5803_v38 = vsel %vm5802_vm11, %v7586_v16, %v5799_v23  ;;  %7591 = vrsqrt.f32 %v11181_v15 }
 0xf3a   : > { %v5847_v31 = vmul.f32 0.5, %v5846_v50  ;;  %v5713_v39 = vpop.xlane.xlu2 %5712  ;;  %v5954_v24 = vmul.f32 %v5803_v38, %v5762_v35  ;;  %v5955_v0 = vmul.f32 %v5813_v49, %v5763_v8  ;;  %v5843_v35 = vsel %vm11196_vm12, %v11136_v47, %v5839_v5 }
 0xf3b   : > { %v5760_v55 = vsub.f32 %v5728_v54, %v5744_v13  ;;  %v5757_v36 = vsub.f32 %v5725_v42, %v5741_v3  ;;  %v5729_v16 = vmul.f32 %v5713_v39, %v11608_v52  ;;  %v5958_v57 = vmul.f32 %v5843_v35, %v5766_v9 }
 0xf3c   : > { %v5848_v62 = vsub.f32 1.5, %v5847_v31  ;;  %v5973_v37 = vmul.f32 %v11080_v43, %v5954_v24  ;;  %v5974_v19 = vmul.f32 %v11080_v43, %v5955_v0  ;;  %v5776_v63 = vsub.f32 %v10949_v30, %v11155_v27 }
 0xf3d   : > { %v11206_v34 = vadd.f32 1e-05, %v5760_v55  ;;  %v11208_v61 = vadd.f32 1e-05, %v5757_v36  ;;  %v5761_v58 = vsub.f32 %v5729_v16, %v5745_v56  ;;  %v5977_v2 = vmul.f32 %v11080_v43, %v5958_v57 }
 0xf3e   : > { %v5849_v8 = vmul.f32 %v11158_v11, %v5848_v62  ;;  %v5992_v53 = vadd.f32 %v11097_v29, %v5973_v37  ;;  %v5993_v59 = vadd.f32 %v11097_v29, %v5974_v19  ;;  %vm5900_vm0 = vweird.f32 %v11181_v15 }
 0xf3f   : > { %7593 = vrsqrt.f32 %v11206_v34  ;;  %v11219_v47 = vadd.f32 1e-05, %v5761_v58  ;;  %v11221_v10 = vpop.eup %7591  ;;  %vm5940_vm1 = vweird.f32 %v11206_v34  ;;  %v5996_v24 = vadd.f32 %v11097_v29, %v5977_v2 }
 0xf40   : > { %7595 = vrsqrt.f32 %v11208_v61  ;;  %v5625_v44 = vpop.xlane.xlu1 %5624  ;;  %v5623_v60 = vpop.xlane.xlu0 %5622  ;;  %v5853_v32 = vsel %vm5852_vm15, %v11158_v11, %v5849_v8  ;;  %v5895_v28 = vmul.f32 %v11221_v10, %v11181_v15  ;;  %v6008_v25 = vpack.c.bf16 %v5993_v59, %v5992_v53 }
 0xf41   : > { %7597 = vrsqrt.f32 %v11219_v47  ;;  %v5959_v40 = vmul.f32 %v5853_v32, %v5767_v21  ;;  %v5777_v11 = vsub.f32 %v10953_v12, %v11165_v17  ;;  %v11242_v50 = vmul.f32 %v5623_v60, %v11608_v52 }
 0xf42   : > { %v5631_v26 = vpop.xlane.xlu2 %5630  ;;  %v5896_v41 = vmul.f32 %v11221_v10, %v5895_v28  ;;  %6092 = vmatmul.bf16.vlgmr.msra.gmra.mxu0 %v6008_v25  ;;  %v11250_v51 = vmul.f32 %v5625_v44, %v11608_v52  ;;  %vm5901_vm2 = vweird.f32 %v11221_v10  ;;  %vm5910_vm8 = vweird.f32 %v11208_v61 }
 0xf43   : > { %v5978_v20 = vmul.f32 %v11080_v43, %v5959_v40  ;;  %v11261_v31 = vmul.f32 %v5631_v26, %v11608_v52  ;;  %v5732_v36 = vmul.f32 %v11242_v50, %v11242_v50  ;;  %vm11275_vm3 = vmor %vm5900_vm0, %vm5901_vm2  ;;  %vm5950_vm9 = vweird.f32 %v11219_v47 }
 0xf44   : > { %v5897_v3 = vmul.f32 0.5, %v5896_v41  ;;  %v5733_v37 = vmul.f32 %v11250_v51, %v11250_v51 }
 0xf45   : > { %v11237_v23 = vpop.eup %7593  ;;  %v5997_v54 = vadd.f32 %v11097_v29, %v5978_v20 }
 0xf46   : > { %v7596_v4 = vpop.eup %7595  ;;  %v5935_v13 = vmul.f32 %v11237_v23, %v11206_v34  ;;  %v5898_v49 = vsub.f32 1.5, %v5897_v3  ;;  %vm5941_vm4 = vweird.f32 %v11237_v23 }
 0xf47   : > { %v11252_v1 = vpop.eup %7597  ;;  %v5905_v5 = vmul.f32 %v7596_v4, %v11208_v61  ;;  %v6010_v35 = vpack.c.bf16 %v5997_v54, %v5996_v24  ;;  %vm5911_vm5 = vweird.f32 %v7596_v4  ;;  %vm11293_vm7 = vmor %vm5940_vm1, %vm5941_vm4 }
 0xf48   : > { %v5936_v42 = vmul.f32 %v11237_v23, %v5935_v13  ;;  %v5945_v38 = vmul.f32 %v11252_v1, %v11219_v47  ;;  %v5687_v56 = vpop.xlane.xlu1 %5686  ;;  %v5633_v39 = vpop.xlane.xlu0 %5632  ;;  %v5899_v48 = vmul.f32 %v11221_v10, %v5898_v49  ;;  %vm5951_vm6 = vweird.f32 %v11252_v1  ;;  %vm5912_vm10 = vmor %vm5910_vm8, %vm5911_vm5 }
 0xf49   : > { %v5906_v55 = vmul.f32 %v7596_v4, %v5905_v5  ;;  %v5716_v16 = vmul.f32 %v5687_v56, %v11608_v52  ;;  %6102 = vmatmul.bf16.vlgmr.msra.gmra.mxu1 %v6010_v35  ;;  %v11286_v32 = vmul.f32 %v5633_v39, %v11608_v52  ;;  %vm5952_vm11 = vmor %vm5950_vm9, %vm5951_vm6 }
 0xf4a   : > { %v5937_v0 = vmul.f32 0.5, %v5936_v42  ;;  %v5946_v62 = vmul.f32 %v11252_v1, %v5945_v38  ;;  %v5689_v58 = vpop.xlane.xlu2 %5688  ;;  %v5903_v60 = vsel %vm11275_vm3, %v11221_v10, %v5899_v48 }
 0xf4b   : > { %v5907_v9 = vmul.f32 0.5, %v5906_v55  ;;  %v5748_v8 = vsub.f32 %v5716_v16, %v5732_v36  ;;  %v5717_v44 = vmul.f32 %v5689_v58, %v11608_v52  ;;  %v5964_v26 = vmul.f32 %v5903_v60, %v5772_v14 }
 0xf4c   : > { %v5938_v53 = vsub.f32 1.5, %v5937_v0  ;;  %v5947_v21 = vmul.f32 0.5, %v5946_v62  ;;  %v5736_v14 = vmul.f32 %v11261_v31, %v11261_v31  ;;  %v5737_v61 = vmul.f32 %v11286_v32, %v11286_v32 }
 0xf4d   : > { %v5908_v59 = vsub.f32 1.5, %v5907_v9  ;;  %v5780_v15 = vadd.f32 1e-05, %v5748_v8  ;;  %v5749_v25 = vsub.f32 %v5717_v44, %v5733_v37  ;;  %v5983_v54 = vmul.f32 %v11080_v43, %v5964_v26 }
 0xf4e   : > { %v5939_v57 = vmul.f32 %v11237_v23, %v5938_v53  ;;  %v5948_v28 = vsub.f32 1.5, %v5947_v21  ;;  %v5764_v8 = vsub.f32 %v10901_v18, %v11242_v50 }
 0xf4f   : > { %v5909_v10 = vmul.f32 %v7596_v4, %v5908_v59  ;;  %7599 = vrsqrt.f32 %v5780_v15  ;;  %v5781_v2 = vadd.f32 1e-05, %v5749_v25  ;;  %v6002_v48 = vadd.f32 %v11097_v29, %v5983_v54 }
 0xf50   : > { %v5949_v41 = vmul.f32 %v11252_v1, %v5948_v28  ;;  %v5697_v3 = vpop.xlane.xlu1 %5696  ;;  %v5695_v34 = vpop.xlane.xlu0 %5694  ;;  %v5943_v20 = vsel %vm11293_vm7, %v11237_v23, %v5939_v57  ;;  %vm5820_vm13 = vweird.f32 %v5780_v15  ;;  %v5765_v25 = vsub.f32 %v10905_v6, %v11250_v51 }
 0xf51   : > { %v5721_v47 = vmul.f32 %v5697_v3, %v11608_v52  ;;  %v5720_v13 = vmul.f32 %v5695_v34, %v11608_v52  ;;  %v5913_v49 = vsel %vm5912_vm10, %v7596_v4, %v5909_v10  ;;  %7601 = vrsqrt.f32 %v5781_v2 }
 0xf52   : > { %v5965_v5 = vmul.f32 %v5913_v49, %v5773_v33  ;;  %v5953_v23 = vsel %vm5952_vm11, %v11252_v1, %v5949_v41  ;;  %v5968_v56 = vmul.f32 %v5943_v20, %v5776_v63  ;;  %vm5830_vm0 = vweird.f32 %v5781_v2 }
 0xf53   : > { %v5753_v42 = vsub.f32 %v5721_v47, %v5737_v61  ;;  %v5752_v38 = vsub.f32 %v5720_v13, %v5736_v14  ;;  %v5969_v52 = vmul.f32 %v5953_v23, %v5777_v11  ;;  %v5769_v3 = vsub.f32 %v10921_v45, %v11286_v32  ;;  %v7574_v23 = vld [vmem:[%s11621_s11] ss:$0 sm:$0xff] }
 0xf54   : > { %v5984_v4 = vmul.f32 %v11080_v43, %v5965_v5  ;;  %v5987_v22 = vmul.f32 %v11080_v43, %v5968_v56  ;;  %v5768_v51 = vsub.f32 %v10917_v46, %v11261_v31 }
 0xf55   : > { %v7600_v39 = vpop.eup %7599  ;;  %v5785_v24 = vadd.f32 1e-05, %v5753_v42  ;;  %v5784_v7 = vadd.f32 1e-05, %v5752_v38  ;;  %v5988_v33 = vmul.f32 %v11080_v43, %v5969_v52 }
 0xf56   : > { %v5815_v1 = vmul.f32 %v7600_v39, %v5780_v15  ;;  %v6003_v55 = vadd.f32 %v11097_v29, %v5984_v4  ;;  %v6006_v30 = vadd.f32 %v11097_v29, %v5987_v22  ;;  %vm5821_vm12 = vweird.f32 %v7600_v39 }
 0xf57   : > { %7603 = vrsqrt.f32 %v5785_v24  ;;  %v7602_v27 = vpop.eup %7601  ;;  %v6007_v11 = vadd.f32 %v11097_v29, %v5988_v33  ;;  %vm5822_vm14 = vmor %vm5820_vm13, %vm5821_vm12  ;;  %vm5870_vm4 = vweird.f32 %v5785_v24  ;;  %vm5860_vm6 = vweird.f32 %v5784_v7 }
 0xf58   : > { %v5816_v12 = vmul.f32 %v7600_v39, %v5815_v1  ;;  %7605 = vrsqrt.f32 %v5784_v7  ;;  %v6013_v17 = vpack.c.bf16 %v6003_v55, %v6002_v48  ;;  %v5825_v63 = vmul.f32 %v7602_v27, %v5781_v2 }
 0xf59   : > { %v6015_v16 = vpack.c.bf16 %v6007_v11, %v6006_v30  ;;  %vm5831_vm15 = vweird.f32 %v7602_v27 }
 0xf5a   : > { %v5817_v36 = vmul.f32 0.5, %v5816_v12  ;;  %6117 = vmatmul.bf16.gmra.mxu2 %v6013_v17  ;;  %v5826_v0 = vmul.f32 %v7602_v27, %v5825_v63  ;;  %vm5832_vm1 = vmor %vm5830_vm0, %vm5831_vm15 }
 0xf5b   : > { %6127 = vmatmul.bf16.gmra.mxu3 %v6015_v16 }
 0xf5c   : > { %v5818_v62 = vsub.f32 1.5, %v5817_v36  ;;  %v5827_v35 = vmul.f32 0.5, %v5826_v0 }
 0xf5d   : > { %v7604_v37 = vpop.eup %7603 }
 0xf5e   : > { %v7606_v58 = vpop.eup %7605  ;;  %v5819_v19 = vmul.f32 %v7600_v39, %v5818_v62  ;;  %v5865_v9 = vmul.f32 %v7604_v37, %v5785_v24  ;;  %v5828_v53 = vsub.f32 1.5, %v5827_v35  ;;  %vm5871_vm2 = vweird.f32 %v7604_v37 }
 0xf5f   : > { %v5855_v21 = vmul.f32 %v7606_v58, %v5784_v7  ;;  %vm5861_vm3 = vweird.f32 %v7606_v58  ;;  %vm5872_vm5 = vmor %vm5870_vm4, %vm5871_vm2 }
 0xf60   : > { %v5866_v44 = vmul.f32 %v7604_v37, %v5865_v9  ;;  %v5823_v60 = vsel %vm5822_vm14, %v7600_v39, %v5819_v19  ;;  %v5829_v59 = vmul.f32 %v7602_v27, %v5828_v53  ;;  %vm5862_vm7 = vmor %vm5860_vm6, %vm5861_vm3 }
 0xf61   : > { %v5856_v57 = vmul.f32 %v7606_v58, %v5855_v21  ;;  %v5956_v28 = vmul.f32 %v5823_v60, %v5764_v8 }
 0xf62   : > { %v5867_v26 = vmul.f32 0.5, %v5866_v44  ;;  %v5833_v40 = vsel %vm5832_vm1, %v7602_v27, %v5829_v59 }
 0xf63   : > { %v5857_v15 = vmul.f32 0.5, %v5856_v57  ;;  %v5957_v18 = vmul.f32 %v5833_v40, %v5765_v25  ;;  %v5975_v50 = vmul.f32 %v11080_v43, %v5956_v28 }
 0xf64   : > { %v5868_v10 = vsub.f32 1.5, %v5867_v26 }
 0xf65   : > { %v5858_v41 = vsub.f32 1.5, %v5857_v15  ;;  %v5976_v2 = vmul.f32 %v11080_v43, %v5957_v18  ;;  %v5994_v34 = vadd.f32 %v11097_v29, %v5975_v50 }
 0xf66   : > { %v5869_v14 = vmul.f32 %v7604_v37, %v5868_v10 }
 0xf67   : > { %v5859_v6 = vmul.f32 %v7606_v58, %v5858_v41  ;;  %v5995_v20 = vadd.f32 %v11097_v29, %v5976_v2 }
 0xf68   : > { %v5873_v61 = vsel %vm5872_vm5, %v7604_v37, %v5869_v14 }
 0xf69   : > { %v5863_v47 = vsel %vm5862_vm7, %v7606_v58, %v5859_v6  ;;  %v5961_v13 = vmul.f32 %v5873_v61, %v5769_v3  ;;  %v6009_v49 = vpack.c.bf16 %v5995_v20, %v5994_v34 }
 0xf6a   : > { %v5960_v5 = vmul.f32 %v5863_v47, %v5768_v51 }
 0xf6b   : > { %v5980_v45 = vmul.f32 %v11080_v43, %v5961_v13  ;;  %6097 = vmatmul.bf16.gmra.mxu0 %v6009_v49 }
 0xf6c   : > { %v5979_v32 = vmul.f32 %v11080_v43, %v5960_v5 }
 0xf6d   : > { %v5999_v46 = vadd.f32 %v11097_v29, %v5980_v45 }
 0xf6e   : > { %v5998_v31 = vadd.f32 %v11097_v29, %v5979_v32 }
 0xf70   : > { %v6011_v54 = vpack.c.bf16 %v5999_v46, %v5998_v31 }
 0xf72   : > { %6107 = vmatmul.bf16.gmra.mxu1 %v6011_v54 }
 0xfaf   : > { %v6113_v42 = vpop.f32.mrf.mxu2 }
 0xfb0   : > { %v6114_v38 = vadd.f32 %v7574_v23, %v6113_v42 }
 0xfb2   : > { %6141 = vst [vmem:[%s8377_s6 + $0x40] sm:$0xff] %v6114_v38 }
 0xfb5   : > { %v6123_v56 = vpop.f32.mrf.mxu3 }
 0xfb6   : > { %v6124_v52 = vadd.f32 %v7574_v23, %v6123_v56 }
 0xfb7   : > { %v6115_v43 = vpop.f32.mrf.mxu2 }
 0xfb8   : > { %6145 = vst [vmem:[%s8377_s6 + $0x60] sm:$0xff] %v6124_v52  ;;  %v6116_v4 = vadd.f32 %v7574_v23, %v6115_v43 }
 0xfba   : > { %6142 = vst [vmem:[%s8377_s6 + $0x48] sm:$0xff] %v6116_v4 }
 0xfbd   : > { %v6125_v29 = vpop.f32.mrf.mxu3 }
 0xfbe   : > { %v6126_v39 = vadd.f32 %v7574_v23, %v6125_v29 }
 0xfbf   : > { %v6093_v24 = vpop.f32.mrf.mxu0 }
 0xfc0   : > { %6146 = vst [vmem:[%s8377_s6 + $0x68] sm:$0xff] %v6126_v39  ;;  %v6094_v7 = vadd.f32 %v7574_v23, %v6093_v24 }
 0xfc2   : > { %6133 = vst [vmem:[%s8377_s6] sm:$0xff] %v6094_v7 }
 0xfc6   : > { %v6103_v33 = vpop.f32.mrf.mxu1 }
 0xfc7   : > { %v6095_v22 = vpop.f32.mrf.mxu0  ;;  %v6104_v48 = vadd.f32 %v7574_v23, %v6103_v33 }
 0xfc8   : > { %v6096_v1 = vadd.f32 %v7574_v23, %v6095_v22 }
 0xfc9   : > { %6137 = vst [vmem:[%s8377_s6 + $0x20] sm:$0xff] %v6104_v48 }
 0xfca   : > { %6134 = vst [vmem:[%s8377_s6 + $0x8] sm:$0xff] %v6096_v1 }
 0xfce   : > { %v6105_v55 = vpop.f32.mrf.mxu1 }
 0xfcf   : > { %v6106_v30 = vadd.f32 %v7574_v23, %v6105_v55 }
 0xfd1   : > { %6138 = vst [vmem:[%s8377_s6 + $0x28] sm:$0xff] %v6106_v30 }
 0xfdd   : > { %v6118_v27 = vpop.f32.mrf.mxu2 }
 0xfde   : > { %v6119_v12 = vadd.f32 %v7574_v23, %v6118_v27  ;;  %v6128_v17 = vpop.f32.mrf.mxu3 }
 0xfdf   : > { %v6129_v11 = vadd.f32 %v7574_v23, %v6128_v17 }
 0xfe0   : > { %6143 = vst [vmem:[%s8377_s6 + $0x50] sm:$0xff] %v6119_v12 }
 0xfe1   : > { %6147 = vst [vmem:[%s8377_s6 + $0x70] sm:$0xff] %v6129_v11 }
 0xfe5   : > { %v6120_v63 = vpop.f32.mrf.mxu2 }
 0xfe6   : > { %v6121_v36 = vadd.f32 %v7574_v23, %v6120_v63  ;;  %v6130_v16 = vpop.f32.mrf.mxu3 }
 0xfe7   : > { %v6131_v0 = vadd.f32 %v7574_v23, %v6130_v16 }
 0xfe8   : > { %6144 = vst [vmem:[%s8377_s6 + $0x58] sm:$0xff] %v6121_v36  ;;  %v6098_v62 = vpop.f32.mrf.mxu0 }
 0xfe9   : > { %6148 = vst [vmem:[%s8377_s6 + $0x78] sm:$0xff] %v6131_v0  ;;  %v6099_v37 = vadd.f32 %v7574_v23, %v6098_v62 }
 0xfeb   : > { %6135 = vst [vmem:[%s8377_s6 + $0x10] sm:$0xff] %v6099_v37 }
 0xfef   : > { %v6108_v35 = vpop.f32.mrf.mxu1 }
 0xff0   : > { %v6109_v58 = vadd.f32 %v7574_v23, %v6108_v35  ;;  %v6100_v19 = vpop.f32.mrf.mxu0 }
 0xff1   : > { %v6101_v9 = vadd.f32 %v7574_v23, %v6100_v19 }
 0xff2   : > { %6139 = vst [vmem:[%s8377_s6 + $0x30] sm:$0xff] %v6109_v58 }
 0xff3   : > { %6136 = vst [vmem:[%s8377_s6 + $0x18] sm:$0xff] %v6101_v9 }
 0xff7   : > { %v6110_v8 = vpop.f32.mrf.mxu1 }
 0xff8   : > { %v6111_v53 = vadd.f32 %v7574_v23, %v6110_v8 }
 0xffa   : > { %6140 = vst [vmem:[%s8377_s6 + $0x38] sm:$0xff] %v6111_v53 }
 0xffb PF: > { %s11622_s0 = sld [smem:[#allocation29_spill]]  ;;  %s6162_s16 = sshll.u32 %s8377_s6, 4  ;;  %s6163_s16 = int_to_ptr.vmem [resolvable:$true] %s6162_s16 }
 0xffc   : > { %s11624_s23 = sld [smem:[#allocation77_spill]]  ;;  %s6150_s27 = scalar_lea.sflag [#allocation6], %s8312_s20 }
0x1001   : > { %s7027_s8 = sshll.u32 %s11622_s0, 7 }
0x1002   : > { %s11625_s25 = smov %s11624_s23  ;;  %s6161_s26 = scalar_lea.hbm %s11624_s23, %s7027_s8 }
0x1003   : > { %s6164_s10 = sshll.u32 %s6161_s26, 4  ;;  %s7867_s13 = scalar_lea.hbm %s11625_s25, 256  ;;  %s6165_s10 = int_to_ptr.hbm [resolvable:$true] %s6164_s10 }
0x1004   : > { %s7861_s9 = sshra.s32 %s6165_s10, 4  ;;  %s7862_s9 = int_to_ptr.hbm [resolvable:$true] %s7861_s9 }
0x1005   : > { %s7863_s12 = scalar_lea.hbm %s7862_s9, 128  ;;  %p7868_p12 = scmp.lt.s32.totalorder %s7862_s9, %s11625_s25 }
0x1006   : > { %p7864_p3 = scmp.ne.s32.totalorder %s7862_s9, %s7863_s12  ;;  %p7869_p13 = scmp.lt.s32.totalorder %s7867_s13, %s7863_s12 }
0x1008   : > { %p7865_p6 = pnand %p7864_p3, %p8256_p0  ;;  %p7870_p1 = por %p7869_p13, %p7868_p12 }
0x100a   : > { %p7866_p8 = pneg %p7865_p6 }
0x100c   : > { %p7871_p5 = pnand %p7870_p1, %p7866_p8 }
0x100e   : > { %7874 = shalt.err (!%p7871_p5)
}
0x100f   : > { %s8000_s20 = smov 128   ;;  %s8001_s6 = smov 8  }
0x1010   : > { %7089 = dma.vmem_to_hbm [thread:$0]  (%p8256_p0), %s6163_s16, 2048, %s6165_s10, %s6150_s27, %s8000_s20, %s8000_s20, %s8001_s6  }
0x1011 PF: > { %s11626_s19 = sld [smem:[#allocation31_spill]] }
0x1012   : > { %s11627_s4 = sld [smem:[#allocation26_spill]] }
0x1017   : > { %p7124_p2 = scmp.ge.s32.totalorder %s11626_s19, 2 }
0x1018   : > { %s6179_s22 = sand.u32 1, %s11627_s4  }
0x1019   : > { %p7118_p4 = pnand %p7124_p2, %p8268_p10  ;;  %s6180_s24 = scalar_lea.sflag [#allocation6], %s6179_s22 }
0x101b   : > { %p7119_p7 = pneg %p7118_p4 }
0x101d   : > { %7940 = dma.done.wait (%p7119_p7), %s6180_s24, 2048  }
0x101e   : > { %7942 = vsyncadd (%p7119_p7), %s6180_s24, 4294965248  ;;  %s40_s23 = sadd.s32 1, %s11626_s19   ;;  %s11629_s1 = sld [smem:[#allocation25_spill]] }
0x101f   : > { %p37_p9 = scmp.ge.s32.totalorder %s40_s23, 6   ;;  %s11630_s15 = sld [smem:[#allocation34_spill]] }
0x1020   : > { %s11631_s2 = sld [smem:[#allocation27_spill]]  ;;  %s11636_s29 = smov %s7949_s30 }
0x1021   : > { %s11632_s18 = sld [smem:[#allocation36_spill]]  ;;  %s11638_s16 = smov %s7961_s17 }
0x1022   : > { %s11633_s20 = sld [smem:[#allocation30_spill]]  ;;  %s11640_s19 = smov %s7977_s21 }
0x1023   : > { %s11634_s11 = sld [smem:[#allocation32_spill]] }
0x1024   : > { %s11635_s22 = sld [smem:[#allocation33_spill]]  ;;  %s11637_s30 = smov %s11629_s1 }
0x1025   :  { %39 = sbr.rel (!%p37_p9) target bundleno = 32 (0x20), region = 214 }
0x1026   : > { %s11639_s17 = smov %s11631_s2 }
0x1029   : > { %s11641_s21 = smov %s11634_s11 }
0x102a   :  { %6186 = vsyncpa [#allocation5], 1 }
0x102b   :  { %6188 = vsyncpa [#allocation5 + $0x1], 1 }
0x102c   :  { %6189 = vsyncpa [#allocation8], 1 }
0x102d   :  { %6191 = vsyncpa [#allocation8 + $0x1], 1 }
0x102e   :  { %6192 = vsyncpa [#allocation11], 1 }
0x102f   :  { %6194 = vsyncpa [#allocation11 + $0x1], 1 }
0x1030   :  { %6195 = vsyncpa [#allocation14], 1 }
0x1031   :  { %6197 = vsyncpa [#allocation14 + $0x1], 1 }
0x1032   :  { %6198 = vsyncpa [#allocation17], 1 }
0x1033   :  { %6199 = vsyncpa [#allocation6], 1 }
0x1034   :  { %6201 = vsyncpa [#allocation6 + $0x1], 1 }

</bundles_post_ra>
